<compile_context>
chip_gen: v6e
topology: v6e:2x2x1
jax: 0.10.0
libtpu: 0.0.40
codegen_flags: <defaults>
</compile_context>

<pallas_src>
import jax
import jax.numpy as jnp
from jax import lax
from jax.experimental import pallas as pl
from jax.experimental.pallas import tpu as pltpu


# ----------------------------- Pallas kernels ------------------------------ #

def conv3x3_relu_kernel(xp_ref, w_ref, b_ref, o_ref):
    """3x3 conv (stride 1, pad already applied) + bias + ReLU, one batch elem.

    xp_ref: (1, Cin, H+2, W+2)  padded NCHW input tile (W on the lane axis)
    w_ref : (Cout*Cin*9,)       f32 conv weights, OIHW row-major flat, in SMEM
    b_ref : (Cout,)             f32 bias, in SMEM
    o_ref : (1, Cout, H, W)     NCHW output tile
    """
    Cin = xp_ref.shape[1]
    Cout, H, W = o_ref.shape[1], o_ref.shape[2], o_ref.shape[3]

    # Unrolled VPU broadcast-FMAs over lane-dense (H, W) slabs.  Only one
    # accumulator slab is live at a time (keeps vreg pressure flat at 224x224).
    for co in range(Cout):
        acc = jnp.zeros((H, W), jnp.float32)
        for ci in range(Cin):
            for kh in range(3):
                for kw in range(3):
                    wv = w_ref[co * Cin * 9 + ci * 9 + kh * 3 + kw]  # SMEM scalar
                    acc = acc + wv * xp_ref[0, ci, kh:kh + H, kw:kw + W]
        o_ref[0, co] = jnp.maximum(acc + b_ref[co], 0.0)


def linear_relu_kernel(x_ref, w_ref, b_ref, o_ref, acc_ref):
    """y = relu(x @ W.T + b), K-tiled with a resident f32 accumulator.

    x_ref  : (N, tk)   K-slice of flattened features (K lane-dense)
    w_ref  : (O, tk)   K-slice of the torch-layout (O, K) weight (K lane-dense)
    b_ref  : (1, O)
    o_ref  : (N, O)
    acc_ref: (N, O)    f32 VMEM scratch accumulator
    """
    k = pl.program_id(0)

    @pl.when(k == 0)
    def _():
        acc_ref[...] = jnp.zeros_like(acc_ref)

    acc_ref[...] += lax.dot_general(
        x_ref[...], w_ref[...],
        dimension_numbers=(((1,), (1,)), ((), ())),   # contract on last axes
        preferred_element_type=jnp.float32)

    @pl.when(k == pl.num_programs(0) - 1)
    def _():
        o_ref[...] = jnp.maximum(acc_ref[...] + b_ref[...], 0.0)


# ------------------------------- wrappers ---------------------------------- #

def conv_block(x_nchw, conv_w, conv_b):
    """ConvBlock: Conv2d(3x3, stride 1, pad 1) + ReLU + Flatten (torch order)."""
    N, Cin, H, W = x_nchw.shape
    Cout = conv_w.shape[0]

    # padding=1.  TODO(synk): at 224x224 scale, fold the halo into a row-tiled
    # kernel (grid=(N, H//th)) to drop this extra HBM copy of the input.
    xp = jnp.pad(x_nchw, ((0, 0), (0, 0), (1, 1), (1, 1)))
    w_flat = conv_w.reshape(-1).astype(jnp.float32)     # OIHW row-major -> SMEM

    out_nchw = pl.pallas_call(
        conv3x3_relu_kernel,
        out_shape=jax.ShapeDtypeStruct((N, Cout, H, W), jnp.float32),
        grid=(N,),
        in_specs=[
            pl.BlockSpec((1, Cin, H + 2, W + 2), lambda n: (n, 0, 0, 0)),
            pl.BlockSpec(memory_space=pltpu.MemorySpace.SMEM),
            pl.BlockSpec(memory_space=pltpu.MemorySpace.SMEM),
        ],
        out_specs=pl.BlockSpec((1, Cout, H, W), lambda n: (n, 0, 0, 0)),
        compiler_params=pltpu.CompilerParams(
            dimension_semantics=("parallel",)),          # batch shards across TCs on v7x
    )(xp, w_flat, conv_b.astype(jnp.float32))

    # nn.Flatten on an NCHW conv output is channel-major -> free reshape.
    return out_nchw.reshape(N, Cout * H * W)


def fc_block(x, w_oi, b, *, tk=512):
    """FullyConnectedBlock: Linear + ReLU, streamed over the K dimension."""
    N, K = x.shape
    O = w_oi.shape[0]
    if K % tk != 0:          # static fallback for awkward K
        tk = K
    nk = K // tk

    return pl.pallas_call(
        linear_relu_kernel,
        out_shape=jax.ShapeDtypeStruct((N, O), jnp.float32),
        grid=(nk,),
        in_specs=[
            pl.BlockSpec((N, tk), lambda k: (0, k)),
            pl.BlockSpec((O, tk), lambda k: (0, k)),    # torch (O, K) layout, no transpose
            pl.BlockSpec((1, O), lambda k: (0, 0)),
        ],
        out_specs=pl.BlockSpec((N, O), lambda k: (0, 0)),
        scratch_shapes=[pltpu.VMEM((N, O), jnp.float32)],
        compiler_params=pltpu.CompilerParams(
            dimension_semantics=("arbitrary",)),         # K is a reduction axis
    )(x, w_oi, b.reshape(1, O))


@jax.jit
def two_block_model(x_nchw, conv_w, conv_b, fc_w, fc_b):
    feats = conv_block(x_nchw, conv_w, conv_b)
    return fc_block(feats, fc_w, fc_b)


# ------------------------------ reference ---------------------------------- #

def reference(x_nchw, conv_w, conv_b, fc_w, fc_b):
    y = lax.conv_general_dilated(
        x_nchw, conv_w, window_strides=(1, 1), padding=((1, 1), (1, 1)),
        dimension_numbers=("NCHW", "OIHW", "NCHW"))
    y = y + conv_b.reshape(1, -1, 1, 1)
    y = jnp.maximum(y, 0.0)
    y = y.reshape(y.shape[0], -1)
    y = y @ fc_w.T + fc_b
    return jnp.maximum(y, 0.0)


# --------------------------------- main ------------------------------------ #

if __name__ == "__main__":
    # Small shapes consistent with the module's forward.
    N, Cin, H, W = 2, 4, 16, 16
    Cout = 8
    out_size = 32
    fc_in = Cout * H * W  # scaled-down analogue of conv_out * 224 * 224

    key = jax.random.PRNGKey(0)
    k_x, k_cw, k_cb, k_fw, k_fb = jax.random.split(key, 5)

    x = jax.random.normal(k_x, (N, Cin, H, W), jnp.float32)
    conv_w = jax.random.normal(k_cw, (Cout, Cin, 3, 3), jnp.float32) * 0.1
    conv_b = jax.random.normal(k_cb, (Cout,), jnp.float32) * 0.1
    fc_w = jax.random.normal(k_fw, (out_size, fc_in), jnp.float32) * 0.02
    fc_b = jax.random.normal(k_fb, (out_size,), jnp.float32) * 0.02

    out = jax.block_until_ready(two_block_model(x, conv_w, conv_b, fc_w, fc_b))
    ref = reference(x, conv_w, conv_b, fc_w, fc_b)

    assert out.shape == (N, out_size), out.shape
    # Tolerance accounts for TPU default-precision MXU (bf16 passes) on the FC /
    # XLA conv path vs the kernel's exact-f32 VPU conv; layout or ordering bugs
    # would show up as O(1) errors and still be caught.
    assert jnp.allclose(out, ref, atol=1e-2, rtol=1e-2), "mismatch vs reference"

    print("KERNEL_OK")
</pallas_src>

<mosaic_0001>
module attributes {stable_mosaic.version = 11 : i64} {
  func.func @conv3x3_relu_kernel(%arg0: i32, %arg1: memref<1x4x18x18xf32, #tpu.memory_space<vmem>>, %arg2: memref<288xf32, #tpu.memory_space<smem>>, %arg3: memref<8xf32, #tpu.memory_space<smem>>, %arg4: memref<1x8x16x16xf32, #tpu.memory_space<vmem>>) attributes {dimension_semantics = [#tpu.dimension_semantics<parallel>], iteration_bounds = array<i64: 2>, scalar_prefetch = 0 : i64, scratch_operands = 0 : i64, tpu.core_type = #tpu.core_type<tc>, window_params = [{transform_indices = @transform_0, window_bounds = array<i64: 1, 4, 18, 18>}, {transform_indices = @transform_1, window_bounds = array<i64: 288>}, {transform_indices = @transform_2, window_bounds = array<i64: 8>}, {transform_indices = @transform_3, window_bounds = array<i64: 1, 8, 16, 16>}]} {
    %cst = arith.constant 0.000000e+00 : f32
    %0 = vector.broadcast %cst : f32 to vector<16x16xf32>
    %c0 = arith.constant 0 : index
    %1 = memref.load %arg2[%c0] : memref<288xf32, #tpu.memory_space<smem>>
    %c0_0 = arith.constant 0 : index
    %c0_1 = arith.constant 0 : index
    %c0_2 = arith.constant 0 : index
    %c0_3 = arith.constant 0 : index
    %2 = vector.load %arg1[%c0_0, %c0_1, %c0_2, %c0_3] : memref<1x4x18x18xf32, #tpu.memory_space<vmem>>, vector<1x1x16x16xf32>
    %3 = vector.shape_cast %2 : vector<1x1x16x16xf32> to vector<16x16xf32>
    %4 = vector.broadcast %1 : f32 to vector<16x16xf32>
    %5 = arith.mulf %4, %3 : vector<16x16xf32>
    %6 = arith.addf %0, %5 : vector<16x16xf32>
    %c1 = arith.constant 1 : index
    %7 = memref.load %arg2[%c1] : memref<288xf32, #tpu.memory_space<smem>>
    %c0_4 = arith.constant 0 : index
    %c0_5 = arith.constant 0 : index
    %c0_6 = arith.constant 0 : index
    %c1_7 = arith.constant 1 : index
    %8 = vector.load %arg1[%c0_4, %c0_5, %c0_6, %c1_7] : memref<1x4x18x18xf32, #tpu.memory_space<vmem>>, vector<1x1x16x16xf32>
    %9 = vector.shape_cast %8 : vector<1x1x16x16xf32> to vector<16x16xf32>
    %10 = vector.broadcast %7 : f32 to vector<16x16xf32>
    %11 = arith.mulf %10, %9 : vector<16x16xf32>
    %12 = arith.addf %6, %11 : vector<16x16xf32>
    %c2 = arith.constant 2 : index
    %13 = memref.load %arg2[%c2] : memref<288xf32, #tpu.memory_space<smem>>
    %c0_8 = arith.constant 0 : index
    %c0_9 = arith.constant 0 : index
    %c0_10 = arith.constant 0 : index
    %c2_11 = arith.constant 2 : index
    %14 = vector.load %arg1[%c0_8, %c0_9, %c0_10, %c2_11] : memref<1x4x18x18xf32, #tpu.memory_space<vmem>>, vector<1x1x16x16xf32>
    %15 = vector.shape_cast %14 : vector<1x1x16x16xf32> to vector<16x16xf32>
    %16 = vector.broadcast %13 : f32 to vector<16x16xf32>
    %17 = arith.mulf %16, %15 : vector<16x16xf32>
    %18 = arith.addf %12, %17 : vector<16x16xf32>
    %c3 = arith.constant 3 : index
    %19 = memref.load %arg2[%c3] : memref<288xf32, #tpu.memory_space<smem>>
    %c0_12 = arith.constant 0 : index
    %c0_13 = arith.constant 0 : index
    %c1_14 = arith.constant 1 : index
    %c0_15 = arith.constant 0 : index
    %20 = vector.load %arg1[%c0_12, %c0_13, %c1_14, %c0_15] : memref<1x4x18x18xf32, #tpu.memory_space<vmem>>, vector<1x1x16x16xf32>
    %21 = vector.shape_cast %20 : vector<1x1x16x16xf32> to vector<16x16xf32>
    %22 = vector.broadcast %19 : f32 to vector<16x16xf32>
    %23 = arith.mulf %22, %21 : vector<16x16xf32>
    %24 = arith.addf %18, %23 : vector<16x16xf32>
    %c4 = arith.constant 4 : index
    %25 = memref.load %arg2[%c4] : memref<288xf32, #tpu.memory_space<smem>>
    %c0_16 = arith.constant 0 : index
    %c0_17 = arith.constant 0 : index
    %c1_18 = arith.constant 1 : index
    %c1_19 = arith.constant 1 : index
    %26 = vector.load %arg1[%c0_16, %c0_17, %c1_18, %c1_19] : memref<1x4x18x18xf32, #tpu.memory_space<vmem>>, vector<1x1x16x16xf32>
    %27 = vector.shape_cast %26 : vector<1x1x16x16xf32> to vector<16x16xf32>
    %28 = vector.broadcast %25 : f32 to vector<16x16xf32>
    %29 = arith.mulf %28, %27 : vector<16x16xf32>
    %30 = arith.addf %24, %29 : vector<16x16xf32>
    %c5 = arith.constant 5 : index
    %31 = memref.load %arg2[%c5] : memref<288xf32, #tpu.memory_space<smem>>
    %c0_20 = arith.constant 0 : index
    %c0_21 = arith.constant 0 : index
    %c1_22 = arith.constant 1 : index
    %c2_23 = arith.constant 2 : index
    %32 = vector.load %arg1[%c0_20, %c0_21, %c1_22, %c2_23] : memref<1x4x18x18xf32, #tpu.memory_space<vmem>>, vector<1x1x16x16xf32>
    %33 = vector.shape_cast %32 : vector<1x1x16x16xf32> to vector<16x16xf32>
    %34 = vector.broadcast %31 : f32 to vector<16x16xf32>
    %35 = arith.mulf %34, %33 : vector<16x16xf32>
    %36 = arith.addf %30, %35 : vector<16x16xf32>
    %c6 = arith.constant 6 : index
    %37 = memref.load %arg2[%c6] : memref<288xf32, #tpu.memory_space<smem>>
    %c0_24 = arith.constant 0 : index
    %c0_25 = arith.constant 0 : index
    %c2_26 = arith.constant 2 : index
    %c0_27 = arith.constant 0 : index
    %38 = vector.load %arg1[%c0_24, %c0_25, %c2_26, %c0_27] : memref<1x4x18x18xf32, #tpu.memory_space<vmem>>, vector<1x1x16x16xf32>
    %39 = vector.shape_cast %38 : vector<1x1x16x16xf32> to vector<16x16xf32>
    %40 = vector.broadcast %37 : f32 to vector<16x16xf32>
    %41 = arith.mulf %40, %39 : vector<16x16xf32>
    %42 = arith.addf %36, %41 : vector<16x16xf32>
    %c7 = arith.constant 7 : index
    %43 = memref.load %arg2[%c7] : memref<288xf32, #tpu.memory_space<smem>>
    %c0_28 = arith.constant 0 : index
    %c0_29 = arith.constant 0 : index
    %c2_30 = arith.constant 2 : index
    %c1_31 = arith.constant 1 : index
    %44 = vector.load %arg1[%c0_28, %c0_29, %c2_30, %c1_31] : memref<1x4x18x18xf32, #tpu.memory_space<vmem>>, vector<1x1x16x16xf32>
    %45 = vector.shape_cast %44 : vector<1x1x16x16xf32> to vector<16x16xf32>
    %46 = vector.broadcast %43 : f32 to vector<16x16xf32>
    %47 = arith.mulf %46, %45 : vector<16x16xf32>
    %48 = arith.addf %42, %47 : vector<16x16xf32>
    %c8 = arith.constant 8 : index
    %49 = memref.load %arg2[%c8] : memref<288xf32, #tpu.memory_space<smem>>
    %c0_32 = arith.constant 0 : index
    %c0_33 = arith.constant 0 : index
    %c2_34 = arith.constant 2 : index
    %c2_35 = arith.constant 2 : index
    %50 = vector.load %arg1[%c0_32, %c0_33, %c2_34, %c2_35] : memref<1x4x18x18xf32, #tpu.memory_space<vmem>>, vector<1x1x16x16xf32>
    %51 = vector.shape_cast %50 : vector<1x1x16x16xf32> to vector<16x16xf32>
    %52 = vector.broadcast %49 : f32 to vector<16x16xf32>
    %53 = arith.mulf %52, %51 : vector<16x16xf32>
    %54 = arith.addf %48, %53 : vector<16x16xf32>
    %c9 = arith.constant 9 : index
    %55 = memref.load %arg2[%c9] : memref<288xf32, #tpu.memory_space<smem>>
    %c0_36 = arith.constant 0 : index
    %c1_37 = arith.constant 1 : index
    %c0_38 = arith.constant 0 : index
    %c0_39 = arith.constant 0 : index
    %56 = vector.load %arg1[%c0_36, %c1_37, %c0_38, %c0_39] : memref<1x4x18x18xf32, #tpu.memory_space<vmem>>, vector<1x1x16x16xf32>
    %57 = vector.shape_cast %56 : vector<1x1x16x16xf32> to vector<16x16xf32>
    %58 = vector.broadcast %55 : f32 to vector<16x16xf32>
    %59 = arith.mulf %58, %57 : vector<16x16xf32>
    %60 = arith.addf %54, %59 : vector<16x16xf32>
    %c10 = arith.constant 10 : index
    %61 = memref.load %arg2[%c10] : memref<288xf32, #tpu.memory_space<smem>>
    %c0_40 = arith.constant 0 : index
    %c1_41 = arith.constant 1 : index
    %c0_42 = arith.constant 0 : index
    %c1_43 = arith.constant 1 : index
    %62 = vector.load %arg1[%c0_40, %c1_41, %c0_42, %c1_43] : memref<1x4x18x18xf32, #tpu.memory_space<vmem>>, vector<1x1x16x16xf32>
    %63 = vector.shape_cast %62 : vector<1x1x16x16xf32> to vector<16x16xf32>
    %64 = vector.broadcast %61 : f32 to vector<16x16xf32>
    %65 = arith.mulf %64, %63 : vector<16x16xf32>
    %66 = arith.addf %60, %65 : vector<16x16xf32>
    %c11 = arith.constant 11 : index
    %67 = memref.load %arg2[%c11] : memref<288xf32, #tpu.memory_space<smem>>
    %c0_44 = arith.constant 0 : index
    %c1_45 = arith.constant 1 : index
    %c0_46 = arith.constant 0 : index
    %c2_47 = arith.constant 2 : index
    %68 = vector.load %arg1[%c0_44, %c1_45, %c0_46, %c2_47] : memref<1x4x18x18xf32, #tpu.memory_space<vmem>>, vector<1x1x16x16xf32>
    %69 = vector.shape_cast %68 : vector<1x1x16x16xf32> to vector<16x16xf32>
    %70 = vector.broadcast %67 : f32 to vector<16x16xf32>
    %71 = arith.mulf %70, %69 : vector<16x16xf32>
    %72 = arith.addf %66, %71 : vector<16x16xf32>
    %c12 = arith.constant 12 : index
    %73 = memref.load %arg2[%c12] : memref<288xf32, #tpu.memory_space<smem>>
    %c0_48 = arith.constant 0 : index
    %c1_49 = arith.constant 1 : index
    %c1_50 = arith.constant 1 : index
    %c0_51 = arith.constant 0 : index
    %74 = vector.load %arg1[%c0_48, %c1_49, %c1_50, %c0_51] : memref<1x4x18x18xf32, #tpu.memory_space<vmem>>, vector<1x1x16x16xf32>
    %75 = vector.shape_cast %74 : vector<1x1x16x16xf32> to vector<16x16xf32>
    %76 = vector.broadcast %73 : f32 to vector<16x16xf32>
    %77 = arith.mulf %76, %75 : vector<16x16xf32>
    %78 = arith.addf %72, %77 : vector<16x16xf32>
    %c13 = arith.constant 13 : index
    %79 = memref.load %arg2[%c13] : memref<288xf32, #tpu.memory_space<smem>>
    %c0_52 = arith.constant 0 : index
    %c1_53 = arith.constant 1 : index
    %c1_54 = arith.constant 1 : index
    %c1_55 = arith.constant 1 : index
    %80 = vector.load %arg1[%c0_52, %c1_53, %c1_54, %c1_55] : memref<1x4x18x18xf32, #tpu.memory_space<vmem>>, vector<1x1x16x16xf32>
    %81 = vector.shape_cast %80 : vector<1x1x16x16xf32> to vector<16x16xf32>
    %82 = vector.broadcast %79 : f32 to vector<16x16xf32>
    %83 = arith.mulf %82, %81 : vector<16x16xf32>
    %84 = arith.addf %78, %83 : vector<16x16xf32>
    %c14 = arith.constant 14 : index
    %85 = memref.load %arg2[%c14] : memref<288xf32, #tpu.memory_space<smem>>
    %c0_56 = arith.constant 0 : index
    %c1_57 = arith.constant 1 : index
    %c1_58 = arith.constant 1 : index
    %c2_59 = arith.constant 2 : index
    %86 = vector.load %arg1[%c0_56, %c1_57, %c1_58, %c2_59] : memref<1x4x18x18xf32, #tpu.memory_space<vmem>>, vector<1x1x16x16xf32>
    %87 = vector.shape_cast %86 : vector<1x1x16x16xf32> to vector<16x16xf32>
    %88 = vector.broadcast %85 : f32 to vector<16x16xf32>
    %89 = arith.mulf %88, %87 : vector<16x16xf32>
    %90 = arith.addf %84, %89 : vector<16x16xf32>
    %c15 = arith.constant 15 : index
    %91 = memref.load %arg2[%c15] : memref<288xf32, #tpu.memory_space<smem>>
    %c0_60 = arith.constant 0 : index
    %c1_61 = arith.constant 1 : index
    %c2_62 = arith.constant 2 : index
    %c0_63 = arith.constant 0 : index
    %92 = vector.load %arg1[%c0_60, %c1_61, %c2_62, %c0_63] : memref<1x4x18x18xf32, #tpu.memory_space<vmem>>, vector<1x1x16x16xf32>
    %93 = vector.shape_cast %92 : vector<1x1x16x16xf32> to vector<16x16xf32>
    %94 = vector.broadcast %91 : f32 to vector<16x16xf32>
    %95 = arith.mulf %94, %93 : vector<16x16xf32>
    %96 = arith.addf %90, %95 : vector<16x16xf32>
    %c16 = arith.constant 16 : index
    %97 = memref.load %arg2[%c16] : memref<288xf32, #tpu.memory_space<smem>>
    %c0_64 = arith.constant 0 : index
    %c1_65 = arith.constant 1 : index
    %c2_66 = arith.constant 2 : index
    %c1_67 = arith.constant 1 : index
    %98 = vector.load %arg1[%c0_64, %c1_65, %c2_66, %c1_67] : memref<1x4x18x18xf32, #tpu.memory_space<vmem>>, vector<1x1x16x16xf32>
    %99 = vector.shape_cast %98 : vector<1x1x16x16xf32> to vector<16x16xf32>
    %100 = vector.broadcast %97 : f32 to vector<16x16xf32>
    %101 = arith.mulf %100, %99 : vector<16x16xf32>
    %102 = arith.addf %96, %101 : vector<16x16xf32>
    %c17 = arith.constant 17 : index
    %103 = memref.load %arg2[%c17] : memref<288xf32, #tpu.memory_space<smem>>
    %c0_68 = arith.constant 0 : index
    %c1_69 = arith.constant 1 : index
    %c2_70 = arith.constant 2 : index
    %c2_71 = arith.constant 2 : index
    %104 = vector.load %arg1[%c0_68, %c1_69, %c2_70, %c2_71] : memref<1x4x18x18xf32, #tpu.memory_space<vmem>>, vector<1x1x16x16xf32>
    %105 = vector.shape_cast %104 : vector<1x1x16x16xf32> to vector<16x16xf32>
    %106 = vector.broadcast %103 : f32 to vector<16x16xf32>
    %107 = arith.mulf %106, %105 : vector<16x16xf32>
    %108 = arith.addf %102, %107 : vector<16x16xf32>
    %c18 = arith.constant 18 : index
    %109 = memref.load %arg2[%c18] : memref<288xf32, #tpu.memory_space<smem>>
    %c0_72 = arith.constant 0 : index
    %c2_73 = arith.constant 2 : index
    %c0_74 = arith.constant 0 : index
    %c0_75 = arith.constant 0 : index
    %110 = vector.load %arg1[%c0_72, %c2_73, %c0_74, %c0_75] : memref<1x4x18x18xf32, #tpu.memory_space<vmem>>, vector<1x1x16x16xf32>
    %111 = vector.shape_cast %110 : vector<1x1x16x16xf32> to vector<16x16xf32>
    %112 = vector.broadcast %109 : f32 to vector<16x16xf32>
    %113 = arith.mulf %112, %111 : vector<16x16xf32>
    %114 = arith.addf %108, %113 : vector<16x16xf32>
    %c19 = arith.constant 19 : index
    %115 = memref.load %arg2[%c19] : memref<288xf32, #tpu.memory_space<smem>>
    %c0_76 = arith.constant 0 : index
    %c2_77 = arith.constant 2 : index
    %c0_78 = arith.constant 0 : index
    %c1_79 = arith.constant 1 : index
    %116 = vector.load %arg1[%c0_76, %c2_77, %c0_78, %c1_79] : memref<1x4x18x18xf32, #tpu.memory_space<vmem>>, vector<1x1x16x16xf32>
    %117 = vector.shape_cast %116 : vector<1x1x16x16xf32> to vector<16x16xf32>
    %118 = vector.broadcast %115 : f32 to vector<16x16xf32>
    %119 = arith.mulf %118, %117 : vector<16x16xf32>
    %120 = arith.addf %114, %119 : vector<16x16xf32>
    %c20 = arith.constant 20 : index
    %121 = memref.load %arg2[%c20] : memref<288xf32, #tpu.memory_space<smem>>
    %c0_80 = arith.constant 0 : index
    %c2_81 = arith.constant 2 : index
    %c0_82 = arith.constant 0 : index
    %c2_83 = arith.constant 2 : index
    %122 = vector.load %arg1[%c0_80, %c2_81, %c0_82, %c2_83] : memref<1x4x18x18xf32, #tpu.memory_space<vmem>>, vector<1x1x16x16xf32>
    %123 = vector.shape_cast %122 : vector<1x1x16x16xf32> to vector<16x16xf32>
    %124 = vector.broadcast %121 : f32 to vector<16x16xf32>
    %125 = arith.mulf %124, %123 : vector<16x16xf32>
    %126 = arith.addf %120, %125 : vector<16x16xf32>
    %c21 = arith.constant 21 : index
    %127 = memref.load %arg2[%c21] : memref<288xf32, #tpu.memory_space<smem>>
    %c0_84 = arith.constant 0 : index
    %c2_85 = arith.constant 2 : index
    %c1_86 = arith.constant 1 : index
    %c0_87 = arith.constant 0 : index
    %128 = vector.load %arg1[%c0_84, %c2_85, %c1_86, %c0_87] : memref<1x4x18x18xf32, #tpu.memory_space<vmem>>, vector<1x1x16x16xf32>
    %129 = vector.shape_cast %128 : vector<1x1x16x16xf32> to vector<16x16xf32>
    %130 = vector.broadcast %127 : f32 to vector<16x16xf32>
    %131 = arith.mulf %130, %129 : vector<16x16xf32>
    %132 = arith.addf %126, %131 : vector<16x16xf32>
    %c22 = arith.constant 22 : index
    %133 = memref.load %arg2[%c22] : memref<288xf32, #tpu.memory_space<smem>>
    %c0_88 = arith.constant 0 : index
    %c2_89 = arith.constant 2 : index
    %c1_90 = arith.constant 1 : index
    %c1_91 = arith.constant 1 : index
    %134 = vector.load %arg1[%c0_88, %c2_89, %c1_90, %c1_91] : memref<1x4x18x18xf32, #tpu.memory_space<vmem>>, vector<1x1x16x16xf32>
    %135 = vector.shape_cast %134 : vector<1x1x16x16xf32> to vector<16x16xf32>
    %136 = vector.broadcast %133 : f32 to vector<16x16xf32>
    %137 = arith.mulf %136, %135 : vector<16x16xf32>
    %138 = arith.addf %132, %137 : vector<16x16xf32>
    %c23 = arith.constant 23 : index
    %139 = memref.load %arg2[%c23] : memref<288xf32, #tpu.memory_space<smem>>
    %c0_92 = arith.constant 0 : index
    %c2_93 = arith.constant 2 : index
    %c1_94 = arith.constant 1 : index
    %c2_95 = arith.constant 2 : index
    %140 = vector.load %arg1[%c0_92, %c2_93, %c1_94, %c2_95] : memref<1x4x18x18xf32, #tpu.memory_space<vmem>>, vector<1x1x16x16xf32>
    %141 = vector.shape_cast %140 : vector<1x1x16x16xf32> to vector<16x16xf32>
    %142 = vector.broadcast %139 : f32 to vector<16x16xf32>
    %143 = arith.mulf %142, %141 : vector<16x16xf32>
    %144 = arith.addf %138, %143 : vector<16x16xf32>
    %c24 = arith.constant 24 : index
    %145 = memref.load %arg2[%c24] : memref<288xf32, #tpu.memory_space<smem>>
    %c0_96 = arith.constant 0 : index
    %c2_97 = arith.constant 2 : index
    %c2_98 = arith.constant 2 : index
    %c0_99 = arith.constant 0 : index
    %146 = vector.load %arg1[%c0_96, %c2_97, %c2_98, %c0_99] : memref<1x4x18x18xf32, #tpu.memory_space<vmem>>, vector<1x1x16x16xf32>
    %147 = vector.shape_cast %146 : vector<1x1x16x16xf32> to vector<16x16xf32>
    %148 = vector.broadcast %145 : f32 to vector<16x16xf32>
    %149 = arith.mulf %148, %147 : vector<16x16xf32>
    %150 = arith.addf %144, %149 : vector<16x16xf32>
    %c25 = arith.constant 25 : index
    %151 = memref.load %arg2[%c25] : memref<288xf32, #tpu.memory_space<smem>>
    %c0_100 = arith.constant 0 : index
    %c2_101 = arith.constant 2 : index
    %c2_102 = arith.constant 2 : index
    %c1_103 = arith.constant 1 : index
    %152 = vector.load %arg1[%c0_100, %c2_101, %c2_102, %c1_103] : memref<1x4x18x18xf32, #tpu.memory_space<vmem>>, vector<1x1x16x16xf32>
    %153 = vector.shape_cast %152 : vector<1x1x16x16xf32> to vector<16x16xf32>
    %154 = vector.broadcast %151 : f32 to vector<16x16xf32>
    %155 = arith.mulf %154, %153 : vector<16x16xf32>
    %156 = arith.addf %150, %155 : vector<16x16xf32>
    %c26 = arith.constant 26 : index
    %157 = memref.load %arg2[%c26] : memref<288xf32, #tpu.memory_space<smem>>
    %c0_104 = arith.constant 0 : index
    %c2_105 = arith.constant 2 : index
    %c2_106 = arith.constant 2 : index
    %c2_107 = arith.constant 2 : index
    %158 = vector.load %arg1[%c0_104, %c2_105, %c2_106, %c2_107] : memref<1x4x18x18xf32, #tpu.memory_space<vmem>>, vector<1x1x16x16xf32>
    %159 = vector.shape_cast %158 : vector<1x1x16x16xf32> to vector<16x16xf32>
    %160 = vector.broadcast %157 : f32 to vector<16x16xf32>
    %161 = arith.mulf %160, %159 : vector<16x16xf32>
    %162 = arith.addf %156, %161 : vector<16x16xf32>
    %c27 = arith.constant 27 : index
    %163 = memref.load %arg2[%c27] : memref<288xf32, #tpu.memory_space<smem>>
    %c0_108 = arith.constant 0 : index
    %c3_109 = arith.constant 3 : index
    %c0_110 = arith.constant 0 : index
    %c0_111 = arith.constant 0 : index
    %164 = vector.load %arg1[%c0_108, %c3_109, %c0_110, %c0_111] : memref<1x4x18x18xf32, #tpu.memory_space<vmem>>, vector<1x1x16x16xf32>
    %165 = vector.shape_cast %164 : vector<1x1x16x16xf32> to vector<16x16xf32>
    %166 = vector.broadcast %163 : f32 to vector<16x16xf32>
    %167 = arith.mulf %166, %165 : vector<16x16xf32>
    %168 = arith.addf %162, %167 : vector<16x16xf32>
    %c28 = arith.constant 28 : index
    %169 = memref.load %arg2[%c28] : memref<288xf32, #tpu.memory_space<smem>>
    %c0_112 = arith.constant 0 : index
    %c3_113 = arith.constant 3 : index
    %c0_114 = arith.constant 0 : index
    %c1_115 = arith.constant 1 : index
    %170 = vector.load %arg1[%c0_112, %c3_113, %c0_114, %c1_115] : memref<1x4x18x18xf32, #tpu.memory_space<vmem>>, vector<1x1x16x16xf32>
    %171 = vector.shape_cast %170 : vector<1x1x16x16xf32> to vector<16x16xf32>
    %172 = vector.broadcast %169 : f32 to vector<16x16xf32>
    %173 = arith.mulf %172, %171 : vector<16x16xf32>
    %174 = arith.addf %168, %173 : vector<16x16xf32>
    %c29 = arith.constant 29 : index
    %175 = memref.load %arg2[%c29] : memref<288xf32, #tpu.memory_space<smem>>
    %c0_116 = arith.constant 0 : index
    %c3_117 = arith.constant 3 : index
    %c0_118 = arith.constant 0 : index
    %c2_119 = arith.constant 2 : index
    %176 = vector.load %arg1[%c0_116, %c3_117, %c0_118, %c2_119] : memref<1x4x18x18xf32, #tpu.memory_space<vmem>>, vector<1x1x16x16xf32>
    %177 = vector.shape_cast %176 : vector<1x1x16x16xf32> to vector<16x16xf32>
    %178 = vector.broadcast %175 : f32 to vector<16x16xf32>
    %179 = arith.mulf %178, %177 : vector<16x16xf32>
    %180 = arith.addf %174, %179 : vector<16x16xf32>
    %c30 = arith.constant 30 : index
    %181 = memref.load %arg2[%c30] : memref<288xf32, #tpu.memory_space<smem>>
    %c0_120 = arith.constant 0 : index
    %c3_121 = arith.constant 3 : index
    %c1_122 = arith.constant 1 : index
    %c0_123 = arith.constant 0 : index
    %182 = vector.load %arg1[%c0_120, %c3_121, %c1_122, %c0_123] : memref<1x4x18x18xf32, #tpu.memory_space<vmem>>, vector<1x1x16x16xf32>
    %183 = vector.shape_cast %182 : vector<1x1x16x16xf32> to vector<16x16xf32>
    %184 = vector.broadcast %181 : f32 to vector<16x16xf32>
    %185 = arith.mulf %184, %183 : vector<16x16xf32>
    %186 = arith.addf %180, %185 : vector<16x16xf32>
    %c31 = arith.constant 31 : index
    %187 = memref.load %arg2[%c31] : memref<288xf32, #tpu.memory_space<smem>>
    %c0_124 = arith.constant 0 : index
    %c3_125 = arith.constant 3 : index
    %c1_126 = arith.constant 1 : index
    %c1_127 = arith.constant 1 : index
    %188 = vector.load %arg1[%c0_124, %c3_125, %c1_126, %c1_127] : memref<1x4x18x18xf32, #tpu.memory_space<vmem>>, vector<1x1x16x16xf32>
    %189 = vector.shape_cast %188 : vector<1x1x16x16xf32> to vector<16x16xf32>
    %190 = vector.broadcast %187 : f32 to vector<16x16xf32>
    %191 = arith.mulf %190, %189 : vector<16x16xf32>
    %192 = arith.addf %186, %191 : vector<16x16xf32>
    %c32 = arith.constant 32 : index
    %193 = memref.load %arg2[%c32] : memref<288xf32, #tpu.memory_space<smem>>
    %c0_128 = arith.constant 0 : index
    %c3_129 = arith.constant 3 : index
    %c1_130 = arith.constant 1 : index
    %c2_131 = arith.constant 2 : index
    %194 = vector.load %arg1[%c0_128, %c3_129, %c1_130, %c2_131] : memref<1x4x18x18xf32, #tpu.memory_space<vmem>>, vector<1x1x16x16xf32>
    %195 = vector.shape_cast %194 : vector<1x1x16x16xf32> to vector<16x16xf32>
    %196 = vector.broadcast %193 : f32 to vector<16x16xf32>
    %197 = arith.mulf %196, %195 : vector<16x16xf32>
    %198 = arith.addf %192, %197 : vector<16x16xf32>
    %c33 = arith.constant 33 : index
    %199 = memref.load %arg2[%c33] : memref<288xf32, #tpu.memory_space<smem>>
    %c0_132 = arith.constant 0 : index
    %c3_133 = arith.constant 3 : index
    %c2_134 = arith.constant 2 : index
    %c0_135 = arith.constant 0 : index
    %200 = vector.load %arg1[%c0_132, %c3_133, %c2_134, %c0_135] : memref<1x4x18x18xf32, #tpu.memory_space<vmem>>, vector<1x1x16x16xf32>
    %201 = vector.shape_cast %200 : vector<1x1x16x16xf32> to vector<16x16xf32>
    %202 = vector.broadcast %199 : f32 to vector<16x16xf32>
    %203 = arith.mulf %202, %201 : vector<16x16xf32>
    %204 = arith.addf %198, %203 : vector<16x16xf32>
    %c34 = arith.constant 34 : index
    %205 = memref.load %arg2[%c34] : memref<288xf32, #tpu.memory_space<smem>>
    %c0_136 = arith.constant 0 : index
    %c3_137 = arith.constant 3 : index
    %c2_138 = arith.constant 2 : index
    %c1_139 = arith.constant 1 : index
    %206 = vector.load %arg1[%c0_136, %c3_137, %c2_138, %c1_139] : memref<1x4x18x18xf32, #tpu.memory_space<vmem>>, vector<1x1x16x16xf32>
    %207 = vector.shape_cast %206 : vector<1x1x16x16xf32> to vector<16x16xf32>
    %208 = vector.broadcast %205 : f32 to vector<16x16xf32>
    %209 = arith.mulf %208, %207 : vector<16x16xf32>
    %210 = arith.addf %204, %209 : vector<16x16xf32>
    %c35 = arith.constant 35 : index
    %211 = memref.load %arg2[%c35] : memref<288xf32, #tpu.memory_space<smem>>
    %c0_140 = arith.constant 0 : index
    %c3_141 = arith.constant 3 : index
    %c2_142 = arith.constant 2 : index
    %c2_143 = arith.constant 2 : index
    %212 = vector.load %arg1[%c0_140, %c3_141, %c2_142, %c2_143] : memref<1x4x18x18xf32, #tpu.memory_space<vmem>>, vector<1x1x16x16xf32>
    %213 = vector.shape_cast %212 : vector<1x1x16x16xf32> to vector<16x16xf32>
    %214 = vector.broadcast %211 : f32 to vector<16x16xf32>
    %215 = arith.mulf %214, %213 : vector<16x16xf32>
    %216 = arith.addf %210, %215 : vector<16x16xf32>
    %c0_144 = arith.constant 0 : index
    %217 = memref.load %arg3[%c0_144] : memref<8xf32, #tpu.memory_space<smem>>
    %218 = vector.broadcast %217 : f32 to vector<16x16xf32>
    %219 = arith.addf %216, %218 : vector<16x16xf32>
    %cst_145 = arith.constant 0.000000e+00 : f32
    %220 = vector.broadcast %cst_145 : f32 to vector<16x16xf32>
    %221 = arith.maximumf %219, %220 : vector<16x16xf32>
    %c0_146 = arith.constant 0 : index
    %c0_147 = arith.constant 0 : index
    %c0_148 = arith.constant 0 : index
    %c0_149 = arith.constant 0 : index
    %222 = vector.load %arg4[%c0_146, %c0_147, %c0_148, %c0_149] : memref<1x8x16x16xf32, #tpu.memory_space<vmem>>, vector<1x1x16x16xf32>
    %223 = vector.shape_cast %222 : vector<1x1x16x16xf32> to vector<16x16xf32>
    %224 = vector.shape_cast %221 : vector<16x16xf32> to vector<1x1x16x16xf32>
    tpu.vector_store %arg4[%c0_146, %c0_147, %c0_148, %c0_149], %224 {strides = array<i32>} : memref<1x8x16x16xf32, #tpu.memory_space<vmem>>, vector<1x1x16x16xf32>,
    %cst_150 = arith.constant 0.000000e+00 : f32
    %225 = vector.broadcast %cst_150 : f32 to vector<16x16xf32>
    %c36 = arith.constant 36 : index
    %226 = memref.load %arg2[%c36] : memref<288xf32, #tpu.memory_space<smem>>
    %c0_151 = arith.constant 0 : index
    %c0_152 = arith.constant 0 : index
    %c0_153 = arith.constant 0 : index
    %c0_154 = arith.constant 0 : index
    %227 = vector.load %arg1[%c0_151, %c0_152, %c0_153, %c0_154] : memref<1x4x18x18xf32, #tpu.memory_space<vmem>>, vector<1x1x16x16xf32>
    %228 = vector.shape_cast %227 : vector<1x1x16x16xf32> to vector<16x16xf32>
    %229 = vector.broadcast %226 : f32 to vector<16x16xf32>
    %230 = arith.mulf %229, %228 : vector<16x16xf32>
    %231 = arith.addf %225, %230 : vector<16x16xf32>
    %c37 = arith.constant 37 : index
    %232 = memref.load %arg2[%c37] : memref<288xf32, #tpu.memory_space<smem>>
    %c0_155 = arith.constant 0 : index
    %c0_156 = arith.constant 0 : index
    %c0_157 = arith.constant 0 : index
    %c1_158 = arith.constant 1 : index
    %233 = vector.load %arg1[%c0_155, %c0_156, %c0_157, %c1_158] : memref<1x4x18x18xf32, #tpu.memory_space<vmem>>, vector<1x1x16x16xf32>
    %234 = vector.shape_cast %233 : vector<1x1x16x16xf32> to vector<16x16xf32>
    %235 = vector.broadcast %232 : f32 to vector<16x16xf32>
    %236 = arith.mulf %235, %234 : vector<16x16xf32>
    %237 = arith.addf %231, %236 : vector<16x16xf32>
    %c38 = arith.constant 38 : index
    %238 = memref.load %arg2[%c38] : memref<288xf32, #tpu.memory_space<smem>>
    %c0_159 = arith.constant 0 : index
    %c0_160 = arith.constant 0 : index
    %c0_161 = arith.constant 0 : index
    %c2_162 = arith.constant 2 : index
    %239 = vector.load %arg1[%c0_159, %c0_160, %c0_161, %c2_162] : memref<1x4x18x18xf32, #tpu.memory_space<vmem>>, vector<1x1x16x16xf32>
    %240 = vector.shape_cast %239 : vector<1x1x16x16xf32> to vector<16x16xf32>
    %241 = vector.broadcast %238 : f32 to vector<16x16xf32>
    %242 = arith.mulf %241, %240 : vector<16x16xf32>
    %243 = arith.addf %237, %242 : vector<16x16xf32>
    %c39 = arith.constant 39 : index
    %244 = memref.load %arg2[%c39] : memref<288xf32, #tpu.memory_space<smem>>
    %c0_163 = arith.constant 0 : index
    %c0_164 = arith.constant 0 : index
    %c1_165 = arith.constant 1 : index
    %c0_166 = arith.constant 0 : index
    %245 = vector.load %arg1[%c0_163, %c0_164, %c1_165, %c0_166] : memref<1x4x18x18xf32, #tpu.memory_space<vmem>>, vector<1x1x16x16xf32>
    %246 = vector.shape_cast %245 : vector<1x1x16x16xf32> to vector<16x16xf32>
    %247 = vector.broadcast %244 : f32 to vector<16x16xf32>
    %248 = arith.mulf %247, %246 : vector<16x16xf32>
    %249 = arith.addf %243, %248 : vector<16x16xf32>
    %c40 = arith.constant 40 : index
    %250 = memref.load %arg2[%c40] : memref<288xf32, #tpu.memory_space<smem>>
    %c0_167 = arith.constant 0 : index
    %c0_168 = arith.constant 0 : index
    %c1_169 = arith.constant 1 : index
    %c1_170 = arith.constant 1 : index
    %251 = vector.load %arg1[%c0_167, %c0_168, %c1_169, %c1_170] : memref<1x4x18x18xf32, #tpu.memory_space<vmem>>, vector<1x1x16x16xf32>
    %252 = vector.shape_cast %251 : vector<1x1x16x16xf32> to vector<16x16xf32>
    %253 = vector.broadcast %250 : f32 to vector<16x16xf32>
    %254 = arith.mulf %253, %252 : vector<16x16xf32>
    %255 = arith.addf %249, %254 : vector<16x16xf32>
    %c41 = arith.constant 41 : index
    %256 = memref.load %arg2[%c41] : memref<288xf32, #tpu.memory_space<smem>>
    %c0_171 = arith.constant 0 : index
    %c0_172 = arith.constant 0 : index
    %c1_173 = arith.constant 1 : index
    %c2_174 = arith.constant 2 : index
    %257 = vector.load %arg1[%c0_171, %c0_172, %c1_173, %c2_174] : memref<1x4x18x18xf32, #tpu.memory_space<vmem>>, vector<1x1x16x16xf32>
    %258 = vector.shape_cast %257 : vector<1x1x16x16xf32> to vector<16x16xf32>
    %259 = vector.broadcast %256 : f32 to vector<16x16xf32>
    %260 = arith.mulf %259, %258 : vector<16x16xf32>
    %261 = arith.addf %255, %260 : vector<16x16xf32>
    %c42 = arith.constant 42 : index
    %262 = memref.load %arg2[%c42] : memref<288xf32, #tpu.memory_space<smem>>
    %c0_175 = arith.constant 0 : index
    %c0_176 = arith.constant 0 : index
    %c2_177 = arith.constant 2 : index
    %c0_178 = arith.constant 0 : index
    %263 = vector.load %arg1[%c0_175, %c0_176, %c2_177, %c0_178] : memref<1x4x18x18xf32, #tpu.memory_space<vmem>>, vector<1x1x16x16xf32>
    %264 = vector.shape_cast %263 : vector<1x1x16x16xf32> to vector<16x16xf32>
    %265 = vector.broadcast %262 : f32 to vector<16x16xf32>
    %266 = arith.mulf %265, %264 : vector<16x16xf32>
    %267 = arith.addf %261, %266 : vector<16x16xf32>
    %c43 = arith.constant 43 : index
    %268 = memref.load %arg2[%c43] : memref<288xf32, #tpu.memory_space<smem>>
    %c0_179 = arith.constant 0 : index
    %c0_180 = arith.constant 0 : index
    %c2_181 = arith.constant 2 : index
    %c1_182 = arith.constant 1 : index
    %269 = vector.load %arg1[%c0_179, %c0_180, %c2_181, %c1_182] : memref<1x4x18x18xf32, #tpu.memory_space<vmem>>, vector<1x1x16x16xf32>
    %270 = vector.shape_cast %269 : vector<1x1x16x16xf32> to vector<16x16xf32>
    %271 = vector.broadcast %268 : f32 to vector<16x16xf32>
    %272 = arith.mulf %271, %270 : vector<16x16xf32>
    %273 = arith.addf %267, %272 : vector<16x16xf32>
    %c44 = arith.constant 44 : index
    %274 = memref.load %arg2[%c44] : memref<288xf32, #tpu.memory_space<smem>>
    %c0_183 = arith.constant 0 : index
    %c0_184 = arith.constant 0 : index
    %c2_185 = arith.constant 2 : index
    %c2_186 = arith.constant 2 : index
    %275 = vector.load %arg1[%c0_183, %c0_184, %c2_185, %c2_186] : memref<1x4x18x18xf32, #tpu.memory_space<vmem>>, vector<1x1x16x16xf32>
    %276 = vector.shape_cast %275 : vector<1x1x16x16xf32> to vector<16x16xf32>
    %277 = vector.broadcast %274 : f32 to vector<16x16xf32>
    %278 = arith.mulf %277, %276 : vector<16x16xf32>
    %279 = arith.addf %273, %278 : vector<16x16xf32>
    %c45 = arith.constant 45 : index
    %280 = memref.load %arg2[%c45] : memref<288xf32, #tpu.memory_space<smem>>
    %c0_187 = arith.constant 0 : index
    %c1_188 = arith.constant 1 : index
    %c0_189 = arith.constant 0 : index
    %c0_190 = arith.constant 0 : index
    %281 = vector.load %arg1[%c0_187, %c1_188, %c0_189, %c0_190] : memref<1x4x18x18xf32, #tpu.memory_space<vmem>>, vector<1x1x16x16xf32>
    %282 = vector.shape_cast %281 : vector<1x1x16x16xf32> to vector<16x16xf32>
    %283 = vector.broadcast %280 : f32 to vector<16x16xf32>
    %284 = arith.mulf %283, %282 : vector<16x16xf32>
    %285 = arith.addf %279, %284 : vector<16x16xf32>
    %c46 = arith.constant 46 : index
    %286 = memref.load %arg2[%c46] : memref<288xf32, #tpu.memory_space<smem>>
    %c0_191 = arith.constant 0 : index
    %c1_192 = arith.constant 1 : index
    %c0_193 = arith.constant 0 : index
    %c1_194 = arith.constant 1 : index
    %287 = vector.load %arg1[%c0_191, %c1_192, %c0_193, %c1_194] : memref<1x4x18x18xf32, #tpu.memory_space<vmem>>, vector<1x1x16x16xf32>
    %288 = vector.shape_cast %287 : vector<1x1x16x16xf32> to vector<16x16xf32>
    %289 = vector.broadcast %286 : f32 to vector<16x16xf32>
    %290 = arith.mulf %289, %288 : vector<16x16xf32>
    %291 = arith.addf %285, %290 : vector<16x16xf32>
    %c47 = arith.constant 47 : index
    %292 = memref.load %arg2[%c47] : memref<288xf32, #tpu.memory_space<smem>>
    %c0_195 = arith.constant 0 : index
    %c1_196 = arith.constant 1 : index
    %c0_197 = arith.constant 0 : index
    %c2_198 = arith.constant 2 : index
    %293 = vector.load %arg1[%c0_195, %c1_196, %c0_197, %c2_198] : memref<1x4x18x18xf32, #tpu.memory_space<vmem>>, vector<1x1x16x16xf32>
    %294 = vector.shape_cast %293 : vector<1x1x16x16xf32> to vector<16x16xf32>
    %295 = vector.broadcast %292 : f32 to vector<16x16xf32>
    %296 = arith.mulf %295, %294 : vector<16x16xf32>
    %297 = arith.addf %291, %296 : vector<16x16xf32>
    %c48 = arith.constant 48 : index
    %298 = memref.load %arg2[%c48] : memref<288xf32, #tpu.memory_space<smem>>
    %c0_199 = arith.constant 0 : index
    %c1_200 = arith.constant 1 : index
    %c1_201 = arith.constant 1 : index
    %c0_202 = arith.constant 0 : index
    %299 = vector.load %arg1[%c0_199, %c1_200, %c1_201, %c0_202] : memref<1x4x18x18xf32, #tpu.memory_space<vmem>>, vector<1x1x16x16xf32>
    %300 = vector.shape_cast %299 : vector<1x1x16x16xf32> to vector<16x16xf32>
    %301 = vector.broadcast %298 : f32 to vector<16x16xf32>
    %302 = arith.mulf %301, %300 : vector<16x16xf32>
    %303 = arith.addf %297, %302 : vector<16x16xf32>
    %c49 = arith.constant 49 : index
    %304 = memref.load %arg2[%c49] : memref<288xf32, #tpu.memory_space<smem>>
    %c0_203 = arith.constant 0 : index
    %c1_204 = arith.constant 1 : index
    %c1_205 = arith.constant 1 : index
    %c1_206 = arith.constant 1 : index
    %305 = vector.load %arg1[%c0_203, %c1_204, %c1_205, %c1_206] : memref<1x4x18x18xf32, #tpu.memory_space<vmem>>, vector<1x1x16x16xf32>
    %306 = vector.shape_cast %305 : vector<1x1x16x16xf32> to vector<16x16xf32>
    %307 = vector.broadcast %304 : f32 to vector<16x16xf32>
    %308 = arith.mulf %307, %306 : vector<16x16xf32>
    %309 = arith.addf %303, %308 : vector<16x16xf32>
    %c50 = arith.constant 50 : index
    %310 = memref.load %arg2[%c50] : memref<288xf32, #tpu.memory_space<smem>>
    %c0_207 = arith.constant 0 : index
    %c1_208 = arith.constant 1 : index
    %c1_209 = arith.constant 1 : index
    %c2_210 = arith.constant 2 : index
    %311 = vector.load %arg1[%c0_207, %c1_208, %c1_209, %c2_210] : memref<1x4x18x18xf32, #tpu.memory_space<vmem>>, vector<1x1x16x16xf32>
    %312 = vector.shape_cast %311 : vector<1x1x16x16xf32> to vector<16x16xf32>
    %313 = vector.broadcast %310 : f32 to vector<16x16xf32>
    %314 = arith.mulf %313, %312 : vector<16x16xf32>
    %315 = arith.addf %309, %314 : vector<16x16xf32>
    %c51 = arith.constant 51 : index
    %316 = memref.load %arg2[%c51] : memref<288xf32, #tpu.memory_space<smem>>
    %c0_211 = arith.constant 0 : index
    %c1_212 = arith.constant 1 : index
    %c2_213 = arith.constant 2 : index
    %c0_214 = arith.constant 0 : index
    %317 = vector.load %arg1[%c0_211, %c1_212, %c2_213, %c0_214] : memref<1x4x18x18xf32, #tpu.memory_space<vmem>>, vector<1x1x16x16xf32>
    %318 = vector.shape_cast %317 : vector<1x1x16x16xf32> to vector<16x16xf32>
    %319 = vector.broadcast %316 : f32 to vector<16x16xf32>
    %320 = arith.mulf %319, %318 : vector<16x16xf32>
    %321 = arith.addf %315, %320 : vector<16x16xf32>
    %c52 = arith.constant 52 : index
    %322 = memref.load %arg2[%c52] : memref<288xf32, #tpu.memory_space<smem>>
    %c0_215 = arith.constant 0 : index
    %c1_216 = arith.constant 1 : index
    %c2_217 = arith.constant 2 : index
    %c1_218 = arith.constant 1 : index
    %323 = vector.load %arg1[%c0_215, %c1_216, %c2_217, %c1_218] : memref<1x4x18x18xf32, #tpu.memory_space<vmem>>, vector<1x1x16x16xf32>
    %324 = vector.shape_cast %323 : vector<1x1x16x16xf32> to vector<16x16xf32>
    %325 = vector.broadcast %322 : f32 to vector<16x16xf32>
    %326 = arith.mulf %325, %324 : vector<16x16xf32>
    %327 = arith.addf %321, %326 : vector<16x16xf32>
    %c53 = arith.constant 53 : index
    %328 = memref.load %arg2[%c53] : memref<288xf32, #tpu.memory_space<smem>>
    %c0_219 = arith.constant 0 : index
    %c1_220 = arith.constant 1 : index
    %c2_221 = arith.constant 2 : index
    %c2_222 = arith.constant 2 : index
    %329 = vector.load %arg1[%c0_219, %c1_220, %c2_221, %c2_222] : memref<1x4x18x18xf32, #tpu.memory_space<vmem>>, vector<1x1x16x16xf32>
    %330 = vector.shape_cast %329 : vector<1x1x16x16xf32> to vector<16x16xf32>
    %331 = vector.broadcast %328 : f32 to vector<16x16xf32>
    %332 = arith.mulf %331, %330 : vector<16x16xf32>
    %333 = arith.addf %327, %332 : vector<16x16xf32>
    %c54 = arith.constant 54 : index
    %334 = memref.load %arg2[%c54] : memref<288xf32, #tpu.memory_space<smem>>
    %c0_223 = arith.constant 0 : index
    %c2_224 = arith.constant 2 : index
    %c0_225 = arith.constant 0 : index
    %c0_226 = arith.constant 0 : index
    %335 = vector.load %arg1[%c0_223, %c2_224, %c0_225, %c0_226] : memref<1x4x18x18xf32, #tpu.memory_space<vmem>>, vector<1x1x16x16xf32>
    %336 = vector.shape_cast %335 : vector<1x1x16x16xf32> to vector<16x16xf32>
    %337 = vector.broadcast %334 : f32 to vector<16x16xf32>
    %338 = arith.mulf %337, %336 : vector<16x16xf32>
    %339 = arith.addf %333, %338 : vector<16x16xf32>
    %c55 = arith.constant 55 : index
    %340 = memref.load %arg2[%c55] : memref<288xf32, #tpu.memory_space<smem>>
    %c0_227 = arith.constant 0 : index
    %c2_228 = arith.constant 2 : index
    %c0_229 = arith.constant 0 : index
    %c1_230 = arith.constant 1 : index
    %341 = vector.load %arg1[%c0_227, %c2_228, %c0_229, %c1_230] : memref<1x4x18x18xf32, #tpu.memory_space<vmem>>, vector<1x1x16x16xf32>
    %342 = vector.shape_cast %341 : vector<1x1x16x16xf32> to vector<16x16xf32>
    %343 = vector.broadcast %340 : f32 to vector<16x16xf32>
    %344 = arith.mulf %343, %342 : vector<16x16xf32>
    %345 = arith.addf %339, %344 : vector<16x16xf32>
    %c56 = arith.constant 56 : index
    %346 = memref.load %arg2[%c56] : memref<288xf32, #tpu.memory_space<smem>>
    %c0_231 = arith.constant 0 : index
    %c2_232 = arith.constant 2 : index
    %c0_233 = arith.constant 0 : index
    %c2_234 = arith.constant 2 : index
    %347 = vector.load %arg1[%c0_231, %c2_232, %c0_233, %c2_234] : memref<1x4x18x18xf32, #tpu.memory_space<vmem>>, vector<1x1x16x16xf32>
    %348 = vector.shape_cast %347 : vector<1x1x16x16xf32> to vector<16x16xf32>
    %349 = vector.broadcast %346 : f32 to vector<16x16xf32>
    %350 = arith.mulf %349, %348 : vector<16x16xf32>
    %351 = arith.addf %345, %350 : vector<16x16xf32>
    %c57 = arith.constant 57 : index
    %352 = memref.load %arg2[%c57] : memref<288xf32, #tpu.memory_space<smem>>
    %c0_235 = arith.constant 0 : index
    %c2_236 = arith.constant 2 : index
    %c1_237 = arith.constant 1 : index
    %c0_238 = arith.constant 0 : index
    %353 = vector.load %arg1[%c0_235, %c2_236, %c1_237, %c0_238] : memref<1x4x18x18xf32, #tpu.memory_space<vmem>>, vector<1x1x16x16xf32>
    %354 = vector.shape_cast %353 : vector<1x1x16x16xf32> to vector<16x16xf32>
    %355 = vector.broadcast %352 : f32 to vector<16x16xf32>
    %356 = arith.mulf %355, %354 : vector<16x16xf32>
    %357 = arith.addf %351, %356 : vector<16x16xf32>
    %c58 = arith.constant 58 : index
    %358 = memref.load %arg2[%c58] : memref<288xf32, #tpu.memory_space<smem>>
    %c0_239 = arith.constant 0 : index
    %c2_240 = arith.constant 2 : index
    %c1_241 = arith.constant 1 : index
    %c1_242 = arith.constant 1 : index
    %359 = vector.load %arg1[%c0_239, %c2_240, %c1_241, %c1_242] : memref<1x4x18x18xf32, #tpu.memory_space<vmem>>, vector<1x1x16x16xf32>
    %360 = vector.shape_cast %359 : vector<1x1x16x16xf32> to vector<16x16xf32>
    %361 = vector.broadcast %358 : f32 to vector<16x16xf32>
    %362 = arith.mulf %361, %360 : vector<16x16xf32>
    %363 = arith.addf %357, %362 : vector<16x16xf32>
    %c59 = arith.constant 59 : index
    %364 = memref.load %arg2[%c59] : memref<288xf32, #tpu.memory_space<smem>>
    %c0_243 = arith.constant 0 : index
    %c2_244 = arith.constant 2 : index
    %c1_245 = arith.constant 1 : index
    %c2_246 = arith.constant 2 : index
    %365 = vector.load %arg1[%c0_243, %c2_244, %c1_245, %c2_246] : memref<1x4x18x18xf32, #tpu.memory_space<vmem>>, vector<1x1x16x16xf32>
    %366 = vector.shape_cast %365 : vector<1x1x16x16xf32> to vector<16x16xf32>
    %367 = vector.broadcast %364 : f32 to vector<16x16xf32>
    %368 = arith.mulf %367, %366 : vector<16x16xf32>
    %369 = arith.addf %363, %368 : vector<16x16xf32>
    %c60 = arith.constant 60 : index
    %370 = memref.load %arg2[%c60] : memref<288xf32, #tpu.memory_space<smem>>
    %c0_247 = arith.constant 0 : index
    %c2_248 = arith.constant 2 : index
    %c2_249 = arith.constant 2 : index
    %c0_250 = arith.constant 0 : index
    %371 = vector.load %arg1[%c0_247, %c2_248, %c2_249, %c0_250] : memref<1x4x18x18xf32, #tpu.memory_space<vmem>>, vector<1x1x16x16xf32>
    %372 = vector.shape_cast %371 : vector<1x1x16x16xf32> to vector<16x16xf32>
    %373 = vector.broadcast %370 : f32 to vector<16x16xf32>
    %374 = arith.mulf %373, %372 : vector<16x16xf32>
    %375 = arith.addf %369, %374 : vector<16x16xf32>
    %c61 = arith.constant 61 : index
    %376 = memref.load %arg2[%c61] : memref<288xf32, #tpu.memory_space<smem>>
    %c0_251 = arith.constant 0 : index
    %c2_252 = arith.constant 2 : index
    %c2_253 = arith.constant 2 : index
    %c1_254 = arith.constant 1 : index
    %377 = vector.load %arg1[%c0_251, %c2_252, %c2_253, %c1_254] : memref<1x4x18x18xf32, #tpu.memory_space<vmem>>, vector<1x1x16x16xf32>
    %378 = vector.shape_cast %377 : vector<1x1x16x16xf32> to vector<16x16xf32>
    %379 = vector.broadcast %376 : f32 to vector<16x16xf32>
    %380 = arith.mulf %379, %378 : vector<16x16xf32>
    %381 = arith.addf %375, %380 : vector<16x16xf32>
    %c62 = arith.constant 62 : index
    %382 = memref.load %arg2[%c62] : memref<288xf32, #tpu.memory_space<smem>>
    %c0_255 = arith.constant 0 : index
    %c2_256 = arith.constant 2 : index
    %c2_257 = arith.constant 2 : index
    %c2_258 = arith.constant 2 : index
    %383 = vector.load %arg1[%c0_255, %c2_256, %c2_257, %c2_258] : memref<1x4x18x18xf32, #tpu.memory_space<vmem>>, vector<1x1x16x16xf32>
    %384 = vector.shape_cast %383 : vector<1x1x16x16xf32> to vector<16x16xf32>
    %385 = vector.broadcast %382 : f32 to vector<16x16xf32>
    %386 = arith.mulf %385, %384 : vector<16x16xf32>
    %387 = arith.addf %381, %386 : vector<16x16xf32>
    %c63 = arith.constant 63 : index
    %388 = memref.load %arg2[%c63] : memref<288xf32, #tpu.memory_space<smem>>
    %c0_259 = arith.constant 0 : index
    %c3_260 = arith.constant 3 : index
    %c0_261 = arith.constant 0 : index
    %c0_262 = arith.constant 0 : index
    %389 = vector.load %arg1[%c0_259, %c3_260, %c0_261, %c0_262] : memref<1x4x18x18xf32, #tpu.memory_space<vmem>>, vector<1x1x16x16xf32>
    %390 = vector.shape_cast %389 : vector<1x1x16x16xf32> to vector<16x16xf32>
    %391 = vector.broadcast %388 : f32 to vector<16x16xf32>
    %392 = arith.mulf %391, %390 : vector<16x16xf32>
    %393 = arith.addf %387, %392 : vector<16x16xf32>
    %c64 = arith.constant 64 : index
    %394 = memref.load %arg2[%c64] : memref<288xf32, #tpu.memory_space<smem>>
    %c0_263 = arith.constant 0 : index
    %c3_264 = arith.constant 3 : index
    %c0_265 = arith.constant 0 : index
    %c1_266 = arith.constant 1 : index
    %395 = vector.load %arg1[%c0_263, %c3_264, %c0_265, %c1_266] : memref<1x4x18x18xf32, #tpu.memory_space<vmem>>, vector<1x1x16x16xf32>
    %396 = vector.shape_cast %395 : vector<1x1x16x16xf32> to vector<16x16xf32>
    %397 = vector.broadcast %394 : f32 to vector<16x16xf32>
    %398 = arith.mulf %397, %396 : vector<16x16xf32>
    %399 = arith.addf %393, %398 : vector<16x16xf32>
    %c65 = arith.constant 65 : index
    %400 = memref.load %arg2[%c65] : memref<288xf32, #tpu.memory_space<smem>>
    %c0_267 = arith.constant 0 : index
    %c3_268 = arith.constant 3 : index
    %c0_269 = arith.constant 0 : index
    %c2_270 = arith.constant 2 : index
    %401 = vector.load %arg1[%c0_267, %c3_268, %c0_269, %c2_270] : memref<1x4x18x18xf32, #tpu.memory_space<vmem>>, vector<1x1x16x16xf32>
    %402 = vector.shape_cast %401 : vector<1x1x16x16xf32> to vector<16x16xf32>
    %403 = vector.broadcast %400 : f32 to vector<16x16xf32>
    %404 = arith.mulf %403, %402 : vector<16x16xf32>
    %405 = arith.addf %399, %404 : vector<16x16xf32>
    %c66 = arith.constant 66 : index
    %406 = memref.load %arg2[%c66] : memref<288xf32, #tpu.memory_space<smem>>
    %c0_271 = arith.constant 0 : index
    %c3_272 = arith.constant 3 : index
    %c1_273 = arith.constant 1 : index
    %c0_274 = arith.constant 0 : index
    %407 = vector.load %arg1[%c0_271, %c3_272, %c1_273, %c0_274] : memref<1x4x18x18xf32, #tpu.memory_space<vmem>>, vector<1x1x16x16xf32>
    %408 = vector.shape_cast %407 : vector<1x1x16x16xf32> to vector<16x16xf32>
    %409 = vector.broadcast %406 : f32 to vector<16x16xf32>
    %410 = arith.mulf %409, %408 : vector<16x16xf32>
    %411 = arith.addf %405, %410 : vector<16x16xf32>
    %c67 = arith.constant 67 : index
    %412 = memref.load %arg2[%c67] : memref<288xf32, #tpu.memory_space<smem>>
    %c0_275 = arith.constant 0 : index
    %c3_276 = arith.constant 3 : index
    %c1_277 = arith.constant 1 : index
    %c1_278 = arith.constant 1 : index
    %413 = vector.load %arg1[%c0_275, %c3_276, %c1_277, %c1_278] : memref<1x4x18x18xf32, #tpu.memory_space<vmem>>, vector<1x1x16x16xf32>
    %414 = vector.shape_cast %413 : vector<1x1x16x16xf32> to vector<16x16xf32>
    %415 = vector.broadcast %412 : f32 to vector<16x16xf32>
    %416 = arith.mulf %415, %414 : vector<16x16xf32>
    %417 = arith.addf %411, %416 : vector<16x16xf32>
    %c68 = arith.constant 68 : index
    %418 = memref.load %arg2[%c68] : memref<288xf32, #tpu.memory_space<smem>>
    %c0_279 = arith.constant 0 : index
    %c3_280 = arith.constant 3 : index
    %c1_281 = arith.constant 1 : index
    %c2_282 = arith.constant 2 : index
    %419 = vector.load %arg1[%c0_279, %c3_280, %c1_281, %c2_282] : memref<1x4x18x18xf32, #tpu.memory_space<vmem>>, vector<1x1x16x16xf32>
    %420 = vector.shape_cast %419 : vector<1x1x16x16xf32> to vector<16x16xf32>
    %421 = vector.broadcast %418 : f32 to vector<16x16xf32>
    %422 = arith.mulf %421, %420 : vector<16x16xf32>
    %423 = arith.addf %417, %422 : vector<16x16xf32>
    %c69 = arith.constant 69 : index
    %424 = memref.load %arg2[%c69] : memref<288xf32, #tpu.memory_space<smem>>
    %c0_283 = arith.constant 0 : index
    %c3_284 = arith.constant 3 : index
    %c2_285 = arith.constant 2 : index
    %c0_286 = arith.constant 0 : index
    %425 = vector.load %arg1[%c0_283, %c3_284, %c2_285, %c0_286] : memref<1x4x18x18xf32, #tpu.memory_space<vmem>>, vector<1x1x16x16xf32>
    %426 = vector.shape_cast %425 : vector<1x1x16x16xf32> to vector<16x16xf32>
    %427 = vector.broadcast %424 : f32 to vector<16x16xf32>
    %428 = arith.mulf %427, %426 : vector<16x16xf32>
    %429 = arith.addf %423, %428 : vector<16x16xf32>
    %c70 = arith.constant 70 : index
    %430 = memref.load %arg2[%c70] : memref<288xf32, #tpu.memory_space<smem>>
    %c0_287 = arith.constant 0 : index
    %c3_288 = arith.constant 3 : index
    %c2_289 = arith.constant 2 : index
    %c1_290 = arith.constant 1 : index
    %431 = vector.load %arg1[%c0_287, %c3_288, %c2_289, %c1_290] : memref<1x4x18x18xf32, #tpu.memory_space<vmem>>, vector<1x1x16x16xf32>
    %432 = vector.shape_cast %431 : vector<1x1x16x16xf32> to vector<16x16xf32>
    %433 = vector.broadcast %430 : f32 to vector<16x16xf32>
    %434 = arith.mulf %433, %432 : vector<16x16xf32>
    %435 = arith.addf %429, %434 : vector<16x16xf32>
    %c71 = arith.constant 71 : index
    %436 = memref.load %arg2[%c71] : memref<288xf32, #tpu.memory_space<smem>>
    %c0_291 = arith.constant 0 : index
    %c3_292 = arith.constant 3 : index
    %c2_293 = arith.constant 2 : index
    %c2_294 = arith.constant 2 : index
    %437 = vector.load %arg1[%c0_291, %c3_292, %c2_293, %c2_294] : memref<1x4x18x18xf32, #tpu.memory_space<vmem>>, vector<1x1x16x16xf32>
    %438 = vector.shape_cast %437 : vector<1x1x16x16xf32> to vector<16x16xf32>
    %439 = vector.broadcast %436 : f32 to vector<16x16xf32>
    %440 = arith.mulf %439, %438 : vector<16x16xf32>
    %441 = arith.addf %435, %440 : vector<16x16xf32>
    %c1_295 = arith.constant 1 : index
    %442 = memref.load %arg3[%c1_295] : memref<8xf32, #tpu.memory_space<smem>>
    %443 = vector.broadcast %442 : f32 to vector<16x16xf32>
    %444 = arith.addf %441, %443 : vector<16x16xf32>
    %cst_296 = arith.constant 0.000000e+00 : f32
    %445 = vector.broadcast %cst_296 : f32 to vector<16x16xf32>
    %446 = arith.maximumf %444, %445 : vector<16x16xf32>
    %c0_297 = arith.constant 0 : index
    %c1_298 = arith.constant 1 : index
    %c0_299 = arith.constant 0 : index
    %c0_300 = arith.constant 0 : index
    %447 = vector.load %arg4[%c0_297, %c1_298, %c0_299, %c0_300] : memref<1x8x16x16xf32, #tpu.memory_space<vmem>>, vector<1x1x16x16xf32>
    %448 = vector.shape_cast %447 : vector<1x1x16x16xf32> to vector<16x16xf32>
    %449 = vector.shape_cast %446 : vector<16x16xf32> to vector<1x1x16x16xf32>
    tpu.vector_store %arg4[%c0_297, %c1_298, %c0_299, %c0_300], %449 {strides = array<i32>} : memref<1x8x16x16xf32, #tpu.memory_space<vmem>>, vector<1x1x16x16xf32>,
    %cst_301 = arith.constant 0.000000e+00 : f32
    %450 = vector.broadcast %cst_301 : f32 to vector<16x16xf32>
    %c72 = arith.constant 72 : index
    %451 = memref.load %arg2[%c72] : memref<288xf32, #tpu.memory_space<smem>>
    %c0_302 = arith.constant 0 : index
    %c0_303 = arith.constant 0 : index
    %c0_304 = arith.constant 0 : index
    %c0_305 = arith.constant 0 : index
    %452 = vector.load %arg1[%c0_302, %c0_303, %c0_304, %c0_305] : memref<1x4x18x18xf32, #tpu.memory_space<vmem>>, vector<1x1x16x16xf32>
    %453 = vector.shape_cast %452 : vector<1x1x16x16xf32> to vector<16x16xf32>
    %454 = vector.broadcast %451 : f32 to vector<16x16xf32>
    %455 = arith.mulf %454, %453 : vector<16x16xf32>
    %456 = arith.addf %450, %455 : vector<16x16xf32>
    %c73 = arith.constant 73 : index
    %457 = memref.load %arg2[%c73] : memref<288xf32, #tpu.memory_space<smem>>
    %c0_306 = arith.constant 0 : index
    %c0_307 = arith.constant 0 : index
    %c0_308 = arith.constant 0 : index
    %c1_309 = arith.constant 1 : index
    %458 = vector.load %arg1[%c0_306, %c0_307, %c0_308, %c1_309] : memref<1x4x18x18xf32, #tpu.memory_space<vmem>>, vector<1x1x16x16xf32>
    %459 = vector.shape_cast %458 : vector<1x1x16x16xf32> to vector<16x16xf32>
    %460 = vector.broadcast %457 : f32 to vector<16x16xf32>
    %461 = arith.mulf %460, %459 : vector<16x16xf32>
    %462 = arith.addf %456, %461 : vector<16x16xf32>
    %c74 = arith.constant 74 : index
    %463 = memref.load %arg2[%c74] : memref<288xf32, #tpu.memory_space<smem>>
    %c0_310 = arith.constant 0 : index
    %c0_311 = arith.constant 0 : index
    %c0_312 = arith.constant 0 : index
    %c2_313 = arith.constant 2 : index
    %464 = vector.load %arg1[%c0_310, %c0_311, %c0_312, %c2_313] : memref<1x4x18x18xf32, #tpu.memory_space<vmem>>, vector<1x1x16x16xf32>
    %465 = vector.shape_cast %464 : vector<1x1x16x16xf32> to vector<16x16xf32>
    %466 = vector.broadcast %463 : f32 to vector<16x16xf32>
    %467 = arith.mulf %466, %465 : vector<16x16xf32>
    %468 = arith.addf %462, %467 : vector<16x16xf32>
    %c75 = arith.constant 75 : index
    %469 = memref.load %arg2[%c75] : memref<288xf32, #tpu.memory_space<smem>>
    %c0_314 = arith.constant 0 : index
    %c0_315 = arith.constant 0 : index
    %c1_316 = arith.constant 1 : index
    %c0_317 = arith.constant 0 : index
    %470 = vector.load %arg1[%c0_314, %c0_315, %c1_316, %c0_317] : memref<1x4x18x18xf32, #tpu.memory_space<vmem>>, vector<1x1x16x16xf32>
    %471 = vector.shape_cast %470 : vector<1x1x16x16xf32> to vector<16x16xf32>
    %472 = vector.broadcast %469 : f32 to vector<16x16xf32>
    %473 = arith.mulf %472, %471 : vector<16x16xf32>
    %474 = arith.addf %468, %473 : vector<16x16xf32>
    %c76 = arith.constant 76 : index
    %475 = memref.load %arg2[%c76] : memref<288xf32, #tpu.memory_space<smem>>
    %c0_318 = arith.constant 0 : index
    %c0_319 = arith.constant 0 : index
    %c1_320 = arith.constant 1 : index
    %c1_321 = arith.constant 1 : index
    %476 = vector.load %arg1[%c0_318, %c0_319, %c1_320, %c1_321] : memref<1x4x18x18xf32, #tpu.memory_space<vmem>>, vector<1x1x16x16xf32>
    %477 = vector.shape_cast %476 : vector<1x1x16x16xf32> to vector<16x16xf32>
    %478 = vector.broadcast %475 : f32 to vector<16x16xf32>
    %479 = arith.mulf %478, %477 : vector<16x16xf32>
    %480 = arith.addf %474, %479 : vector<16x16xf32>
    %c77 = arith.constant 77 : index
    %481 = memref.load %arg2[%c77] : memref<288xf32, #tpu.memory_space<smem>>
    %c0_322 = arith.constant 0 : index
    %c0_323 = arith.constant 0 : index
    %c1_324 = arith.constant 1 : index
    %c2_325 = arith.constant 2 : index
    %482 = vector.load %arg1[%c0_322, %c0_323, %c1_324, %c2_325] : memref<1x4x18x18xf32, #tpu.memory_space<vmem>>, vector<1x1x16x16xf32>
    %483 = vector.shape_cast %482 : vector<1x1x16x16xf32> to vector<16x16xf32>
    %484 = vector.broadcast %481 : f32 to vector<16x16xf32>
    %485 = arith.mulf %484, %483 : vector<16x16xf32>
    %486 = arith.addf %480, %485 : vector<16x16xf32>
    %c78 = arith.constant 78 : index
    %487 = memref.load %arg2[%c78] : memref<288xf32, #tpu.memory_space<smem>>
    %c0_326 = arith.constant 0 : index
    %c0_327 = arith.constant 0 : index
    %c2_328 = arith.constant 2 : index
    %c0_329 = arith.constant 0 : index
    %488 = vector.load %arg1[%c0_326, %c0_327, %c2_328, %c0_329] : memref<1x4x18x18xf32, #tpu.memory_space<vmem>>, vector<1x1x16x16xf32>
    %489 = vector.shape_cast %488 : vector<1x1x16x16xf32> to vector<16x16xf32>
    %490 = vector.broadcast %487 : f32 to vector<16x16xf32>
    %491 = arith.mulf %490, %489 : vector<16x16xf32>
    %492 = arith.addf %486, %491 : vector<16x16xf32>
    %c79 = arith.constant 79 : index
    %493 = memref.load %arg2[%c79] : memref<288xf32, #tpu.memory_space<smem>>
    %c0_330 = arith.constant 0 : index
    %c0_331 = arith.constant 0 : index
    %c2_332 = arith.constant 2 : index
    %c1_333 = arith.constant 1 : index
    %494 = vector.load %arg1[%c0_330, %c0_331, %c2_332, %c1_333] : memref<1x4x18x18xf32, #tpu.memory_space<vmem>>, vector<1x1x16x16xf32>
    %495 = vector.shape_cast %494 : vector<1x1x16x16xf32> to vector<16x16xf32>
    %496 = vector.broadcast %493 : f32 to vector<16x16xf32>
    %497 = arith.mulf %496, %495 : vector<16x16xf32>
    %498 = arith.addf %492, %497 : vector<16x16xf32>
    %c80 = arith.constant 80 : index
    %499 = memref.load %arg2[%c80] : memref<288xf32, #tpu.memory_space<smem>>
    %c0_334 = arith.constant 0 : index
    %c0_335 = arith.constant 0 : index
    %c2_336 = arith.constant 2 : index
    %c2_337 = arith.constant 2 : index
    %500 = vector.load %arg1[%c0_334, %c0_335, %c2_336, %c2_337] : memref<1x4x18x18xf32, #tpu.memory_space<vmem>>, vector<1x1x16x16xf32>
    %501 = vector.shape_cast %500 : vector<1x1x16x16xf32> to vector<16x16xf32>
    %502 = vector.broadcast %499 : f32 to vector<16x16xf32>
    %503 = arith.mulf %502, %501 : vector<16x16xf32>
    %504 = arith.addf %498, %503 : vector<16x16xf32>
    %c81 = arith.constant 81 : index
    %505 = memref.load %arg2[%c81] : memref<288xf32, #tpu.memory_space<smem>>
    %c0_338 = arith.constant 0 : index
    %c1_339 = arith.constant 1 : index
    %c0_340 = arith.constant 0 : index
    %c0_341 = arith.constant 0 : index
    %506 = vector.load %arg1[%c0_338, %c1_339, %c0_340, %c0_341] : memref<1x4x18x18xf32, #tpu.memory_space<vmem>>, vector<1x1x16x16xf32>
    %507 = vector.shape_cast %506 : vector<1x1x16x16xf32> to vector<16x16xf32>
    %508 = vector.broadcast %505 : f32 to vector<16x16xf32>
    %509 = arith.mulf %508, %507 : vector<16x16xf32>
    %510 = arith.addf %504, %509 : vector<16x16xf32>
    %c82 = arith.constant 82 : index
    %511 = memref.load %arg2[%c82] : memref<288xf32, #tpu.memory_space<smem>>
    %c0_342 = arith.constant 0 : index
    %c1_343 = arith.constant 1 : index
    %c0_344 = arith.constant 0 : index
    %c1_345 = arith.constant 1 : index
    %512 = vector.load %arg1[%c0_342, %c1_343, %c0_344, %c1_345] : memref<1x4x18x18xf32, #tpu.memory_space<vmem>>, vector<1x1x16x16xf32>
    %513 = vector.shape_cast %512 : vector<1x1x16x16xf32> to vector<16x16xf32>
    %514 = vector.broadcast %511 : f32 to vector<16x16xf32>
    %515 = arith.mulf %514, %513 : vector<16x16xf32>
    %516 = arith.addf %510, %515 : vector<16x16xf32>
    %c83 = arith.constant 83 : index
    %517 = memref.load %arg2[%c83] : memref<288xf32, #tpu.memory_space<smem>>
    %c0_346 = arith.constant 0 : index
    %c1_347 = arith.constant 1 : index
    %c0_348 = arith.constant 0 : index
    %c2_349 = arith.constant 2 : index
    %518 = vector.load %arg1[%c0_346, %c1_347, %c0_348, %c2_349] : memref<1x4x18x18xf32, #tpu.memory_space<vmem>>, vector<1x1x16x16xf32>
    %519 = vector.shape_cast %518 : vector<1x1x16x16xf32> to vector<16x16xf32>
    %520 = vector.broadcast %517 : f32 to vector<16x16xf32>
    %521 = arith.mulf %520, %519 : vector<16x16xf32>
    %522 = arith.addf %516, %521 : vector<16x16xf32>
    %c84 = arith.constant 84 : index
    %523 = memref.load %arg2[%c84] : memref<288xf32, #tpu.memory_space<smem>>
    %c0_350 = arith.constant 0 : index
    %c1_351 = arith.constant 1 : index
    %c1_352 = arith.constant 1 : index
    %c0_353 = arith.constant 0 : index
    %524 = vector.load %arg1[%c0_350, %c1_351, %c1_352, %c0_353] : memref<1x4x18x18xf32, #tpu.memory_space<vmem>>, vector<1x1x16x16xf32>
    %525 = vector.shape_cast %524 : vector<1x1x16x16xf32> to vector<16x16xf32>
    %526 = vector.broadcast %523 : f32 to vector<16x16xf32>
    %527 = arith.mulf %526, %525 : vector<16x16xf32>
    %528 = arith.addf %522, %527 : vector<16x16xf32>
    %c85 = arith.constant 85 : index
    %529 = memref.load %arg2[%c85] : memref<288xf32, #tpu.memory_space<smem>>
    %c0_354 = arith.constant 0 : index
    %c1_355 = arith.constant 1 : index
    %c1_356 = arith.constant 1 : index
    %c1_357 = arith.constant 1 : index
    %530 = vector.load %arg1[%c0_354, %c1_355, %c1_356, %c1_357] : memref<1x4x18x18xf32, #tpu.memory_space<vmem>>, vector<1x1x16x16xf32>
    %531 = vector.shape_cast %530 : vector<1x1x16x16xf32> to vector<16x16xf32>
    %532 = vector.broadcast %529 : f32 to vector<16x16xf32>
    %533 = arith.mulf %532, %531 : vector<16x16xf32>
    %534 = arith.addf %528, %533 : vector<16x16xf32>
    %c86 = arith.constant 86 : index
    %535 = memref.load %arg2[%c86] : memref<288xf32, #tpu.memory_space<smem>>
    %c0_358 = arith.constant 0 : index
    %c1_359 = arith.constant 1 : index
    %c1_360 = arith.constant 1 : index
    %c2_361 = arith.constant 2 : index
    %536 = vector.load %arg1[%c0_358, %c1_359, %c1_360, %c2_361] : memref<1x4x18x18xf32, #tpu.memory_space<vmem>>, vector<1x1x16x16xf32>
    %537 = vector.shape_cast %536 : vector<1x1x16x16xf32> to vector<16x16xf32>
    %538 = vector.broadcast %535 : f32 to vector<16x16xf32>
    %539 = arith.mulf %538, %537 : vector<16x16xf32>
    %540 = arith.addf %534, %539 : vector<16x16xf32>
    %c87 = arith.constant 87 : index
    %541 = memref.load %arg2[%c87] : memref<288xf32, #tpu.memory_space<smem>>
    %c0_362 = arith.constant 0 : index
    %c1_363 = arith.constant 1 : index
    %c2_364 = arith.constant 2 : index
    %c0_365 = arith.constant 0 : index
    %542 = vector.load %arg1[%c0_362, %c1_363, %c2_364, %c0_365] : memref<1x4x18x18xf32, #tpu.memory_space<vmem>>, vector<1x1x16x16xf32>
    %543 = vector.shape_cast %542 : vector<1x1x16x16xf32> to vector<16x16xf32>
    %544 = vector.broadcast %541 : f32 to vector<16x16xf32>
    %545 = arith.mulf %544, %543 : vector<16x16xf32>
    %546 = arith.addf %540, %545 : vector<16x16xf32>
    %c88 = arith.constant 88 : index
    %547 = memref.load %arg2[%c88] : memref<288xf32, #tpu.memory_space<smem>>
    %c0_366 = arith.constant 0 : index
    %c1_367 = arith.constant 1 : index
    %c2_368 = arith.constant 2 : index
    %c1_369 = arith.constant 1 : index
    %548 = vector.load %arg1[%c0_366, %c1_367, %c2_368, %c1_369] : memref<1x4x18x18xf32, #tpu.memory_space<vmem>>, vector<1x1x16x16xf32>
    %549 = vector.shape_cast %548 : vector<1x1x16x16xf32> to vector<16x16xf32>
    %550 = vector.broadcast %547 : f32 to vector<16x16xf32>
    %551 = arith.mulf %550, %549 : vector<16x16xf32>
    %552 = arith.addf %546, %551 : vector<16x16xf32>
    %c89 = arith.constant 89 : index
    %553 = memref.load %arg2[%c89] : memref<288xf32, #tpu.memory_space<smem>>
    %c0_370 = arith.constant 0 : index
    %c1_371 = arith.constant 1 : index
    %c2_372 = arith.constant 2 : index
    %c2_373 = arith.constant 2 : index
    %554 = vector.load %arg1[%c0_370, %c1_371, %c2_372, %c2_373] : memref<1x4x18x18xf32, #tpu.memory_space<vmem>>, vector<1x1x16x16xf32>
    %555 = vector.shape_cast %554 : vector<1x1x16x16xf32> to vector<16x16xf32>
    %556 = vector.broadcast %553 : f32 to vector<16x16xf32>
    %557 = arith.mulf %556, %555 : vector<16x16xf32>
    %558 = arith.addf %552, %557 : vector<16x16xf32>
    %c90 = arith.constant 90 : index
    %559 = memref.load %arg2[%c90] : memref<288xf32, #tpu.memory_space<smem>>
    %c0_374 = arith.constant 0 : index
    %c2_375 = arith.constant 2 : index
    %c0_376 = arith.constant 0 : index
    %c0_377 = arith.constant 0 : index
    %560 = vector.load %arg1[%c0_374, %c2_375, %c0_376, %c0_377] : memref<1x4x18x18xf32, #tpu.memory_space<vmem>>, vector<1x1x16x16xf32>
    %561 = vector.shape_cast %560 : vector<1x1x16x16xf32> to vector<16x16xf32>
    %562 = vector.broadcast %559 : f32 to vector<16x16xf32>
    %563 = arith.mulf %562, %561 : vector<16x16xf32>
    %564 = arith.addf %558, %563 : vector<16x16xf32>
    %c91 = arith.constant 91 : index
    %565 = memref.load %arg2[%c91] : memref<288xf32, #tpu.memory_space<smem>>
    %c0_378 = arith.constant 0 : index
    %c2_379 = arith.constant 2 : index
    %c0_380 = arith.constant 0 : index
    %c1_381 = arith.constant 1 : index
    %566 = vector.load %arg1[%c0_378, %c2_379, %c0_380, %c1_381] : memref<1x4x18x18xf32, #tpu.memory_space<vmem>>, vector<1x1x16x16xf32>
    %567 = vector.shape_cast %566 : vector<1x1x16x16xf32> to vector<16x16xf32>
    %568 = vector.broadcast %565 : f32 to vector<16x16xf32>
    %569 = arith.mulf %568, %567 : vector<16x16xf32>
    %570 = arith.addf %564, %569 : vector<16x16xf32>
    %c92 = arith.constant 92 : index
    %571 = memref.load %arg2[%c92] : memref<288xf32, #tpu.memory_space<smem>>
    %c0_382 = arith.constant 0 : index
    %c2_383 = arith.constant 2 : index
    %c0_384 = arith.constant 0 : index
    %c2_385 = arith.constant 2 : index
    %572 = vector.load %arg1[%c0_382, %c2_383, %c0_384, %c2_385] : memref<1x4x18x18xf32, #tpu.memory_space<vmem>>, vector<1x1x16x16xf32>
    %573 = vector.shape_cast %572 : vector<1x1x16x16xf32> to vector<16x16xf32>
    %574 = vector.broadcast %571 : f32 to vector<16x16xf32>
    %575 = arith.mulf %574, %573 : vector<16x16xf32>
    %576 = arith.addf %570, %575 : vector<16x16xf32>
    %c93 = arith.constant 93 : index
    %577 = memref.load %arg2[%c93] : memref<288xf32, #tpu.memory_space<smem>>
    %c0_386 = arith.constant 0 : index
    %c2_387 = arith.constant 2 : index
    %c1_388 = arith.constant 1 : index
    %c0_389 = arith.constant 0 : index
    %578 = vector.load %arg1[%c0_386, %c2_387, %c1_388, %c0_389] : memref<1x4x18x18xf32, #tpu.memory_space<vmem>>, vector<1x1x16x16xf32>
    %579 = vector.shape_cast %578 : vector<1x1x16x16xf32> to vector<16x16xf32>
    %580 = vector.broadcast %577 : f32 to vector<16x16xf32>
    %581 = arith.mulf %580, %579 : vector<16x16xf32>
    %582 = arith.addf %576, %581 : vector<16x16xf32>
    %c94 = arith.constant 94 : index
    %583 = memref.load %arg2[%c94] : memref<288xf32, #tpu.memory_space<smem>>
    %c0_390 = arith.constant 0 : index
    %c2_391 = arith.constant 2 : index
    %c1_392 = arith.constant 1 : index
    %c1_393 = arith.constant 1 : index
    %584 = vector.load %arg1[%c0_390, %c2_391, %c1_392, %c1_393] : memref<1x4x18x18xf32, #tpu.memory_space<vmem>>, vector<1x1x16x16xf32>
    %585 = vector.shape_cast %584 : vector<1x1x16x16xf32> to vector<16x16xf32>
    %586 = vector.broadcast %583 : f32 to vector<16x16xf32>
    %587 = arith.mulf %586, %585 : vector<16x16xf32>
    %588 = arith.addf %582, %587 : vector<16x16xf32>
    %c95 = arith.constant 95 : index
    %589 = memref.load %arg2[%c95] : memref<288xf32, #tpu.memory_space<smem>>
    %c0_394 = arith.constant 0 : index
    %c2_395 = arith.constant 2 : index
    %c1_396 = arith.constant 1 : index
    %c2_397 = arith.constant 2 : index
    %590 = vector.load %arg1[%c0_394, %c2_395, %c1_396, %c2_397] : memref<1x4x18x18xf32, #tpu.memory_space<vmem>>, vector<1x1x16x16xf32>
    %591 = vector.shape_cast %590 : vector<1x1x16x16xf32> to vector<16x16xf32>
    %592 = vector.broadcast %589 : f32 to vector<16x16xf32>
    %593 = arith.mulf %592, %591 : vector<16x16xf32>
    %594 = arith.addf %588, %593 : vector<16x16xf32>
    %c96 = arith.constant 96 : index
    %595 = memref.load %arg2[%c96] : memref<288xf32, #tpu.memory_space<smem>>
    %c0_398 = arith.constant 0 : index
    %c2_399 = arith.constant 2 : index
    %c2_400 = arith.constant 2 : index
    %c0_401 = arith.constant 0 : index
    %596 = vector.load %arg1[%c0_398, %c2_399, %c2_400, %c0_401] : memref<1x4x18x18xf32, #tpu.memory_space<vmem>>, vector<1x1x16x16xf32>
    %597 = vector.shape_cast %596 : vector<1x1x16x16xf32> to vector<16x16xf32>
    %598 = vector.broadcast %595 : f32 to vector<16x16xf32>
    %599 = arith.mulf %598, %597 : vector<16x16xf32>
    %600 = arith.addf %594, %599 : vector<16x16xf32>
    %c97 = arith.constant 97 : index
    %601 = memref.load %arg2[%c97] : memref<288xf32, #tpu.memory_space<smem>>
    %c0_402 = arith.constant 0 : index
    %c2_403 = arith.constant 2 : index
    %c2_404 = arith.constant 2 : index
    %c1_405 = arith.constant 1 : index
    %602 = vector.load %arg1[%c0_402, %c2_403, %c2_404, %c1_405] : memref<1x4x18x18xf32, #tpu.memory_space<vmem>>, vector<1x1x16x16xf32>
    %603 = vector.shape_cast %602 : vector<1x1x16x16xf32> to vector<16x16xf32>
    %604 = vector.broadcast %601 : f32 to vector<16x16xf32>
    %605 = arith.mulf %604, %603 : vector<16x16xf32>
    %606 = arith.addf %600, %605 : vector<16x16xf32>
    %c98 = arith.constant 98 : index
    %607 = memref.load %arg2[%c98] : memref<288xf32, #tpu.memory_space<smem>>
    %c0_406 = arith.constant 0 : index
    %c2_407 = arith.constant 2 : index
    %c2_408 = arith.constant 2 : index
    %c2_409 = arith.constant 2 : index
    %608 = vector.load %arg1[%c0_406, %c2_407, %c2_408, %c2_409] : memref<1x4x18x18xf32, #tpu.memory_space<vmem>>, vector<1x1x16x16xf32>
    %609 = vector.shape_cast %608 : vector<1x1x16x16xf32> to vector<16x16xf32>
    %610 = vector.broadcast %607 : f32 to vector<16x16xf32>
    %611 = arith.mulf %610, %609 : vector<16x16xf32>
    %612 = arith.addf %606, %611 : vector<16x16xf32>
    %c99 = arith.constant 99 : index
    %613 = memref.load %arg2[%c99] : memref<288xf32, #tpu.memory_space<smem>>
    %c0_410 = arith.constant 0 : index
    %c3_411 = arith.constant 3 : index
    %c0_412 = arith.constant 0 : index
    %c0_413 = arith.constant 0 : index
    %614 = vector.load %arg1[%c0_410, %c3_411, %c0_412, %c0_413] : memref<1x4x18x18xf32, #tpu.memory_space<vmem>>, vector<1x1x16x16xf32>
    %615 = vector.shape_cast %614 : vector<1x1x16x16xf32> to vector<16x16xf32>
    %616 = vector.broadcast %613 : f32 to vector<16x16xf32>
    %617 = arith.mulf %616, %615 : vector<16x16xf32>
    %618 = arith.addf %612, %617 : vector<16x16xf32>
    %c100 = arith.constant 100 : index
    %619 = memref.load %arg2[%c100] : memref<288xf32, #tpu.memory_space<smem>>
    %c0_414 = arith.constant 0 : index
    %c3_415 = arith.constant 3 : index
    %c0_416 = arith.constant 0 : index
    %c1_417 = arith.constant 1 : index
    %620 = vector.load %arg1[%c0_414, %c3_415, %c0_416, %c1_417] : memref<1x4x18x18xf32, #tpu.memory_space<vmem>>, vector<1x1x16x16xf32>
    %621 = vector.shape_cast %620 : vector<1x1x16x16xf32> to vector<16x16xf32>
    %622 = vector.broadcast %619 : f32 to vector<16x16xf32>
    %623 = arith.mulf %622, %621 : vector<16x16xf32>
    %624 = arith.addf %618, %623 : vector<16x16xf32>
    %c101 = arith.constant 101 : index
    %625 = memref.load %arg2[%c101] : memref<288xf32, #tpu.memory_space<smem>>
    %c0_418 = arith.constant 0 : index
    %c3_419 = arith.constant 3 : index
    %c0_420 = arith.constant 0 : index
    %c2_421 = arith.constant 2 : index
    %626 = vector.load %arg1[%c0_418, %c3_419, %c0_420, %c2_421] : memref<1x4x18x18xf32, #tpu.memory_space<vmem>>, vector<1x1x16x16xf32>
    %627 = vector.shape_cast %626 : vector<1x1x16x16xf32> to vector<16x16xf32>
    %628 = vector.broadcast %625 : f32 to vector<16x16xf32>
    %629 = arith.mulf %628, %627 : vector<16x16xf32>
    %630 = arith.addf %624, %629 : vector<16x16xf32>
    %c102 = arith.constant 102 : index
    %631 = memref.load %arg2[%c102] : memref<288xf32, #tpu.memory_space<smem>>
    %c0_422 = arith.constant 0 : index
    %c3_423 = arith.constant 3 : index
    %c1_424 = arith.constant 1 : index
    %c0_425 = arith.constant 0 : index
    %632 = vector.load %arg1[%c0_422, %c3_423, %c1_424, %c0_425] : memref<1x4x18x18xf32, #tpu.memory_space<vmem>>, vector<1x1x16x16xf32>
    %633 = vector.shape_cast %632 : vector<1x1x16x16xf32> to vector<16x16xf32>
    %634 = vector.broadcast %631 : f32 to vector<16x16xf32>
    %635 = arith.mulf %634, %633 : vector<16x16xf32>
    %636 = arith.addf %630, %635 : vector<16x16xf32>
    %c103 = arith.constant 103 : index
    %637 = memref.load %arg2[%c103] : memref<288xf32, #tpu.memory_space<smem>>
    %c0_426 = arith.constant 0 : index
    %c3_427 = arith.constant 3 : index
    %c1_428 = arith.constant 1 : index
    %c1_429 = arith.constant 1 : index
    %638 = vector.load %arg1[%c0_426, %c3_427, %c1_428, %c1_429] : memref<1x4x18x18xf32, #tpu.memory_space<vmem>>, vector<1x1x16x16xf32>
    %639 = vector.shape_cast %638 : vector<1x1x16x16xf32> to vector<16x16xf32>
    %640 = vector.broadcast %637 : f32 to vector<16x16xf32>
    %641 = arith.mulf %640, %639 : vector<16x16xf32>
    %642 = arith.addf %636, %641 : vector<16x16xf32>
    %c104 = arith.constant 104 : index
    %643 = memref.load %arg2[%c104] : memref<288xf32, #tpu.memory_space<smem>>
    %c0_430 = arith.constant 0 : index
    %c3_431 = arith.constant 3 : index
    %c1_432 = arith.constant 1 : index
    %c2_433 = arith.constant 2 : index
    %644 = vector.load %arg1[%c0_430, %c3_431, %c1_432, %c2_433] : memref<1x4x18x18xf32, #tpu.memory_space<vmem>>, vector<1x1x16x16xf32>
    %645 = vector.shape_cast %644 : vector<1x1x16x16xf32> to vector<16x16xf32>
    %646 = vector.broadcast %643 : f32 to vector<16x16xf32>
    %647 = arith.mulf %646, %645 : vector<16x16xf32>
    %648 = arith.addf %642, %647 : vector<16x16xf32>
    %c105 = arith.constant 105 : index
    %649 = memref.load %arg2[%c105] : memref<288xf32, #tpu.memory_space<smem>>
    %c0_434 = arith.constant 0 : index
    %c3_435 = arith.constant 3 : index
    %c2_436 = arith.constant 2 : index
    %c0_437 = arith.constant 0 : index
    %650 = vector.load %arg1[%c0_434, %c3_435, %c2_436, %c0_437] : memref<1x4x18x18xf32, #tpu.memory_space<vmem>>, vector<1x1x16x16xf32>
    %651 = vector.shape_cast %650 : vector<1x1x16x16xf32> to vector<16x16xf32>
    %652 = vector.broadcast %649 : f32 to vector<16x16xf32>
    %653 = arith.mulf %652, %651 : vector<16x16xf32>
    %654 = arith.addf %648, %653 : vector<16x16xf32>
    %c106 = arith.constant 106 : index
    %655 = memref.load %arg2[%c106] : memref<288xf32, #tpu.memory_space<smem>>
    %c0_438 = arith.constant 0 : index
    %c3_439 = arith.constant 3 : index
    %c2_440 = arith.constant 2 : index
    %c1_441 = arith.constant 1 : index
    %656 = vector.load %arg1[%c0_438, %c3_439, %c2_440, %c1_441] : memref<1x4x18x18xf32, #tpu.memory_space<vmem>>, vector<1x1x16x16xf32>
    %657 = vector.shape_cast %656 : vector<1x1x16x16xf32> to vector<16x16xf32>
    %658 = vector.broadcast %655 : f32 to vector<16x16xf32>
    %659 = arith.mulf %658, %657 : vector<16x16xf32>
    %660 = arith.addf %654, %659 : vector<16x16xf32>
    %c107 = arith.constant 107 : index
    %661 = memref.load %arg2[%c107] : memref<288xf32, #tpu.memory_space<smem>>
    %c0_442 = arith.constant 0 : index
    %c3_443 = arith.constant 3 : index
    %c2_444 = arith.constant 2 : index
    %c2_445 = arith.constant 2 : index
    %662 = vector.load %arg1[%c0_442, %c3_443, %c2_444, %c2_445] : memref<1x4x18x18xf32, #tpu.memory_space<vmem>>, vector<1x1x16x16xf32>
    %663 = vector.shape_cast %662 : vector<1x1x16x16xf32> to vector<16x16xf32>
    %664 = vector.broadcast %661 : f32 to vector<16x16xf32>
    %665 = arith.mulf %664, %663 : vector<16x16xf32>
    %666 = arith.addf %660, %665 : vector<16x16xf32>
    %c2_446 = arith.constant 2 : index
    %667 = memref.load %arg3[%c2_446] : memref<8xf32, #tpu.memory_space<smem>>
    %668 = vector.broadcast %667 : f32 to vector<16x16xf32>
    %669 = arith.addf %666, %668 : vector<16x16xf32>
    %cst_447 = arith.constant 0.000000e+00 : f32
    %670 = vector.broadcast %cst_447 : f32 to vector<16x16xf32>
    %671 = arith.maximumf %669, %670 : vector<16x16xf32>
    %c0_448 = arith.constant 0 : index
    %c2_449 = arith.constant 2 : index
    %c0_450 = arith.constant 0 : index
    %c0_451 = arith.constant 0 : index
    %672 = vector.load %arg4[%c0_448, %c2_449, %c0_450, %c0_451] : memref<1x8x16x16xf32, #tpu.memory_space<vmem>>, vector<1x1x16x16xf32>
    %673 = vector.shape_cast %672 : vector<1x1x16x16xf32> to vector<16x16xf32>
    %674 = vector.shape_cast %671 : vector<16x16xf32> to vector<1x1x16x16xf32>
    tpu.vector_store %arg4[%c0_448, %c2_449, %c0_450, %c0_451], %674 {strides = array<i32>} : memref<1x8x16x16xf32, #tpu.memory_space<vmem>>, vector<1x1x16x16xf32>,
    %cst_452 = arith.constant 0.000000e+00 : f32
    %675 = vector.broadcast %cst_452 : f32 to vector<16x16xf32>
    %c108 = arith.constant 108 : index
    %676 = memref.load %arg2[%c108] : memref<288xf32, #tpu.memory_space<smem>>
    %c0_453 = arith.constant 0 : index
    %c0_454 = arith.constant 0 : index
    %c0_455 = arith.constant 0 : index
    %c0_456 = arith.constant 0 : index
    %677 = vector.load %arg1[%c0_453, %c0_454, %c0_455, %c0_456] : memref<1x4x18x18xf32, #tpu.memory_space<vmem>>, vector<1x1x16x16xf32>
    %678 = vector.shape_cast %677 : vector<1x1x16x16xf32> to vector<16x16xf32>
    %679 = vector.broadcast %676 : f32 to vector<16x16xf32>
    %680 = arith.mulf %679, %678 : vector<16x16xf32>
    %681 = arith.addf %675, %680 : vector<16x16xf32>
    %c109 = arith.constant 109 : index
    %682 = memref.load %arg2[%c109] : memref<288xf32, #tpu.memory_space<smem>>
    %c0_457 = arith.constant 0 : index
    %c0_458 = arith.constant 0 : index
    %c0_459 = arith.constant 0 : index
    %c1_460 = arith.constant 1 : index
    %683 = vector.load %arg1[%c0_457, %c0_458, %c0_459, %c1_460] : memref<1x4x18x18xf32, #tpu.memory_space<vmem>>, vector<1x1x16x16xf32>
    %684 = vector.shape_cast %683 : vector<1x1x16x16xf32> to vector<16x16xf32>
    %685 = vector.broadcast %682 : f32 to vector<16x16xf32>
    %686 = arith.mulf %685, %684 : vector<16x16xf32>
    %687 = arith.addf %681, %686 : vector<16x16xf32>
    %c110 = arith.constant 110 : index
    %688 = memref.load %arg2[%c110] : memref<288xf32, #tpu.memory_space<smem>>
    %c0_461 = arith.constant 0 : index
    %c0_462 = arith.constant 0 : index
    %c0_463 = arith.constant 0 : index
    %c2_464 = arith.constant 2 : index
    %689 = vector.load %arg1[%c0_461, %c0_462, %c0_463, %c2_464] : memref<1x4x18x18xf32, #tpu.memory_space<vmem>>, vector<1x1x16x16xf32>
    %690 = vector.shape_cast %689 : vector<1x1x16x16xf32> to vector<16x16xf32>
    %691 = vector.broadcast %688 : f32 to vector<16x16xf32>
    %692 = arith.mulf %691, %690 : vector<16x16xf32>
    %693 = arith.addf %687, %692 : vector<16x16xf32>
    %c111 = arith.constant 111 : index
    %694 = memref.load %arg2[%c111] : memref<288xf32, #tpu.memory_space<smem>>
    %c0_465 = arith.constant 0 : index
    %c0_466 = arith.constant 0 : index
    %c1_467 = arith.constant 1 : index
    %c0_468 = arith.constant 0 : index
    %695 = vector.load %arg1[%c0_465, %c0_466, %c1_467, %c0_468] : memref<1x4x18x18xf32, #tpu.memory_space<vmem>>, vector<1x1x16x16xf32>
    %696 = vector.shape_cast %695 : vector<1x1x16x16xf32> to vector<16x16xf32>
    %697 = vector.broadcast %694 : f32 to vector<16x16xf32>
    %698 = arith.mulf %697, %696 : vector<16x16xf32>
    %699 = arith.addf %693, %698 : vector<16x16xf32>
    %c112 = arith.constant 112 : index
    %700 = memref.load %arg2[%c112] : memref<288xf32, #tpu.memory_space<smem>>
    %c0_469 = arith.constant 0 : index
    %c0_470 = arith.constant 0 : index
    %c1_471 = arith.constant 1 : index
    %c1_472 = arith.constant 1 : index
    %701 = vector.load %arg1[%c0_469, %c0_470, %c1_471, %c1_472] : memref<1x4x18x18xf32, #tpu.memory_space<vmem>>, vector<1x1x16x16xf32>
    %702 = vector.shape_cast %701 : vector<1x1x16x16xf32> to vector<16x16xf32>
    %703 = vector.broadcast %700 : f32 to vector<16x16xf32>
    %704 = arith.mulf %703, %702 : vector<16x16xf32>
    %705 = arith.addf %699, %704 : vector<16x16xf32>
    %c113 = arith.constant 113 : index
    %706 = memref.load %arg2[%c113] : memref<288xf32, #tpu.memory_space<smem>>
    %c0_473 = arith.constant 0 : index
    %c0_474 = arith.constant 0 : index
    %c1_475 = arith.constant 1 : index
    %c2_476 = arith.constant 2 : index
    %707 = vector.load %arg1[%c0_473, %c0_474, %c1_475, %c2_476] : memref<1x4x18x18xf32, #tpu.memory_space<vmem>>, vector<1x1x16x16xf32>
    %708 = vector.shape_cast %707 : vector<1x1x16x16xf32> to vector<16x16xf32>
    %709 = vector.broadcast %706 : f32 to vector<16x16xf32>
    %710 = arith.mulf %709, %708 : vector<16x16xf32>
    %711 = arith.addf %705, %710 : vector<16x16xf32>
    %c114 = arith.constant 114 : index
    %712 = memref.load %arg2[%c114] : memref<288xf32, #tpu.memory_space<smem>>
    %c0_477 = arith.constant 0 : index
    %c0_478 = arith.constant 0 : index
    %c2_479 = arith.constant 2 : index
    %c0_480 = arith.constant 0 : index
    %713 = vector.load %arg1[%c0_477, %c0_478, %c2_479, %c0_480] : memref<1x4x18x18xf32, #tpu.memory_space<vmem>>, vector<1x1x16x16xf32>
    %714 = vector.shape_cast %713 : vector<1x1x16x16xf32> to vector<16x16xf32>
    %715 = vector.broadcast %712 : f32 to vector<16x16xf32>
    %716 = arith.mulf %715, %714 : vector<16x16xf32>
    %717 = arith.addf %711, %716 : vector<16x16xf32>
    %c115 = arith.constant 115 : index
    %718 = memref.load %arg2[%c115] : memref<288xf32, #tpu.memory_space<smem>>
    %c0_481 = arith.constant 0 : index
    %c0_482 = arith.constant 0 : index
    %c2_483 = arith.constant 2 : index
    %c1_484 = arith.constant 1 : index
    %719 = vector.load %arg1[%c0_481, %c0_482, %c2_483, %c1_484] : memref<1x4x18x18xf32, #tpu.memory_space<vmem>>, vector<1x1x16x16xf32>
    %720 = vector.shape_cast %719 : vector<1x1x16x16xf32> to vector<16x16xf32>
    %721 = vector.broadcast %718 : f32 to vector<16x16xf32>
    %722 = arith.mulf %721, %720 : vector<16x16xf32>
    %723 = arith.addf %717, %722 : vector<16x16xf32>
    %c116 = arith.constant 116 : index
    %724 = memref.load %arg2[%c116] : memref<288xf32, #tpu.memory_space<smem>>
    %c0_485 = arith.constant 0 : index
    %c0_486 = arith.constant 0 : index
    %c2_487 = arith.constant 2 : index
    %c2_488 = arith.constant 2 : index
    %725 = vector.load %arg1[%c0_485, %c0_486, %c2_487, %c2_488] : memref<1x4x18x18xf32, #tpu.memory_space<vmem>>, vector<1x1x16x16xf32>
    %726 = vector.shape_cast %725 : vector<1x1x16x16xf32> to vector<16x16xf32>
    %727 = vector.broadcast %724 : f32 to vector<16x16xf32>
    %728 = arith.mulf %727, %726 : vector<16x16xf32>
    %729 = arith.addf %723, %728 : vector<16x16xf32>
    %c117 = arith.constant 117 : index
    %730 = memref.load %arg2[%c117] : memref<288xf32, #tpu.memory_space<smem>>
    %c0_489 = arith.constant 0 : index
    %c1_490 = arith.constant 1 : index
    %c0_491 = arith.constant 0 : index
    %c0_492 = arith.constant 0 : index
    %731 = vector.load %arg1[%c0_489, %c1_490, %c0_491, %c0_492] : memref<1x4x18x18xf32, #tpu.memory_space<vmem>>, vector<1x1x16x16xf32>
    %732 = vector.shape_cast %731 : vector<1x1x16x16xf32> to vector<16x16xf32>
    %733 = vector.broadcast %730 : f32 to vector<16x16xf32>
    %734 = arith.mulf %733, %732 : vector<16x16xf32>
    %735 = arith.addf %729, %734 : vector<16x16xf32>
    %c118 = arith.constant 118 : index
    %736 = memref.load %arg2[%c118] : memref<288xf32, #tpu.memory_space<smem>>
    %c0_493 = arith.constant 0 : index
    %c1_494 = arith.constant 1 : index
    %c0_495 = arith.constant 0 : index
    %c1_496 = arith.constant 1 : index
    %737 = vector.load %arg1[%c0_493, %c1_494, %c0_495, %c1_496] : memref<1x4x18x18xf32, #tpu.memory_space<vmem>>, vector<1x1x16x16xf32>
    %738 = vector.shape_cast %737 : vector<1x1x16x16xf32> to vector<16x16xf32>
    %739 = vector.broadcast %736 : f32 to vector<16x16xf32>
    %740 = arith.mulf %739, %738 : vector<16x16xf32>
    %741 = arith.addf %735, %740 : vector<16x16xf32>
    %c119 = arith.constant 119 : index
    %742 = memref.load %arg2[%c119] : memref<288xf32, #tpu.memory_space<smem>>
    %c0_497 = arith.constant 0 : index
    %c1_498 = arith.constant 1 : index
    %c0_499 = arith.constant 0 : index
    %c2_500 = arith.constant 2 : index
    %743 = vector.load %arg1[%c0_497, %c1_498, %c0_499, %c2_500] : memref<1x4x18x18xf32, #tpu.memory_space<vmem>>, vector<1x1x16x16xf32>
    %744 = vector.shape_cast %743 : vector<1x1x16x16xf32> to vector<16x16xf32>
    %745 = vector.broadcast %742 : f32 to vector<16x16xf32>
    %746 = arith.mulf %745, %744 : vector<16x16xf32>
    %747 = arith.addf %741, %746 : vector<16x16xf32>
    %c120 = arith.constant 120 : index
    %748 = memref.load %arg2[%c120] : memref<288xf32, #tpu.memory_space<smem>>
    %c0_501 = arith.constant 0 : index
    %c1_502 = arith.constant 1 : index
    %c1_503 = arith.constant 1 : index
    %c0_504 = arith.constant 0 : index
    %749 = vector.load %arg1[%c0_501, %c1_502, %c1_503, %c0_504] : memref<1x4x18x18xf32, #tpu.memory_space<vmem>>, vector<1x1x16x16xf32>
    %750 = vector.shape_cast %749 : vector<1x1x16x16xf32> to vector<16x16xf32>
    %751 = vector.broadcast %748 : f32 to vector<16x16xf32>
    %752 = arith.mulf %751, %750 : vector<16x16xf32>
    %753 = arith.addf %747, %752 : vector<16x16xf32>
    %c121 = arith.constant 121 : index
    %754 = memref.load %arg2[%c121] : memref<288xf32, #tpu.memory_space<smem>>
    %c0_505 = arith.constant 0 : index
    %c1_506 = arith.constant 1 : index
    %c1_507 = arith.constant 1 : index
    %c1_508 = arith.constant 1 : index
    %755 = vector.load %arg1[%c0_505, %c1_506, %c1_507, %c1_508] : memref<1x4x18x18xf32, #tpu.memory_space<vmem>>, vector<1x1x16x16xf32>
    %756 = vector.shape_cast %755 : vector<1x1x16x16xf32> to vector<16x16xf32>
    %757 = vector.broadcast %754 : f32 to vector<16x16xf32>
    %758 = arith.mulf %757, %756 : vector<16x16xf32>
    %759 = arith.addf %753, %758 : vector<16x16xf32>
    %c122 = arith.constant 122 : index
    %760 = memref.load %arg2[%c122] : memref<288xf32, #tpu.memory_space<smem>>
    %c0_509 = arith.constant 0 : index
    %c1_510 = arith.constant 1 : index
    %c1_511 = arith.constant 1 : index
    %c2_512 = arith.constant 2 : index
    %761 = vector.load %arg1[%c0_509, %c1_510, %c1_511, %c2_512] : memref<1x4x18x18xf32, #tpu.memory_space<vmem>>, vector<1x1x16x16xf32>
    %762 = vector.shape_cast %761 : vector<1x1x16x16xf32> to vector<16x16xf32>
    %763 = vector.broadcast %760 : f32 to vector<16x16xf32>
    %764 = arith.mulf %763, %762 : vector<16x16xf32>
    %765 = arith.addf %759, %764 : vector<16x16xf32>
    %c123 = arith.constant 123 : index
    %766 = memref.load %arg2[%c123] : memref<288xf32, #tpu.memory_space<smem>>
    %c0_513 = arith.constant 0 : index
    %c1_514 = arith.constant 1 : index
    %c2_515 = arith.constant 2 : index
    %c0_516 = arith.constant 0 : index
    %767 = vector.load %arg1[%c0_513, %c1_514, %c2_515, %c0_516] : memref<1x4x18x18xf32, #tpu.memory_space<vmem>>, vector<1x1x16x16xf32>
    %768 = vector.shape_cast %767 : vector<1x1x16x16xf32> to vector<16x16xf32>
    %769 = vector.broadcast %766 : f32 to vector<16x16xf32>
    %770 = arith.mulf %769, %768 : vector<16x16xf32>
    %771 = arith.addf %765, %770 : vector<16x16xf32>
    %c124 = arith.constant 124 : index
    %772 = memref.load %arg2[%c124] : memref<288xf32, #tpu.memory_space<smem>>
    %c0_517 = arith.constant 0 : index
    %c1_518 = arith.constant 1 : index
    %c2_519 = arith.constant 2 : index
    %c1_520 = arith.constant 1 : index
    %773 = vector.load %arg1[%c0_517, %c1_518, %c2_519, %c1_520] : memref<1x4x18x18xf32, #tpu.memory_space<vmem>>, vector<1x1x16x16xf32>
    %774 = vector.shape_cast %773 : vector<1x1x16x16xf32> to vector<16x16xf32>
    %775 = vector.broadcast %772 : f32 to vector<16x16xf32>
    %776 = arith.mulf %775, %774 : vector<16x16xf32>
    %777 = arith.addf %771, %776 : vector<16x16xf32>
    %c125 = arith.constant 125 : index
    %778 = memref.load %arg2[%c125] : memref<288xf32, #tpu.memory_space<smem>>
    %c0_521 = arith.constant 0 : index
    %c1_522 = arith.constant 1 : index
    %c2_523 = arith.constant 2 : index
    %c2_524 = arith.constant 2 : index
    %779 = vector.load %arg1[%c0_521, %c1_522, %c2_523, %c2_524] : memref<1x4x18x18xf32, #tpu.memory_space<vmem>>, vector<1x1x16x16xf32>
    %780 = vector.shape_cast %779 : vector<1x1x16x16xf32> to vector<16x16xf32>
    %781 = vector.broadcast %778 : f32 to vector<16x16xf32>
    %782 = arith.mulf %781, %780 : vector<16x16xf32>
    %783 = arith.addf %777, %782 : vector<16x16xf32>
    %c126 = arith.constant 126 : index
    %784 = memref.load %arg2[%c126] : memref<288xf32, #tpu.memory_space<smem>>
    %c0_525 = arith.constant 0 : index
    %c2_526 = arith.constant 2 : index
    %c0_527 = arith.constant 0 : index
    %c0_528 = arith.constant 0 : index
    %785 = vector.load %arg1[%c0_525, %c2_526, %c0_527, %c0_528] : memref<1x4x18x18xf32, #tpu.memory_space<vmem>>, vector<1x1x16x16xf32>
    %786 = vector.shape_cast %785 : vector<1x1x16x16xf32> to vector<16x16xf32>
    %787 = vector.broadcast %784 : f32 to vector<16x16xf32>
    %788 = arith.mulf %787, %786 : vector<16x16xf32>
    %789 = arith.addf %783, %788 : vector<16x16xf32>
    %c127 = arith.constant 127 : index
    %790 = memref.load %arg2[%c127] : memref<288xf32, #tpu.memory_space<smem>>
    %c0_529 = arith.constant 0 : index
    %c2_530 = arith.constant 2 : index
    %c0_531 = arith.constant 0 : index
    %c1_532 = arith.constant 1 : index
    %791 = vector.load %arg1[%c0_529, %c2_530, %c0_531, %c1_532] : memref<1x4x18x18xf32, #tpu.memory_space<vmem>>, vector<1x1x16x16xf32>
    %792 = vector.shape_cast %791 : vector<1x1x16x16xf32> to vector<16x16xf32>
    %793 = vector.broadcast %790 : f32 to vector<16x16xf32>
    %794 = arith.mulf %793, %792 : vector<16x16xf32>
    %795 = arith.addf %789, %794 : vector<16x16xf32>
    %c128 = arith.constant 128 : index
    %796 = memref.load %arg2[%c128] : memref<288xf32, #tpu.memory_space<smem>>
    %c0_533 = arith.constant 0 : index
    %c2_534 = arith.constant 2 : index
    %c0_535 = arith.constant 0 : index
    %c2_536 = arith.constant 2 : index
    %797 = vector.load %arg1[%c0_533, %c2_534, %c0_535, %c2_536] : memref<1x4x18x18xf32, #tpu.memory_space<vmem>>, vector<1x1x16x16xf32>
    %798 = vector.shape_cast %797 : vector<1x1x16x16xf32> to vector<16x16xf32>
    %799 = vector.broadcast %796 : f32 to vector<16x16xf32>
    %800 = arith.mulf %799, %798 : vector<16x16xf32>
    %801 = arith.addf %795, %800 : vector<16x16xf32>
    %c129 = arith.constant 129 : index
    %802 = memref.load %arg2[%c129] : memref<288xf32, #tpu.memory_space<smem>>
    %c0_537 = arith.constant 0 : index
    %c2_538 = arith.constant 2 : index
    %c1_539 = arith.constant 1 : index
    %c0_540 = arith.constant 0 : index
    %803 = vector.load %arg1[%c0_537, %c2_538, %c1_539, %c0_540] : memref<1x4x18x18xf32, #tpu.memory_space<vmem>>, vector<1x1x16x16xf32>
    %804 = vector.shape_cast %803 : vector<1x1x16x16xf32> to vector<16x16xf32>
    %805 = vector.broadcast %802 : f32 to vector<16x16xf32>
    %806 = arith.mulf %805, %804 : vector<16x16xf32>
    %807 = arith.addf %801, %806 : vector<16x16xf32>
    %c130 = arith.constant 130 : index
    %808 = memref.load %arg2[%c130] : memref<288xf32, #tpu.memory_space<smem>>
    %c0_541 = arith.constant 0 : index
    %c2_542 = arith.constant 2 : index
    %c1_543 = arith.constant 1 : index
    %c1_544 = arith.constant 1 : index
    %809 = vector.load %arg1[%c0_541, %c2_542, %c1_543, %c1_544] : memref<1x4x18x18xf32, #tpu.memory_space<vmem>>, vector<1x1x16x16xf32>
    %810 = vector.shape_cast %809 : vector<1x1x16x16xf32> to vector<16x16xf32>
    %811 = vector.broadcast %808 : f32 to vector<16x16xf32>
    %812 = arith.mulf %811, %810 : vector<16x16xf32>
    %813 = arith.addf %807, %812 : vector<16x16xf32>
    %c131 = arith.constant 131 : index
    %814 = memref.load %arg2[%c131] : memref<288xf32, #tpu.memory_space<smem>>
    %c0_545 = arith.constant 0 : index
    %c2_546 = arith.constant 2 : index
    %c1_547 = arith.constant 1 : index
    %c2_548 = arith.constant 2 : index
    %815 = vector.load %arg1[%c0_545, %c2_546, %c1_547, %c2_548] : memref<1x4x18x18xf32, #tpu.memory_space<vmem>>, vector<1x1x16x16xf32>
    %816 = vector.shape_cast %815 : vector<1x1x16x16xf32> to vector<16x16xf32>
    %817 = vector.broadcast %814 : f32 to vector<16x16xf32>
    %818 = arith.mulf %817, %816 : vector<16x16xf32>
    %819 = arith.addf %813, %818 : vector<16x16xf32>
    %c132 = arith.constant 132 : index
    %820 = memref.load %arg2[%c132] : memref<288xf32, #tpu.memory_space<smem>>
    %c0_549 = arith.constant 0 : index
    %c2_550 = arith.constant 2 : index
    %c2_551 = arith.constant 2 : index
    %c0_552 = arith.constant 0 : index
    %821 = vector.load %arg1[%c0_549, %c2_550, %c2_551, %c0_552] : memref<1x4x18x18xf32, #tpu.memory_space<vmem>>, vector<1x1x16x16xf32>
    %822 = vector.shape_cast %821 : vector<1x1x16x16xf32> to vector<16x16xf32>
    %823 = vector.broadcast %820 : f32 to vector<16x16xf32>
    %824 = arith.mulf %823, %822 : vector<16x16xf32>
    %825 = arith.addf %819, %824 : vector<16x16xf32>
    %c133 = arith.constant 133 : index
    %826 = memref.load %arg2[%c133] : memref<288xf32, #tpu.memory_space<smem>>
    %c0_553 = arith.constant 0 : index
    %c2_554 = arith.constant 2 : index
    %c2_555 = arith.constant 2 : index
    %c1_556 = arith.constant 1 : index
    %827 = vector.load %arg1[%c0_553, %c2_554, %c2_555, %c1_556] : memref<1x4x18x18xf32, #tpu.memory_space<vmem>>, vector<1x1x16x16xf32>
    %828 = vector.shape_cast %827 : vector<1x1x16x16xf32> to vector<16x16xf32>
    %829 = vector.broadcast %826 : f32 to vector<16x16xf32>
    %830 = arith.mulf %829, %828 : vector<16x16xf32>
    %831 = arith.addf %825, %830 : vector<16x16xf32>
    %c134 = arith.constant 134 : index
    %832 = memref.load %arg2[%c134] : memref<288xf32, #tpu.memory_space<smem>>
    %c0_557 = arith.constant 0 : index
    %c2_558 = arith.constant 2 : index
    %c2_559 = arith.constant 2 : index
    %c2_560 = arith.constant 2 : index
    %833 = vector.load %arg1[%c0_557, %c2_558, %c2_559, %c2_560] : memref<1x4x18x18xf32, #tpu.memory_space<vmem>>, vector<1x1x16x16xf32>
    %834 = vector.shape_cast %833 : vector<1x1x16x16xf32> to vector<16x16xf32>
    %835 = vector.broadcast %832 : f32 to vector<16x16xf32>
    %836 = arith.mulf %835, %834 : vector<16x16xf32>
    %837 = arith.addf %831, %836 : vector<16x16xf32>
    %c135 = arith.constant 135 : index
    %838 = memref.load %arg2[%c135] : memref<288xf32, #tpu.memory_space<smem>>
    %c0_561 = arith.constant 0 : index
    %c3_562 = arith.constant 3 : index
    %c0_563 = arith.constant 0 : index
    %c0_564 = arith.constant 0 : index
    %839 = vector.load %arg1[%c0_561, %c3_562, %c0_563, %c0_564] : memref<1x4x18x18xf32, #tpu.memory_space<vmem>>, vector<1x1x16x16xf32>
    %840 = vector.shape_cast %839 : vector<1x1x16x16xf32> to vector<16x16xf32>
    %841 = vector.broadcast %838 : f32 to vector<16x16xf32>
    %842 = arith.mulf %841, %840 : vector<16x16xf32>
    %843 = arith.addf %837, %842 : vector<16x16xf32>
    %c136 = arith.constant 136 : index
    %844 = memref.load %arg2[%c136] : memref<288xf32, #tpu.memory_space<smem>>
    %c0_565 = arith.constant 0 : index
    %c3_566 = arith.constant 3 : index
    %c0_567 = arith.constant 0 : index
    %c1_568 = arith.constant 1 : index
    %845 = vector.load %arg1[%c0_565, %c3_566, %c0_567, %c1_568] : memref<1x4x18x18xf32, #tpu.memory_space<vmem>>, vector<1x1x16x16xf32>
    %846 = vector.shape_cast %845 : vector<1x1x16x16xf32> to vector<16x16xf32>
    %847 = vector.broadcast %844 : f32 to vector<16x16xf32>
    %848 = arith.mulf %847, %846 : vector<16x16xf32>
    %849 = arith.addf %843, %848 : vector<16x16xf32>
    %c137 = arith.constant 137 : index
    %850 = memref.load %arg2[%c137] : memref<288xf32, #tpu.memory_space<smem>>
    %c0_569 = arith.constant 0 : index
    %c3_570 = arith.constant 3 : index
    %c0_571 = arith.constant 0 : index
    %c2_572 = arith.constant 2 : index
    %851 = vector.load %arg1[%c0_569, %c3_570, %c0_571, %c2_572] : memref<1x4x18x18xf32, #tpu.memory_space<vmem>>, vector<1x1x16x16xf32>
    %852 = vector.shape_cast %851 : vector<1x1x16x16xf32> to vector<16x16xf32>
    %853 = vector.broadcast %850 : f32 to vector<16x16xf32>
    %854 = arith.mulf %853, %852 : vector<16x16xf32>
    %855 = arith.addf %849, %854 : vector<16x16xf32>
    %c138 = arith.constant 138 : index
    %856 = memref.load %arg2[%c138] : memref<288xf32, #tpu.memory_space<smem>>
    %c0_573 = arith.constant 0 : index
    %c3_574 = arith.constant 3 : index
    %c1_575 = arith.constant 1 : index
    %c0_576 = arith.constant 0 : index
    %857 = vector.load %arg1[%c0_573, %c3_574, %c1_575, %c0_576] : memref<1x4x18x18xf32, #tpu.memory_space<vmem>>, vector<1x1x16x16xf32>
    %858 = vector.shape_cast %857 : vector<1x1x16x16xf32> to vector<16x16xf32>
    %859 = vector.broadcast %856 : f32 to vector<16x16xf32>
    %860 = arith.mulf %859, %858 : vector<16x16xf32>
    %861 = arith.addf %855, %860 : vector<16x16xf32>
    %c139 = arith.constant 139 : index
    %862 = memref.load %arg2[%c139] : memref<288xf32, #tpu.memory_space<smem>>
    %c0_577 = arith.constant 0 : index
    %c3_578 = arith.constant 3 : index
    %c1_579 = arith.constant 1 : index
    %c1_580 = arith.constant 1 : index
    %863 = vector.load %arg1[%c0_577, %c3_578, %c1_579, %c1_580] : memref<1x4x18x18xf32, #tpu.memory_space<vmem>>, vector<1x1x16x16xf32>
    %864 = vector.shape_cast %863 : vector<1x1x16x16xf32> to vector<16x16xf32>
    %865 = vector.broadcast %862 : f32 to vector<16x16xf32>
    %866 = arith.mulf %865, %864 : vector<16x16xf32>
    %867 = arith.addf %861, %866 : vector<16x16xf32>
    %c140 = arith.constant 140 : index
    %868 = memref.load %arg2[%c140] : memref<288xf32, #tpu.memory_space<smem>>
    %c0_581 = arith.constant 0 : index
    %c3_582 = arith.constant 3 : index
    %c1_583 = arith.constant 1 : index
    %c2_584 = arith.constant 2 : index
    %869 = vector.load %arg1[%c0_581, %c3_582, %c1_583, %c2_584] : memref<1x4x18x18xf32, #tpu.memory_space<vmem>>, vector<1x1x16x16xf32>
    %870 = vector.shape_cast %869 : vector<1x1x16x16xf32> to vector<16x16xf32>
    %871 = vector.broadcast %868 : f32 to vector<16x16xf32>
    %872 = arith.mulf %871, %870 : vector<16x16xf32>
    %873 = arith.addf %867, %872 : vector<16x16xf32>
    %c141 = arith.constant 141 : index
    %874 = memref.load %arg2[%c141] : memref<288xf32, #tpu.memory_space<smem>>
    %c0_585 = arith.constant 0 : index
    %c3_586 = arith.constant 3 : index
    %c2_587 = arith.constant 2 : index
    %c0_588 = arith.constant 0 : index
    %875 = vector.load %arg1[%c0_585, %c3_586, %c2_587, %c0_588] : memref<1x4x18x18xf32, #tpu.memory_space<vmem>>, vector<1x1x16x16xf32>
    %876 = vector.shape_cast %875 : vector<1x1x16x16xf32> to vector<16x16xf32>
    %877 = vector.broadcast %874 : f32 to vector<16x16xf32>
    %878 = arith.mulf %877, %876 : vector<16x16xf32>
    %879 = arith.addf %873, %878 : vector<16x16xf32>
    %c142 = arith.constant 142 : index
    %880 = memref.load %arg2[%c142] : memref<288xf32, #tpu.memory_space<smem>>
    %c0_589 = arith.constant 0 : index
    %c3_590 = arith.constant 3 : index
    %c2_591 = arith.constant 2 : index
    %c1_592 = arith.constant 1 : index
    %881 = vector.load %arg1[%c0_589, %c3_590, %c2_591, %c1_592] : memref<1x4x18x18xf32, #tpu.memory_space<vmem>>, vector<1x1x16x16xf32>
    %882 = vector.shape_cast %881 : vector<1x1x16x16xf32> to vector<16x16xf32>
    %883 = vector.broadcast %880 : f32 to vector<16x16xf32>
    %884 = arith.mulf %883, %882 : vector<16x16xf32>
    %885 = arith.addf %879, %884 : vector<16x16xf32>
    %c143 = arith.constant 143 : index
    %886 = memref.load %arg2[%c143] : memref<288xf32, #tpu.memory_space<smem>>
    %c0_593 = arith.constant 0 : index
    %c3_594 = arith.constant 3 : index
    %c2_595 = arith.constant 2 : index
    %c2_596 = arith.constant 2 : index
    %887 = vector.load %arg1[%c0_593, %c3_594, %c2_595, %c2_596] : memref<1x4x18x18xf32, #tpu.memory_space<vmem>>, vector<1x1x16x16xf32>
    %888 = vector.shape_cast %887 : vector<1x1x16x16xf32> to vector<16x16xf32>
    %889 = vector.broadcast %886 : f32 to vector<16x16xf32>
    %890 = arith.mulf %889, %888 : vector<16x16xf32>
    %891 = arith.addf %885, %890 : vector<16x16xf32>
    %c3_597 = arith.constant 3 : index
    %892 = memref.load %arg3[%c3_597] : memref<8xf32, #tpu.memory_space<smem>>
    %893 = vector.broadcast %892 : f32 to vector<16x16xf32>
    %894 = arith.addf %891, %893 : vector<16x16xf32>
    %cst_598 = arith.constant 0.000000e+00 : f32
    %895 = vector.broadcast %cst_598 : f32 to vector<16x16xf32>
    %896 = arith.maximumf %894, %895 : vector<16x16xf32>
    %c0_599 = arith.constant 0 : index
    %c3_600 = arith.constant 3 : index
    %c0_601 = arith.constant 0 : index
    %c0_602 = arith.constant 0 : index
    %897 = vector.load %arg4[%c0_599, %c3_600, %c0_601, %c0_602] : memref<1x8x16x16xf32, #tpu.memory_space<vmem>>, vector<1x1x16x16xf32>
    %898 = vector.shape_cast %897 : vector<1x1x16x16xf32> to vector<16x16xf32>
    %899 = vector.shape_cast %896 : vector<16x16xf32> to vector<1x1x16x16xf32>
    tpu.vector_store %arg4[%c0_599, %c3_600, %c0_601, %c0_602], %899 {strides = array<i32>} : memref<1x8x16x16xf32, #tpu.memory_space<vmem>>, vector<1x1x16x16xf32>,
    %cst_603 = arith.constant 0.000000e+00 : f32
    %900 = vector.broadcast %cst_603 : f32 to vector<16x16xf32>
    %c144 = arith.constant 144 : index
    %901 = memref.load %arg2[%c144] : memref<288xf32, #tpu.memory_space<smem>>
    %c0_604 = arith.constant 0 : index
    %c0_605 = arith.constant 0 : index
    %c0_606 = arith.constant 0 : index
    %c0_607 = arith.constant 0 : index
    %902 = vector.load %arg1[%c0_604, %c0_605, %c0_606, %c0_607] : memref<1x4x18x18xf32, #tpu.memory_space<vmem>>, vector<1x1x16x16xf32>
    %903 = vector.shape_cast %902 : vector<1x1x16x16xf32> to vector<16x16xf32>
    %904 = vector.broadcast %901 : f32 to vector<16x16xf32>
    %905 = arith.mulf %904, %903 : vector<16x16xf32>
    %906 = arith.addf %900, %905 : vector<16x16xf32>
    %c145 = arith.constant 145 : index
    %907 = memref.load %arg2[%c145] : memref<288xf32, #tpu.memory_space<smem>>
    %c0_608 = arith.constant 0 : index
    %c0_609 = arith.constant 0 : index
    %c0_610 = arith.constant 0 : index
    %c1_611 = arith.constant 1 : index
    %908 = vector.load %arg1[%c0_608, %c0_609, %c0_610, %c1_611] : memref<1x4x18x18xf32, #tpu.memory_space<vmem>>, vector<1x1x16x16xf32>
    %909 = vector.shape_cast %908 : vector<1x1x16x16xf32> to vector<16x16xf32>
    %910 = vector.broadcast %907 : f32 to vector<16x16xf32>
    %911 = arith.mulf %910, %909 : vector<16x16xf32>
    %912 = arith.addf %906, %911 : vector<16x16xf32>
    %c146 = arith.constant 146 : index
    %913 = memref.load %arg2[%c146] : memref<288xf32, #tpu.memory_space<smem>>
    %c0_612 = arith.constant 0 : index
    %c0_613 = arith.constant 0 : index
    %c0_614 = arith.constant 0 : index
    %c2_615 = arith.constant 2 : index
    %914 = vector.load %arg1[%c0_612, %c0_613, %c0_614, %c2_615] : memref<1x4x18x18xf32, #tpu.memory_space<vmem>>, vector<1x1x16x16xf32>
    %915 = vector.shape_cast %914 : vector<1x1x16x16xf32> to vector<16x16xf32>
    %916 = vector.broadcast %913 : f32 to vector<16x16xf32>
    %917 = arith.mulf %916, %915 : vector<16x16xf32>
    %918 = arith.addf %912, %917 : vector<16x16xf32>
    %c147 = arith.constant 147 : index
    %919 = memref.load %arg2[%c147] : memref<288xf32, #tpu.memory_space<smem>>
    %c0_616 = arith.constant 0 : index
    %c0_617 = arith.constant 0 : index
    %c1_618 = arith.constant 1 : index
    %c0_619 = arith.constant 0 : index
    %920 = vector.load %arg1[%c0_616, %c0_617, %c1_618, %c0_619] : memref<1x4x18x18xf32, #tpu.memory_space<vmem>>, vector<1x1x16x16xf32>
    %921 = vector.shape_cast %920 : vector<1x1x16x16xf32> to vector<16x16xf32>
    %922 = vector.broadcast %919 : f32 to vector<16x16xf32>
    %923 = arith.mulf %922, %921 : vector<16x16xf32>
    %924 = arith.addf %918, %923 : vector<16x16xf32>
    %c148 = arith.constant 148 : index
    %925 = memref.load %arg2[%c148] : memref<288xf32, #tpu.memory_space<smem>>
    %c0_620 = arith.constant 0 : index
    %c0_621 = arith.constant 0 : index
    %c1_622 = arith.constant 1 : index
    %c1_623 = arith.constant 1 : index
    %926 = vector.load %arg1[%c0_620, %c0_621, %c1_622, %c1_623] : memref<1x4x18x18xf32, #tpu.memory_space<vmem>>, vector<1x1x16x16xf32>
    %927 = vector.shape_cast %926 : vector<1x1x16x16xf32> to vector<16x16xf32>
    %928 = vector.broadcast %925 : f32 to vector<16x16xf32>
    %929 = arith.mulf %928, %927 : vector<16x16xf32>
    %930 = arith.addf %924, %929 : vector<16x16xf32>
    %c149 = arith.constant 149 : index
    %931 = memref.load %arg2[%c149] : memref<288xf32, #tpu.memory_space<smem>>
    %c0_624 = arith.constant 0 : index
    %c0_625 = arith.constant 0 : index
    %c1_626 = arith.constant 1 : index
    %c2_627 = arith.constant 2 : index
    %932 = vector.load %arg1[%c0_624, %c0_625, %c1_626, %c2_627] : memref<1x4x18x18xf32, #tpu.memory_space<vmem>>, vector<1x1x16x16xf32>
    %933 = vector.shape_cast %932 : vector<1x1x16x16xf32> to vector<16x16xf32>
    %934 = vector.broadcast %931 : f32 to vector<16x16xf32>
    %935 = arith.mulf %934, %933 : vector<16x16xf32>
    %936 = arith.addf %930, %935 : vector<16x16xf32>
    %c150 = arith.constant 150 : index
    %937 = memref.load %arg2[%c150] : memref<288xf32, #tpu.memory_space<smem>>
    %c0_628 = arith.constant 0 : index
    %c0_629 = arith.constant 0 : index
    %c2_630 = arith.constant 2 : index
    %c0_631 = arith.constant 0 : index
    %938 = vector.load %arg1[%c0_628, %c0_629, %c2_630, %c0_631] : memref<1x4x18x18xf32, #tpu.memory_space<vmem>>, vector<1x1x16x16xf32>
    %939 = vector.shape_cast %938 : vector<1x1x16x16xf32> to vector<16x16xf32>
    %940 = vector.broadcast %937 : f32 to vector<16x16xf32>
    %941 = arith.mulf %940, %939 : vector<16x16xf32>
    %942 = arith.addf %936, %941 : vector<16x16xf32>
    %c151 = arith.constant 151 : index
    %943 = memref.load %arg2[%c151] : memref<288xf32, #tpu.memory_space<smem>>
    %c0_632 = arith.constant 0 : index
    %c0_633 = arith.constant 0 : index
    %c2_634 = arith.constant 2 : index
    %c1_635 = arith.constant 1 : index
    %944 = vector.load %arg1[%c0_632, %c0_633, %c2_634, %c1_635] : memref<1x4x18x18xf32, #tpu.memory_space<vmem>>, vector<1x1x16x16xf32>
    %945 = vector.shape_cast %944 : vector<1x1x16x16xf32> to vector<16x16xf32>
    %946 = vector.broadcast %943 : f32 to vector<16x16xf32>
    %947 = arith.mulf %946, %945 : vector<16x16xf32>
    %948 = arith.addf %942, %947 : vector<16x16xf32>
    %c152 = arith.constant 152 : index
    %949 = memref.load %arg2[%c152] : memref<288xf32, #tpu.memory_space<smem>>
    %c0_636 = arith.constant 0 : index
    %c0_637 = arith.constant 0 : index
    %c2_638 = arith.constant 2 : index
    %c2_639 = arith.constant 2 : index
    %950 = vector.load %arg1[%c0_636, %c0_637, %c2_638, %c2_639] : memref<1x4x18x18xf32, #tpu.memory_space<vmem>>, vector<1x1x16x16xf32>
    %951 = vector.shape_cast %950 : vector<1x1x16x16xf32> to vector<16x16xf32>
    %952 = vector.broadcast %949 : f32 to vector<16x16xf32>
    %953 = arith.mulf %952, %951 : vector<16x16xf32>
    %954 = arith.addf %948, %953 : vector<16x16xf32>
    %c153 = arith.constant 153 : index
    %955 = memref.load %arg2[%c153] : memref<288xf32, #tpu.memory_space<smem>>
    %c0_640 = arith.constant 0 : index
    %c1_641 = arith.constant 1 : index
    %c0_642 = arith.constant 0 : index
    %c0_643 = arith.constant 0 : index
    %956 = vector.load %arg1[%c0_640, %c1_641, %c0_642, %c0_643] : memref<1x4x18x18xf32, #tpu.memory_space<vmem>>, vector<1x1x16x16xf32>
    %957 = vector.shape_cast %956 : vector<1x1x16x16xf32> to vector<16x16xf32>
    %958 = vector.broadcast %955 : f32 to vector<16x16xf32>
    %959 = arith.mulf %958, %957 : vector<16x16xf32>
    %960 = arith.addf %954, %959 : vector<16x16xf32>
    %c154 = arith.constant 154 : index
    %961 = memref.load %arg2[%c154] : memref<288xf32, #tpu.memory_space<smem>>
    %c0_644 = arith.constant 0 : index
    %c1_645 = arith.constant 1 : index
    %c0_646 = arith.constant 0 : index
    %c1_647 = arith.constant 1 : index
    %962 = vector.load %arg1[%c0_644, %c1_645, %c0_646, %c1_647] : memref<1x4x18x18xf32, #tpu.memory_space<vmem>>, vector<1x1x16x16xf32>
    %963 = vector.shape_cast %962 : vector<1x1x16x16xf32> to vector<16x16xf32>
    %964 = vector.broadcast %961 : f32 to vector<16x16xf32>
    %965 = arith.mulf %964, %963 : vector<16x16xf32>
    %966 = arith.addf %960, %965 : vector<16x16xf32>
    %c155 = arith.constant 155 : index
    %967 = memref.load %arg2[%c155] : memref<288xf32, #tpu.memory_space<smem>>
    %c0_648 = arith.constant 0 : index
    %c1_649 = arith.constant 1 : index
    %c0_650 = arith.constant 0 : index
    %c2_651 = arith.constant 2 : index
    %968 = vector.load %arg1[%c0_648, %c1_649, %c0_650, %c2_651] : memref<1x4x18x18xf32, #tpu.memory_space<vmem>>, vector<1x1x16x16xf32>
    %969 = vector.shape_cast %968 : vector<1x1x16x16xf32> to vector<16x16xf32>
    %970 = vector.broadcast %967 : f32 to vector<16x16xf32>
    %971 = arith.mulf %970, %969 : vector<16x16xf32>
    %972 = arith.addf %966, %971 : vector<16x16xf32>
    %c156 = arith.constant 156 : index
    %973 = memref.load %arg2[%c156] : memref<288xf32, #tpu.memory_space<smem>>
    %c0_652 = arith.constant 0 : index
    %c1_653 = arith.constant 1 : index
    %c1_654 = arith.constant 1 : index
    %c0_655 = arith.constant 0 : index
    %974 = vector.load %arg1[%c0_652, %c1_653, %c1_654, %c0_655] : memref<1x4x18x18xf32, #tpu.memory_space<vmem>>, vector<1x1x16x16xf32>
    %975 = vector.shape_cast %974 : vector<1x1x16x16xf32> to vector<16x16xf32>
    %976 = vector.broadcast %973 : f32 to vector<16x16xf32>
    %977 = arith.mulf %976, %975 : vector<16x16xf32>
    %978 = arith.addf %972, %977 : vector<16x16xf32>
    %c157 = arith.constant 157 : index
    %979 = memref.load %arg2[%c157] : memref<288xf32, #tpu.memory_space<smem>>
    %c0_656 = arith.constant 0 : index
    %c1_657 = arith.constant 1 : index
    %c1_658 = arith.constant 1 : index
    %c1_659 = arith.constant 1 : index
    %980 = vector.load %arg1[%c0_656, %c1_657, %c1_658, %c1_659] : memref<1x4x18x18xf32, #tpu.memory_space<vmem>>, vector<1x1x16x16xf32>
    %981 = vector.shape_cast %980 : vector<1x1x16x16xf32> to vector<16x16xf32>
    %982 = vector.broadcast %979 : f32 to vector<16x16xf32>
    %983 = arith.mulf %982, %981 : vector<16x16xf32>
    %984 = arith.addf %978, %983 : vector<16x16xf32>
    %c158 = arith.constant 158 : index
    %985 = memref.load %arg2[%c158] : memref<288xf32, #tpu.memory_space<smem>>
    %c0_660 = arith.constant 0 : index
    %c1_661 = arith.constant 1 : index
    %c1_662 = arith.constant 1 : index
    %c2_663 = arith.constant 2 : index
    %986 = vector.load %arg1[%c0_660, %c1_661, %c1_662, %c2_663] : memref<1x4x18x18xf32, #tpu.memory_space<vmem>>, vector<1x1x16x16xf32>
    %987 = vector.shape_cast %986 : vector<1x1x16x16xf32> to vector<16x16xf32>
    %988 = vector.broadcast %985 : f32 to vector<16x16xf32>
    %989 = arith.mulf %988, %987 : vector<16x16xf32>
    %990 = arith.addf %984, %989 : vector<16x16xf32>
    %c159 = arith.constant 159 : index
    %991 = memref.load %arg2[%c159] : memref<288xf32, #tpu.memory_space<smem>>
    %c0_664 = arith.constant 0 : index
    %c1_665 = arith.constant 1 : index
    %c2_666 = arith.constant 2 : index
    %c0_667 = arith.constant 0 : index
    %992 = vector.load %arg1[%c0_664, %c1_665, %c2_666, %c0_667] : memref<1x4x18x18xf32, #tpu.memory_space<vmem>>, vector<1x1x16x16xf32>
    %993 = vector.shape_cast %992 : vector<1x1x16x16xf32> to vector<16x16xf32>
    %994 = vector.broadcast %991 : f32 to vector<16x16xf32>
    %995 = arith.mulf %994, %993 : vector<16x16xf32>
    %996 = arith.addf %990, %995 : vector<16x16xf32>
    %c160 = arith.constant 160 : index
    %997 = memref.load %arg2[%c160] : memref<288xf32, #tpu.memory_space<smem>>
    %c0_668 = arith.constant 0 : index
    %c1_669 = arith.constant 1 : index
    %c2_670 = arith.constant 2 : index
    %c1_671 = arith.constant 1 : index
    %998 = vector.load %arg1[%c0_668, %c1_669, %c2_670, %c1_671] : memref<1x4x18x18xf32, #tpu.memory_space<vmem>>, vector<1x1x16x16xf32>
    %999 = vector.shape_cast %998 : vector<1x1x16x16xf32> to vector<16x16xf32>
    %1000 = vector.broadcast %997 : f32 to vector<16x16xf32>
    %1001 = arith.mulf %1000, %999 : vector<16x16xf32>
    %1002 = arith.addf %996, %1001 : vector<16x16xf32>
    %c161 = arith.constant 161 : index
    %1003 = memref.load %arg2[%c161] : memref<288xf32, #tpu.memory_space<smem>>
    %c0_672 = arith.constant 0 : index
    %c1_673 = arith.constant 1 : index
    %c2_674 = arith.constant 2 : index
    %c2_675 = arith.constant 2 : index
    %1004 = vector.load %arg1[%c0_672, %c1_673, %c2_674, %c2_675] : memref<1x4x18x18xf32, #tpu.memory_space<vmem>>, vector<1x1x16x16xf32>
    %1005 = vector.shape_cast %1004 : vector<1x1x16x16xf32> to vector<16x16xf32>
    %1006 = vector.broadcast %1003 : f32 to vector<16x16xf32>
    %1007 = arith.mulf %1006, %1005 : vector<16x16xf32>
    %1008 = arith.addf %1002, %1007 : vector<16x16xf32>
    %c162 = arith.constant 162 : index
    %1009 = memref.load %arg2[%c162] : memref<288xf32, #tpu.memory_space<smem>>
    %c0_676 = arith.constant 0 : index
    %c2_677 = arith.constant 2 : index
    %c0_678 = arith.constant 0 : index
    %c0_679 = arith.constant 0 : index
    %1010 = vector.load %arg1[%c0_676, %c2_677, %c0_678, %c0_679] : memref<1x4x18x18xf32, #tpu.memory_space<vmem>>, vector<1x1x16x16xf32>
    %1011 = vector.shape_cast %1010 : vector<1x1x16x16xf32> to vector<16x16xf32>
    %1012 = vector.broadcast %1009 : f32 to vector<16x16xf32>
    %1013 = arith.mulf %1012, %1011 : vector<16x16xf32>
    %1014 = arith.addf %1008, %1013 : vector<16x16xf32>
    %c163 = arith.constant 163 : index
    %1015 = memref.load %arg2[%c163] : memref<288xf32, #tpu.memory_space<smem>>
    %c0_680 = arith.constant 0 : index
    %c2_681 = arith.constant 2 : index
    %c0_682 = arith.constant 0 : index
    %c1_683 = arith.constant 1 : index
    %1016 = vector.load %arg1[%c0_680, %c2_681, %c0_682, %c1_683] : memref<1x4x18x18xf32, #tpu.memory_space<vmem>>, vector<1x1x16x16xf32>
    %1017 = vector.shape_cast %1016 : vector<1x1x16x16xf32> to vector<16x16xf32>
    %1018 = vector.broadcast %1015 : f32 to vector<16x16xf32>
    %1019 = arith.mulf %1018, %1017 : vector<16x16xf32>
    %1020 = arith.addf %1014, %1019 : vector<16x16xf32>
    %c164 = arith.constant 164 : index
    %1021 = memref.load %arg2[%c164] : memref<288xf32, #tpu.memory_space<smem>>
    %c0_684 = arith.constant 0 : index
    %c2_685 = arith.constant 2 : index
    %c0_686 = arith.constant 0 : index
    %c2_687 = arith.constant 2 : index
    %1022 = vector.load %arg1[%c0_684, %c2_685, %c0_686, %c2_687] : memref<1x4x18x18xf32, #tpu.memory_space<vmem>>, vector<1x1x16x16xf32>
    %1023 = vector.shape_cast %1022 : vector<1x1x16x16xf32> to vector<16x16xf32>
    %1024 = vector.broadcast %1021 : f32 to vector<16x16xf32>
    %1025 = arith.mulf %1024, %1023 : vector<16x16xf32>
    %1026 = arith.addf %1020, %1025 : vector<16x16xf32>
    %c165 = arith.constant 165 : index
    %1027 = memref.load %arg2[%c165] : memref<288xf32, #tpu.memory_space<smem>>
    %c0_688 = arith.constant 0 : index
    %c2_689 = arith.constant 2 : index
    %c1_690 = arith.constant 1 : index
    %c0_691 = arith.constant 0 : index
    %1028 = vector.load %arg1[%c0_688, %c2_689, %c1_690, %c0_691] : memref<1x4x18x18xf32, #tpu.memory_space<vmem>>, vector<1x1x16x16xf32>
    %1029 = vector.shape_cast %1028 : vector<1x1x16x16xf32> to vector<16x16xf32>
    %1030 = vector.broadcast %1027 : f32 to vector<16x16xf32>
    %1031 = arith.mulf %1030, %1029 : vector<16x16xf32>
    %1032 = arith.addf %1026, %1031 : vector<16x16xf32>
    %c166 = arith.constant 166 : index
    %1033 = memref.load %arg2[%c166] : memref<288xf32, #tpu.memory_space<smem>>
    %c0_692 = arith.constant 0 : index
    %c2_693 = arith.constant 2 : index
    %c1_694 = arith.constant 1 : index
    %c1_695 = arith.constant 1 : index
    %1034 = vector.load %arg1[%c0_692, %c2_693, %c1_694, %c1_695] : memref<1x4x18x18xf32, #tpu.memory_space<vmem>>, vector<1x1x16x16xf32>
    %1035 = vector.shape_cast %1034 : vector<1x1x16x16xf32> to vector<16x16xf32>
    %1036 = vector.broadcast %1033 : f32 to vector<16x16xf32>
    %1037 = arith.mulf %1036, %1035 : vector<16x16xf32>
    %1038 = arith.addf %1032, %1037 : vector<16x16xf32>
    %c167 = arith.constant 167 : index
    %1039 = memref.load %arg2[%c167] : memref<288xf32, #tpu.memory_space<smem>>
    %c0_696 = arith.constant 0 : index
    %c2_697 = arith.constant 2 : index
    %c1_698 = arith.constant 1 : index
    %c2_699 = arith.constant 2 : index
    %1040 = vector.load %arg1[%c0_696, %c2_697, %c1_698, %c2_699] : memref<1x4x18x18xf32, #tpu.memory_space<vmem>>, vector<1x1x16x16xf32>
    %1041 = vector.shape_cast %1040 : vector<1x1x16x16xf32> to vector<16x16xf32>
    %1042 = vector.broadcast %1039 : f32 to vector<16x16xf32>
    %1043 = arith.mulf %1042, %1041 : vector<16x16xf32>
    %1044 = arith.addf %1038, %1043 : vector<16x16xf32>
    %c168 = arith.constant 168 : index
    %1045 = memref.load %arg2[%c168] : memref<288xf32, #tpu.memory_space<smem>>
    %c0_700 = arith.constant 0 : index
    %c2_701 = arith.constant 2 : index
    %c2_702 = arith.constant 2 : index
    %c0_703 = arith.constant 0 : index
    %1046 = vector.load %arg1[%c0_700, %c2_701, %c2_702, %c0_703] : memref<1x4x18x18xf32, #tpu.memory_space<vmem>>, vector<1x1x16x16xf32>
    %1047 = vector.shape_cast %1046 : vector<1x1x16x16xf32> to vector<16x16xf32>
    %1048 = vector.broadcast %1045 : f32 to vector<16x16xf32>
    %1049 = arith.mulf %1048, %1047 : vector<16x16xf32>
    %1050 = arith.addf %1044, %1049 : vector<16x16xf32>
    %c169 = arith.constant 169 : index
    %1051 = memref.load %arg2[%c169] : memref<288xf32, #tpu.memory_space<smem>>
    %c0_704 = arith.constant 0 : index
    %c2_705 = arith.constant 2 : index
    %c2_706 = arith.constant 2 : index
    %c1_707 = arith.constant 1 : index
    %1052 = vector.load %arg1[%c0_704, %c2_705, %c2_706, %c1_707] : memref<1x4x18x18xf32, #tpu.memory_space<vmem>>, vector<1x1x16x16xf32>
    %1053 = vector.shape_cast %1052 : vector<1x1x16x16xf32> to vector<16x16xf32>
    %1054 = vector.broadcast %1051 : f32 to vector<16x16xf32>
    %1055 = arith.mulf %1054, %1053 : vector<16x16xf32>
    %1056 = arith.addf %1050, %1055 : vector<16x16xf32>
    %c170 = arith.constant 170 : index
    %1057 = memref.load %arg2[%c170] : memref<288xf32, #tpu.memory_space<smem>>
    %c0_708 = arith.constant 0 : index
    %c2_709 = arith.constant 2 : index
    %c2_710 = arith.constant 2 : index
    %c2_711 = arith.constant 2 : index
    %1058 = vector.load %arg1[%c0_708, %c2_709, %c2_710, %c2_711] : memref<1x4x18x18xf32, #tpu.memory_space<vmem>>, vector<1x1x16x16xf32>
    %1059 = vector.shape_cast %1058 : vector<1x1x16x16xf32> to vector<16x16xf32>
    %1060 = vector.broadcast %1057 : f32 to vector<16x16xf32>
    %1061 = arith.mulf %1060, %1059 : vector<16x16xf32>
    %1062 = arith.addf %1056, %1061 : vector<16x16xf32>
    %c171 = arith.constant 171 : index
    %1063 = memref.load %arg2[%c171] : memref<288xf32, #tpu.memory_space<smem>>
    %c0_712 = arith.constant 0 : index
    %c3_713 = arith.constant 3 : index
    %c0_714 = arith.constant 0 : index
    %c0_715 = arith.constant 0 : index
    %1064 = vector.load %arg1[%c0_712, %c3_713, %c0_714, %c0_715] : memref<1x4x18x18xf32, #tpu.memory_space<vmem>>, vector<1x1x16x16xf32>
    %1065 = vector.shape_cast %1064 : vector<1x1x16x16xf32> to vector<16x16xf32>
    %1066 = vector.broadcast %1063 : f32 to vector<16x16xf32>
    %1067 = arith.mulf %1066, %1065 : vector<16x16xf32>
    %1068 = arith.addf %1062, %1067 : vector<16x16xf32>
    %c172 = arith.constant 172 : index
    %1069 = memref.load %arg2[%c172] : memref<288xf32, #tpu.memory_space<smem>>
    %c0_716 = arith.constant 0 : index
    %c3_717 = arith.constant 3 : index
    %c0_718 = arith.constant 0 : index
    %c1_719 = arith.constant 1 : index
    %1070 = vector.load %arg1[%c0_716, %c3_717, %c0_718, %c1_719] : memref<1x4x18x18xf32, #tpu.memory_space<vmem>>, vector<1x1x16x16xf32>
    %1071 = vector.shape_cast %1070 : vector<1x1x16x16xf32> to vector<16x16xf32>
    %1072 = vector.broadcast %1069 : f32 to vector<16x16xf32>
    %1073 = arith.mulf %1072, %1071 : vector<16x16xf32>
    %1074 = arith.addf %1068, %1073 : vector<16x16xf32>
    %c173 = arith.constant 173 : index
    %1075 = memref.load %arg2[%c173] : memref<288xf32, #tpu.memory_space<smem>>
    %c0_720 = arith.constant 0 : index
    %c3_721 = arith.constant 3 : index
    %c0_722 = arith.constant 0 : index
    %c2_723 = arith.constant 2 : index
    %1076 = vector.load %arg1[%c0_720, %c3_721, %c0_722, %c2_723] : memref<1x4x18x18xf32, #tpu.memory_space<vmem>>, vector<1x1x16x16xf32>
    %1077 = vector.shape_cast %1076 : vector<1x1x16x16xf32> to vector<16x16xf32>
    %1078 = vector.broadcast %1075 : f32 to vector<16x16xf32>
    %1079 = arith.mulf %1078, %1077 : vector<16x16xf32>
    %1080 = arith.addf %1074, %1079 : vector<16x16xf32>
    %c174 = arith.constant 174 : index
    %1081 = memref.load %arg2[%c174] : memref<288xf32, #tpu.memory_space<smem>>
    %c0_724 = arith.constant 0 : index
    %c3_725 = arith.constant 3 : index
    %c1_726 = arith.constant 1 : index
    %c0_727 = arith.constant 0 : index
    %1082 = vector.load %arg1[%c0_724, %c3_725, %c1_726, %c0_727] : memref<1x4x18x18xf32, #tpu.memory_space<vmem>>, vector<1x1x16x16xf32>
    %1083 = vector.shape_cast %1082 : vector<1x1x16x16xf32> to vector<16x16xf32>
    %1084 = vector.broadcast %1081 : f32 to vector<16x16xf32>
    %1085 = arith.mulf %1084, %1083 : vector<16x16xf32>
    %1086 = arith.addf %1080, %1085 : vector<16x16xf32>
    %c175 = arith.constant 175 : index
    %1087 = memref.load %arg2[%c175] : memref<288xf32, #tpu.memory_space<smem>>
    %c0_728 = arith.constant 0 : index
    %c3_729 = arith.constant 3 : index
    %c1_730 = arith.constant 1 : index
    %c1_731 = arith.constant 1 : index
    %1088 = vector.load %arg1[%c0_728, %c3_729, %c1_730, %c1_731] : memref<1x4x18x18xf32, #tpu.memory_space<vmem>>, vector<1x1x16x16xf32>
    %1089 = vector.shape_cast %1088 : vector<1x1x16x16xf32> to vector<16x16xf32>
    %1090 = vector.broadcast %1087 : f32 to vector<16x16xf32>
    %1091 = arith.mulf %1090, %1089 : vector<16x16xf32>
    %1092 = arith.addf %1086, %1091 : vector<16x16xf32>
    %c176 = arith.constant 176 : index
    %1093 = memref.load %arg2[%c176] : memref<288xf32, #tpu.memory_space<smem>>
    %c0_732 = arith.constant 0 : index
    %c3_733 = arith.constant 3 : index
    %c1_734 = arith.constant 1 : index
    %c2_735 = arith.constant 2 : index
    %1094 = vector.load %arg1[%c0_732, %c3_733, %c1_734, %c2_735] : memref<1x4x18x18xf32, #tpu.memory_space<vmem>>, vector<1x1x16x16xf32>
    %1095 = vector.shape_cast %1094 : vector<1x1x16x16xf32> to vector<16x16xf32>
    %1096 = vector.broadcast %1093 : f32 to vector<16x16xf32>
    %1097 = arith.mulf %1096, %1095 : vector<16x16xf32>
    %1098 = arith.addf %1092, %1097 : vector<16x16xf32>
    %c177 = arith.constant 177 : index
    %1099 = memref.load %arg2[%c177] : memref<288xf32, #tpu.memory_space<smem>>
    %c0_736 = arith.constant 0 : index
    %c3_737 = arith.constant 3 : index
    %c2_738 = arith.constant 2 : index
    %c0_739 = arith.constant 0 : index
    %1100 = vector.load %arg1[%c0_736, %c3_737, %c2_738, %c0_739] : memref<1x4x18x18xf32, #tpu.memory_space<vmem>>, vector<1x1x16x16xf32>
    %1101 = vector.shape_cast %1100 : vector<1x1x16x16xf32> to vector<16x16xf32>
    %1102 = vector.broadcast %1099 : f32 to vector<16x16xf32>
    %1103 = arith.mulf %1102, %1101 : vector<16x16xf32>
    %1104 = arith.addf %1098, %1103 : vector<16x16xf32>
    %c178 = arith.constant 178 : index
    %1105 = memref.load %arg2[%c178] : memref<288xf32, #tpu.memory_space<smem>>
    %c0_740 = arith.constant 0 : index
    %c3_741 = arith.constant 3 : index
    %c2_742 = arith.constant 2 : index
    %c1_743 = arith.constant 1 : index
    %1106 = vector.load %arg1[%c0_740, %c3_741, %c2_742, %c1_743] : memref<1x4x18x18xf32, #tpu.memory_space<vmem>>, vector<1x1x16x16xf32>
    %1107 = vector.shape_cast %1106 : vector<1x1x16x16xf32> to vector<16x16xf32>
    %1108 = vector.broadcast %1105 : f32 to vector<16x16xf32>
    %1109 = arith.mulf %1108, %1107 : vector<16x16xf32>
    %1110 = arith.addf %1104, %1109 : vector<16x16xf32>
    %c179 = arith.constant 179 : index
    %1111 = memref.load %arg2[%c179] : memref<288xf32, #tpu.memory_space<smem>>
    %c0_744 = arith.constant 0 : index
    %c3_745 = arith.constant 3 : index
    %c2_746 = arith.constant 2 : index
    %c2_747 = arith.constant 2 : index
    %1112 = vector.load %arg1[%c0_744, %c3_745, %c2_746, %c2_747] : memref<1x4x18x18xf32, #tpu.memory_space<vmem>>, vector<1x1x16x16xf32>
    %1113 = vector.shape_cast %1112 : vector<1x1x16x16xf32> to vector<16x16xf32>
    %1114 = vector.broadcast %1111 : f32 to vector<16x16xf32>
    %1115 = arith.mulf %1114, %1113 : vector<16x16xf32>
    %1116 = arith.addf %1110, %1115 : vector<16x16xf32>
    %c4_748 = arith.constant 4 : index
    %1117 = memref.load %arg3[%c4_748] : memref<8xf32, #tpu.memory_space<smem>>
    %1118 = vector.broadcast %1117 : f32 to vector<16x16xf32>
    %1119 = arith.addf %1116, %1118 : vector<16x16xf32>
    %cst_749 = arith.constant 0.000000e+00 : f32
    %1120 = vector.broadcast %cst_749 : f32 to vector<16x16xf32>
    %1121 = arith.maximumf %1119, %1120 : vector<16x16xf32>
    %c0_750 = arith.constant 0 : index
    %c4_751 = arith.constant 4 : index
    %c0_752 = arith.constant 0 : index
    %c0_753 = arith.constant 0 : index
    %1122 = vector.load %arg4[%c0_750, %c4_751, %c0_752, %c0_753] : memref<1x8x16x16xf32, #tpu.memory_space<vmem>>, vector<1x1x16x16xf32>
    %1123 = vector.shape_cast %1122 : vector<1x1x16x16xf32> to vector<16x16xf32>
    %1124 = vector.shape_cast %1121 : vector<16x16xf32> to vector<1x1x16x16xf32>
    tpu.vector_store %arg4[%c0_750, %c4_751, %c0_752, %c0_753], %1124 {strides = array<i32>} : memref<1x8x16x16xf32, #tpu.memory_space<vmem>>, vector<1x1x16x16xf32>,
    %cst_754 = arith.constant 0.000000e+00 : f32
    %1125 = vector.broadcast %cst_754 : f32 to vector<16x16xf32>
    %c180 = arith.constant 180 : index
    %1126 = memref.load %arg2[%c180] : memref<288xf32, #tpu.memory_space<smem>>
    %c0_755 = arith.constant 0 : index
    %c0_756 = arith.constant 0 : index
    %c0_757 = arith.constant 0 : index
    %c0_758 = arith.constant 0 : index
    %1127 = vector.load %arg1[%c0_755, %c0_756, %c0_757, %c0_758] : memref<1x4x18x18xf32, #tpu.memory_space<vmem>>, vector<1x1x16x16xf32>
    %1128 = vector.shape_cast %1127 : vector<1x1x16x16xf32> to vector<16x16xf32>
    %1129 = vector.broadcast %1126 : f32 to vector<16x16xf32>
    %1130 = arith.mulf %1129, %1128 : vector<16x16xf32>
    %1131 = arith.addf %1125, %1130 : vector<16x16xf32>
    %c181 = arith.constant 181 : index
    %1132 = memref.load %arg2[%c181] : memref<288xf32, #tpu.memory_space<smem>>
    %c0_759 = arith.constant 0 : index
    %c0_760 = arith.constant 0 : index
    %c0_761 = arith.constant 0 : index
    %c1_762 = arith.constant 1 : index
    %1133 = vector.load %arg1[%c0_759, %c0_760, %c0_761, %c1_762] : memref<1x4x18x18xf32, #tpu.memory_space<vmem>>, vector<1x1x16x16xf32>
    %1134 = vector.shape_cast %1133 : vector<1x1x16x16xf32> to vector<16x16xf32>
    %1135 = vector.broadcast %1132 : f32 to vector<16x16xf32>
    %1136 = arith.mulf %1135, %1134 : vector<16x16xf32>
    %1137 = arith.addf %1131, %1136 : vector<16x16xf32>
    %c182 = arith.constant 182 : index
    %1138 = memref.load %arg2[%c182] : memref<288xf32, #tpu.memory_space<smem>>
    %c0_763 = arith.constant 0 : index
    %c0_764 = arith.constant 0 : index
    %c0_765 = arith.constant 0 : index
    %c2_766 = arith.constant 2 : index
    %1139 = vector.load %arg1[%c0_763, %c0_764, %c0_765, %c2_766] : memref<1x4x18x18xf32, #tpu.memory_space<vmem>>, vector<1x1x16x16xf32>
    %1140 = vector.shape_cast %1139 : vector<1x1x16x16xf32> to vector<16x16xf32>
    %1141 = vector.broadcast %1138 : f32 to vector<16x16xf32>
    %1142 = arith.mulf %1141, %1140 : vector<16x16xf32>
    %1143 = arith.addf %1137, %1142 : vector<16x16xf32>
    %c183 = arith.constant 183 : index
    %1144 = memref.load %arg2[%c183] : memref<288xf32, #tpu.memory_space<smem>>
    %c0_767 = arith.constant 0 : index
    %c0_768 = arith.constant 0 : index
    %c1_769 = arith.constant 1 : index
    %c0_770 = arith.constant 0 : index
    %1145 = vector.load %arg1[%c0_767, %c0_768, %c1_769, %c0_770] : memref<1x4x18x18xf32, #tpu.memory_space<vmem>>, vector<1x1x16x16xf32>
    %1146 = vector.shape_cast %1145 : vector<1x1x16x16xf32> to vector<16x16xf32>
    %1147 = vector.broadcast %1144 : f32 to vector<16x16xf32>
    %1148 = arith.mulf %1147, %1146 : vector<16x16xf32>
    %1149 = arith.addf %1143, %1148 : vector<16x16xf32>
    %c184 = arith.constant 184 : index
    %1150 = memref.load %arg2[%c184] : memref<288xf32, #tpu.memory_space<smem>>
    %c0_771 = arith.constant 0 : index
    %c0_772 = arith.constant 0 : index
    %c1_773 = arith.constant 1 : index
    %c1_774 = arith.constant 1 : index
    %1151 = vector.load %arg1[%c0_771, %c0_772, %c1_773, %c1_774] : memref<1x4x18x18xf32, #tpu.memory_space<vmem>>, vector<1x1x16x16xf32>
    %1152 = vector.shape_cast %1151 : vector<1x1x16x16xf32> to vector<16x16xf32>
    %1153 = vector.broadcast %1150 : f32 to vector<16x16xf32>
    %1154 = arith.mulf %1153, %1152 : vector<16x16xf32>
    %1155 = arith.addf %1149, %1154 : vector<16x16xf32>
    %c185 = arith.constant 185 : index
    %1156 = memref.load %arg2[%c185] : memref<288xf32, #tpu.memory_space<smem>>
    %c0_775 = arith.constant 0 : index
    %c0_776 = arith.constant 0 : index
    %c1_777 = arith.constant 1 : index
    %c2_778 = arith.constant 2 : index
    %1157 = vector.load %arg1[%c0_775, %c0_776, %c1_777, %c2_778] : memref<1x4x18x18xf32, #tpu.memory_space<vmem>>, vector<1x1x16x16xf32>
    %1158 = vector.shape_cast %1157 : vector<1x1x16x16xf32> to vector<16x16xf32>
    %1159 = vector.broadcast %1156 : f32 to vector<16x16xf32>
    %1160 = arith.mulf %1159, %1158 : vector<16x16xf32>
    %1161 = arith.addf %1155, %1160 : vector<16x16xf32>
    %c186 = arith.constant 186 : index
    %1162 = memref.load %arg2[%c186] : memref<288xf32, #tpu.memory_space<smem>>
    %c0_779 = arith.constant 0 : index
    %c0_780 = arith.constant 0 : index
    %c2_781 = arith.constant 2 : index
    %c0_782 = arith.constant 0 : index
    %1163 = vector.load %arg1[%c0_779, %c0_780, %c2_781, %c0_782] : memref<1x4x18x18xf32, #tpu.memory_space<vmem>>, vector<1x1x16x16xf32>
    %1164 = vector.shape_cast %1163 : vector<1x1x16x16xf32> to vector<16x16xf32>
    %1165 = vector.broadcast %1162 : f32 to vector<16x16xf32>
    %1166 = arith.mulf %1165, %1164 : vector<16x16xf32>
    %1167 = arith.addf %1161, %1166 : vector<16x16xf32>
    %c187 = arith.constant 187 : index
    %1168 = memref.load %arg2[%c187] : memref<288xf32, #tpu.memory_space<smem>>
    %c0_783 = arith.constant 0 : index
    %c0_784 = arith.constant 0 : index
    %c2_785 = arith.constant 2 : index
    %c1_786 = arith.constant 1 : index
    %1169 = vector.load %arg1[%c0_783, %c0_784, %c2_785, %c1_786] : memref<1x4x18x18xf32, #tpu.memory_space<vmem>>, vector<1x1x16x16xf32>
    %1170 = vector.shape_cast %1169 : vector<1x1x16x16xf32> to vector<16x16xf32>
    %1171 = vector.broadcast %1168 : f32 to vector<16x16xf32>
    %1172 = arith.mulf %1171, %1170 : vector<16x16xf32>
    %1173 = arith.addf %1167, %1172 : vector<16x16xf32>
    %c188 = arith.constant 188 : index
    %1174 = memref.load %arg2[%c188] : memref<288xf32, #tpu.memory_space<smem>>
    %c0_787 = arith.constant 0 : index
    %c0_788 = arith.constant 0 : index
    %c2_789 = arith.constant 2 : index
    %c2_790 = arith.constant 2 : index
    %1175 = vector.load %arg1[%c0_787, %c0_788, %c2_789, %c2_790] : memref<1x4x18x18xf32, #tpu.memory_space<vmem>>, vector<1x1x16x16xf32>
    %1176 = vector.shape_cast %1175 : vector<1x1x16x16xf32> to vector<16x16xf32>
    %1177 = vector.broadcast %1174 : f32 to vector<16x16xf32>
    %1178 = arith.mulf %1177, %1176 : vector<16x16xf32>
    %1179 = arith.addf %1173, %1178 : vector<16x16xf32>
    %c189 = arith.constant 189 : index
    %1180 = memref.load %arg2[%c189] : memref<288xf32, #tpu.memory_space<smem>>
    %c0_791 = arith.constant 0 : index
    %c1_792 = arith.constant 1 : index
    %c0_793 = arith.constant 0 : index
    %c0_794 = arith.constant 0 : index
    %1181 = vector.load %arg1[%c0_791, %c1_792, %c0_793, %c0_794] : memref<1x4x18x18xf32, #tpu.memory_space<vmem>>, vector<1x1x16x16xf32>
    %1182 = vector.shape_cast %1181 : vector<1x1x16x16xf32> to vector<16x16xf32>
    %1183 = vector.broadcast %1180 : f32 to vector<16x16xf32>
    %1184 = arith.mulf %1183, %1182 : vector<16x16xf32>
    %1185 = arith.addf %1179, %1184 : vector<16x16xf32>
    %c190 = arith.constant 190 : index
    %1186 = memref.load %arg2[%c190] : memref<288xf32, #tpu.memory_space<smem>>
    %c0_795 = arith.constant 0 : index
    %c1_796 = arith.constant 1 : index
    %c0_797 = arith.constant 0 : index
    %c1_798 = arith.constant 1 : index
    %1187 = vector.load %arg1[%c0_795, %c1_796, %c0_797, %c1_798] : memref<1x4x18x18xf32, #tpu.memory_space<vmem>>, vector<1x1x16x16xf32>
    %1188 = vector.shape_cast %1187 : vector<1x1x16x16xf32> to vector<16x16xf32>
    %1189 = vector.broadcast %1186 : f32 to vector<16x16xf32>
    %1190 = arith.mulf %1189, %1188 : vector<16x16xf32>
    %1191 = arith.addf %1185, %1190 : vector<16x16xf32>
    %c191 = arith.constant 191 : index
    %1192 = memref.load %arg2[%c191] : memref<288xf32, #tpu.memory_space<smem>>
    %c0_799 = arith.constant 0 : index
    %c1_800 = arith.constant 1 : index
    %c0_801 = arith.constant 0 : index
    %c2_802 = arith.constant 2 : index
    %1193 = vector.load %arg1[%c0_799, %c1_800, %c0_801, %c2_802] : memref<1x4x18x18xf32, #tpu.memory_space<vmem>>, vector<1x1x16x16xf32>
    %1194 = vector.shape_cast %1193 : vector<1x1x16x16xf32> to vector<16x16xf32>
    %1195 = vector.broadcast %1192 : f32 to vector<16x16xf32>
    %1196 = arith.mulf %1195, %1194 : vector<16x16xf32>
    %1197 = arith.addf %1191, %1196 : vector<16x16xf32>
    %c192 = arith.constant 192 : index
    %1198 = memref.load %arg2[%c192] : memref<288xf32, #tpu.memory_space<smem>>
    %c0_803 = arith.constant 0 : index
    %c1_804 = arith.constant 1 : index
    %c1_805 = arith.constant 1 : index
    %c0_806 = arith.constant 0 : index
    %1199 = vector.load %arg1[%c0_803, %c1_804, %c1_805, %c0_806] : memref<1x4x18x18xf32, #tpu.memory_space<vmem>>, vector<1x1x16x16xf32>
    %1200 = vector.shape_cast %1199 : vector<1x1x16x16xf32> to vector<16x16xf32>
    %1201 = vector.broadcast %1198 : f32 to vector<16x16xf32>
    %1202 = arith.mulf %1201, %1200 : vector<16x16xf32>
    %1203 = arith.addf %1197, %1202 : vector<16x16xf32>
    %c193 = arith.constant 193 : index
    %1204 = memref.load %arg2[%c193] : memref<288xf32, #tpu.memory_space<smem>>
    %c0_807 = arith.constant 0 : index
    %c1_808 = arith.constant 1 : index
    %c1_809 = arith.constant 1 : index
    %c1_810 = arith.constant 1 : index
    %1205 = vector.load %arg1[%c0_807, %c1_808, %c1_809, %c1_810] : memref<1x4x18x18xf32, #tpu.memory_space<vmem>>, vector<1x1x16x16xf32>
    %1206 = vector.shape_cast %1205 : vector<1x1x16x16xf32> to vector<16x16xf32>
    %1207 = vector.broadcast %1204 : f32 to vector<16x16xf32>
    %1208 = arith.mulf %1207, %1206 : vector<16x16xf32>
    %1209 = arith.addf %1203, %1208 : vector<16x16xf32>
    %c194 = arith.constant 194 : index
    %1210 = memref.load %arg2[%c194] : memref<288xf32, #tpu.memory_space<smem>>
    %c0_811 = arith.constant 0 : index
    %c1_812 = arith.constant 1 : index
    %c1_813 = arith.constant 1 : index
    %c2_814 = arith.constant 2 : index
    %1211 = vector.load %arg1[%c0_811, %c1_812, %c1_813, %c2_814] : memref<1x4x18x18xf32, #tpu.memory_space<vmem>>, vector<1x1x16x16xf32>
    %1212 = vector.shape_cast %1211 : vector<1x1x16x16xf32> to vector<16x16xf32>
    %1213 = vector.broadcast %1210 : f32 to vector<16x16xf32>
    %1214 = arith.mulf %1213, %1212 : vector<16x16xf32>
    %1215 = arith.addf %1209, %1214 : vector<16x16xf32>
    %c195 = arith.constant 195 : index
    %1216 = memref.load %arg2[%c195] : memref<288xf32, #tpu.memory_space<smem>>
    %c0_815 = arith.constant 0 : index
    %c1_816 = arith.constant 1 : index
    %c2_817 = arith.constant 2 : index
    %c0_818 = arith.constant 0 : index
    %1217 = vector.load %arg1[%c0_815, %c1_816, %c2_817, %c0_818] : memref<1x4x18x18xf32, #tpu.memory_space<vmem>>, vector<1x1x16x16xf32>
    %1218 = vector.shape_cast %1217 : vector<1x1x16x16xf32> to vector<16x16xf32>
    %1219 = vector.broadcast %1216 : f32 to vector<16x16xf32>
    %1220 = arith.mulf %1219, %1218 : vector<16x16xf32>
    %1221 = arith.addf %1215, %1220 : vector<16x16xf32>
    %c196 = arith.constant 196 : index
    %1222 = memref.load %arg2[%c196] : memref<288xf32, #tpu.memory_space<smem>>
    %c0_819 = arith.constant 0 : index
    %c1_820 = arith.constant 1 : index
    %c2_821 = arith.constant 2 : index
    %c1_822 = arith.constant 1 : index
    %1223 = vector.load %arg1[%c0_819, %c1_820, %c2_821, %c1_822] : memref<1x4x18x18xf32, #tpu.memory_space<vmem>>, vector<1x1x16x16xf32>
    %1224 = vector.shape_cast %1223 : vector<1x1x16x16xf32> to vector<16x16xf32>
    %1225 = vector.broadcast %1222 : f32 to vector<16x16xf32>
    %1226 = arith.mulf %1225, %1224 : vector<16x16xf32>
    %1227 = arith.addf %1221, %1226 : vector<16x16xf32>
    %c197 = arith.constant 197 : index
    %1228 = memref.load %arg2[%c197] : memref<288xf32, #tpu.memory_space<smem>>
    %c0_823 = arith.constant 0 : index
    %c1_824 = arith.constant 1 : index
    %c2_825 = arith.constant 2 : index
    %c2_826 = arith.constant 2 : index
    %1229 = vector.load %arg1[%c0_823, %c1_824, %c2_825, %c2_826] : memref<1x4x18x18xf32, #tpu.memory_space<vmem>>, vector<1x1x16x16xf32>
    %1230 = vector.shape_cast %1229 : vector<1x1x16x16xf32> to vector<16x16xf32>
    %1231 = vector.broadcast %1228 : f32 to vector<16x16xf32>
    %1232 = arith.mulf %1231, %1230 : vector<16x16xf32>
    %1233 = arith.addf %1227, %1232 : vector<16x16xf32>
    %c198 = arith.constant 198 : index
    %1234 = memref.load %arg2[%c198] : memref<288xf32, #tpu.memory_space<smem>>
    %c0_827 = arith.constant 0 : index
    %c2_828 = arith.constant 2 : index
    %c0_829 = arith.constant 0 : index
    %c0_830 = arith.constant 0 : index
    %1235 = vector.load %arg1[%c0_827, %c2_828, %c0_829, %c0_830] : memref<1x4x18x18xf32, #tpu.memory_space<vmem>>, vector<1x1x16x16xf32>
    %1236 = vector.shape_cast %1235 : vector<1x1x16x16xf32> to vector<16x16xf32>
    %1237 = vector.broadcast %1234 : f32 to vector<16x16xf32>
    %1238 = arith.mulf %1237, %1236 : vector<16x16xf32>
    %1239 = arith.addf %1233, %1238 : vector<16x16xf32>
    %c199 = arith.constant 199 : index
    %1240 = memref.load %arg2[%c199] : memref<288xf32, #tpu.memory_space<smem>>
    %c0_831 = arith.constant 0 : index
    %c2_832 = arith.constant 2 : index
    %c0_833 = arith.constant 0 : index
    %c1_834 = arith.constant 1 : index
    %1241 = vector.load %arg1[%c0_831, %c2_832, %c0_833, %c1_834] : memref<1x4x18x18xf32, #tpu.memory_space<vmem>>, vector<1x1x16x16xf32>
    %1242 = vector.shape_cast %1241 : vector<1x1x16x16xf32> to vector<16x16xf32>
    %1243 = vector.broadcast %1240 : f32 to vector<16x16xf32>
    %1244 = arith.mulf %1243, %1242 : vector<16x16xf32>
    %1245 = arith.addf %1239, %1244 : vector<16x16xf32>
    %c200 = arith.constant 200 : index
    %1246 = memref.load %arg2[%c200] : memref<288xf32, #tpu.memory_space<smem>>
    %c0_835 = arith.constant 0 : index
    %c2_836 = arith.constant 2 : index
    %c0_837 = arith.constant 0 : index
    %c2_838 = arith.constant 2 : index
    %1247 = vector.load %arg1[%c0_835, %c2_836, %c0_837, %c2_838] : memref<1x4x18x18xf32, #tpu.memory_space<vmem>>, vector<1x1x16x16xf32>
    %1248 = vector.shape_cast %1247 : vector<1x1x16x16xf32> to vector<16x16xf32>
    %1249 = vector.broadcast %1246 : f32 to vector<16x16xf32>
    %1250 = arith.mulf %1249, %1248 : vector<16x16xf32>
    %1251 = arith.addf %1245, %1250 : vector<16x16xf32>
    %c201 = arith.constant 201 : index
    %1252 = memref.load %arg2[%c201] : memref<288xf32, #tpu.memory_space<smem>>
    %c0_839 = arith.constant 0 : index
    %c2_840 = arith.constant 2 : index
    %c1_841 = arith.constant 1 : index
    %c0_842 = arith.constant 0 : index
    %1253 = vector.load %arg1[%c0_839, %c2_840, %c1_841, %c0_842] : memref<1x4x18x18xf32, #tpu.memory_space<vmem>>, vector<1x1x16x16xf32>
    %1254 = vector.shape_cast %1253 : vector<1x1x16x16xf32> to vector<16x16xf32>
    %1255 = vector.broadcast %1252 : f32 to vector<16x16xf32>
    %1256 = arith.mulf %1255, %1254 : vector<16x16xf32>
    %1257 = arith.addf %1251, %1256 : vector<16x16xf32>
    %c202 = arith.constant 202 : index
    %1258 = memref.load %arg2[%c202] : memref<288xf32, #tpu.memory_space<smem>>
    %c0_843 = arith.constant 0 : index
    %c2_844 = arith.constant 2 : index
    %c1_845 = arith.constant 1 : index
    %c1_846 = arith.constant 1 : index
    %1259 = vector.load %arg1[%c0_843, %c2_844, %c1_845, %c1_846] : memref<1x4x18x18xf32, #tpu.memory_space<vmem>>, vector<1x1x16x16xf32>
    %1260 = vector.shape_cast %1259 : vector<1x1x16x16xf32> to vector<16x16xf32>
    %1261 = vector.broadcast %1258 : f32 to vector<16x16xf32>
    %1262 = arith.mulf %1261, %1260 : vector<16x16xf32>
    %1263 = arith.addf %1257, %1262 : vector<16x16xf32>
    %c203 = arith.constant 203 : index
    %1264 = memref.load %arg2[%c203] : memref<288xf32, #tpu.memory_space<smem>>
    %c0_847 = arith.constant 0 : index
    %c2_848 = arith.constant 2 : index
    %c1_849 = arith.constant 1 : index
    %c2_850 = arith.constant 2 : index
    %1265 = vector.load %arg1[%c0_847, %c2_848, %c1_849, %c2_850] : memref<1x4x18x18xf32, #tpu.memory_space<vmem>>, vector<1x1x16x16xf32>
    %1266 = vector.shape_cast %1265 : vector<1x1x16x16xf32> to vector<16x16xf32>
    %1267 = vector.broadcast %1264 : f32 to vector<16x16xf32>
    %1268 = arith.mulf %1267, %1266 : vector<16x16xf32>
    %1269 = arith.addf %1263, %1268 : vector<16x16xf32>
    %c204 = arith.constant 204 : index
    %1270 = memref.load %arg2[%c204] : memref<288xf32, #tpu.memory_space<smem>>
    %c0_851 = arith.constant 0 : index
    %c2_852 = arith.constant 2 : index
    %c2_853 = arith.constant 2 : index
    %c0_854 = arith.constant 0 : index
    %1271 = vector.load %arg1[%c0_851, %c2_852, %c2_853, %c0_854] : memref<1x4x18x18xf32, #tpu.memory_space<vmem>>, vector<1x1x16x16xf32>
    %1272 = vector.shape_cast %1271 : vector<1x1x16x16xf32> to vector<16x16xf32>
    %1273 = vector.broadcast %1270 : f32 to vector<16x16xf32>
    %1274 = arith.mulf %1273, %1272 : vector<16x16xf32>
    %1275 = arith.addf %1269, %1274 : vector<16x16xf32>
    %c205 = arith.constant 205 : index
    %1276 = memref.load %arg2[%c205] : memref<288xf32, #tpu.memory_space<smem>>
    %c0_855 = arith.constant 0 : index
    %c2_856 = arith.constant 2 : index
    %c2_857 = arith.constant 2 : index
    %c1_858 = arith.constant 1 : index
    %1277 = vector.load %arg1[%c0_855, %c2_856, %c2_857, %c1_858] : memref<1x4x18x18xf32, #tpu.memory_space<vmem>>, vector<1x1x16x16xf32>
    %1278 = vector.shape_cast %1277 : vector<1x1x16x16xf32> to vector<16x16xf32>
    %1279 = vector.broadcast %1276 : f32 to vector<16x16xf32>
    %1280 = arith.mulf %1279, %1278 : vector<16x16xf32>
    %1281 = arith.addf %1275, %1280 : vector<16x16xf32>
    %c206 = arith.constant 206 : index
    %1282 = memref.load %arg2[%c206] : memref<288xf32, #tpu.memory_space<smem>>
    %c0_859 = arith.constant 0 : index
    %c2_860 = arith.constant 2 : index
    %c2_861 = arith.constant 2 : index
    %c2_862 = arith.constant 2 : index
    %1283 = vector.load %arg1[%c0_859, %c2_860, %c2_861, %c2_862] : memref<1x4x18x18xf32, #tpu.memory_space<vmem>>, vector<1x1x16x16xf32>
    %1284 = vector.shape_cast %1283 : vector<1x1x16x16xf32> to vector<16x16xf32>
    %1285 = vector.broadcast %1282 : f32 to vector<16x16xf32>
    %1286 = arith.mulf %1285, %1284 : vector<16x16xf32>
    %1287 = arith.addf %1281, %1286 : vector<16x16xf32>
    %c207 = arith.constant 207 : index
    %1288 = memref.load %arg2[%c207] : memref<288xf32, #tpu.memory_space<smem>>
    %c0_863 = arith.constant 0 : index
    %c3_864 = arith.constant 3 : index
    %c0_865 = arith.constant 0 : index
    %c0_866 = arith.constant 0 : index
    %1289 = vector.load %arg1[%c0_863, %c3_864, %c0_865, %c0_866] : memref<1x4x18x18xf32, #tpu.memory_space<vmem>>, vector<1x1x16x16xf32>
    %1290 = vector.shape_cast %1289 : vector<1x1x16x16xf32> to vector<16x16xf32>
    %1291 = vector.broadcast %1288 : f32 to vector<16x16xf32>
    %1292 = arith.mulf %1291, %1290 : vector<16x16xf32>
    %1293 = arith.addf %1287, %1292 : vector<16x16xf32>
    %c208 = arith.constant 208 : index
    %1294 = memref.load %arg2[%c208] : memref<288xf32, #tpu.memory_space<smem>>
    %c0_867 = arith.constant 0 : index
    %c3_868 = arith.constant 3 : index
    %c0_869 = arith.constant 0 : index
    %c1_870 = arith.constant 1 : index
    %1295 = vector.load %arg1[%c0_867, %c3_868, %c0_869, %c1_870] : memref<1x4x18x18xf32, #tpu.memory_space<vmem>>, vector<1x1x16x16xf32>
    %1296 = vector.shape_cast %1295 : vector<1x1x16x16xf32> to vector<16x16xf32>
    %1297 = vector.broadcast %1294 : f32 to vector<16x16xf32>
    %1298 = arith.mulf %1297, %1296 : vector<16x16xf32>
    %1299 = arith.addf %1293, %1298 : vector<16x16xf32>
    %c209 = arith.constant 209 : index
    %1300 = memref.load %arg2[%c209] : memref<288xf32, #tpu.memory_space<smem>>
    %c0_871 = arith.constant 0 : index
    %c3_872 = arith.constant 3 : index
    %c0_873 = arith.constant 0 : index
    %c2_874 = arith.constant 2 : index
    %1301 = vector.load %arg1[%c0_871, %c3_872, %c0_873, %c2_874] : memref<1x4x18x18xf32, #tpu.memory_space<vmem>>, vector<1x1x16x16xf32>
    %1302 = vector.shape_cast %1301 : vector<1x1x16x16xf32> to vector<16x16xf32>
    %1303 = vector.broadcast %1300 : f32 to vector<16x16xf32>
    %1304 = arith.mulf %1303, %1302 : vector<16x16xf32>
    %1305 = arith.addf %1299, %1304 : vector<16x16xf32>
    %c210 = arith.constant 210 : index
    %1306 = memref.load %arg2[%c210] : memref<288xf32, #tpu.memory_space<smem>>
    %c0_875 = arith.constant 0 : index
    %c3_876 = arith.constant 3 : index
    %c1_877 = arith.constant 1 : index
    %c0_878 = arith.constant 0 : index
    %1307 = vector.load %arg1[%c0_875, %c3_876, %c1_877, %c0_878] : memref<1x4x18x18xf32, #tpu.memory_space<vmem>>, vector<1x1x16x16xf32>
    %1308 = vector.shape_cast %1307 : vector<1x1x16x16xf32> to vector<16x16xf32>
    %1309 = vector.broadcast %1306 : f32 to vector<16x16xf32>
    %1310 = arith.mulf %1309, %1308 : vector<16x16xf32>
    %1311 = arith.addf %1305, %1310 : vector<16x16xf32>
    %c211 = arith.constant 211 : index
    %1312 = memref.load %arg2[%c211] : memref<288xf32, #tpu.memory_space<smem>>
    %c0_879 = arith.constant 0 : index
    %c3_880 = arith.constant 3 : index
    %c1_881 = arith.constant 1 : index
    %c1_882 = arith.constant 1 : index
    %1313 = vector.load %arg1[%c0_879, %c3_880, %c1_881, %c1_882] : memref<1x4x18x18xf32, #tpu.memory_space<vmem>>, vector<1x1x16x16xf32>
    %1314 = vector.shape_cast %1313 : vector<1x1x16x16xf32> to vector<16x16xf32>
    %1315 = vector.broadcast %1312 : f32 to vector<16x16xf32>
    %1316 = arith.mulf %1315, %1314 : vector<16x16xf32>
    %1317 = arith.addf %1311, %1316 : vector<16x16xf32>
    %c212 = arith.constant 212 : index
    %1318 = memref.load %arg2[%c212] : memref<288xf32, #tpu.memory_space<smem>>
    %c0_883 = arith.constant 0 : index
    %c3_884 = arith.constant 3 : index
    %c1_885 = arith.constant 1 : index
    %c2_886 = arith.constant 2 : index
    %1319 = vector.load %arg1[%c0_883, %c3_884, %c1_885, %c2_886] : memref<1x4x18x18xf32, #tpu.memory_space<vmem>>, vector<1x1x16x16xf32>
    %1320 = vector.shape_cast %1319 : vector<1x1x16x16xf32> to vector<16x16xf32>
    %1321 = vector.broadcast %1318 : f32 to vector<16x16xf32>
    %1322 = arith.mulf %1321, %1320 : vector<16x16xf32>
    %1323 = arith.addf %1317, %1322 : vector<16x16xf32>
    %c213 = arith.constant 213 : index
    %1324 = memref.load %arg2[%c213] : memref<288xf32, #tpu.memory_space<smem>>
    %c0_887 = arith.constant 0 : index
    %c3_888 = arith.constant 3 : index
    %c2_889 = arith.constant 2 : index
    %c0_890 = arith.constant 0 : index
    %1325 = vector.load %arg1[%c0_887, %c3_888, %c2_889, %c0_890] : memref<1x4x18x18xf32, #tpu.memory_space<vmem>>, vector<1x1x16x16xf32>
    %1326 = vector.shape_cast %1325 : vector<1x1x16x16xf32> to vector<16x16xf32>
    %1327 = vector.broadcast %1324 : f32 to vector<16x16xf32>
    %1328 = arith.mulf %1327, %1326 : vector<16x16xf32>
    %1329 = arith.addf %1323, %1328 : vector<16x16xf32>
    %c214 = arith.constant 214 : index
    %1330 = memref.load %arg2[%c214] : memref<288xf32, #tpu.memory_space<smem>>
    %c0_891 = arith.constant 0 : index
    %c3_892 = arith.constant 3 : index
    %c2_893 = arith.constant 2 : index
    %c1_894 = arith.constant 1 : index
    %1331 = vector.load %arg1[%c0_891, %c3_892, %c2_893, %c1_894] : memref<1x4x18x18xf32, #tpu.memory_space<vmem>>, vector<1x1x16x16xf32>
    %1332 = vector.shape_cast %1331 : vector<1x1x16x16xf32> to vector<16x16xf32>
    %1333 = vector.broadcast %1330 : f32 to vector<16x16xf32>
    %1334 = arith.mulf %1333, %1332 : vector<16x16xf32>
    %1335 = arith.addf %1329, %1334 : vector<16x16xf32>
    %c215 = arith.constant 215 : index
    %1336 = memref.load %arg2[%c215] : memref<288xf32, #tpu.memory_space<smem>>
    %c0_895 = arith.constant 0 : index
    %c3_896 = arith.constant 3 : index
    %c2_897 = arith.constant 2 : index
    %c2_898 = arith.constant 2 : index
    %1337 = vector.load %arg1[%c0_895, %c3_896, %c2_897, %c2_898] : memref<1x4x18x18xf32, #tpu.memory_space<vmem>>, vector<1x1x16x16xf32>
    %1338 = vector.shape_cast %1337 : vector<1x1x16x16xf32> to vector<16x16xf32>
    %1339 = vector.broadcast %1336 : f32 to vector<16x16xf32>
    %1340 = arith.mulf %1339, %1338 : vector<16x16xf32>
    %1341 = arith.addf %1335, %1340 : vector<16x16xf32>
    %c5_899 = arith.constant 5 : index
    %1342 = memref.load %arg3[%c5_899] : memref<8xf32, #tpu.memory_space<smem>>
    %1343 = vector.broadcast %1342 : f32 to vector<16x16xf32>
    %1344 = arith.addf %1341, %1343 : vector<16x16xf32>
    %cst_900 = arith.constant 0.000000e+00 : f32
    %1345 = vector.broadcast %cst_900 : f32 to vector<16x16xf32>
    %1346 = arith.maximumf %1344, %1345 : vector<16x16xf32>
    %c0_901 = arith.constant 0 : index
    %c5_902 = arith.constant 5 : index
    %c0_903 = arith.constant 0 : index
    %c0_904 = arith.constant 0 : index
    %1347 = vector.load %arg4[%c0_901, %c5_902, %c0_903, %c0_904] : memref<1x8x16x16xf32, #tpu.memory_space<vmem>>, vector<1x1x16x16xf32>
    %1348 = vector.shape_cast %1347 : vector<1x1x16x16xf32> to vector<16x16xf32>
    %1349 = vector.shape_cast %1346 : vector<16x16xf32> to vector<1x1x16x16xf32>
    tpu.vector_store %arg4[%c0_901, %c5_902, %c0_903, %c0_904], %1349 {strides = array<i32>} : memref<1x8x16x16xf32, #tpu.memory_space<vmem>>, vector<1x1x16x16xf32>,
    %cst_905 = arith.constant 0.000000e+00 : f32
    %1350 = vector.broadcast %cst_905 : f32 to vector<16x16xf32>
    %c216 = arith.constant 216 : index
    %1351 = memref.load %arg2[%c216] : memref<288xf32, #tpu.memory_space<smem>>
    %c0_906 = arith.constant 0 : index
    %c0_907 = arith.constant 0 : index
    %c0_908 = arith.constant 0 : index
    %c0_909 = arith.constant 0 : index
    %1352 = vector.load %arg1[%c0_906, %c0_907, %c0_908, %c0_909] : memref<1x4x18x18xf32, #tpu.memory_space<vmem>>, vector<1x1x16x16xf32>
    %1353 = vector.shape_cast %1352 : vector<1x1x16x16xf32> to vector<16x16xf32>
    %1354 = vector.broadcast %1351 : f32 to vector<16x16xf32>
    %1355 = arith.mulf %1354, %1353 : vector<16x16xf32>
    %1356 = arith.addf %1350, %1355 : vector<16x16xf32>
    %c217 = arith.constant 217 : index
    %1357 = memref.load %arg2[%c217] : memref<288xf32, #tpu.memory_space<smem>>
    %c0_910 = arith.constant 0 : index
    %c0_911 = arith.constant 0 : index
    %c0_912 = arith.constant 0 : index
    %c1_913 = arith.constant 1 : index
    %1358 = vector.load %arg1[%c0_910, %c0_911, %c0_912, %c1_913] : memref<1x4x18x18xf32, #tpu.memory_space<vmem>>, vector<1x1x16x16xf32>
    %1359 = vector.shape_cast %1358 : vector<1x1x16x16xf32> to vector<16x16xf32>
    %1360 = vector.broadcast %1357 : f32 to vector<16x16xf32>
    %1361 = arith.mulf %1360, %1359 : vector<16x16xf32>
    %1362 = arith.addf %1356, %1361 : vector<16x16xf32>
    %c218 = arith.constant 218 : index
    %1363 = memref.load %arg2[%c218] : memref<288xf32, #tpu.memory_space<smem>>
    %c0_914 = arith.constant 0 : index
    %c0_915 = arith.constant 0 : index
    %c0_916 = arith.constant 0 : index
    %c2_917 = arith.constant 2 : index
    %1364 = vector.load %arg1[%c0_914, %c0_915, %c0_916, %c2_917] : memref<1x4x18x18xf32, #tpu.memory_space<vmem>>, vector<1x1x16x16xf32>
    %1365 = vector.shape_cast %1364 : vector<1x1x16x16xf32> to vector<16x16xf32>
    %1366 = vector.broadcast %1363 : f32 to vector<16x16xf32>
    %1367 = arith.mulf %1366, %1365 : vector<16x16xf32>
    %1368 = arith.addf %1362, %1367 : vector<16x16xf32>
    %c219 = arith.constant 219 : index
    %1369 = memref.load %arg2[%c219] : memref<288xf32, #tpu.memory_space<smem>>
    %c0_918 = arith.constant 0 : index
    %c0_919 = arith.constant 0 : index
    %c1_920 = arith.constant 1 : index
    %c0_921 = arith.constant 0 : index
    %1370 = vector.load %arg1[%c0_918, %c0_919, %c1_920, %c0_921] : memref<1x4x18x18xf32, #tpu.memory_space<vmem>>, vector<1x1x16x16xf32>
    %1371 = vector.shape_cast %1370 : vector<1x1x16x16xf32> to vector<16x16xf32>
    %1372 = vector.broadcast %1369 : f32 to vector<16x16xf32>
    %1373 = arith.mulf %1372, %1371 : vector<16x16xf32>
    %1374 = arith.addf %1368, %1373 : vector<16x16xf32>
    %c220 = arith.constant 220 : index
    %1375 = memref.load %arg2[%c220] : memref<288xf32, #tpu.memory_space<smem>>
    %c0_922 = arith.constant 0 : index
    %c0_923 = arith.constant 0 : index
    %c1_924 = arith.constant 1 : index
    %c1_925 = arith.constant 1 : index
    %1376 = vector.load %arg1[%c0_922, %c0_923, %c1_924, %c1_925] : memref<1x4x18x18xf32, #tpu.memory_space<vmem>>, vector<1x1x16x16xf32>
    %1377 = vector.shape_cast %1376 : vector<1x1x16x16xf32> to vector<16x16xf32>
    %1378 = vector.broadcast %1375 : f32 to vector<16x16xf32>
    %1379 = arith.mulf %1378, %1377 : vector<16x16xf32>
    %1380 = arith.addf %1374, %1379 : vector<16x16xf32>
    %c221 = arith.constant 221 : index
    %1381 = memref.load %arg2[%c221] : memref<288xf32, #tpu.memory_space<smem>>
    %c0_926 = arith.constant 0 : index
    %c0_927 = arith.constant 0 : index
    %c1_928 = arith.constant 1 : index
    %c2_929 = arith.constant 2 : index
    %1382 = vector.load %arg1[%c0_926, %c0_927, %c1_928, %c2_929] : memref<1x4x18x18xf32, #tpu.memory_space<vmem>>, vector<1x1x16x16xf32>
    %1383 = vector.shape_cast %1382 : vector<1x1x16x16xf32> to vector<16x16xf32>
    %1384 = vector.broadcast %1381 : f32 to vector<16x16xf32>
    %1385 = arith.mulf %1384, %1383 : vector<16x16xf32>
    %1386 = arith.addf %1380, %1385 : vector<16x16xf32>
    %c222 = arith.constant 222 : index
    %1387 = memref.load %arg2[%c222] : memref<288xf32, #tpu.memory_space<smem>>
    %c0_930 = arith.constant 0 : index
    %c0_931 = arith.constant 0 : index
    %c2_932 = arith.constant 2 : index
    %c0_933 = arith.constant 0 : index
    %1388 = vector.load %arg1[%c0_930, %c0_931, %c2_932, %c0_933] : memref<1x4x18x18xf32, #tpu.memory_space<vmem>>, vector<1x1x16x16xf32>
    %1389 = vector.shape_cast %1388 : vector<1x1x16x16xf32> to vector<16x16xf32>
    %1390 = vector.broadcast %1387 : f32 to vector<16x16xf32>
    %1391 = arith.mulf %1390, %1389 : vector<16x16xf32>
    %1392 = arith.addf %1386, %1391 : vector<16x16xf32>
    %c223 = arith.constant 223 : index
    %1393 = memref.load %arg2[%c223] : memref<288xf32, #tpu.memory_space<smem>>
    %c0_934 = arith.constant 0 : index
    %c0_935 = arith.constant 0 : index
    %c2_936 = arith.constant 2 : index
    %c1_937 = arith.constant 1 : index
    %1394 = vector.load %arg1[%c0_934, %c0_935, %c2_936, %c1_937] : memref<1x4x18x18xf32, #tpu.memory_space<vmem>>, vector<1x1x16x16xf32>
    %1395 = vector.shape_cast %1394 : vector<1x1x16x16xf32> to vector<16x16xf32>
    %1396 = vector.broadcast %1393 : f32 to vector<16x16xf32>
    %1397 = arith.mulf %1396, %1395 : vector<16x16xf32>
    %1398 = arith.addf %1392, %1397 : vector<16x16xf32>
    %c224 = arith.constant 224 : index
    %1399 = memref.load %arg2[%c224] : memref<288xf32, #tpu.memory_space<smem>>
    %c0_938 = arith.constant 0 : index
    %c0_939 = arith.constant 0 : index
    %c2_940 = arith.constant 2 : index
    %c2_941 = arith.constant 2 : index
    %1400 = vector.load %arg1[%c0_938, %c0_939, %c2_940, %c2_941] : memref<1x4x18x18xf32, #tpu.memory_space<vmem>>, vector<1x1x16x16xf32>
    %1401 = vector.shape_cast %1400 : vector<1x1x16x16xf32> to vector<16x16xf32>
    %1402 = vector.broadcast %1399 : f32 to vector<16x16xf32>
    %1403 = arith.mulf %1402, %1401 : vector<16x16xf32>
    %1404 = arith.addf %1398, %1403 : vector<16x16xf32>
    %c225 = arith.constant 225 : index
    %1405 = memref.load %arg2[%c225] : memref<288xf32, #tpu.memory_space<smem>>
    %c0_942 = arith.constant 0 : index
    %c1_943 = arith.constant 1 : index
    %c0_944 = arith.constant 0 : index
    %c0_945 = arith.constant 0 : index
    %1406 = vector.load %arg1[%c0_942, %c1_943, %c0_944, %c0_945] : memref<1x4x18x18xf32, #tpu.memory_space<vmem>>, vector<1x1x16x16xf32>
    %1407 = vector.shape_cast %1406 : vector<1x1x16x16xf32> to vector<16x16xf32>
    %1408 = vector.broadcast %1405 : f32 to vector<16x16xf32>
    %1409 = arith.mulf %1408, %1407 : vector<16x16xf32>
    %1410 = arith.addf %1404, %1409 : vector<16x16xf32>
    %c226 = arith.constant 226 : index
    %1411 = memref.load %arg2[%c226] : memref<288xf32, #tpu.memory_space<smem>>
    %c0_946 = arith.constant 0 : index
    %c1_947 = arith.constant 1 : index
    %c0_948 = arith.constant 0 : index
    %c1_949 = arith.constant 1 : index
    %1412 = vector.load %arg1[%c0_946, %c1_947, %c0_948, %c1_949] : memref<1x4x18x18xf32, #tpu.memory_space<vmem>>, vector<1x1x16x16xf32>
    %1413 = vector.shape_cast %1412 : vector<1x1x16x16xf32> to vector<16x16xf32>
    %1414 = vector.broadcast %1411 : f32 to vector<16x16xf32>
    %1415 = arith.mulf %1414, %1413 : vector<16x16xf32>
    %1416 = arith.addf %1410, %1415 : vector<16x16xf32>
    %c227 = arith.constant 227 : index
    %1417 = memref.load %arg2[%c227] : memref<288xf32, #tpu.memory_space<smem>>
    %c0_950 = arith.constant 0 : index
    %c1_951 = arith.constant 1 : index
    %c0_952 = arith.constant 0 : index
    %c2_953 = arith.constant 2 : index
    %1418 = vector.load %arg1[%c0_950, %c1_951, %c0_952, %c2_953] : memref<1x4x18x18xf32, #tpu.memory_space<vmem>>, vector<1x1x16x16xf32>
    %1419 = vector.shape_cast %1418 : vector<1x1x16x16xf32> to vector<16x16xf32>
    %1420 = vector.broadcast %1417 : f32 to vector<16x16xf32>
    %1421 = arith.mulf %1420, %1419 : vector<16x16xf32>
    %1422 = arith.addf %1416, %1421 : vector<16x16xf32>
    %c228 = arith.constant 228 : index
    %1423 = memref.load %arg2[%c228] : memref<288xf32, #tpu.memory_space<smem>>
    %c0_954 = arith.constant 0 : index
    %c1_955 = arith.constant 1 : index
    %c1_956 = arith.constant 1 : index
    %c0_957 = arith.constant 0 : index
    %1424 = vector.load %arg1[%c0_954, %c1_955, %c1_956, %c0_957] : memref<1x4x18x18xf32, #tpu.memory_space<vmem>>, vector<1x1x16x16xf32>
    %1425 = vector.shape_cast %1424 : vector<1x1x16x16xf32> to vector<16x16xf32>
    %1426 = vector.broadcast %1423 : f32 to vector<16x16xf32>
    %1427 = arith.mulf %1426, %1425 : vector<16x16xf32>
    %1428 = arith.addf %1422, %1427 : vector<16x16xf32>
    %c229 = arith.constant 229 : index
    %1429 = memref.load %arg2[%c229] : memref<288xf32, #tpu.memory_space<smem>>
    %c0_958 = arith.constant 0 : index
    %c1_959 = arith.constant 1 : index
    %c1_960 = arith.constant 1 : index
    %c1_961 = arith.constant 1 : index
    %1430 = vector.load %arg1[%c0_958, %c1_959, %c1_960, %c1_961] : memref<1x4x18x18xf32, #tpu.memory_space<vmem>>, vector<1x1x16x16xf32>
    %1431 = vector.shape_cast %1430 : vector<1x1x16x16xf32> to vector<16x16xf32>
    %1432 = vector.broadcast %1429 : f32 to vector<16x16xf32>
    %1433 = arith.mulf %1432, %1431 : vector<16x16xf32>
    %1434 = arith.addf %1428, %1433 : vector<16x16xf32>
    %c230 = arith.constant 230 : index
    %1435 = memref.load %arg2[%c230] : memref<288xf32, #tpu.memory_space<smem>>
    %c0_962 = arith.constant 0 : index
    %c1_963 = arith.constant 1 : index
    %c1_964 = arith.constant 1 : index
    %c2_965 = arith.constant 2 : index
    %1436 = vector.load %arg1[%c0_962, %c1_963, %c1_964, %c2_965] : memref<1x4x18x18xf32, #tpu.memory_space<vmem>>, vector<1x1x16x16xf32>
    %1437 = vector.shape_cast %1436 : vector<1x1x16x16xf32> to vector<16x16xf32>
    %1438 = vector.broadcast %1435 : f32 to vector<16x16xf32>
    %1439 = arith.mulf %1438, %1437 : vector<16x16xf32>
    %1440 = arith.addf %1434, %1439 : vector<16x16xf32>
    %c231 = arith.constant 231 : index
    %1441 = memref.load %arg2[%c231] : memref<288xf32, #tpu.memory_space<smem>>
    %c0_966 = arith.constant 0 : index
    %c1_967 = arith.constant 1 : index
    %c2_968 = arith.constant 2 : index
    %c0_969 = arith.constant 0 : index
    %1442 = vector.load %arg1[%c0_966, %c1_967, %c2_968, %c0_969] : memref<1x4x18x18xf32, #tpu.memory_space<vmem>>, vector<1x1x16x16xf32>
    %1443 = vector.shape_cast %1442 : vector<1x1x16x16xf32> to vector<16x16xf32>
    %1444 = vector.broadcast %1441 : f32 to vector<16x16xf32>
    %1445 = arith.mulf %1444, %1443 : vector<16x16xf32>
    %1446 = arith.addf %1440, %1445 : vector<16x16xf32>
    %c232 = arith.constant 232 : index
    %1447 = memref.load %arg2[%c232] : memref<288xf32, #tpu.memory_space<smem>>
    %c0_970 = arith.constant 0 : index
    %c1_971 = arith.constant 1 : index
    %c2_972 = arith.constant 2 : index
    %c1_973 = arith.constant 1 : index
    %1448 = vector.load %arg1[%c0_970, %c1_971, %c2_972, %c1_973] : memref<1x4x18x18xf32, #tpu.memory_space<vmem>>, vector<1x1x16x16xf32>
    %1449 = vector.shape_cast %1448 : vector<1x1x16x16xf32> to vector<16x16xf32>
    %1450 = vector.broadcast %1447 : f32 to vector<16x16xf32>
    %1451 = arith.mulf %1450, %1449 : vector<16x16xf32>
    %1452 = arith.addf %1446, %1451 : vector<16x16xf32>
    %c233 = arith.constant 233 : index
    %1453 = memref.load %arg2[%c233] : memref<288xf32, #tpu.memory_space<smem>>
    %c0_974 = arith.constant 0 : index
    %c1_975 = arith.constant 1 : index
    %c2_976 = arith.constant 2 : index
    %c2_977 = arith.constant 2 : index
    %1454 = vector.load %arg1[%c0_974, %c1_975, %c2_976, %c2_977] : memref<1x4x18x18xf32, #tpu.memory_space<vmem>>, vector<1x1x16x16xf32>
    %1455 = vector.shape_cast %1454 : vector<1x1x16x16xf32> to vector<16x16xf32>
    %1456 = vector.broadcast %1453 : f32 to vector<16x16xf32>
    %1457 = arith.mulf %1456, %1455 : vector<16x16xf32>
    %1458 = arith.addf %1452, %1457 : vector<16x16xf32>
    %c234 = arith.constant 234 : index
    %1459 = memref.load %arg2[%c234] : memref<288xf32, #tpu.memory_space<smem>>
    %c0_978 = arith.constant 0 : index
    %c2_979 = arith.constant 2 : index
    %c0_980 = arith.constant 0 : index
    %c0_981 = arith.constant 0 : index
    %1460 = vector.load %arg1[%c0_978, %c2_979, %c0_980, %c0_981] : memref<1x4x18x18xf32, #tpu.memory_space<vmem>>, vector<1x1x16x16xf32>
    %1461 = vector.shape_cast %1460 : vector<1x1x16x16xf32> to vector<16x16xf32>
    %1462 = vector.broadcast %1459 : f32 to vector<16x16xf32>
    %1463 = arith.mulf %1462, %1461 : vector<16x16xf32>
    %1464 = arith.addf %1458, %1463 : vector<16x16xf32>
    %c235 = arith.constant 235 : index
    %1465 = memref.load %arg2[%c235] : memref<288xf32, #tpu.memory_space<smem>>
    %c0_982 = arith.constant 0 : index
    %c2_983 = arith.constant 2 : index
    %c0_984 = arith.constant 0 : index
    %c1_985 = arith.constant 1 : index
    %1466 = vector.load %arg1[%c0_982, %c2_983, %c0_984, %c1_985] : memref<1x4x18x18xf32, #tpu.memory_space<vmem>>, vector<1x1x16x16xf32>
    %1467 = vector.shape_cast %1466 : vector<1x1x16x16xf32> to vector<16x16xf32>
    %1468 = vector.broadcast %1465 : f32 to vector<16x16xf32>
    %1469 = arith.mulf %1468, %1467 : vector<16x16xf32>
    %1470 = arith.addf %1464, %1469 : vector<16x16xf32>
    %c236 = arith.constant 236 : index
    %1471 = memref.load %arg2[%c236] : memref<288xf32, #tpu.memory_space<smem>>
    %c0_986 = arith.constant 0 : index
    %c2_987 = arith.constant 2 : index
    %c0_988 = arith.constant 0 : index
    %c2_989 = arith.constant 2 : index
    %1472 = vector.load %arg1[%c0_986, %c2_987, %c0_988, %c2_989] : memref<1x4x18x18xf32, #tpu.memory_space<vmem>>, vector<1x1x16x16xf32>
    %1473 = vector.shape_cast %1472 : vector<1x1x16x16xf32> to vector<16x16xf32>
    %1474 = vector.broadcast %1471 : f32 to vector<16x16xf32>
    %1475 = arith.mulf %1474, %1473 : vector<16x16xf32>
    %1476 = arith.addf %1470, %1475 : vector<16x16xf32>
    %c237 = arith.constant 237 : index
    %1477 = memref.load %arg2[%c237] : memref<288xf32, #tpu.memory_space<smem>>
    %c0_990 = arith.constant 0 : index
    %c2_991 = arith.constant 2 : index
    %c1_992 = arith.constant 1 : index
    %c0_993 = arith.constant 0 : index
    %1478 = vector.load %arg1[%c0_990, %c2_991, %c1_992, %c0_993] : memref<1x4x18x18xf32, #tpu.memory_space<vmem>>, vector<1x1x16x16xf32>
    %1479 = vector.shape_cast %1478 : vector<1x1x16x16xf32> to vector<16x16xf32>
    %1480 = vector.broadcast %1477 : f32 to vector<16x16xf32>
    %1481 = arith.mulf %1480, %1479 : vector<16x16xf32>
    %1482 = arith.addf %1476, %1481 : vector<16x16xf32>
    %c238 = arith.constant 238 : index
    %1483 = memref.load %arg2[%c238] : memref<288xf32, #tpu.memory_space<smem>>
    %c0_994 = arith.constant 0 : index
    %c2_995 = arith.constant 2 : index
    %c1_996 = arith.constant 1 : index
    %c1_997 = arith.constant 1 : index
    %1484 = vector.load %arg1[%c0_994, %c2_995, %c1_996, %c1_997] : memref<1x4x18x18xf32, #tpu.memory_space<vmem>>, vector<1x1x16x16xf32>
    %1485 = vector.shape_cast %1484 : vector<1x1x16x16xf32> to vector<16x16xf32>
    %1486 = vector.broadcast %1483 : f32 to vector<16x16xf32>
    %1487 = arith.mulf %1486, %1485 : vector<16x16xf32>
    %1488 = arith.addf %1482, %1487 : vector<16x16xf32>
    %c239 = arith.constant 239 : index
    %1489 = memref.load %arg2[%c239] : memref<288xf32, #tpu.memory_space<smem>>
    %c0_998 = arith.constant 0 : index
    %c2_999 = arith.constant 2 : index
    %c1_1000 = arith.constant 1 : index
    %c2_1001 = arith.constant 2 : index
    %1490 = vector.load %arg1[%c0_998, %c2_999, %c1_1000, %c2_1001] : memref<1x4x18x18xf32, #tpu.memory_space<vmem>>, vector<1x1x16x16xf32>
    %1491 = vector.shape_cast %1490 : vector<1x1x16x16xf32> to vector<16x16xf32>
    %1492 = vector.broadcast %1489 : f32 to vector<16x16xf32>
    %1493 = arith.mulf %1492, %1491 : vector<16x16xf32>
    %1494 = arith.addf %1488, %1493 : vector<16x16xf32>
    %c240 = arith.constant 240 : index
    %1495 = memref.load %arg2[%c240] : memref<288xf32, #tpu.memory_space<smem>>
    %c0_1002 = arith.constant 0 : index
    %c2_1003 = arith.constant 2 : index
    %c2_1004 = arith.constant 2 : index
    %c0_1005 = arith.constant 0 : index
    %1496 = vector.load %arg1[%c0_1002, %c2_1003, %c2_1004, %c0_1005] : memref<1x4x18x18xf32, #tpu.memory_space<vmem>>, vector<1x1x16x16xf32>
    %1497 = vector.shape_cast %1496 : vector<1x1x16x16xf32> to vector<16x16xf32>
    %1498 = vector.broadcast %1495 : f32 to vector<16x16xf32>
    %1499 = arith.mulf %1498, %1497 : vector<16x16xf32>
    %1500 = arith.addf %1494, %1499 : vector<16x16xf32>
    %c241 = arith.constant 241 : index
    %1501 = memref.load %arg2[%c241] : memref<288xf32, #tpu.memory_space<smem>>
    %c0_1006 = arith.constant 0 : index
    %c2_1007 = arith.constant 2 : index
    %c2_1008 = arith.constant 2 : index
    %c1_1009 = arith.constant 1 : index
    %1502 = vector.load %arg1[%c0_1006, %c2_1007, %c2_1008, %c1_1009] : memref<1x4x18x18xf32, #tpu.memory_space<vmem>>, vector<1x1x16x16xf32>
    %1503 = vector.shape_cast %1502 : vector<1x1x16x16xf32> to vector<16x16xf32>
    %1504 = vector.broadcast %1501 : f32 to vector<16x16xf32>
    %1505 = arith.mulf %1504, %1503 : vector<16x16xf32>
    %1506 = arith.addf %1500, %1505 : vector<16x16xf32>
    %c242 = arith.constant 242 : index
    %1507 = memref.load %arg2[%c242] : memref<288xf32, #tpu.memory_space<smem>>
    %c0_1010 = arith.constant 0 : index
    %c2_1011 = arith.constant 2 : index
    %c2_1012 = arith.constant 2 : index
    %c2_1013 = arith.constant 2 : index
    %1508 = vector.load %arg1[%c0_1010, %c2_1011, %c2_1012, %c2_1013] : memref<1x4x18x18xf32, #tpu.memory_space<vmem>>, vector<1x1x16x16xf32>
    %1509 = vector.shape_cast %1508 : vector<1x1x16x16xf32> to vector<16x16xf32>
    %1510 = vector.broadcast %1507 : f32 to vector<16x16xf32>
    %1511 = arith.mulf %1510, %1509 : vector<16x16xf32>
    %1512 = arith.addf %1506, %1511 : vector<16x16xf32>
    %c243 = arith.constant 243 : index
    %1513 = memref.load %arg2[%c243] : memref<288xf32, #tpu.memory_space<smem>>
    %c0_1014 = arith.constant 0 : index
    %c3_1015 = arith.constant 3 : index
    %c0_1016 = arith.constant 0 : index
    %c0_1017 = arith.constant 0 : index
    %1514 = vector.load %arg1[%c0_1014, %c3_1015, %c0_1016, %c0_1017] : memref<1x4x18x18xf32, #tpu.memory_space<vmem>>, vector<1x1x16x16xf32>
    %1515 = vector.shape_cast %1514 : vector<1x1x16x16xf32> to vector<16x16xf32>
    %1516 = vector.broadcast %1513 : f32 to vector<16x16xf32>
    %1517 = arith.mulf %1516, %1515 : vector<16x16xf32>
    %1518 = arith.addf %1512, %1517 : vector<16x16xf32>
    %c244 = arith.constant 244 : index
    %1519 = memref.load %arg2[%c244] : memref<288xf32, #tpu.memory_space<smem>>
    %c0_1018 = arith.constant 0 : index
    %c3_1019 = arith.constant 3 : index
    %c0_1020 = arith.constant 0 : index
    %c1_1021 = arith.constant 1 : index
    %1520 = vector.load %arg1[%c0_1018, %c3_1019, %c0_1020, %c1_1021] : memref<1x4x18x18xf32, #tpu.memory_space<vmem>>, vector<1x1x16x16xf32>
    %1521 = vector.shape_cast %1520 : vector<1x1x16x16xf32> to vector<16x16xf32>
    %1522 = vector.broadcast %1519 : f32 to vector<16x16xf32>
    %1523 = arith.mulf %1522, %1521 : vector<16x16xf32>
    %1524 = arith.addf %1518, %1523 : vector<16x16xf32>
    %c245 = arith.constant 245 : index
    %1525 = memref.load %arg2[%c245] : memref<288xf32, #tpu.memory_space<smem>>
    %c0_1022 = arith.constant 0 : index
    %c3_1023 = arith.constant 3 : index
    %c0_1024 = arith.constant 0 : index
    %c2_1025 = arith.constant 2 : index
    %1526 = vector.load %arg1[%c0_1022, %c3_1023, %c0_1024, %c2_1025] : memref<1x4x18x18xf32, #tpu.memory_space<vmem>>, vector<1x1x16x16xf32>
    %1527 = vector.shape_cast %1526 : vector<1x1x16x16xf32> to vector<16x16xf32>
    %1528 = vector.broadcast %1525 : f32 to vector<16x16xf32>
    %1529 = arith.mulf %1528, %1527 : vector<16x16xf32>
    %1530 = arith.addf %1524, %1529 : vector<16x16xf32>
    %c246 = arith.constant 246 : index
    %1531 = memref.load %arg2[%c246] : memref<288xf32, #tpu.memory_space<smem>>
    %c0_1026 = arith.constant 0 : index
    %c3_1027 = arith.constant 3 : index
    %c1_1028 = arith.constant 1 : index
    %c0_1029 = arith.constant 0 : index
    %1532 = vector.load %arg1[%c0_1026, %c3_1027, %c1_1028, %c0_1029] : memref<1x4x18x18xf32, #tpu.memory_space<vmem>>, vector<1x1x16x16xf32>
    %1533 = vector.shape_cast %1532 : vector<1x1x16x16xf32> to vector<16x16xf32>
    %1534 = vector.broadcast %1531 : f32 to vector<16x16xf32>
    %1535 = arith.mulf %1534, %1533 : vector<16x16xf32>
    %1536 = arith.addf %1530, %1535 : vector<16x16xf32>
    %c247 = arith.constant 247 : index
    %1537 = memref.load %arg2[%c247] : memref<288xf32, #tpu.memory_space<smem>>
    %c0_1030 = arith.constant 0 : index
    %c3_1031 = arith.constant 3 : index
    %c1_1032 = arith.constant 1 : index
    %c1_1033 = arith.constant 1 : index
    %1538 = vector.load %arg1[%c0_1030, %c3_1031, %c1_1032, %c1_1033] : memref<1x4x18x18xf32, #tpu.memory_space<vmem>>, vector<1x1x16x16xf32>
    %1539 = vector.shape_cast %1538 : vector<1x1x16x16xf32> to vector<16x16xf32>
    %1540 = vector.broadcast %1537 : f32 to vector<16x16xf32>
    %1541 = arith.mulf %1540, %1539 : vector<16x16xf32>
    %1542 = arith.addf %1536, %1541 : vector<16x16xf32>
    %c248 = arith.constant 248 : index
    %1543 = memref.load %arg2[%c248] : memref<288xf32, #tpu.memory_space<smem>>
    %c0_1034 = arith.constant 0 : index
    %c3_1035 = arith.constant 3 : index
    %c1_1036 = arith.constant 1 : index
    %c2_1037 = arith.constant 2 : index
    %1544 = vector.load %arg1[%c0_1034, %c3_1035, %c1_1036, %c2_1037] : memref<1x4x18x18xf32, #tpu.memory_space<vmem>>, vector<1x1x16x16xf32>
    %1545 = vector.shape_cast %1544 : vector<1x1x16x16xf32> to vector<16x16xf32>
    %1546 = vector.broadcast %1543 : f32 to vector<16x16xf32>
    %1547 = arith.mulf %1546, %1545 : vector<16x16xf32>
    %1548 = arith.addf %1542, %1547 : vector<16x16xf32>
    %c249 = arith.constant 249 : index
    %1549 = memref.load %arg2[%c249] : memref<288xf32, #tpu.memory_space<smem>>
    %c0_1038 = arith.constant 0 : index
    %c3_1039 = arith.constant 3 : index
    %c2_1040 = arith.constant 2 : index
    %c0_1041 = arith.constant 0 : index
    %1550 = vector.load %arg1[%c0_1038, %c3_1039, %c2_1040, %c0_1041] : memref<1x4x18x18xf32, #tpu.memory_space<vmem>>, vector<1x1x16x16xf32>
    %1551 = vector.shape_cast %1550 : vector<1x1x16x16xf32> to vector<16x16xf32>
    %1552 = vector.broadcast %1549 : f32 to vector<16x16xf32>
    %1553 = arith.mulf %1552, %1551 : vector<16x16xf32>
    %1554 = arith.addf %1548, %1553 : vector<16x16xf32>
    %c250 = arith.constant 250 : index
    %1555 = memref.load %arg2[%c250] : memref<288xf32, #tpu.memory_space<smem>>
    %c0_1042 = arith.constant 0 : index
    %c3_1043 = arith.constant 3 : index
    %c2_1044 = arith.constant 2 : index
    %c1_1045 = arith.constant 1 : index
    %1556 = vector.load %arg1[%c0_1042, %c3_1043, %c2_1044, %c1_1045] : memref<1x4x18x18xf32, #tpu.memory_space<vmem>>, vector<1x1x16x16xf32>
    %1557 = vector.shape_cast %1556 : vector<1x1x16x16xf32> to vector<16x16xf32>
    %1558 = vector.broadcast %1555 : f32 to vector<16x16xf32>
    %1559 = arith.mulf %1558, %1557 : vector<16x16xf32>
    %1560 = arith.addf %1554, %1559 : vector<16x16xf32>
    %c251 = arith.constant 251 : index
    %1561 = memref.load %arg2[%c251] : memref<288xf32, #tpu.memory_space<smem>>
    %c0_1046 = arith.constant 0 : index
    %c3_1047 = arith.constant 3 : index
    %c2_1048 = arith.constant 2 : index
    %c2_1049 = arith.constant 2 : index
    %1562 = vector.load %arg1[%c0_1046, %c3_1047, %c2_1048, %c2_1049] : memref<1x4x18x18xf32, #tpu.memory_space<vmem>>, vector<1x1x16x16xf32>
    %1563 = vector.shape_cast %1562 : vector<1x1x16x16xf32> to vector<16x16xf32>
    %1564 = vector.broadcast %1561 : f32 to vector<16x16xf32>
    %1565 = arith.mulf %1564, %1563 : vector<16x16xf32>
    %1566 = arith.addf %1560, %1565 : vector<16x16xf32>
    %c6_1050 = arith.constant 6 : index
    %1567 = memref.load %arg3[%c6_1050] : memref<8xf32, #tpu.memory_space<smem>>
    %1568 = vector.broadcast %1567 : f32 to vector<16x16xf32>
    %1569 = arith.addf %1566, %1568 : vector<16x16xf32>
    %cst_1051 = arith.constant 0.000000e+00 : f32
    %1570 = vector.broadcast %cst_1051 : f32 to vector<16x16xf32>
    %1571 = arith.maximumf %1569, %1570 : vector<16x16xf32>
    %c0_1052 = arith.constant 0 : index
    %c6_1053 = arith.constant 6 : index
    %c0_1054 = arith.constant 0 : index
    %c0_1055 = arith.constant 0 : index
    %1572 = vector.load %arg4[%c0_1052, %c6_1053, %c0_1054, %c0_1055] : memref<1x8x16x16xf32, #tpu.memory_space<vmem>>, vector<1x1x16x16xf32>
    %1573 = vector.shape_cast %1572 : vector<1x1x16x16xf32> to vector<16x16xf32>
    %1574 = vector.shape_cast %1571 : vector<16x16xf32> to vector<1x1x16x16xf32>
    tpu.vector_store %arg4[%c0_1052, %c6_1053, %c0_1054, %c0_1055], %1574 {strides = array<i32>} : memref<1x8x16x16xf32, #tpu.memory_space<vmem>>, vector<1x1x16x16xf32>,
    %cst_1056 = arith.constant 0.000000e+00 : f32
    %1575 = vector.broadcast %cst_1056 : f32 to vector<16x16xf32>
    %c252 = arith.constant 252 : index
    %1576 = memref.load %arg2[%c252] : memref<288xf32, #tpu.memory_space<smem>>
    %c0_1057 = arith.constant 0 : index
    %c0_1058 = arith.constant 0 : index
    %c0_1059 = arith.constant 0 : index
    %c0_1060 = arith.constant 0 : index
    %1577 = vector.load %arg1[%c0_1057, %c0_1058, %c0_1059, %c0_1060] : memref<1x4x18x18xf32, #tpu.memory_space<vmem>>, vector<1x1x16x16xf32>
    %1578 = vector.shape_cast %1577 : vector<1x1x16x16xf32> to vector<16x16xf32>
    %1579 = vector.broadcast %1576 : f32 to vector<16x16xf32>
    %1580 = arith.mulf %1579, %1578 : vector<16x16xf32>
    %1581 = arith.addf %1575, %1580 : vector<16x16xf32>
    %c253 = arith.constant 253 : index
    %1582 = memref.load %arg2[%c253] : memref<288xf32, #tpu.memory_space<smem>>
    %c0_1061 = arith.constant 0 : index
    %c0_1062 = arith.constant 0 : index
    %c0_1063 = arith.constant 0 : index
    %c1_1064 = arith.constant 1 : index
    %1583 = vector.load %arg1[%c0_1061, %c0_1062, %c0_1063, %c1_1064] : memref<1x4x18x18xf32, #tpu.memory_space<vmem>>, vector<1x1x16x16xf32>
    %1584 = vector.shape_cast %1583 : vector<1x1x16x16xf32> to vector<16x16xf32>
    %1585 = vector.broadcast %1582 : f32 to vector<16x16xf32>
    %1586 = arith.mulf %1585, %1584 : vector<16x16xf32>
    %1587 = arith.addf %1581, %1586 : vector<16x16xf32>
    %c254 = arith.constant 254 : index
    %1588 = memref.load %arg2[%c254] : memref<288xf32, #tpu.memory_space<smem>>
    %c0_1065 = arith.constant 0 : index
    %c0_1066 = arith.constant 0 : index
    %c0_1067 = arith.constant 0 : index
    %c2_1068 = arith.constant 2 : index
    %1589 = vector.load %arg1[%c0_1065, %c0_1066, %c0_1067, %c2_1068] : memref<1x4x18x18xf32, #tpu.memory_space<vmem>>, vector<1x1x16x16xf32>
    %1590 = vector.shape_cast %1589 : vector<1x1x16x16xf32> to vector<16x16xf32>
    %1591 = vector.broadcast %1588 : f32 to vector<16x16xf32>
    %1592 = arith.mulf %1591, %1590 : vector<16x16xf32>
    %1593 = arith.addf %1587, %1592 : vector<16x16xf32>
    %c255 = arith.constant 255 : index
    %1594 = memref.load %arg2[%c255] : memref<288xf32, #tpu.memory_space<smem>>
    %c0_1069 = arith.constant 0 : index
    %c0_1070 = arith.constant 0 : index
    %c1_1071 = arith.constant 1 : index
    %c0_1072 = arith.constant 0 : index
    %1595 = vector.load %arg1[%c0_1069, %c0_1070, %c1_1071, %c0_1072] : memref<1x4x18x18xf32, #tpu.memory_space<vmem>>, vector<1x1x16x16xf32>
    %1596 = vector.shape_cast %1595 : vector<1x1x16x16xf32> to vector<16x16xf32>
    %1597 = vector.broadcast %1594 : f32 to vector<16x16xf32>
    %1598 = arith.mulf %1597, %1596 : vector<16x16xf32>
    %1599 = arith.addf %1593, %1598 : vector<16x16xf32>
    %c256 = arith.constant 256 : index
    %1600 = memref.load %arg2[%c256] : memref<288xf32, #tpu.memory_space<smem>>
    %c0_1073 = arith.constant 0 : index
    %c0_1074 = arith.constant 0 : index
    %c1_1075 = arith.constant 1 : index
    %c1_1076 = arith.constant 1 : index
    %1601 = vector.load %arg1[%c0_1073, %c0_1074, %c1_1075, %c1_1076] : memref<1x4x18x18xf32, #tpu.memory_space<vmem>>, vector<1x1x16x16xf32>
    %1602 = vector.shape_cast %1601 : vector<1x1x16x16xf32> to vector<16x16xf32>
    %1603 = vector.broadcast %1600 : f32 to vector<16x16xf32>
    %1604 = arith.mulf %1603, %1602 : vector<16x16xf32>
    %1605 = arith.addf %1599, %1604 : vector<16x16xf32>
    %c257 = arith.constant 257 : index
    %1606 = memref.load %arg2[%c257] : memref<288xf32, #tpu.memory_space<smem>>
    %c0_1077 = arith.constant 0 : index
    %c0_1078 = arith.constant 0 : index
    %c1_1079 = arith.constant 1 : index
    %c2_1080 = arith.constant 2 : index
    %1607 = vector.load %arg1[%c0_1077, %c0_1078, %c1_1079, %c2_1080] : memref<1x4x18x18xf32, #tpu.memory_space<vmem>>, vector<1x1x16x16xf32>
    %1608 = vector.shape_cast %1607 : vector<1x1x16x16xf32> to vector<16x16xf32>
    %1609 = vector.broadcast %1606 : f32 to vector<16x16xf32>
    %1610 = arith.mulf %1609, %1608 : vector<16x16xf32>
    %1611 = arith.addf %1605, %1610 : vector<16x16xf32>
    %c258 = arith.constant 258 : index
    %1612 = memref.load %arg2[%c258] : memref<288xf32, #tpu.memory_space<smem>>
    %c0_1081 = arith.constant 0 : index
    %c0_1082 = arith.constant 0 : index
    %c2_1083 = arith.constant 2 : index
    %c0_1084 = arith.constant 0 : index
    %1613 = vector.load %arg1[%c0_1081, %c0_1082, %c2_1083, %c0_1084] : memref<1x4x18x18xf32, #tpu.memory_space<vmem>>, vector<1x1x16x16xf32>
    %1614 = vector.shape_cast %1613 : vector<1x1x16x16xf32> to vector<16x16xf32>
    %1615 = vector.broadcast %1612 : f32 to vector<16x16xf32>
    %1616 = arith.mulf %1615, %1614 : vector<16x16xf32>
    %1617 = arith.addf %1611, %1616 : vector<16x16xf32>
    %c259 = arith.constant 259 : index
    %1618 = memref.load %arg2[%c259] : memref<288xf32, #tpu.memory_space<smem>>
    %c0_1085 = arith.constant 0 : index
    %c0_1086 = arith.constant 0 : index
    %c2_1087 = arith.constant 2 : index
    %c1_1088 = arith.constant 1 : index
    %1619 = vector.load %arg1[%c0_1085, %c0_1086, %c2_1087, %c1_1088] : memref<1x4x18x18xf32, #tpu.memory_space<vmem>>, vector<1x1x16x16xf32>
    %1620 = vector.shape_cast %1619 : vector<1x1x16x16xf32> to vector<16x16xf32>
    %1621 = vector.broadcast %1618 : f32 to vector<16x16xf32>
    %1622 = arith.mulf %1621, %1620 : vector<16x16xf32>
    %1623 = arith.addf %1617, %1622 : vector<16x16xf32>
    %c260 = arith.constant 260 : index
    %1624 = memref.load %arg2[%c260] : memref<288xf32, #tpu.memory_space<smem>>
    %c0_1089 = arith.constant 0 : index
    %c0_1090 = arith.constant 0 : index
    %c2_1091 = arith.constant 2 : index
    %c2_1092 = arith.constant 2 : index
    %1625 = vector.load %arg1[%c0_1089, %c0_1090, %c2_1091, %c2_1092] : memref<1x4x18x18xf32, #tpu.memory_space<vmem>>, vector<1x1x16x16xf32>
    %1626 = vector.shape_cast %1625 : vector<1x1x16x16xf32> to vector<16x16xf32>
    %1627 = vector.broadcast %1624 : f32 to vector<16x16xf32>
    %1628 = arith.mulf %1627, %1626 : vector<16x16xf32>
    %1629 = arith.addf %1623, %1628 : vector<16x16xf32>
    %c261 = arith.constant 261 : index
    %1630 = memref.load %arg2[%c261] : memref<288xf32, #tpu.memory_space<smem>>
    %c0_1093 = arith.constant 0 : index
    %c1_1094 = arith.constant 1 : index
    %c0_1095 = arith.constant 0 : index
    %c0_1096 = arith.constant 0 : index
    %1631 = vector.load %arg1[%c0_1093, %c1_1094, %c0_1095, %c0_1096] : memref<1x4x18x18xf32, #tpu.memory_space<vmem>>, vector<1x1x16x16xf32>
    %1632 = vector.shape_cast %1631 : vector<1x1x16x16xf32> to vector<16x16xf32>
    %1633 = vector.broadcast %1630 : f32 to vector<16x16xf32>
    %1634 = arith.mulf %1633, %1632 : vector<16x16xf32>
    %1635 = arith.addf %1629, %1634 : vector<16x16xf32>
    %c262 = arith.constant 262 : index
    %1636 = memref.load %arg2[%c262] : memref<288xf32, #tpu.memory_space<smem>>
    %c0_1097 = arith.constant 0 : index
    %c1_1098 = arith.constant 1 : index
    %c0_1099 = arith.constant 0 : index
    %c1_1100 = arith.constant 1 : index
    %1637 = vector.load %arg1[%c0_1097, %c1_1098, %c0_1099, %c1_1100] : memref<1x4x18x18xf32, #tpu.memory_space<vmem>>, vector<1x1x16x16xf32>
    %1638 = vector.shape_cast %1637 : vector<1x1x16x16xf32> to vector<16x16xf32>
    %1639 = vector.broadcast %1636 : f32 to vector<16x16xf32>
    %1640 = arith.mulf %1639, %1638 : vector<16x16xf32>
    %1641 = arith.addf %1635, %1640 : vector<16x16xf32>
    %c263 = arith.constant 263 : index
    %1642 = memref.load %arg2[%c263] : memref<288xf32, #tpu.memory_space<smem>>
    %c0_1101 = arith.constant 0 : index
    %c1_1102 = arith.constant 1 : index
    %c0_1103 = arith.constant 0 : index
    %c2_1104 = arith.constant 2 : index
    %1643 = vector.load %arg1[%c0_1101, %c1_1102, %c0_1103, %c2_1104] : memref<1x4x18x18xf32, #tpu.memory_space<vmem>>, vector<1x1x16x16xf32>
    %1644 = vector.shape_cast %1643 : vector<1x1x16x16xf32> to vector<16x16xf32>
    %1645 = vector.broadcast %1642 : f32 to vector<16x16xf32>
    %1646 = arith.mulf %1645, %1644 : vector<16x16xf32>
    %1647 = arith.addf %1641, %1646 : vector<16x16xf32>
    %c264 = arith.constant 264 : index
    %1648 = memref.load %arg2[%c264] : memref<288xf32, #tpu.memory_space<smem>>
    %c0_1105 = arith.constant 0 : index
    %c1_1106 = arith.constant 1 : index
    %c1_1107 = arith.constant 1 : index
    %c0_1108 = arith.constant 0 : index
    %1649 = vector.load %arg1[%c0_1105, %c1_1106, %c1_1107, %c0_1108] : memref<1x4x18x18xf32, #tpu.memory_space<vmem>>, vector<1x1x16x16xf32>
    %1650 = vector.shape_cast %1649 : vector<1x1x16x16xf32> to vector<16x16xf32>
    %1651 = vector.broadcast %1648 : f32 to vector<16x16xf32>
    %1652 = arith.mulf %1651, %1650 : vector<16x16xf32>
    %1653 = arith.addf %1647, %1652 : vector<16x16xf32>
    %c265 = arith.constant 265 : index
    %1654 = memref.load %arg2[%c265] : memref<288xf32, #tpu.memory_space<smem>>
    %c0_1109 = arith.constant 0 : index
    %c1_1110 = arith.constant 1 : index
    %c1_1111 = arith.constant 1 : index
    %c1_1112 = arith.constant 1 : index
    %1655 = vector.load %arg1[%c0_1109, %c1_1110, %c1_1111, %c1_1112] : memref<1x4x18x18xf32, #tpu.memory_space<vmem>>, vector<1x1x16x16xf32>
    %1656 = vector.shape_cast %1655 : vector<1x1x16x16xf32> to vector<16x16xf32>
    %1657 = vector.broadcast %1654 : f32 to vector<16x16xf32>
    %1658 = arith.mulf %1657, %1656 : vector<16x16xf32>
    %1659 = arith.addf %1653, %1658 : vector<16x16xf32>
    %c266 = arith.constant 266 : index
    %1660 = memref.load %arg2[%c266] : memref<288xf32, #tpu.memory_space<smem>>
    %c0_1113 = arith.constant 0 : index
    %c1_1114 = arith.constant 1 : index
    %c1_1115 = arith.constant 1 : index
    %c2_1116 = arith.constant 2 : index
    %1661 = vector.load %arg1[%c0_1113, %c1_1114, %c1_1115, %c2_1116] : memref<1x4x18x18xf32, #tpu.memory_space<vmem>>, vector<1x1x16x16xf32>
    %1662 = vector.shape_cast %1661 : vector<1x1x16x16xf32> to vector<16x16xf32>
    %1663 = vector.broadcast %1660 : f32 to vector<16x16xf32>
    %1664 = arith.mulf %1663, %1662 : vector<16x16xf32>
    %1665 = arith.addf %1659, %1664 : vector<16x16xf32>
    %c267 = arith.constant 267 : index
    %1666 = memref.load %arg2[%c267] : memref<288xf32, #tpu.memory_space<smem>>
    %c0_1117 = arith.constant 0 : index
    %c1_1118 = arith.constant 1 : index
    %c2_1119 = arith.constant 2 : index
    %c0_1120 = arith.constant 0 : index
    %1667 = vector.load %arg1[%c0_1117, %c1_1118, %c2_1119, %c0_1120] : memref<1x4x18x18xf32, #tpu.memory_space<vmem>>, vector<1x1x16x16xf32>
    %1668 = vector.shape_cast %1667 : vector<1x1x16x16xf32> to vector<16x16xf32>
    %1669 = vector.broadcast %1666 : f32 to vector<16x16xf32>
    %1670 = arith.mulf %1669, %1668 : vector<16x16xf32>
    %1671 = arith.addf %1665, %1670 : vector<16x16xf32>
    %c268 = arith.constant 268 : index
    %1672 = memref.load %arg2[%c268] : memref<288xf32, #tpu.memory_space<smem>>
    %c0_1121 = arith.constant 0 : index
    %c1_1122 = arith.constant 1 : index
    %c2_1123 = arith.constant 2 : index
    %c1_1124 = arith.constant 1 : index
    %1673 = vector.load %arg1[%c0_1121, %c1_1122, %c2_1123, %c1_1124] : memref<1x4x18x18xf32, #tpu.memory_space<vmem>>, vector<1x1x16x16xf32>
    %1674 = vector.shape_cast %1673 : vector<1x1x16x16xf32> to vector<16x16xf32>
    %1675 = vector.broadcast %1672 : f32 to vector<16x16xf32>
    %1676 = arith.mulf %1675, %1674 : vector<16x16xf32>
    %1677 = arith.addf %1671, %1676 : vector<16x16xf32>
    %c269 = arith.constant 269 : index
    %1678 = memref.load %arg2[%c269] : memref<288xf32, #tpu.memory_space<smem>>
    %c0_1125 = arith.constant 0 : index
    %c1_1126 = arith.constant 1 : index
    %c2_1127 = arith.constant 2 : index
    %c2_1128 = arith.constant 2 : index
    %1679 = vector.load %arg1[%c0_1125, %c1_1126, %c2_1127, %c2_1128] : memref<1x4x18x18xf32, #tpu.memory_space<vmem>>, vector<1x1x16x16xf32>
    %1680 = vector.shape_cast %1679 : vector<1x1x16x16xf32> to vector<16x16xf32>
    %1681 = vector.broadcast %1678 : f32 to vector<16x16xf32>
    %1682 = arith.mulf %1681, %1680 : vector<16x16xf32>
    %1683 = arith.addf %1677, %1682 : vector<16x16xf32>
    %c270 = arith.constant 270 : index
    %1684 = memref.load %arg2[%c270] : memref<288xf32, #tpu.memory_space<smem>>
    %c0_1129 = arith.constant 0 : index
    %c2_1130 = arith.constant 2 : index
    %c0_1131 = arith.constant 0 : index
    %c0_1132 = arith.constant 0 : index
    %1685 = vector.load %arg1[%c0_1129, %c2_1130, %c0_1131, %c0_1132] : memref<1x4x18x18xf32, #tpu.memory_space<vmem>>, vector<1x1x16x16xf32>
    %1686 = vector.shape_cast %1685 : vector<1x1x16x16xf32> to vector<16x16xf32>
    %1687 = vector.broadcast %1684 : f32 to vector<16x16xf32>
    %1688 = arith.mulf %1687, %1686 : vector<16x16xf32>
    %1689 = arith.addf %1683, %1688 : vector<16x16xf32>
    %c271 = arith.constant 271 : index
    %1690 = memref.load %arg2[%c271] : memref<288xf32, #tpu.memory_space<smem>>
    %c0_1133 = arith.constant 0 : index
    %c2_1134 = arith.constant 2 : index
    %c0_1135 = arith.constant 0 : index
    %c1_1136 = arith.constant 1 : index
    %1691 = vector.load %arg1[%c0_1133, %c2_1134, %c0_1135, %c1_1136] : memref<1x4x18x18xf32, #tpu.memory_space<vmem>>, vector<1x1x16x16xf32>
    %1692 = vector.shape_cast %1691 : vector<1x1x16x16xf32> to vector<16x16xf32>
    %1693 = vector.broadcast %1690 : f32 to vector<16x16xf32>
    %1694 = arith.mulf %1693, %1692 : vector<16x16xf32>
    %1695 = arith.addf %1689, %1694 : vector<16x16xf32>
    %c272 = arith.constant 272 : index
    %1696 = memref.load %arg2[%c272] : memref<288xf32, #tpu.memory_space<smem>>
    %c0_1137 = arith.constant 0 : index
    %c2_1138 = arith.constant 2 : index
    %c0_1139 = arith.constant 0 : index
    %c2_1140 = arith.constant 2 : index
    %1697 = vector.load %arg1[%c0_1137, %c2_1138, %c0_1139, %c2_1140] : memref<1x4x18x18xf32, #tpu.memory_space<vmem>>, vector<1x1x16x16xf32>
    %1698 = vector.shape_cast %1697 : vector<1x1x16x16xf32> to vector<16x16xf32>
    %1699 = vector.broadcast %1696 : f32 to vector<16x16xf32>
    %1700 = arith.mulf %1699, %1698 : vector<16x16xf32>
    %1701 = arith.addf %1695, %1700 : vector<16x16xf32>
    %c273 = arith.constant 273 : index
    %1702 = memref.load %arg2[%c273] : memref<288xf32, #tpu.memory_space<smem>>
    %c0_1141 = arith.constant 0 : index
    %c2_1142 = arith.constant 2 : index
    %c1_1143 = arith.constant 1 : index
    %c0_1144 = arith.constant 0 : index
    %1703 = vector.load %arg1[%c0_1141, %c2_1142, %c1_1143, %c0_1144] : memref<1x4x18x18xf32, #tpu.memory_space<vmem>>, vector<1x1x16x16xf32>
    %1704 = vector.shape_cast %1703 : vector<1x1x16x16xf32> to vector<16x16xf32>
    %1705 = vector.broadcast %1702 : f32 to vector<16x16xf32>
    %1706 = arith.mulf %1705, %1704 : vector<16x16xf32>
    %1707 = arith.addf %1701, %1706 : vector<16x16xf32>
    %c274 = arith.constant 274 : index
    %1708 = memref.load %arg2[%c274] : memref<288xf32, #tpu.memory_space<smem>>
    %c0_1145 = arith.constant 0 : index
    %c2_1146 = arith.constant 2 : index
    %c1_1147 = arith.constant 1 : index
    %c1_1148 = arith.constant 1 : index
    %1709 = vector.load %arg1[%c0_1145, %c2_1146, %c1_1147, %c1_1148] : memref<1x4x18x18xf32, #tpu.memory_space<vmem>>, vector<1x1x16x16xf32>
    %1710 = vector.shape_cast %1709 : vector<1x1x16x16xf32> to vector<16x16xf32>
    %1711 = vector.broadcast %1708 : f32 to vector<16x16xf32>
    %1712 = arith.mulf %1711, %1710 : vector<16x16xf32>
    %1713 = arith.addf %1707, %1712 : vector<16x16xf32>
    %c275 = arith.constant 275 : index
    %1714 = memref.load %arg2[%c275] : memref<288xf32, #tpu.memory_space<smem>>
    %c0_1149 = arith.constant 0 : index
    %c2_1150 = arith.constant 2 : index
    %c1_1151 = arith.constant 1 : index
    %c2_1152 = arith.constant 2 : index
    %1715 = vector.load %arg1[%c0_1149, %c2_1150, %c1_1151, %c2_1152] : memref<1x4x18x18xf32, #tpu.memory_space<vmem>>, vector<1x1x16x16xf32>
    %1716 = vector.shape_cast %1715 : vector<1x1x16x16xf32> to vector<16x16xf32>
    %1717 = vector.broadcast %1714 : f32 to vector<16x16xf32>
    %1718 = arith.mulf %1717, %1716 : vector<16x16xf32>
    %1719 = arith.addf %1713, %1718 : vector<16x16xf32>
    %c276 = arith.constant 276 : index
    %1720 = memref.load %arg2[%c276] : memref<288xf32, #tpu.memory_space<smem>>
    %c0_1153 = arith.constant 0 : index
    %c2_1154 = arith.constant 2 : index
    %c2_1155 = arith.constant 2 : index
    %c0_1156 = arith.constant 0 : index
    %1721 = vector.load %arg1[%c0_1153, %c2_1154, %c2_1155, %c0_1156] : memref<1x4x18x18xf32, #tpu.memory_space<vmem>>, vector<1x1x16x16xf32>
    %1722 = vector.shape_cast %1721 : vector<1x1x16x16xf32> to vector<16x16xf32>
    %1723 = vector.broadcast %1720 : f32 to vector<16x16xf32>
    %1724 = arith.mulf %1723, %1722 : vector<16x16xf32>
    %1725 = arith.addf %1719, %1724 : vector<16x16xf32>
    %c277 = arith.constant 277 : index
    %1726 = memref.load %arg2[%c277] : memref<288xf32, #tpu.memory_space<smem>>
    %c0_1157 = arith.constant 0 : index
    %c2_1158 = arith.constant 2 : index
    %c2_1159 = arith.constant 2 : index
    %c1_1160 = arith.constant 1 : index
    %1727 = vector.load %arg1[%c0_1157, %c2_1158, %c2_1159, %c1_1160] : memref<1x4x18x18xf32, #tpu.memory_space<vmem>>, vector<1x1x16x16xf32>
    %1728 = vector.shape_cast %1727 : vector<1x1x16x16xf32> to vector<16x16xf32>
    %1729 = vector.broadcast %1726 : f32 to vector<16x16xf32>
    %1730 = arith.mulf %1729, %1728 : vector<16x16xf32>
    %1731 = arith.addf %1725, %1730 : vector<16x16xf32>
    %c278 = arith.constant 278 : index
    %1732 = memref.load %arg2[%c278] : memref<288xf32, #tpu.memory_space<smem>>
    %c0_1161 = arith.constant 0 : index
    %c2_1162 = arith.constant 2 : index
    %c2_1163 = arith.constant 2 : index
    %c2_1164 = arith.constant 2 : index
    %1733 = vector.load %arg1[%c0_1161, %c2_1162, %c2_1163, %c2_1164] : memref<1x4x18x18xf32, #tpu.memory_space<vmem>>, vector<1x1x16x16xf32>
    %1734 = vector.shape_cast %1733 : vector<1x1x16x16xf32> to vector<16x16xf32>
    %1735 = vector.broadcast %1732 : f32 to vector<16x16xf32>
    %1736 = arith.mulf %1735, %1734 : vector<16x16xf32>
    %1737 = arith.addf %1731, %1736 : vector<16x16xf32>
    %c279 = arith.constant 279 : index
    %1738 = memref.load %arg2[%c279] : memref<288xf32, #tpu.memory_space<smem>>
    %c0_1165 = arith.constant 0 : index
    %c3_1166 = arith.constant 3 : index
    %c0_1167 = arith.constant 0 : index
    %c0_1168 = arith.constant 0 : index
    %1739 = vector.load %arg1[%c0_1165, %c3_1166, %c0_1167, %c0_1168] : memref<1x4x18x18xf32, #tpu.memory_space<vmem>>, vector<1x1x16x16xf32>
    %1740 = vector.shape_cast %1739 : vector<1x1x16x16xf32> to vector<16x16xf32>
    %1741 = vector.broadcast %1738 : f32 to vector<16x16xf32>
    %1742 = arith.mulf %1741, %1740 : vector<16x16xf32>
    %1743 = arith.addf %1737, %1742 : vector<16x16xf32>
    %c280 = arith.constant 280 : index
    %1744 = memref.load %arg2[%c280] : memref<288xf32, #tpu.memory_space<smem>>
    %c0_1169 = arith.constant 0 : index
    %c3_1170 = arith.constant 3 : index
    %c0_1171 = arith.constant 0 : index
    %c1_1172 = arith.constant 1 : index
    %1745 = vector.load %arg1[%c0_1169, %c3_1170, %c0_1171, %c1_1172] : memref<1x4x18x18xf32, #tpu.memory_space<vmem>>, vector<1x1x16x16xf32>
    %1746 = vector.shape_cast %1745 : vector<1x1x16x16xf32> to vector<16x16xf32>
    %1747 = vector.broadcast %1744 : f32 to vector<16x16xf32>
    %1748 = arith.mulf %1747, %1746 : vector<16x16xf32>
    %1749 = arith.addf %1743, %1748 : vector<16x16xf32>
    %c281 = arith.constant 281 : index
    %1750 = memref.load %arg2[%c281] : memref<288xf32, #tpu.memory_space<smem>>
    %c0_1173 = arith.constant 0 : index
    %c3_1174 = arith.constant 3 : index
    %c0_1175 = arith.constant 0 : index
    %c2_1176 = arith.constant 2 : index
    %1751 = vector.load %arg1[%c0_1173, %c3_1174, %c0_1175, %c2_1176] : memref<1x4x18x18xf32, #tpu.memory_space<vmem>>, vector<1x1x16x16xf32>
    %1752 = vector.shape_cast %1751 : vector<1x1x16x16xf32> to vector<16x16xf32>
    %1753 = vector.broadcast %1750 : f32 to vector<16x16xf32>
    %1754 = arith.mulf %1753, %1752 : vector<16x16xf32>
    %1755 = arith.addf %1749, %1754 : vector<16x16xf32>
    %c282 = arith.constant 282 : index
    %1756 = memref.load %arg2[%c282] : memref<288xf32, #tpu.memory_space<smem>>
    %c0_1177 = arith.constant 0 : index
    %c3_1178 = arith.constant 3 : index
    %c1_1179 = arith.constant 1 : index
    %c0_1180 = arith.constant 0 : index
    %1757 = vector.load %arg1[%c0_1177, %c3_1178, %c1_1179, %c0_1180] : memref<1x4x18x18xf32, #tpu.memory_space<vmem>>, vector<1x1x16x16xf32>
    %1758 = vector.shape_cast %1757 : vector<1x1x16x16xf32> to vector<16x16xf32>
    %1759 = vector.broadcast %1756 : f32 to vector<16x16xf32>
    %1760 = arith.mulf %1759, %1758 : vector<16x16xf32>
    %1761 = arith.addf %1755, %1760 : vector<16x16xf32>
    %c283 = arith.constant 283 : index
    %1762 = memref.load %arg2[%c283] : memref<288xf32, #tpu.memory_space<smem>>
    %c0_1181 = arith.constant 0 : index
    %c3_1182 = arith.constant 3 : index
    %c1_1183 = arith.constant 1 : index
    %c1_1184 = arith.constant 1 : index
    %1763 = vector.load %arg1[%c0_1181, %c3_1182, %c1_1183, %c1_1184] : memref<1x4x18x18xf32, #tpu.memory_space<vmem>>, vector<1x1x16x16xf32>
    %1764 = vector.shape_cast %1763 : vector<1x1x16x16xf32> to vector<16x16xf32>
    %1765 = vector.broadcast %1762 : f32 to vector<16x16xf32>
    %1766 = arith.mulf %1765, %1764 : vector<16x16xf32>
    %1767 = arith.addf %1761, %1766 : vector<16x16xf32>
    %c284 = arith.constant 284 : index
    %1768 = memref.load %arg2[%c284] : memref<288xf32, #tpu.memory_space<smem>>
    %c0_1185 = arith.constant 0 : index
    %c3_1186 = arith.constant 3 : index
    %c1_1187 = arith.constant 1 : index
    %c2_1188 = arith.constant 2 : index
    %1769 = vector.load %arg1[%c0_1185, %c3_1186, %c1_1187, %c2_1188] : memref<1x4x18x18xf32, #tpu.memory_space<vmem>>, vector<1x1x16x16xf32>
    %1770 = vector.shape_cast %1769 : vector<1x1x16x16xf32> to vector<16x16xf32>
    %1771 = vector.broadcast %1768 : f32 to vector<16x16xf32>
    %1772 = arith.mulf %1771, %1770 : vector<16x16xf32>
    %1773 = arith.addf %1767, %1772 : vector<16x16xf32>
    %c285 = arith.constant 285 : index
    %1774 = memref.load %arg2[%c285] : memref<288xf32, #tpu.memory_space<smem>>
    %c0_1189 = arith.constant 0 : index
    %c3_1190 = arith.constant 3 : index
    %c2_1191 = arith.constant 2 : index
    %c0_1192 = arith.constant 0 : index
    %1775 = vector.load %arg1[%c0_1189, %c3_1190, %c2_1191, %c0_1192] : memref<1x4x18x18xf32, #tpu.memory_space<vmem>>, vector<1x1x16x16xf32>
    %1776 = vector.shape_cast %1775 : vector<1x1x16x16xf32> to vector<16x16xf32>
    %1777 = vector.broadcast %1774 : f32 to vector<16x16xf32>
    %1778 = arith.mulf %1777, %1776 : vector<16x16xf32>
    %1779 = arith.addf %1773, %1778 : vector<16x16xf32>
    %c286 = arith.constant 286 : index
    %1780 = memref.load %arg2[%c286] : memref<288xf32, #tpu.memory_space<smem>>
    %c0_1193 = arith.constant 0 : index
    %c3_1194 = arith.constant 3 : index
    %c2_1195 = arith.constant 2 : index
    %c1_1196 = arith.constant 1 : index
    %1781 = vector.load %arg1[%c0_1193, %c3_1194, %c2_1195, %c1_1196] : memref<1x4x18x18xf32, #tpu.memory_space<vmem>>, vector<1x1x16x16xf32>
    %1782 = vector.shape_cast %1781 : vector<1x1x16x16xf32> to vector<16x16xf32>
    %1783 = vector.broadcast %1780 : f32 to vector<16x16xf32>
    %1784 = arith.mulf %1783, %1782 : vector<16x16xf32>
    %1785 = arith.addf %1779, %1784 : vector<16x16xf32>
    %c287 = arith.constant 287 : index
    %1786 = memref.load %arg2[%c287] : memref<288xf32, #tpu.memory_space<smem>>
    %c0_1197 = arith.constant 0 : index
    %c3_1198 = arith.constant 3 : index
    %c2_1199 = arith.constant 2 : index
    %c2_1200 = arith.constant 2 : index
    %1787 = vector.load %arg1[%c0_1197, %c3_1198, %c2_1199, %c2_1200] : memref<1x4x18x18xf32, #tpu.memory_space<vmem>>, vector<1x1x16x16xf32>
    %1788 = vector.shape_cast %1787 : vector<1x1x16x16xf32> to vector<16x16xf32>
    %1789 = vector.broadcast %1786 : f32 to vector<16x16xf32>
    %1790 = arith.mulf %1789, %1788 : vector<16x16xf32>
    %1791 = arith.addf %1785, %1790 : vector<16x16xf32>
    %c7_1201 = arith.constant 7 : index
    %1792 = memref.load %arg3[%c7_1201] : memref<8xf32, #tpu.memory_space<smem>>
    %1793 = vector.broadcast %1792 : f32 to vector<16x16xf32>
    %1794 = arith.addf %1791, %1793 : vector<16x16xf32>
    %cst_1202 = arith.constant 0.000000e+00 : f32
    %1795 = vector.broadcast %cst_1202 : f32 to vector<16x16xf32>
    %1796 = arith.maximumf %1794, %1795 : vector<16x16xf32>
    %c0_1203 = arith.constant 0 : index
    %c7_1204 = arith.constant 7 : index
    %c0_1205 = arith.constant 0 : index
    %c0_1206 = arith.constant 0 : index
    %1797 = vector.load %arg4[%c0_1203, %c7_1204, %c0_1205, %c0_1206] : memref<1x8x16x16xf32, #tpu.memory_space<vmem>>, vector<1x1x16x16xf32>
    %1798 = vector.shape_cast %1797 : vector<1x1x16x16xf32> to vector<16x16xf32>
    %1799 = vector.shape_cast %1796 : vector<16x16xf32> to vector<1x1x16x16xf32>
    tpu.vector_store %arg4[%c0_1203, %c7_1204, %c0_1205, %c0_1206], %1799 {strides = array<i32>} : memref<1x8x16x16xf32, #tpu.memory_space<vmem>>, vector<1x1x16x16xf32>,
    return
  }
  func.func @transform_0(%arg0: i32) -> (i32, i32, i32, i32) {
    %c0_i32 = arith.constant 0 : i32
    %c0_i32_0 = arith.constant 0 : i32
    %c0_i32_1 = arith.constant 0 : i32
    %c0_i32_2 = arith.constant 0 : i32
    return %arg0, %c0_i32, %c0_i32_0, %c0_i32_1 : i32, i32, i32, i32
  }
  func.func @transform_1(%arg0: i32) -> i32 {
    %c0_i32 = arith.constant 0 : i32
    %c0_i32_0 = arith.constant 0 : i32
    return %c0_i32 : i32
  }
  func.func @transform_2(%arg0: i32) -> i32 {
    %c0_i32 = arith.constant 0 : i32
    %c0_i32_0 = arith.constant 0 : i32
    return %c0_i32 : i32
  }
  func.func @transform_3(%arg0: i32) -> (i32, i32, i32, i32) {
    %c0_i32 = arith.constant 0 : i32
    %c0_i32_0 = arith.constant 0 : i32
    %c0_i32_1 = arith.constant 0 : i32
    %c0_i32_2 = arith.constant 0 : i32
    return %arg0, %c0_i32, %c0_i32_0, %c0_i32_1 : i32, i32, i32, i32
  }
}

module attributes {stable_mosaic.version = 11 : i64} {
  func.func @linear_relu_kernel(%arg0: i32, %arg1: memref<2x512xf32, #tpu.memory_space<vmem>>, %arg2: memref<32x512xf32, #tpu.memory_space<vmem>>, %arg3: memref<1x32xf32, #tpu.memory_space<vmem>>, %arg4: memref<2x32xf32, #tpu.memory_space<vmem>>, %arg5: memref<2x32xf32, #tpu.memory_space<vmem>>) attributes {dimension_semantics = [#tpu.dimension_semantics<arbitrary>], iteration_bounds = array<i64: 4>, scalar_prefetch = 0 : i64, scratch_operands = 1 : i64, tpu.core_type = #tpu.core_type<tc>, window_params = [{transform_indices = @transform_0, window_bounds = array<i64: 2, 512>}, {transform_indices = @transform_1, window_bounds = array<i64: 32, 512>}, {pipeline_mode = #tpu.pipeline_mode<synchronous>, transform_indices = @transform_2, window_bounds = array<i64: 1, 32>}, {pipeline_mode = #tpu.pipeline_mode<synchronous>, transform_indices = @transform_3, window_bounds = array<i64: 2, 32>}]} {
    %c0_i32 = arith.constant 0 : i32
    %0 = arith.cmpi eq, %arg0, %c0_i32 : i32
    %1 = arith.extui %0 : i1 to i32
    %c0_i32_0 = arith.constant 0 : i32
    %2 = arith.cmpi ne, %1, %c0_i32_0 : i32
    scf.if %2 {
      %cst_9 = arith.constant 0.000000e+00 : f32
      %12 = vector.broadcast %cst_9 : f32 to vector<2x32xf32>
      %c0_10 = arith.constant 0 : index
      %c0_11 = arith.constant 0 : index
      %13 = vector.load %arg5[%c0_10, %c0_11] : memref<2x32xf32, #tpu.memory_space<vmem>>, vector<2x32xf32>
      tpu.vector_store %arg5[%c0_10, %c0_11], %12 {strides = array<i32>} : memref<2x32xf32, #tpu.memory_space<vmem>>, vector<2x32xf32>,
    } else {
    }
    %c0 = arith.constant 0 : index
    %c0_1 = arith.constant 0 : index
    %3 = vector.load %arg5[%c0, %c0_1] : memref<2x32xf32, #tpu.memory_space<vmem>>, vector<2x32xf32>
    %c0_2 = arith.constant 0 : index
    %c0_3 = arith.constant 0 : index
    %4 = vector.load %arg1[%c0_2, %c0_3] : memref<2x512xf32, #tpu.memory_space<vmem>>, vector<2x512xf32>
    %c0_4 = arith.constant 0 : index
    %c0_5 = arith.constant 0 : index
    %5 = vector.load %arg2[%c0_4, %c0_5] : memref<32x512xf32, #tpu.memory_space<vmem>>, vector<32x512xf32>
    %cst = arith.constant dense<0.000000e+00> : vector<2x32xf32>
    %6 = tpu.matmul %4, %5, %cst {dimension_numbers = #tpu.dot_dimension_numbers<[1], [1], [0], [0], [0, 0, 1, 0], [], []>} : vector<2x512xf32>, vector<32x512xf32>, vector<2x32xf32> -> vector<2x32xf32>
    %7 = arith.addf %3, %6 : vector<2x32xf32>
    %c0_6 = arith.constant 0 : index
    %c0_7 = arith.constant 0 : index
    %8 = vector.load %arg5[%c0_6, %c0_7] : memref<2x32xf32, #tpu.memory_space<vmem>>, vector<2x32xf32>
    tpu.vector_store %arg5[%c0_6, %c0_7], %7 {strides = array<i32>} : memref<2x32xf32, #tpu.memory_space<vmem>>, vector<2x32xf32>,
    %c3_i32 = arith.constant 3 : i32
    %9 = arith.cmpi eq, %arg0, %c3_i32 : i32
    %10 = arith.extui %9 : i1 to i32
    %c0_i32_8 = arith.constant 0 : i32
    %11 = arith.cmpi ne, %10, %c0_i32_8 : i32
    scf.if %11 {
      %c0_9 = arith.constant 0 : index
      %c0_10 = arith.constant 0 : index
      %12 = vector.load %arg5[%c0_9, %c0_10] : memref<2x32xf32, #tpu.memory_space<vmem>>, vector<2x32xf32>
      %c0_11 = arith.constant 0 : index
      %c0_12 = arith.constant 0 : index
      %13 = vector.load %arg3[%c0_11, %c0_12] : memref<1x32xf32, #tpu.memory_space<vmem>>, vector<1x32xf32>
      %14 = vector.broadcast %13 : vector<1x32xf32> to vector<2x32xf32>
      %15 = arith.addf %12, %14 : vector<2x32xf32>
      %cst_13 = arith.constant 0.000000e+00 : f32
      %16 = vector.broadcast %cst_13 : f32 to vector<2x32xf32>
      %17 = arith.maximumf %15, %16 : vector<2x32xf32>
      %c0_14 = arith.constant 0 : index
      %c0_15 = arith.constant 0 : index
      %18 = vector.load %arg4[%c0_14, %c0_15] : memref<2x32xf32, #tpu.memory_space<vmem>>, vector<2x32xf32>
      tpu.vector_store %arg4[%c0_14, %c0_15], %17 {strides = array<i32>} : memref<2x32xf32, #tpu.memory_space<vmem>>, vector<2x32xf32>,
    } else {
    }
    return
  }
  func.func @transform_0(%arg0: i32) -> (i32, i32) {
    %c0_i32 = arith.constant 0 : i32
    %c0_i32_0 = arith.constant 0 : i32
    return %c0_i32, %arg0 : i32, i32
  }
  func.func @transform_1(%arg0: i32) -> (i32, i32) {
    %c0_i32 = arith.constant 0 : i32
    %c0_i32_0 = arith.constant 0 : i32
    return %c0_i32, %arg0 : i32, i32
  }
  func.func @transform_2(%arg0: i32) -> (i32, i32) {
    %c0_i32 = arith.constant 0 : i32
    %c0_i32_0 = arith.constant 0 : i32
    %c0_i32_1 = arith.constant 0 : i32
    return %c0_i32, %c0_i32_0 : i32, i32
  }
  func.func @transform_3(%arg0: i32) -> (i32, i32) {
    %c0_i32 = arith.constant 0 : i32
    %c0_i32_0 = arith.constant 0 : i32
    %c0_i32_1 = arith.constant 0 : i32
    return %c0_i32, %c0_i32_0 : i32, i32
  }
}

</mosaic_0001>

<bundles_post_ra>
// kernel: two_block_model.3
= control target key start
LH: loop header
LB: loop body
LE: loop exit
PB: predicated region body
PF: predicated region fallthrough
CT: control target
= control target key end

     0   :  { %8 = vsyncpa [#allocation5], 0  ;;  %s625_s12 = smov 0   ;;  %s627_s13 = smov 0   ;;  %s731_s0 = inlined_call_operand.vmem [shape: f32[2,2048], index: 0, kind: input, shape index: {}]   ;;  %s732_s1 = inlined_call_operand.vmem [shape: f32[32,2048], index: 1, kind: input, shape index: {}]   ;;  %s733_s2 = inlined_call_operand.vmem [shape: f32[1,32], index: 2, kind: input, shape index: {}]   ;;  %s734_s3 = inlined_call_operand.hbm [shape: f32[2,32], index: 3, kind: output, shape index: {}]  }
   0x1   :  { %s629_s14 = smov 0  }
   0x2 LB: > { %s641_s15 = sadd.s32 4294967295, %s600_s14   ;;  %s644_s16 = sadd.s32 1, %s600_s14   ;;  %s600_s14 = sphi %s629_s14, %s737_s14   ;;  %s596_s13 = sphi %s627_s13, %s736_s13   ;;  %s592_s12 = sphi %s625_s12, %s735_s12  }
   0x3   : > { %s44_s17 = ssub.s32 %s600_s14, %s644_s16  ;;  %s47_s18 = sadd.s32 1, %s596_s13 }
   0x4   : > { %p45_p0 = scmp.eq.s32.totalorder %s44_s17, 0  ;;  %p54_p1 = scmp.ne.s32.totalorder %s596_s13, %s592_s12 }
   0x5   : > { %p55_p2 = scmp.eq.s32.totalorder %s600_s14, 0  ;;  %p500_p4 = scmp.ge.s32.totalorder %s600_s14, 4 }
   0x6   : > { %s653_s19 = scalar_select %p45_p0, %s596_s13, %s47_s18  }
   0x7   : > { %p56_p3 = por %p55_p2, %p54_p1  ;;  %125 = sbr.rel (%p500_p4) target bundleno = 24 (0x18), region = 20 }
   0xc   : > { %137 = sbr.rel (!%p56_p3) target bundleno = 24 (0x18), region = 28  ;;  %s139_s20 = sand.u32 (%p56_p3), 1, %s596_s13  }
   0xd   : > { %s515_s21 = sshll.u32 (%p56_p3), %s600_s14, 5  ;;  %s501_s22 = sshll.u32 (%p56_p3), %s139_s20, 7 }
   0xe   : > { %s661_s25 = scalar_lea.vmem (%p56_p3), %s732_s1, %s515_s21  ;;  %s141_s26 = scalar_lea.vmem (%p56_p3), [#allocation3], %s501_s22 }
   0xf   : > { %v157_v0 = vld [vmem:[%s661_s25] sm:$0xff] (%p56_p3)  ;;  %v159_v1 = vld [vmem:[%s661_s25 + $0x8] sm:$0xff] (%p56_p3)  ;;  %v161_v2 = vld [vmem:[%s661_s25 + $0x10] sm:$0xff] (%p56_p3) }
  0x10   : > { %158 = vst [vmem:[%s141_s26] sm:$0xff] (%p56_p3), %v157_v0  ;;  %160 = vst [vmem:[%s141_s26 + $0x8] sm:$0xff] (%p56_p3), %v159_v1  ;;  %v163_v3 = vld [vmem:[%s661_s25 + $0x18] sm:$0xff] (%p56_p3)  ;;  %v165_v4 = vld [vmem:[%s661_s25 + $0x80] sm:$0xff] (%p56_p3) }
  0x11   : > { %162 = vst [vmem:[%s141_s26 + $0x10] sm:$0xff] %v161_v2  ;;  %v167_v5 = vld [vmem:[%s661_s25 + $0x88] sm:$0xff]  ;;  %164 = vst [vmem:[%s141_s26 + $0x18] sm:$0xff] %v163_v3  ;;  %v169_v6 = vld [vmem:[%s661_s25 + $0x90] sm:$0xff] }
  0x12   : > { %166 = vst [vmem:[%s141_s26 + $0x20] sm:$0xff] %v165_v4  ;;  %168 = vst [vmem:[%s141_s26 + $0x28] sm:$0xff] %v167_v5  ;;  %v171_v7 = vld [vmem:[%s661_s25 + $0x98] sm:$0xff]  ;;  %v173_v8 = vld [vmem:[%s661_s25 + $0x100] sm:$0xff] }
  0x13   : > { %170 = vst [vmem:[%s141_s26 + $0x30] sm:$0xff] %v169_v6  ;;  %172 = vst [vmem:[%s141_s26 + $0x38] sm:$0xff] %v171_v7  ;;  %v175_v9 = vld [vmem:[%s661_s25 + $0x108] sm:$0xff]  ;;  %v177_v10 = vld [vmem:[%s661_s25 + $0x110] sm:$0xff] }
  0x14   : > { %174 = vst [vmem:[%s141_s26 + $0x40] sm:$0xff] %v173_v8  ;;  %v179_v11 = vld [vmem:[%s661_s25 + $0x118] sm:$0xff]  ;;  %176 = vst [vmem:[%s141_s26 + $0x48] sm:$0xff] %v175_v9  ;;  %v181_v12 = vld [vmem:[%s661_s25 + $0x180] sm:$0xff] }
  0x15   : > { %178 = vst [vmem:[%s141_s26 + $0x50] sm:$0xff] %v177_v10  ;;  %180 = vst [vmem:[%s141_s26 + $0x58] sm:$0xff] %v179_v11  ;;  %v183_v13 = vld [vmem:[%s661_s25 + $0x188] sm:$0xff]  ;;  %v185_v14 = vld [vmem:[%s661_s25 + $0x190] sm:$0xff] }
  0x16   : > { %182 = vst [vmem:[%s141_s26 + $0x60] sm:$0xff] %v181_v12  ;;  %184 = vst [vmem:[%s141_s26 + $0x68] sm:$0xff] %v183_v13  ;;  %v187_v15 = vld [vmem:[%s661_s25 + $0x198] sm:$0xff] }
  0x17   : > { %186 = vst [vmem:[%s141_s26 + $0x70] sm:$0xff] %v185_v14  ;;  %188 = vst [vmem:[%s141_s26 + $0x78] sm:$0xff] %v187_v15 }
  0x18 PF: > { %p504_p5 = scmp.ge.s32.totalorder %s600_s14, 1  ;;  %p193_p6 = scmp.lt.s32.totalorder %s600_s14, 5 }
  0x1a   : > { %p194_p7 = pnand %p504_p5, %p193_p6 }
  0x1b   : > { %s200_s27 = sand.u32 (!%p194_p7), 1, %s592_s12   ;;  %s506_s28 = sshll.u32 (!%p194_p7), %s641_s15, 2 }
  0x1c   : > { %197 = sbr.rel (%p194_p7) target bundleno = 282 (0x11a), region = 51  ;;  %s505_s29 = sshll.u32 (!%p194_p7), %s200_s27, 7 }
  0x1d   : > { %p224_p8 = scmp.lt.s32.totalorder (!%p194_p7), %s506_s28, 15  ;;  %s686_s7 = scalar_lea.vmem (!%p194_p7), [#allocation3], %s505_s29 }
  0x1e   : > { %p508_p9 = scmp.ne.s32.totalorder (!%p194_p7), %s641_s15, 0 }
  0x21   : > { %s739_s28 = smov (!%p224_p8, %s506_s28), 15  ;;  %233 = sbr.rel (%p508_p9) target bundleno = 40 (0x28), region = 59 }
  0x22   : > { %s507_s30 = sshll.u32 %s739_s28, 1 }
  0x23   : > { %s227_s6 = scalar_lea.vmem %s731_s0, %s507_s30 }
  0x26   : > { %vm234_vm0 = vcmask 254976   ;;  %v602_v16 = vmov 0.0  }
  0x27   : > { %235 = vst.msk [vmem:[#allocation2] sm:$0x3] %vm234_vm0, %v602_v16 }
  0x28 PF: > { %v251_v17 = vld [vmem:[%s686_s7 + $0x68] sm:$0xff]  ;;  %v253_v18 = vld [vmem:[%s686_s7 + $0x78] sm:$0xff]  ;;  %v250_v19 = vld [vmem:[%s686_s7 + $0x60] sm:$0xff]  ;;  %v259_v20 = vlaneseq  ;;  %v603_v24 = vmov 1983009808   ;;  %vm417_vm1 = vcmask 254976  }
  0x29   : > { %300 = vmatprep.subr.mxu0 %v251_v17  ;;  %370 = vmatprep.subr.mxu1 %v253_v18  ;;  %v252_v21 = vld [vmem:[%s686_s7 + $0x70] sm:$0xff]  ;;  %v247_v22 = vld [vmem:[%s686_s7 + $0x48] sm:$0xff]  ;;  %v249_v23 = vld [vmem:[%s686_s7 + $0x58] sm:$0xff]  ;;  %v257_v25 = vunpack.c.l.s4 %v603_v24  ;;  %p509_p10 = scmp.ne.s32.totalorder %s641_s15, 3 }
  0x2a   : > { %301 = vmatpush1.xpose.msra.mxu0 %v250_v19  ;;  %371 = vmatpush1.xpose.msra.mxu1 %v252_v21  ;;  %v260_v26 = vshrl.u32 %v259_v20, 7  ;;  %v246_v27 = vld [vmem:[%s686_s7 + $0x40] sm:$0xff]  ;;  %v248_v28 = vld [vmem:[%s686_s7 + $0x50] sm:$0xff]  ;;  %v243_v30 = vld [vmem:[%s686_s7 + $0x28] sm:$0xff] }
  0x2b   : > { %302 = vmatprep.subr.mxu0 %v247_v22  ;;  %372 = vmatprep.subr.mxu1 %v249_v23  ;;  %v258_v29 = vunpack.c.0.s8 %v257_v25  ;;  %v245_v31 = vld [vmem:[%s686_s7 + $0x38] sm:$0xff]  ;;  %v242_v35 = vld [vmem:[%s686_s7 + $0x20] sm:$0xff]  ;;  %v244_v36 = vld [vmem:[%s686_s7 + $0x30] sm:$0xff] }
  0x2c   : > { %v237_v32 = vld [vmem:[%s227_s6] sm:$0xff]  ;;  %v239_v38 = vld [vmem:[%s686_s7 + $0x8] sm:$0xff]  ;;  %v240_v44 = vld [vmem:[%s686_s7 + $0x10] sm:$0xff] }
  0x2d   : > { %v261_v33 = vsub.s32 %v258_v29, %v260_v26  ;;  %v255_v34 = vcombine.high %v237_v32, %v237_v32  ;;  %v241_v39 = vld [vmem:[%s686_s7 + $0x18] sm:$0xff]  ;;  %v238_v43 = vld [vmem:[%s686_s7] sm:$0xff] }
  0x2e   : > { %303 = vmatpush1.xpose.msra.mxu0 %v246_v27  ;;  %373 = vmatpush1.xpose.msra.mxu1 %v248_v28  ;;  %v236_v46 = vld [vmem:[#allocation2] sm:$0x3] }
  0x2f   : > { %304 = vmatprep.subr.mxu0 %v243_v30  ;;  %374 = vmatprep.subr.mxu1 %v245_v31  ;;  %v262_v37 = vrot.slane %v237_v32, %v261_v33  ;;  %v269_v40 = vrot.slane %v255_v34, %v261_v33 }
  0x31   : > { %v270_v41 = vcombine.high %v262_v37, %v262_v37  ;;  %v271_v42 = vcombine.high %v269_v40, %v269_v40 }
  0x32   : > { %305 = vmatpush1.xpose.msra.mxu0 %v242_v35  ;;  %375 = vmatpush1.xpose.msra.mxu1 %v244_v36 }
  0x33   : > { %306 = vmatprep.subr.mxu0 %v239_v38  ;;  %376 = vmatprep.subr.mxu1 %v241_v39 }
  0x34   : > { %340 = vmatprep.mubr.f32.mxu0 %v270_v41  ;;  %410 = vmatprep.mubr.f32.mxu1 %v271_v42 }
  0x36   : > { %307 = vmatpush1.xpose.msra.mxu0 %v238_v43  ;;  %377 = vmatpush1.xpose.msra.mxu1 %v240_v44 }
  0x39   : > { %341 = vmatmul.mubr.f32.vlgmr.msra.gmra.mxu0 %v262_v37  ;;  %411 = vmatmul.mubr.f32.vlgmr.msra.gmra.mxu1 %v269_v40 }
  0xf9   : > { %v342_v45 = vpop.f32.mrf.mxu0  ;;  %v412_v47 = vpop.f32.mrf.mxu1 }
  0xfa   : > { %v413_v48 = vadd.f32 %v412_v47, %v342_v45  ;;  %422 = sbr.rel (%p509_p10) target bundleno = 267 (0x10b), region = 63 }
  0xfb   : > { %v344_v49 = vpop.f32.mrf.mxu0  ;;  %v414_v50 = vpop.f32.mrf.mxu1 }
  0xfc   : > { %v416_v51 = vadd.f32 %v413_v48, %v236_v46 }
  0xfe   : > { %418 = vst.msk [vmem:[#allocation2] sm:$0x3] %vm417_vm1, %v416_v51 }
  0xff   : > { %v510_v53 = vld [vmem:[%s733_s2] ss:$0 sm:$0xff] }
 0x105   : > { %v423_v52 = vld [vmem:[#allocation2] sm:$0x3] }
 0x106   : > { %v431_v54 = vadd.f32 %v510_v53, %v423_v52 }
 0x108   : > { %v432_v55 = vmax.f32 %v431_v54, 0.0 }
 0x10a   : > { %433 = vst.msk [vmem:[#allocation4] sm:$0x3] %vm417_vm1, %v432_v55 }
 0x10b PF: > { %p520_p11 = scmp.eq.s32.totalorder %s641_s15, 3  ;;  %s604_s10 = smov [#allocation4]  }
 0x10c   : > { %s441_s11 = sshll.u32 %s604_s10, 4  ;;  %s442_s11 = int_to_ptr.vmem [resolvable:$true] %s441_s11 }
 0x10d   : > { %s550_s12 = scalar_lea.vmem %s442_s11, 32  ;;  %p557_p1 = scmp.lt.s32.totalorder %s442_s11, %s442_s11 }
 0x10e   : > { %p551_p12 = scmp.ne.s32.totalorder %s442_s11, %s550_s12  ;;  %p558_p2 = scmp.lt.s32.totalorder %s550_s12, %s550_s12 }
 0x110   : > { %p552_p13 = pnand %p551_p12, %p520_p11  ;;  %p559_p3 = por %p558_p2, %p557_p1 }
 0x112   : > { %p553_p0 = pneg %p552_p13 }
 0x114   : > { %p560_p4 = pnand %p559_p3, %p553_p0 }
 0x116   : > { %563 = shalt.err (!%p560_p4)
}
 0x117   : > { %517 = dma.vmem_to_hbm [thread:$0]  (%p520_p11), %s442_s11, 32, %s734_s3, [#allocation5]  }
 0x118   : > { %587 = dma.done.wait (%p520_p11), [#allocation5], 32  }
 0x119   : > { %589 = vsyncadd (%p520_p11), [#allocation5], 4294967264 }
 0x11a PF: > { %p11_p5 = scmp.ge.s32.totalorder %s644_s16, 6   ;;  %s735_s12 = smov %s596_s13 }
 0x11b   : > { %s736_s13 = smov %s653_s19  ;;  %s737_s14 = smov %s644_s16 }
 0x11c   :  { %13 = sbr.rel (!%p11_p5) target bundleno = 2 (0x2), region = 98 }
 0x121   :  { %454 = vsyncpa [#allocation5], 1 }
 0x122   :  { %456 = vsyncpa [#allocation5 + $0x1], 1 }

// kernel: two_block_model.2
= control target key start
LH: loop header
LB: loop body
LE: loop exit
PB: predicated region body
PF: predicated region fallthrough
CT: control target
= control target key end

     0   :  { %8 = vsyncpa [#allocation3], 0  ;;  %s6589_s0 = inlined_call_operand.vmem [shape: f32[2,4,18,18], index: 0, kind: input, shape index: {}]   ;;  %s6590_s1 = inlined_call_operand.vmem [shape: f32[288], index: 1, kind: input, shape index: {}]   ;;  %s6591_s2 = inlined_call_operand.vmem [shape: f32[8], index: 2, kind: input, shape index: {}]   ;;  %s6592_s3 = inlined_call_operand.vmem [shape: f32[2,8,16,16], index: 3, kind: output, shape index: {}]  }
   0x1   :  { %9 = vsyncpa [#allocation5], 0  ;;  %s4459_s12 = smov 0  }
   0x2 LB: > { %s4465_s13 = sadd.s32 4294967295, %s4433_s12   ;;  %p3808_p0 = scmp.ge.s32.totalorder %s4433_s12, 1  ;;  %s4433_s12 = sphi %s4459_s12, %s15_s12  }
   0x3   : > { %p114_p1 = scmp.lt.s32.totalorder %s4433_s12, 3  ;;  %s127_s16 = sshll.u32 %s6590_s1, 4  ;;  %s128_s16 = int_to_ptr.vmem [resolvable:$true] %s127_s16 }
   0x4   : > { %p6593_p3 = scmp.eq.s32.totalorder %s4465_s13, 0  ;;  %s138_s20 = sshll.u32 %s6591_s2, 4  ;;  %s139_s20 = int_to_ptr.vmem [resolvable:$true] %s138_s20 }
   0x5   : > { %p4472_p2 = pnand %p3808_p0, %p114_p1  ;;  %s4389_s22 = scalar_lea.vmem %s128_s16, 48 }
   0x6   : > { %p4390_p6 = scmp.ne.s32.totalorder %s128_s16, %s4389_s22  ;;  %s4396_s23 = scalar_lea.vmem %s128_s16, 64 }
   0x7   : > { %s6595_s17 = scalar_select %p4472_p2, 1, 0 }
   0x8   : > { %p4282_p4 = pneg %p4472_p2  ;;  %p4397_p10 = scmp.lt.s32.totalorder %s128_s16, %s128_s16 }
   0x9   : > { %p4398_p11 = scmp.lt.s32.totalorder %s4396_s23, %s4389_s22 }
   0xa   : > { %p4484_p5 = pnand %p6593_p3, %p4282_p4 }
   0xb   : > { %p4399_p12 = por %p4398_p11, %p4397_p10 }
   0xc   : > { %p4391_p7 = pneg %p4484_p5 }
   0xe   : > { %p4392_p8 = pnand %p4391_p7, %p4390_p6 }
  0x10   : > { %p4393_p9 = pneg %p4392_p8 }
  0x12   : > { %p4400_p13 = pnand %p4399_p12, %p4393_p9 }
  0x14   : > { %4403 = shalt.err (!%p4400_p13)
}
  0x15   : > { %s4435_s24 = smov [#allocation2]   ;;  %s4404_s25 = scalar_lea.vmem %s139_s20, 16 }
  0x16   : > { %4285 = dma.vmem_to_smem (!%p4484_p5), %s128_s16, 48, %s4435_s24, [#allocation3]  }
  0x17   : > { %p4405_p0 = scmp.ne.s32.totalorder %s139_s20, %s4404_s25  ;;  %p4412_p3 = scmp.lt.s32.totalorder %s139_s20, %s139_s20 }
  0x18   : > { %p4413_p6 = scmp.lt.s32.totalorder %s4404_s25, %s4404_s25 }
  0x19   : > { %p4407_p1 = pnand %p4405_p0, %p4391_p7 }
  0x1a   : > { %p4414_p8 = por %p4413_p6, %p4412_p3 }
  0x1b   : > { %p4408_p4 = pneg %p4407_p1 }
  0x1d   : > { %p4415_p2 = pnand %p4414_p8, %p4408_p4 }
  0x1f   : > { %4418 = shalt.err (!%p4415_p2)
}
  0x20   : > { %s4436_s26 = smov [#allocation4]   ;;  %p6597_p9 = scmp.ne.s32.totalorder %s6595_s17, 0 }
  0x21   : > { %4288 = dma.vmem_to_smem (!%p4484_p5), %s139_s20, 16, %s4436_s26, [#allocation5]  }
  0x22   : > { %159 = sbr.rel (%p6597_p9) target bundleno = 942 (0x3ae), region = 32  ;;  %p6598_p10 = scmp.eq.s32.totalorder (!%p6597_p9), %s4465_s13, 0 }
  0x27   : > { %4424 = dma.done.wait (%p6598_p10), [#allocation3], 48   ;;  %p6599_p11 = pmov %p6598_p10 }
  0x28   : > { %p6600_p7 = pmov %p6598_p10 }
  0x29   : > { %4426 = vsyncadd (%p6599_p11), [#allocation3], 4294967248 }
  0x2a   : > { %4428 = dma.done.wait (%p6600_p7), [#allocation5], 16   ;;  %p6601_p3 = pmov %p6600_p7 }
  0x2c   : > { %4430 = vsyncadd (%p6601_p3), [#allocation5], 4294967280 }
  0x2d   : > { %169 = sfence }
  0x2e   : > { %p188_p2 = scmp.lt.s32.totalorder %s4465_s13, 1  ;;  %s3819_s27 = sld [smem:[#allocation2 + $0x2]]  ;;  %vm639_vm0 = vcmask 130048  }
  0x2f   : > { %s3818_s28 = sld [smem:[#allocation2 + $0x1]]  ;;  %s4437_s8 = smov 126  }
  0x30   : > { %s6603_s13 = smov (!%p188_p2, %s4465_s13), 1  ;;  %s3821_s29 = sld [smem:[#allocation2 + $0x4]] }
  0x31   : > { %s4273_s30 = smul.u32 96, %s6603_s13  ;;  %s3822_s7 = sld [smem:[#allocation2 + $0x5]] }
  0x32   : > { %s4438_s9 = smov 127   ;;  %s3824_s10 = sld [smem:[#allocation2 + $0x7]] }
  0x33   : > { %s4518_s6 = scalar_lea.vmem %s6589_s0, %s4273_s30  ;;  %s3825_s11 = sld [smem:[#allocation2 + $0x8]] }
  0x34   : > { %v221_v0 = vstv %s3819_s27  ;;  %v4521_v1 = vld [vmem:[%s4518_s6] sm:$0xff]  ;;  %v4524_v2 = vld [vmem:[%s4518_s6 + $0x8] sm:$0xff]  ;;  %s3829_s14 = sld [smem:[#allocation2 + $0xa]]  ;;  %v4564_v26 = vld [vmem:[%s4518_s6 + $0x18] sm:$0xff] }
  0x35   : > { %v207_v3 = vstv %s3818_s28  ;;  %v222_v4 = vmul.f32 %v221_v0, %v4521_v1  ;;  %v223_v6 = vmul.f32 %v221_v0, %v4524_v2  ;;  %v4533_v8 = vld [vmem:[%s4518_s6 + $0x9] sm:$0xff]  ;;  %v4536_v10 = vld [vmem:[%s4518_s6 + $0x1] sm:$0xff]  ;;  %s3830_s15 = sld [smem:[#allocation2 + $0xb]]  ;;  %v4578_v34 = vld [vmem:[%s4518_s6 + $0x19] sm:$0xff] }
  0x36   : > { %v208_v5 = vmul.f32 %v207_v3, %v4521_v1  ;;  %v209_v7 = vmul.f32 %v207_v3, %v4524_v2  ;;  %v243_v9 = vstv %s3821_s29  ;;  %v4547_v16 = vld [vmem:[%s4518_s6 + $0xa] sm:$0xff]  ;;  %v4550_v18 = vld [vmem:[%s4518_s6 + $0x2] sm:$0xff]  ;;  %s3834_s16 = sld [smem:[#allocation2 + $0xd]]  ;;  %v4592_v42 = vld [vmem:[%s4518_s6 + $0x1a] sm:$0xff] }
  0x37   : > { %226 = vrot.lane.b32.xlu1 %v222_v4, %s4437_s8  ;;  %v245_v11 = vmul.f32 %v243_v9, %v4533_v8  ;;  %v244_v12 = vmul.f32 %v243_v9, %v4536_v10  ;;  %v257_v13 = vstv %s3822_s7  ;;  %v4561_v24 = vld [vmem:[%s4518_s6 + $0x20] sm:$0xff]  ;;  %s3835_s17 = sld [smem:[#allocation2 + $0xe]]  ;;  %v4603_v48 = vld [vmem:[%s4518_s6 + $0x38] sm:$0xff] }
  0x38   : > { %212 = vrot.lane.b32.xlu0 %v208_v5, %s4438_s9  ;;  %v259_v14 = vmul.f32 %v257_v13, %v4533_v8  ;;  %v258_v15 = vmul.f32 %v257_v13, %v4536_v10  ;;  %v279_v17 = vstv %s3824_s10  ;;  %v4575_v32 = vld [vmem:[%s4518_s6 + $0x21] sm:$0xff]  ;;  %s3839_s18 = sld [smem:[#allocation2 + $0x10]]  ;;  %v4606_v50 = vld [vmem:[%s4518_s6 + $0x30] sm:$0xff] }
  0x39   : > { %v281_v19 = vmul.f32 %v279_v17, %v4547_v16  ;;  %v280_v20 = vmul.f32 %v279_v17, %v4550_v18  ;;  %v293_v21 = vstv %s3825_s11  ;;  %s3840_s19 = sld [smem:[#allocation2 + $0x11]]  ;;  %v4589_v40 = vld [vmem:[%s4518_s6 + $0x22] sm:$0xff]  ;;  %v4617_v56 = vld [vmem:[%s4518_s6 + $0x39] sm:$0xff]  ;;  %v4620_v58 = vld [vmem:[%s4518_s6 + $0x31] sm:$0xff] }
  0x3a   : > { %v295_v22 = vmul.f32 %v293_v21, %v4547_v16  ;;  %v294_v23 = vmul.f32 %v293_v21, %v4550_v18  ;;  %v316_v25 = vstv %s3829_s14  ;;  %s3844_s20 = sld [smem:[#allocation2 + $0x13]]  ;;  %v4631_v0 = vld [vmem:[%s4518_s6 + $0x3a] sm:$0xff]  ;;  %v4634_v4 = vld [vmem:[%s4518_s6 + $0x32] sm:$0xff] }
  0x3b   : > { %228 = vrot.lane.b32.xlu1 %v223_v6, %s4437_s8  ;;  %v318_v27 = vmul.f32 %v4561_v24, %v316_v25  ;;  %v317_v28 = vmul.f32 %v4564_v26, %v316_v25  ;;  %v330_v29 = vstv %s3830_s15  ;;  %s3845_s21 = sld [smem:[#allocation2 + $0x14]]  ;;  %v4662_v25 = vld [vmem:[%s4518_s6 + $0x49] sm:$0xff] }
  0x3c   : > { %214 = vrot.lane.b32.xlu0 %v209_v7, %s4438_s9  ;;  %v332_v30 = vmul.f32 %v4561_v24, %v330_v29  ;;  %v331_v31 = vmul.f32 %v4564_v26, %v330_v29  ;;  %v352_v33 = vstv %s3834_s16  ;;  %s3849_s22 = sld [smem:[#allocation2 + $0x16]] }
  0x3d   : > { %v354_v35 = vmul.f32 %v4575_v32, %v352_v33  ;;  %v353_v36 = vmul.f32 %v4578_v34, %v352_v33  ;;  %v366_v37 = vstv %s3835_s17  ;;  %s3850_s23 = sld [smem:[#allocation2 + $0x17]]  ;;  %v4673_v33 = vld [vmem:[%s4518_s6 + $0x52] sm:$0xff] }
  0x3e   : > { %v368_v38 = vmul.f32 %v4575_v32, %v366_v37  ;;  %v367_v39 = vmul.f32 %v4578_v34, %v366_v37  ;;  %v388_v41 = vstv %s3839_s18  ;;  %s3854_s24 = sld [smem:[#allocation2 + $0x19]] }
  0x3f   : > { %250 = vrot.lane.b32.xlu1 %v245_v11, %s4438_s9  ;;  %v390_v43 = vmul.f32 %v4589_v40, %v388_v41  ;;  %v389_v44 = vmul.f32 %v4592_v42, %v388_v41  ;;  %v402_v45 = vstv %s3840_s19  ;;  %s3855_s25 = sld [smem:[#allocation2 + $0x1a]] }
  0x40   : > { %248 = vrot.lane.b32.xlu0 %v244_v12, %s4438_s9  ;;  %v404_v46 = vmul.f32 %v4589_v40, %v402_v45  ;;  %v403_v47 = vmul.f32 %v4592_v42, %v402_v45  ;;  %v425_v49 = vstv %s3844_s20  ;;  %s3859_s26 = sld [smem:[#allocation2 + $0x1c]]  ;;  %v4645_v12 = vld [vmem:[%s4518_s6 + $0x50] sm:$0xff] }
  0x41   : > { %v427_v51 = vmul.f32 %v4603_v48, %v425_v49  ;;  %v426_v52 = vmul.f32 %v4606_v50, %v425_v49  ;;  %v439_v53 = vstv %s3845_s21  ;;  %s3860_s27 = sld [smem:[#allocation2 + $0x1d]] }
  0x42   : > { %v441_v54 = vmul.f32 %v4603_v48, %v439_v53  ;;  %v440_v55 = vmul.f32 %v4606_v50, %v439_v53  ;;  %v461_v57 = vstv %s3849_s22  ;;  %s3864_s28 = sld [smem:[#allocation2 + $0x1f]] }
  0x43   : > { %264 = vrot.lane.b32.xlu1 %v259_v14, %s4437_s8  ;;  %v463_v59 = vmul.f32 %v4617_v56, %v461_v57  ;;  %v462_v60 = vmul.f32 %v4620_v58, %v461_v57  ;;  %v475_v61 = vstv %s3850_s23  ;;  %v4648_v14 = vld [vmem:[%s4518_s6 + $0x48] sm:$0xff]  ;;  %s3865_s29 = sld [smem:[#allocation2 + $0x20]] }
  0x44   : > { %262 = vrot.lane.b32.xlu0 %v258_v15, %s4437_s8  ;;  %v477_v62 = vmul.f32 %v4617_v56, %v475_v61  ;;  %v476_v63 = vmul.f32 %v4620_v58, %v475_v61  ;;  %v497_v3 = vstv %s3854_s24  ;;  %s3869_s30 = sld [smem:[#allocation2 + $0x22]] }
  0x45   : > { %v499_v5 = vmul.f32 %v4631_v0, %v497_v3  ;;  %v498_v6 = vmul.f32 %v4634_v4, %v497_v3  ;;  %v511_v7 = vstv %s3855_s25  ;;  %s3870_s4 = sld [smem:[#allocation2 + $0x23]] }
  0x46   : > { %v513_v9 = vmul.f32 %v4631_v0, %v511_v7  ;;  %v512_v11 = vmul.f32 %v4634_v4, %v511_v7  ;;  %v534_v13 = vstv %s3859_s26  ;;  %s3872_s5 = sld [smem:[#allocation2 + $0x25]] }
  0x47   : > { %286 = vrot.lane.b32.xlu1 %v281_v19, %s4438_s9  ;;  %v536_v15 = vmul.f32 %v4645_v12, %v534_v13  ;;  %v535_v17 = vmul.f32 %v4648_v14, %v534_v13  ;;  %v548_v19 = vstv %s3860_s27  ;;  %s3873_s7 = sld [smem:[#allocation2 + $0x26]] }
  0x48   : > { %284 = vrot.lane.b32.xlu0 %v280_v20, %s4438_s9  ;;  %v550_v20 = vmul.f32 %v4645_v12, %v548_v19  ;;  %v549_v21 = vmul.f32 %v4648_v14, %v548_v19  ;;  %s3875_s10 = sld [smem:[#allocation2 + $0x28]] }
  0x49   : > { %v584_v29 = vstv %s3865_s29  ;;  %s3876_s11 = sld [smem:[#allocation2 + $0x29]] }
  0x4a   : > { %s3878_s14 = sld [smem:[#allocation2 + $0x2b]] }
  0x4b   : > { %300 = vrot.lane.b32.xlu1 %v295_v22, %s4437_s8  ;;  %v4659_v22 = vld [vmem:[%s4518_s6 + $0x51] sm:$0xff]  ;;  %s198_s15 = sld [smem:[#allocation2]] }
  0x4c   : > { %298 = vrot.lane.b32.xlu0 %v294_v23, %s4437_s8  ;;  %v570_v23 = vstv %s3864_s28  ;;  %s3879_s16 = sld [smem:[#allocation2 + $0x2c]] }
  0x4d   : > { %s3883_s17 = sld [smem:[#allocation2 + $0x2e]] }
  0x4e   : > { %s3820_s18 = sld [smem:[#allocation2 + $0x3]] }
  0x4f   : > { %323 = vrot.lane.b32.xlu1 %v318_v27, %s4438_s9  ;;  %v572_v27 = vmul.f32 %v4659_v22, %v570_v23  ;;  %s3884_s19 = sld [smem:[#allocation2 + $0x2f]] }
  0x50   : > { %321 = vrot.lane.b32.xlu0 %v317_v28, %s4438_s9  ;;  %v571_v28 = vmul.f32 %v4662_v25, %v570_v23  ;;  %s4711_s20 = sld [smem:[#allocation2 + $0x31]] }
  0x51   : > { %s4713_s21 = sld [smem:[#allocation2 + $0x6]] }
  0x52   : > { %v737_v3 = vstv %s3879_s16  ;;  %s4720_s22 = sld [smem:[#allocation2 + $0x32]] }
  0x53   : > { %337 = vrot.lane.b32.xlu1 %v332_v30, %s4437_s8  ;;  %v586_v30 = vmul.f32 %v4659_v22, %v584_v29  ;;  %v738_v7 = vmul.f32 %v737_v3, %v4550_v18  ;;  %s4728_s23 = sld [smem:[#allocation2 + $0x34]] }
  0x54   : > { %335 = vrot.lane.b32.xlu0 %v331_v31, %s4437_s8  ;;  %v585_v31 = vmul.f32 %v4662_v25, %v584_v29  ;;  %s4732_s24 = sld [smem:[#allocation2 + $0x9]] }
  0x55   : > { %v773_v23 = vstv %s3884_s19  ;;  %s4741_s25 = sld [smem:[#allocation2 + $0x35]] }
  0x56   : > { %s4747_s26 = sld [smem:[#allocation2 + $0x37]] }
  0x57   : > { %359 = vrot.lane.b32.xlu1 %v354_v35, %s4438_s9  ;;  %v606_v35 = vstv %s3869_s30  ;;  %s4751_s27 = sld [smem:[#allocation2 + $0xc]] }
  0x58   : > { %357 = vrot.lane.b32.xlu0 %v353_v36, %s4438_s9  ;;  %v4676_v36 = vld [vmem:[%s4518_s6 + $0x4a] sm:$0xff]  ;;  %v608_v37 = vmul.f32 %v4673_v33, %v606_v35  ;;  %s4760_s28 = sld [smem:[#allocation2 + $0x38]] }
  0x59   : > { %s4766_s29 = sld [smem:[#allocation2 + $0x3a]] }
  0x5a   : > { %s4770_s30 = sld [smem:[#allocation2 + $0xf]] }
  0x5b   : > { %373 = vrot.lane.b32.xlu1 %v368_v38, %s4437_s8  ;;  %v607_v38 = vmul.f32 %v4676_v36, %v606_v35  ;;  %s4823_s16 = sld [smem:[#allocation2 + $0x43]] }
  0x5c   : > { %371 = vrot.lane.b32.xlu0 %v367_v39, %s4437_s8  ;;  %v620_v39 = vstv %s3870_s4  ;;  %s4779_s4 = sld [smem:[#allocation2 + $0x3b]] }
  0x5d   : > { %v622_v41 = vmul.f32 %v4673_v33, %v620_v39  ;;  %s4842_s19 = sld [smem:[#allocation2 + $0x46]] }
  0x5f   : > { %395 = vrot.lane.b32.xlu1 %v390_v43, %s4438_s9  ;;  %v621_v43 = vmul.f32 %v4676_v36, %v620_v39 }
  0x60   : > { %393 = vrot.lane.b32.xlu0 %v389_v44, %s4438_s9  ;;  %v651_v44 = vstv %s3872_s5  ;;  %s4785_s5 = sld [smem:[#allocation2 + $0x3d]] }
  0x61   : > { %v653_v45 = vmul.f32 %v651_v44, %v4524_v2 }
  0x63   : > { %409 = vrot.lane.b32.xlu1 %v404_v46, %s4437_s8  ;;  %v652_v46 = vmul.f32 %v651_v44, %v4521_v1 }
  0x64   : > { %407 = vrot.lane.b32.xlu0 %v403_v47, %s4437_s8  ;;  %v665_v47 = vstv %s3873_s7  ;;  %s4789_s7 = sld [smem:[#allocation2 + $0x12]] }
  0x65   : > { %v667_v49 = vmul.f32 %v665_v47, %v4524_v2 }
  0x67   : > { %432 = vrot.lane.b32.xlu1 %v427_v51, %s4438_s9  ;;  %v666_v51 = vmul.f32 %v665_v47, %v4521_v1 }
  0x68   : > { %430 = vrot.lane.b32.xlu0 %v426_v52, %s4438_s9  ;;  %v687_v52 = vstv %s3875_s10  ;;  %s4798_s10 = sld [smem:[#allocation2 + $0x3e]] }
  0x69   : > { %v689_v53 = vmul.f32 %v687_v52, %v4533_v8 }
  0x6b   : > { %446 = vrot.lane.b32.xlu1 %v441_v54, %s4437_s8  ;;  %v688_v54 = vmul.f32 %v687_v52, %v4536_v10 }
  0x6c   : > { %444 = vrot.lane.b32.xlu0 %v440_v55, %s4437_s8  ;;  %v701_v55 = vstv %s3876_s11  ;;  %s4804_s11 = sld [smem:[#allocation2 + $0x40]] }
  0x6d   : > { %v703_v57 = vmul.f32 %v701_v55, %v4533_v8 }
  0x6f   : > { %468 = vrot.lane.b32.xlu1 %v463_v59, %s4438_s9  ;;  %v702_v59 = vmul.f32 %v701_v55, %v4536_v10 }
  0x70   : > { %466 = vrot.lane.b32.xlu0 %v462_v60, %s4438_s9  ;;  %v723_v60 = vstv %s3878_s14  ;;  %s4808_s14 = sld [smem:[#allocation2 + $0x15]] }
  0x71   : > { %v725_v61 = vmul.f32 %v723_v60, %v4547_v16 }
  0x73   : > { %482 = vrot.lane.b32.xlu1 %v477_v62, %s4437_s8  ;;  %v724_v62 = vmul.f32 %v723_v60, %v4550_v18 }
  0x74   : > { %480 = vrot.lane.b32.xlu0 %v476_v63, %s4437_s8  ;;  %v201_v63 = vstv %s198_s15  ;;  %s4817_s15 = sld [smem:[#allocation2 + $0x41]] }
  0x77   : > { %504 = vrot.lane.b32.xlu1 %v499_v5, %s4438_s9  ;;  %v202_v5 = vmul.f32 %v201_v63, %v4521_v1 }
  0x78   : > { %502 = vrot.lane.b32.xlu0 %v498_v6, %s4438_s9  ;;  %v739_v6 = vmul.f32 %v737_v3, %v4547_v16 }
  0x7b   : > { %518 = vrot.lane.b32.xlu1 %v513_v9, %s4437_s8  ;;  %v759_v9 = vstv %s3883_s17  ;;  %s4827_s17 = sld [smem:[#allocation2 + $0x18]] }
  0x7c   : > { %516 = vrot.lane.b32.xlu0 %v512_v11, %s4437_s8  ;;  %v761_v19 = vmul.f32 %v4561_v24, %v759_v9 }
  0x7f   : > { %541 = vrot.lane.b32.xlu1 %v536_v15, %s4438_s9 }
  0x80   : > { %539 = vrot.lane.b32.xlu0 %v535_v17, %s4438_s9  ;;  %v203_v17 = vmul.f32 %v201_v63, %v4524_v2 }
  0x83   : > { %555 = vrot.lane.b32.xlu1 %v550_v20, %s4437_s8  ;;  %v760_v20 = vmul.f32 %v4564_v26, %v759_v9 }
  0x84   : > { %553 = vrot.lane.b32.xlu0 %v549_v21, %s4437_s8  ;;  %v237_v21 = vstv %s3820_s18  ;;  %s4836_s18 = sld [smem:[#allocation2 + $0x44]] }
  0x85   : > { %v238_v35 = vmul.f32 %v237_v21, %v4536_v10 }
  0x87   : > { %577 = vrot.lane.b32.xlu1 %v572_v27, %s4438_s9 }
  0x88   : > { %575 = vrot.lane.b32.xlu0 %v571_v28, %s4438_s9 }
  0x8b   : > { %591 = vrot.lane.b32.xlu1 %v586_v30, %s4437_s8 }
  0x8c   : > { %589 = vrot.lane.b32.xlu0 %v585_v31, %s4437_s8  ;;  %v239_v31 = vmul.f32 %v237_v21, %v4533_v8  ;;  %v845_v21 = vstv %s4741_s25  ;;  %s4880_s25 = sld [smem:[#allocation2 + $0x4c]] }
  0x8f   : > { %613 = vrot.lane.b32.xlu1 %v608_v37, %s4438_s9  ;;  %v775_v37 = vmul.f32 %v4561_v24, %v773_v23 }
  0x90   : > { %611 = vrot.lane.b32.xlu0 %v607_v38, %s4438_s9  ;;  %v774_v38 = vmul.f32 %v4564_v26, %v773_v23 }
  0x93   : > { %627 = vrot.lane.b32.xlu1 %v622_v41, %s4437_s8  ;;  %v795_v41 = vstv %s4711_s20  ;;  %s4846_s20 = sld [smem:[#allocation2 + $0x1b]] }
  0x94   : > { %625 = vrot.lane.b32.xlu0 %v621_v43, %s4437_s8  ;;  %v273_v43 = vstv %s4713_s21  ;;  %s4855_s21 = sld [smem:[#allocation2 + $0x47]] }
  0x95   : > { %v275_v52 = vmul.f32 %v273_v43, %v4547_v16  ;;  %v274_v55 = vmul.f32 %v273_v43, %v4550_v18 }
  0x97   : > { %658 = vrot.lane.b32.xlu1 %v653_v45, %s4438_s9 }
  0x98   : > { %656 = vrot.lane.b32.xlu0 %v652_v46, %s4438_s9 }
  0x9b   : > { %672 = vrot.lane.b32.xlu1 %v667_v49, %s4437_s8  ;;  %v797_v49 = vmul.f32 %v4575_v32, %v795_v41 }
  0x9c   : > { %670 = vrot.lane.b32.xlu0 %v666_v51, %s4437_s8  ;;  %v796_v51 = vmul.f32 %v4578_v34, %v795_v41 }
  0x9f   : > { %694 = vrot.lane.b32.xlu1 %v689_v53, %s4438_s9 }
  0xa0   : > { %692 = vrot.lane.b32.xlu0 %v688_v54, %s4438_s9 }
  0xa3   : > { %708 = vrot.lane.b32.xlu1 %v703_v57, %s4437_s8  ;;  %v809_v57 = vstv %s4720_s22  ;;  %s4861_s22 = sld [smem:[#allocation2 + $0x49]] }
  0xa4   : > { %706 = vrot.lane.b32.xlu0 %v702_v59, %s4437_s8  ;;  %v811_v63 = vmul.f32 %v4575_v32, %v809_v57  ;;  %v810_v16 = vmul.f32 %v4578_v34, %v809_v57 }
  0xa7   : > { %730 = vrot.lane.b32.xlu1 %v725_v61, %s4438_s9 }
  0xa8   : > { %728 = vrot.lane.b32.xlu0 %v724_v62, %s4438_s9 }
  0xa9   : > { %v227_v11 = vpop.permute.xlu1 %226 }
  0xaa   : > { %v213_v13 = vpop.permute.xlu0 %212 }
  0xab   : > { %v218_v15 = vadd.f32 %v213_v13, %v202_v5  ;;  %744 = vrot.lane.b32.xlu1 %v739_v6, %s4437_s8  ;;  %v831_v5 = vstv %s4728_s23  ;;  %v310_v6 = vstv %s4732_s24  ;;  %s4865_s23 = sld [smem:[#allocation2 + $0x1e]] }
  0xac   : > { %742 = vrot.lane.b32.xlu0 %v738_v7, %s4437_s8  ;;  %v832_v13 = vmul.f32 %v4592_v42, %v831_v5  ;;  %s4874_s24 = sld [smem:[#allocation2 + $0x4a]] }
  0xad   : > { %v229_v27 = vpop.permute.xlu1 %228  ;;  %v232_v29 = vadd.f32 %v227_v11, %v218_v15  ;;  %v833_v11 = vmul.f32 %v4589_v40, %v831_v5  ;;  %v312_v15 = vmul.f32 %v4561_v24, %v310_v6  ;;  %v846_v24 = vmul.f32 %v4592_v42, %v845_v21 }
  0xae   : > { %v215_v28 = vpop.permute.xlu0 %214 }
  0xaf   : > { %v219_v30 = vadd.f32 %v215_v28, %v203_v17  ;;  %766 = vrot.lane.b32.xlu1 %v761_v19, %s4438_s9  ;;  %v240_v47 = vadd.f32 %v238_v35, %v232_v29  ;;  %v867_v35 = vstv %s4747_s26  ;;  %s4884_s26 = sld [smem:[#allocation2 + $0x21]] }
  0xb0   : > { %764 = vrot.lane.b32.xlu0 %v760_v20, %s4438_s9  ;;  %v311_v20 = vmul.f32 %v4564_v26, %v310_v6  ;;  %v869_v41 = vmul.f32 %v4603_v48, %v867_v35  ;;  %v868_v43 = vmul.f32 %v4606_v50, %v867_v35  ;;  %v953_v35 = vstv %s4798_s10  ;;  %s4937_s10 = sld [smem:[#allocation2 + $0x53]] }
  0xb1   : > { %v233_v39 = vadd.f32 %v229_v27, %v219_v30  ;;  %v251_v44 = vpop.permute.xlu1 %250  ;;  %v847_v30 = vmul.f32 %v4589_v40, %v845_v21  ;;  %v419_v21 = vstv %s4789_s7  ;;  %s4929_s7 = sld [smem:[#allocation2 + $0x27]] }
  0xb2   : > { %v249_v45 = vpop.permute.xlu0 %248 }
  0xb3   : > { %v241_v46 = vadd.f32 %v239_v31, %v233_v39  ;;  %780 = vrot.lane.b32.xlu1 %v775_v37, %s4437_s8  ;;  %v254_v54 = vadd.f32 %v249_v45, %v240_v47  ;;  %v346_v37 = vstv %s4751_s27  ;;  %s4893_s27 = sld [smem:[#allocation2 + $0x4d]] }
  0xb4   : > { %778 = vrot.lane.b32.xlu0 %v774_v38, %s4437_s8  ;;  %v347_v47 = vmul.f32 %v4578_v34, %v346_v37 }
  0xb5   : > { %v255_v53 = vadd.f32 %v251_v44, %v241_v46  ;;  %v265_v59 = vpop.permute.xlu1 %264  ;;  %v348_v44 = vmul.f32 %v4575_v32, %v346_v37 }
  0xb6   : > { %v263_v60 = vpop.permute.xlu0 %262 }
  0xb7   : > { %v269_v61 = vadd.f32 %v265_v59, %v255_v53  ;;  %v268_v62 = vadd.f32 %v263_v60, %v254_v54  ;;  %802 = vrot.lane.b32.xlu1 %v797_v49, %s4438_s9  ;;  %v881_v49 = vstv %s4760_s28  ;;  %v903_v59 = vstv %s4766_s29  ;;  %s4901_s28 = sld [smem:[#allocation2 + $0x4f]] }
  0xb8   : > { %800 = vrot.lane.b32.xlu0 %v796_v51, %s4438_s9  ;;  %v882_v32 = vmul.f32 %v4606_v50, %v881_v49  ;;  %v382_v60 = vstv %s4770_s30  ;;  %s4908_s29 = sld [smem:[#allocation2 + $0x24]] }
  0xb9   : > { %v277_v3 = vadd.f32 %v275_v52, %v269_v61  ;;  %v276_v18 = vadd.f32 %v274_v55, %v268_v62  ;;  %v287_v7 = vpop.permute.xlu1 %286  ;;  %v883_v55 = vmul.f32 %v4603_v48, %v881_v49  ;;  %v383_v6 = vmul.f32 %v4592_v42, %v382_v60  ;;  %s4912_s30 = sld [smem:[#allocation2 + $0x50]] }
  0xba   : > { %v285_v9 = vpop.permute.xlu0 %284 }
  0xbb   : > { %816 = vrot.lane.b32.xlu1 %v811_v63, %s4437_s8  ;;  %v291_v17 = vadd.f32 %v287_v7, %v277_v3  ;;  %v290_v19 = vadd.f32 %v285_v9, %v276_v18  ;;  %v905_v63 = vmul.f32 %v4617_v56, %v903_v59  ;;  %v384_v3 = vmul.f32 %v4589_v40, %v382_v60 }
  0xbc   : > { %814 = vrot.lane.b32.xlu0 %v810_v16, %s4437_s8  ;;  %v904_v16 = vmul.f32 %v4620_v58, %v903_v59  ;;  %v917_v7 = vstv %s4779_s4  ;;  %s4914_s4 = sld [smem:[#allocation4]] }
  0xbd   : > { %v301_v23 = vpop.permute.xlu1 %300  ;;  %v918_v40 = vmul.f32 %v4620_v58, %v917_v7 }
  0xbe   : > { %v299_v27 = vpop.permute.xlu0 %298  ;;  %v305_v28 = vadd.f32 %v301_v23, %v291_v17  ;;  %v919_v17 = vmul.f32 %v4617_v56, %v917_v7 }
  0xbf   : > { %v304_v29 = vadd.f32 %v299_v27, %v290_v19  ;;  %838 = vrot.lane.b32.xlu1 %v833_v11, %s4438_s9 }
  0xc0   : > { %836 = vrot.lane.b32.xlu0 %v832_v13, %s4438_s9  ;;  %v314_v31 = vadd.f32 %v312_v15, %v305_v28 }
  0xc1   : > { %v313_v26 = vadd.f32 %v311_v20, %v304_v29  ;;  %v324_v38 = vpop.permute.xlu1 %323  ;;  %v939_v20 = vstv %s4785_s5  ;;  %s4920_s5 = sld [smem:[#allocation2 + $0x52]] }
  0xc2   : > { %v322_v39 = vpop.permute.xlu0 %321  ;;  %v328_v45 = vadd.f32 %v324_v38, %v314_v31  ;;  %v941_v28 = vmul.f32 %v4631_v0, %v939_v20  ;;  %v940_v29 = vmul.f32 %v4634_v4, %v939_v20 }
  0xc3   : > { %852 = vrot.lane.b32.xlu1 %v847_v30, %s4437_s8  ;;  %v327_v46 = vadd.f32 %v322_v39, %v313_v26  ;;  %v421_v30 = vmul.f32 %v4603_v48, %v419_v21  ;;  %v420_v26 = vmul.f32 %v4606_v50, %v419_v21  ;;  %v954_v48 = vmul.f32 %v4634_v4, %v953_v35 }
  0xc4   : > { %850 = vrot.lane.b32.xlu0 %v846_v24, %s4437_s8 }
  0xc5   : > { %v338_v51 = vpop.permute.xlu1 %337 }
  0xc6   : > { %v336_v52 = vpop.permute.xlu0 %335  ;;  %v342_v53 = vadd.f32 %v338_v51, %v328_v45  ;;  %v975_v45 = vstv %s4804_s11  ;;  %s4272_s11 = sshll.u32 %s6603_s13, 7  ;;  %s4953_s13 = sld [smem:[#allocation2 + $0x55]] }
  0xc7   : > { %v341_v54 = vadd.f32 %v336_v52, %v327_v46  ;;  %874 = vrot.lane.b32.xlu1 %v869_v41, %s4438_s9  ;;  %v455_v46 = vstv %s4808_s14  ;;  %v977_v51 = vmul.f32 %v4645_v12, %v975_v45  ;;  %v976_v52 = vmul.f32 %v4648_v14, %v975_v45  ;;  %s4963_s14 = sld [smem:[#allocation2 + $0x2a]] }
  0xc8   : > { %872 = vrot.lane.b32.xlu0 %v868_v43, %s4438_s9  ;;  %v350_v57 = vadd.f32 %v348_v44, %v342_v53  ;;  %v955_v43 = vmul.f32 %v4631_v0, %v953_v35  ;;  %v457_v53 = vmul.f32 %v4617_v56, %v455_v46 }
  0xc9   : > { %v349_v34 = vadd.f32 %v347_v47, %v341_v54  ;;  %v360_v61 = vpop.permute.xlu1 %359 }
  0xca   : > { %v358_v62 = vpop.permute.xlu0 %357  ;;  %v364_v18 = vadd.f32 %v360_v61, %v350_v57  ;;  %v989_v57 = vstv %s4817_s15  ;;  %s5153_s15 = sld [smem:[#allocation2 + $0x3f]] }
  0xcb   : > { %888 = vrot.lane.b32.xlu1 %v883_v55, %s4437_s8  ;;  %v363_v5 = vadd.f32 %v358_v62, %v349_v34  ;;  %v991_v62 = vmul.f32 %v4645_v12, %v989_v57  ;;  %v990_v56 = vmul.f32 %v4648_v14, %v989_v57 }
  0xcc   : > { %886 = vrot.lane.b32.xlu0 %v882_v32, %s4437_s8  ;;  %v456_v32 = vmul.f32 %v4620_v58, %v455_v46  ;;  %v1092_v46 = vstv %s4861_s22  ;;  %s5018_s22 = sld [smem:[#allocation2 + $0x5b]] }
  0xcd   : > { %v374_v9 = vpop.permute.xlu1 %373 }
  0xce   : > { %v372_v11 = vpop.permute.xlu0 %371  ;;  %v378_v13 = vadd.f32 %v374_v9, %v364_v18 }
  0xcf   : > { %v377_v15 = vadd.f32 %v372_v11, %v363_v5  ;;  %910 = vrot.lane.b32.xlu1 %v905_v63, %s4438_s9 }
  0xd0   : > { %908 = vrot.lane.b32.xlu0 %v904_v16, %s4438_s9  ;;  %v386_v19 = vadd.f32 %v384_v3, %v378_v13  ;;  %v1011_v16 = vstv %s4823_s16  ;;  %v491_v3 = vstv %s4827_s17  ;;  %s4968_s17 = scalar_lea.vmem %s6592_s3, %s4272_s11  ;;  %s5128_s11 = sld [smem:[#allocation2 + $0x3c]] }
  0xd1   : > { %v385_v42 = vadd.f32 %v383_v6, %v377_v15  ;;  %v396_v23 = vpop.permute.xlu1 %395  ;;  %v1013_v6 = vmul.f32 %v4659_v22, %v1011_v16  ;;  %v1012_v7 = vmul.f32 %v4662_v25, %v1011_v16  ;;  %v493_v9 = vmul.f32 %v4631_v0, %v491_v3  ;;  %s5162_s16 = sld [smem:[#allocation2 + $0x6b]] }
  0xd2   : > { %v394_v27 = vpop.permute.xlu0 %393  ;;  %v400_v24 = vadd.f32 %v396_v23, %v386_v19  ;;  %v492_v15 = vmul.f32 %v4634_v4, %v491_v3  ;;  %v1128_v16 = vstv %s4880_s25  ;;  %s5043_s25 = sld [smem:[#allocation2 + $0x5e]] }
  0xd3   : > { %924 = vrot.lane.b32.xlu1 %v919_v17, %s4437_s8  ;;  %v399_v31 = vadd.f32 %v394_v27, %v385_v42  ;;  %v1025_v17 = vstv %s4836_s18  ;;  %v1047_v27 = vstv %s4842_s19  ;;  %s4987_s18 = sld [smem:[#allocation2 + $0x56]] }
  0xd4   : > { %922 = vrot.lane.b32.xlu0 %v918_v40, %s4437_s8  ;;  %v1027_v21 = vmul.f32 %v4659_v22, %v1025_v17  ;;  %v1026_v0 = vmul.f32 %v4662_v25, %v1025_v17  ;;  %s4993_s19 = sld [smem:[#allocation2 + $0x58]] }
  0xd5   : > { %v410_v37 = vpop.permute.xlu1 %409 }
  0xd6   : > { %v408_v38 = vpop.permute.xlu0 %407  ;;  %v414_v39 = vadd.f32 %v410_v37, %v400_v24  ;;  %v1049_v24 = vmul.f32 %v4673_v33, %v1047_v27 }
  0xd7   : > { %v413_v41 = vadd.f32 %v408_v38, %v399_v31  ;;  %946 = vrot.lane.b32.xlu1 %v941_v28, %s4438_s9  ;;  %v528_v28 = vstv %s4846_s20  ;;  %v1048_v31 = vmul.f32 %v4676_v36, %v1047_v27  ;;  %v645_v27 = vstv %s4908_s29  ;;  %s5003_s20 = sld [smem:[#allocation2 + $0x2d]] }
  0xd8   : > { %944 = vrot.lane.b32.xlu0 %v940_v29, %s4438_s9  ;;  %v423_v44 = vadd.f32 %v421_v30, %v414_v39  ;;  %v529_v38 = vmul.f32 %v4648_v14, %v528_v28  ;;  %v1061_v39 = vstv %s4855_s21  ;;  %s5012_s21 = sld [smem:[#allocation2 + $0x59]] }
  0xd9   : > { %v422_v50 = vadd.f32 %v420_v26, %v413_v41  ;;  %v433_v47 = vpop.permute.xlu1 %432  ;;  %v530_v26 = vmul.f32 %v4645_v12, %v528_v28  ;;  %v1062_v12 = vmul.f32 %v4676_v36, %v1061_v39  ;;  %s5078_s29 = sld [smem:[#allocation2 + $0x36]] }
  0xda   : > { %v431_v49 = vpop.permute.xlu0 %430  ;;  %v437_v54 = vadd.f32 %v433_v47, %v423_v44  ;;  %v564_v47 = vstv %s4865_s23  ;;  %s5028_s23 = sld [smem:[#allocation2 + $0x30]] }
  0xdb   : > { %960 = vrot.lane.b32.xlu1 %v955_v43, %s4437_s8  ;;  %v436_v55 = vadd.f32 %v431_v49, %v422_v50  ;;  %v1063_v50 = vmul.f32 %v4673_v33, %v1061_v39  ;;  %v565_v57 = vmul.f32 %v4662_v25, %v564_v47  ;;  %v600_v25 = vstv %s4884_s26  ;;  %s5053_s26 = sld [smem:[#allocation2 + $0x33]] }
  0xdc   : > { %958 = vrot.lane.b32.xlu0 %v954_v48, %s4437_s8 }
  0xdd   : > { %v447_v34 = vpop.permute.xlu1 %446 }
  0xde   : > { %v445_v59 = vpop.permute.xlu0 %444  ;;  %v451_v60 = vadd.f32 %v447_v34, %v437_v54  ;;  %v566_v54 = vmul.f32 %v4659_v22, %v564_v47  ;;  %v1106_v34 = vstv %s4874_s24  ;;  %v681_v47 = vstv %s4929_s7  ;;  %s5037_s24 = sld [smem:[#allocation2 + $0x5c]] }
  0xdf   : > { %v450_v61 = vadd.f32 %v445_v59, %v436_v55  ;;  %982 = vrot.lane.b32.xlu1 %v977_v51, %s4438_s9  ;;  %v1107_v22 = vmul.f32 %v1106_v34, %v4521_v1  ;;  %s5112_s7 = sld [smem:[#allocation2 + $0x65]] }
  0xe0   : > { %980 = vrot.lane.b32.xlu0 %v976_v52, %s4438_s9  ;;  %v459_v63 = vadd.f32 %v457_v53, %v451_v60  ;;  %v1094_v52 = vmul.f32 %v1092_v46, %v4524_v2  ;;  %v1093_v53 = vmul.f32 %v1092_v46, %v4521_v1  ;;  %v4960_v46 = vld [vmem:[%s4518_s6 + $0x18] sm:$0xff] }
  0xe1   : > { %v458_v58 = vadd.f32 %v456_v32, %v450_v61  ;;  %v469_v18 = vpop.permute.xlu1 %468 }
  0xe2   : > { %v467_v5 = vpop.permute.xlu0 %466  ;;  %v473_v11 = vadd.f32 %v469_v18, %v459_v63 }
  0xe3   : > { %996 = vrot.lane.b32.xlu1 %v991_v62, %s4437_s8  ;;  %v472_v13 = vadd.f32 %v467_v5, %v458_v58  ;;  %v1130_v5 = vmul.f32 %v1128_v16, %v4533_v8 }
  0xe4   : > { %994 = vrot.lane.b32.xlu0 %v990_v56, %s4437_s8  ;;  %v1108_v56 = vmul.f32 %v1106_v34, %v4524_v2  ;;  %v602_v2 = vmul.f32 %v4673_v33, %v600_v25 }
  0xe5   : > { %v483_v40 = vpop.permute.xlu1 %482 }
  0xe6   : > { %v481_v19 = vpop.permute.xlu0 %480  ;;  %v487_v42 = vadd.f32 %v483_v40, %v473_v11  ;;  %v1142_v11 = vstv %s4893_s27  ;;  %s5062_s27 = sld [smem:[#allocation2 + $0x5f]] }
  0xe7   : > { %v486_v20 = vadd.f32 %v481_v19, %v472_v13  ;;  %1018 = vrot.lane.b32.xlu1 %v1013_v6, %s4438_s9  ;;  %v1129_v6 = vmul.f32 %v1128_v16, %v4536_v10  ;;  %v1144_v33 = vmul.f32 %v1142_v11, %v4533_v8 }
  0xe8   : > { %1016 = vrot.lane.b32.xlu0 %v1012_v7, %s4438_s9  ;;  %v495_v23 = vadd.f32 %v493_v9, %v487_v42  ;;  %v601_v9 = vmul.f32 %v4676_v36, %v600_v25  ;;  %v1143_v36 = vmul.f32 %v1142_v11, %v4536_v10 }
  0xe9   : > { %v494_v4 = vadd.f32 %v492_v15, %v486_v20  ;;  %v505_v29 = vpop.permute.xlu1 %504  ;;  %v4923_v20 = vld [vmem:[%s4518_s6 + $0xa] sm:$0xff] }
  0xea   : > { %v503_v30 = vpop.permute.xlu0 %502  ;;  %v509_v35 = vadd.f32 %v505_v29, %v495_v23 }
  0xeb   : > { %1032 = vrot.lane.b32.xlu1 %v1027_v21, %s4437_s8  ;;  %v508_v37 = vadd.f32 %v503_v30, %v494_v4  ;;  %v1164_v21 = vstv %s4901_s28  ;;  %v1178_v30 = vstv %s4912_s30  ;;  %s5068_s28 = sld [smem:[#allocation2 + $0x61]] }
  0xec   : > { %1030 = vrot.lane.b32.xlu0 %v1026_v0, %s4437_s8  ;;  %v4927_v0 = vld [vmem:[%s4518_s6 + $0x2] sm:$0xff]  ;;  %v1166_v8 = vmul.f32 %v1164_v21, %v4923_v20  ;;  %s5087_s30 = sld [smem:[#allocation2 + $0x62]] }
  0xed   : > { %v519_v41 = vpop.permute.xlu1 %518  ;;  %v1165_v10 = vmul.f32 %v1164_v21, %v4927_v0 }
  0xee   : > { %v517_v43 = vpop.permute.xlu0 %516  ;;  %v523_v48 = vadd.f32 %v519_v41, %v509_v35  ;;  %v4948_v41 = vld [vmem:[%s4518_s6] sm:$0xff] }
  0xef   : > { %v522_v44 = vadd.f32 %v517_v43, %v508_v37  ;;  %1054 = vrot.lane.b32.xlu1 %v1049_v24, %s4438_s9  ;;  %v634_v24 = vstv %s4914_s4  ;;  %v646_v43 = vmul.f32 %v4948_v41, %v645_v27  ;;  %s5093_s4 = sld [smem:[#allocation2 + $0x64]] }
  0xf0   : > { %1052 = vrot.lane.b32.xlu0 %v1048_v31, %s4438_s9  ;;  %v532_v45 = vadd.f32 %v530_v26, %v523_v48  ;;  %v1180_v48 = vmul.f32 %v1178_v30, %v4923_v20 }
  0xf1   : > { %v531_v14 = vadd.f32 %v529_v38, %v522_v44  ;;  %v542_v49 = vpop.permute.xlu1 %541  ;;  %v4942_v38 = vld [vmem:[%s4518_s6 + $0x8] sm:$0xff]  ;;  %v1179_v44 = vmul.f32 %v1178_v30, %v4927_v0 }
  0xf2   : > { %v540_v51 = vpop.permute.xlu0 %539  ;;  %v546_v55 = vadd.f32 %v542_v49, %v532_v45  ;;  %v647_v39 = vmul.f32 %v4942_v38, %v645_v27  ;;  %v4956_v45 = vld [vmem:[%s4518_s6 + $0x20] sm:$0xff] }
  0xf3   : > { %1068 = vrot.lane.b32.xlu1 %v1063_v50, %s4437_s8  ;;  %v545_v32 = vadd.f32 %v540_v51, %v531_v14  ;;  %v1200_v14 = vstv %s4920_s5  ;;  %v5021_v30 = vld [vmem:[%s4518_s6 + $0x22] sm:$0xff]  ;;  %s5103_s5 = sld [smem:[#allocation2 + $0x39]] }
  0xf4   : > { %1066 = vrot.lane.b32.xlu0 %v1062_v12, %s4437_s8 }
  0xf5   : > { %v556_v59 = vpop.permute.xlu1 %555 }
  0xf6   : > { %v554_v60 = vpop.permute.xlu0 %553  ;;  %v560_v61 = vadd.f32 %v556_v59, %v546_v55  ;;  %v1201_v55 = vmul.f32 %v4960_v46, %v1200_v14 }
  0xf7   : > { %v559_v62 = vadd.f32 %v554_v60, %v545_v32  ;;  %1099 = vrot.lane.b32.xlu1 %v1094_v52, %s4438_s9  ;;  %v4975_v32 = vld [vmem:[%s4518_s6 + $0x9] sm:$0xff]  ;;  %v4983_v60 = vld [vmem:[%s4518_s6 + $0x1] sm:$0xff] }
  0xf8   : > { %1097 = vrot.lane.b32.xlu0 %v1093_v53, %s4438_s9  ;;  %v568_v63 = vadd.f32 %v566_v54, %v560_v61  ;;  %v1202_v54 = vmul.f32 %v4956_v45, %v1200_v14  ;;  %v682_v61 = vmul.f32 %v4983_v60, %v681_v47  ;;  %v4312_v14 = vld [vmem:[%s4518_s6 + $0x18] sm:$0xff] }
  0xf9   : > { %v567_v58 = vadd.f32 %v565_v57, %v559_v62  ;;  %v578_v3 = vpop.permute.xlu1 %577  ;;  %v683_v57 = vmul.f32 %v4975_v32, %v681_v47  ;;  %v1214_v62 = vstv %s4937_s10  ;;  %s5118_s10 = sld [smem:[#allocation2 + $0x67]] }
  0xfa   : > { %v576_v18 = vpop.permute.xlu0 %575  ;;  %v582_v1 = vadd.f32 %v578_v3, %v568_v63  ;;  %v1216_v16 = vmul.f32 %v4956_v45, %v1214_v62  ;;  %v1215_v25 = vmul.f32 %v4960_v46, %v1214_v62  ;;  %v1308_v62 = vstv %s5018_s22  ;;  %s5203_s22 = sld [smem:[#allocation2 + $0x45]] }
  0xfb   : > { %1113 = vrot.lane.b32.xlu1 %v1108_v56, %s4437_s8  ;;  %v581_v7 = vadd.f32 %v576_v18, %v567_v58 }
  0xfc   : > { %1111 = vrot.lane.b32.xlu0 %v1107_v22, %s4437_s8 }
  0xfd   : > { %v592_v13 = vpop.permute.xlu1 %591 }
  0xfe   : > { %v590_v15 = vpop.permute.xlu0 %589  ;;  %v596_v17 = vadd.f32 %v592_v13, %v582_v1  ;;  %v717_v1 = vstv %s4963_s14  ;;  %s5143_s14 = sld [smem:[#allocation2 + $0x6a]] }
  0xff   : > { %v595_v40 = vadd.f32 %v590_v15, %v581_v7  ;;  %1135 = vrot.lane.b32.xlu1 %v1130_v5, %s4438_s9  ;;  %v4996_v5 = vld [vmem:[%s4518_s6 + $0x21] sm:$0xff]  ;;  %v4309_v15 = vld [vmem:[%s4518_s6 + $0xa] sm:$0xff] }
 0x100   : > { %1133 = vrot.lane.b32.xlu0 %v1129_v6, %s4438_s9  ;;  %v604_v19 = vadd.f32 %v602_v2, %v596_v17  ;;  %v1236_v6 = vstv %s4953_s13  ;;  %v5000_v2 = vld [vmem:[%s4518_s6 + $0x19] sm:$0xff]  ;;  %v719_v17 = vmul.f32 %v4309_v15, %v717_v1  ;;  %s5137_s13 = sld [smem:[#allocation2 + $0x68]] }
 0x101   : > { %v603_v42 = vadd.f32 %v601_v9, %v595_v40  ;;  %v614_v23 = vpop.permute.xlu1 %613  ;;  %v1238_v11 = vmul.f32 %v4996_v5, %v1236_v6  ;;  %v1237_v13 = vmul.f32 %v5000_v2, %v1236_v6 }
 0x102   : > { %v612_v4 = vpop.permute.xlu0 %611  ;;  %v618_v28 = vadd.f32 %v614_v23, %v604_v19 }
 0x103   : > { %1149 = vrot.lane.b32.xlu1 %v1144_v33, %s4437_s8  ;;  %v617_v29 = vadd.f32 %v612_v4, %v603_v42  ;;  %v1250_v42 = vstv %s4987_s18  ;;  %s5168_s18 = sld [smem:[#allocation2 + $0x6d]] }
 0x104   : > { %1147 = vrot.lane.b32.xlu0 %v1143_v36, %s4437_s8  ;;  %v4310_v36 = vld [vmem:[%s4518_s6 + $0x2] sm:$0xff]  ;;  %v1251_v27 = vmul.f32 %v5000_v2, %v1250_v42 }
 0x105   : > { %v628_v31 = vpop.permute.xlu1 %627  ;;  %v718_v19 = vmul.f32 %v4310_v36, %v717_v1 }
 0x106   : > { %v626_v26 = vpop.permute.xlu0 %625  ;;  %v632_v35 = vadd.f32 %v628_v31, %v618_v28  ;;  %v5025_v31 = vld [vmem:[%s4518_s6 + $0x1a] sm:$0xff] }
 0x107   : > { %v631_v37 = vadd.f32 %v626_v26, %v617_v29  ;;  %1171 = vrot.lane.b32.xlu1 %v1166_v8, %s4438_s9  ;;  %v753_v26 = vstv %s5003_s20  ;;  %s5187_s20 = sld [smem:[#allocation2 + $0x6e]] }
 0x108   : > { %1169 = vrot.lane.b32.xlu0 %v1165_v10, %s4438_s9  ;;  %v636_v50 = vadd.f32 %v634_v24, %v632_v35  ;;  %v1252_v10 = vmul.f32 %v4996_v5, %v1250_v42  ;;  %v754_v47 = vmul.f32 %v4312_v14, %v753_v26 }
 0x109   : > { %v635_v12 = vadd.f32 %v634_v24, %v631_v37  ;;  %v659_v49 = vpop.permute.xlu1 %658  ;;  %v1272_v24 = vstv %s4993_s19  ;;  %s5178_s19 = sld [smem:[#allocation2 + $0x42]] }
 0x10a   : > { %v657_v51 = vpop.permute.xlu0 %656  ;;  %v638_v52 = vmax.f32 %v636_v50, 0.0  ;;  %v663_v34 = vadd.f32 %v659_v49, %v647_v39  ;;  %v1274_v39 = vmul.f32 %v5021_v30, %v1272_v24  ;;  %v1286_v49 = vstv %s5012_s21  ;;  %s5193_s21 = sld [smem:[#allocation2 + $0x70]] }
 0x10b   : > { %v637_v53 = vmax.f32 %v635_v12, 0.0  ;;  %1185 = vrot.lane.b32.xlu1 %v1180_v48, %s4437_s8  ;;  %v662_v59 = vadd.f32 %v657_v51, %v646_v43  ;;  %v1273_v43 = vmul.f32 %v5025_v31, %v1272_v24  ;;  %v4311_v48 = vld [vmem:[%s4518_s6 + $0x20] sm:$0xff] }
 0x10c   : > { %1183 = vrot.lane.b32.xlu0 %v1179_v44, %s4437_s8  ;;  %641 = vst.msk [vmem:[%s4968_s17 + $0x8] sm:$0xff] %vm639_vm0, %v638_v52  ;;  %v755_v44 = vmul.f32 %v4311_v48, %v753_v26  ;;  %v4315_v24 = vld [vmem:[%s4518_s6 + $0x22] sm:$0xff]  ;;  %v1358_v48 = vstv %s5062_s27  ;;  %s5239_s27 = sld [smem:[#allocation4 + $0x1]] }
 0x10d   : > { %640 = vst.msk [vmem:[%s4968_s17] sm:$0xff] %vm639_vm0, %v637_v53  ;;  %v673_v56 = vpop.permute.xlu1 %672 }
 0x10e   : > { %v671_v22 = vpop.permute.xlu0 %670  ;;  %v677_v63 = vadd.f32 %v673_v56, %v663_v34  ;;  %v5050_v56 = vld [vmem:[%s4518_s6 + $0x30] sm:$0xff] }
 0x10f   : > { %v676_v58 = vadd.f32 %v671_v22, %v662_v59  ;;  %1207 = vrot.lane.b32.xlu1 %v1202_v54, %s4438_s9  ;;  %v789_v22 = vstv %s5028_s23  ;;  %s5212_s23 = sld [smem:[#allocation2 + $0x71]] }
 0x110   : > { %1205 = vrot.lane.b32.xlu0 %v1201_v55, %s4438_s9  ;;  %v685_v3 = vadd.f32 %v683_v57, %v677_v63  ;;  %v1288_v55 = vmul.f32 %v5021_v30, %v1286_v49  ;;  %v1287_v57 = vmul.f32 %v5025_v31, %v1286_v49 }
 0x111   : > { %v684_v18 = vadd.f32 %v682_v61, %v676_v58  ;;  %v695_v7 = vpop.permute.xlu1 %694  ;;  %v5046_v61 = vld [vmem:[%s4518_s6 + $0x38] sm:$0xff] }
 0x112   : > { %v693_v9 = vpop.permute.xlu0 %692  ;;  %v699_v40 = vadd.f32 %v695_v7, %v685_v3  ;;  %v4313_v3 = vld [vmem:[%s4518_s6 + $0x21] sm:$0xff]  ;;  %v4314_v7 = vld [vmem:[%s4518_s6 + $0x19] sm:$0xff] }
 0x113   : > { %1221 = vrot.lane.b32.xlu1 %v1216_v16, %s4437_s8  ;;  %v698_v33 = vadd.f32 %v693_v9, %v684_v18  ;;  %v1310_v16 = vmul.f32 %v5046_v61, %v1308_v62  ;;  %v791_v18 = vmul.f32 %v4313_v3, %v789_v22  ;;  %v790_v9 = vmul.f32 %v4314_v7, %v789_v22  ;;  %v4318_v3 = vld [vmem:[%s4518_s6 + $0x30] sm:$0xff] }
 0x114   : > { %1219 = vrot.lane.b32.xlu0 %v1215_v25, %s4437_s8  ;;  %v1309_v25 = vmul.f32 %v5050_v56, %v1308_v62 }
 0x115   : > { %v709_v21 = vpop.permute.xlu1 %708 }
 0x116   : > { %v707_v23 = vpop.permute.xlu0 %706  ;;  %v713_v4 = vadd.f32 %v709_v21, %v699_v40  ;;  %v5071_v21 = vld [vmem:[%s4518_s6 + $0x39] sm:$0xff] }
 0x117   : > { %v712_v8 = vadd.f32 %v707_v23, %v698_v33  ;;  %1243 = vrot.lane.b32.xlu1 %v1238_v11, %s4438_s9  ;;  %v1322_v11 = vstv %s5037_s24  ;;  %v1344_v23 = vstv %s5043_s25  ;;  %s5226_s24 = sld [smem:[#allocation2 + $0x73]] }
 0x118   : > { %1241 = vrot.lane.b32.xlu0 %v1237_v13, %s4438_s9  ;;  %v721_v28 = vadd.f32 %v719_v17, %v713_v4  ;;  %v1324_v33 = vmul.f32 %v5046_v61, %v1322_v11  ;;  %v1323_v36 = vmul.f32 %v5050_v56, %v1322_v11  ;;  %v5075_v4 = vld [vmem:[%s4518_s6 + $0x31] sm:$0xff]  ;;  %s5233_s25 = sld [smem:[#allocation2 + $0x48]] }
 0x119   : > { %v720_v29 = vadd.f32 %v718_v19, %v712_v8  ;;  %v731_v35 = vpop.permute.xlu1 %730  ;;  %v825_v8 = vstv %s5053_s26  ;;  %v1359_v49 = vmul.f32 %v5075_v4, %v1358_v48  ;;  %s5237_s26 = sld [smem:[#allocation2 + $0x74]] }
 0x11a   : > { %v729_v37 = vpop.permute.xlu0 %728  ;;  %v735_v50 = vadd.f32 %v731_v35, %v721_v28  ;;  %v1346_v28 = vmul.f32 %v5071_v21, %v1344_v23  ;;  %v827_v26 = vmul.f32 %v4315_v24, %v825_v8 }
 0x11b   : > { %1257 = vrot.lane.b32.xlu1 %v1252_v10, %s4437_s8  ;;  %v734_v12 = vadd.f32 %v729_v37, %v720_v29  ;;  %v1345_v29 = vmul.f32 %v5075_v4, %v1344_v23 }
 0x11c   : > { %1255 = vrot.lane.b32.xlu0 %v1251_v27, %s4437_s8 }
 0x11d   : > { %v745_v51 = vpop.permute.xlu1 %744 }
 0x11e   : > { %v743_v52 = vpop.permute.xlu0 %742  ;;  %v749_v53 = vadd.f32 %v745_v51, %v735_v50 }
 0x11f   : > { %v748_v54 = vadd.f32 %v743_v52, %v734_v12  ;;  %1279 = vrot.lane.b32.xlu1 %v1274_v39, %s4438_s9  ;;  %v4316_v39 = vld [vmem:[%s4518_s6 + $0x1a] sm:$0xff] }
 0x120   : > { %1277 = vrot.lane.b32.xlu0 %v1273_v43, %s4438_s9  ;;  %v757_v34 = vadd.f32 %v755_v44, %v749_v53  ;;  %v826_v43 = vmul.f32 %v4316_v39, %v825_v8  ;;  %v5096_v53 = vld [vmem:[%s4518_s6 + $0x3a] sm:$0xff]  ;;  %v1430_v39 = vstv %s5112_s7  ;;  %s5282_s7 = sld [smem:[#allocation2 + $0x7a]] }
 0x121   : > { %v756_v59 = vadd.f32 %v754_v47, %v748_v54  ;;  %v767_v63 = vpop.permute.xlu1 %766  ;;  %v1360_v47 = vmul.f32 %v5071_v21, %v1358_v48  ;;  %v1380_v54 = vstv %s5068_s28  ;;  %s5245_s28 = sld [smem:[#allocation2 + $0x76]] }
 0x122   : > { %v765_v58 = vpop.permute.xlu0 %764  ;;  %v771_v6 = vadd.f32 %v767_v63, %v757_v34  ;;  %v1382_v62 = vmul.f32 %v5096_v53, %v1380_v54  ;;  %v4317_v63 = vld [vmem:[%s4518_s6 + $0x38] sm:$0xff] }
 0x123   : > { %1293 = vrot.lane.b32.xlu1 %v1288_v55, %s4437_s8  ;;  %v770_v1 = vadd.f32 %v765_v58, %v756_v59  ;;  %v5100_v55 = vld [vmem:[%s4518_s6 + $0x32] sm:$0xff] }
 0x124   : > { %1291 = vrot.lane.b32.xlu0 %v1287_v57, %s4437_s8  ;;  %v861_v57 = vstv %s5078_s29  ;;  %v1381_v22 = vmul.f32 %v5100_v55, %v1380_v54  ;;  %v5150_v54 = vld [vmem:[%s4518_s6 + $0x49] sm:$0xff]  ;;  %s5248_s29 = sld [smem:[#allocation2 + $0x4b]] }
 0x125   : > { %v781_v13 = vpop.permute.xlu1 %780  ;;  %v863_v58 = vmul.f32 %v4317_v63, %v861_v57  ;;  %v4321_v63 = vld [vmem:[%s4518_s6 + $0x3a] sm:$0xff] }
 0x126   : > { %v779_v15 = vpop.permute.xlu0 %778  ;;  %v785_v17 = vadd.f32 %v781_v13, %v771_v6  ;;  %v1394_v6 = vstv %s5087_s30  ;;  %s5256_s30 = sld [smem:[#allocation2 + $0x77]] }
 0x127   : > { %v784_v40 = vadd.f32 %v779_v15, %v770_v1  ;;  %1315 = vrot.lane.b32.xlu1 %v1310_v16, %s4438_s9  ;;  %v1396_v13 = vmul.f32 %v5096_v53, %v1394_v6  ;;  %v1395_v15 = vmul.f32 %v5100_v55, %v1394_v6  ;;  %v1466_v6 = vstv %s5137_s13  ;;  %s5301_s13 = sld [smem:[#allocation2 + $0x7d]] }
 0x128   : > { %1313 = vrot.lane.b32.xlu0 %v1309_v25, %s4438_s9  ;;  %v793_v19 = vadd.f32 %v791_v18, %v785_v17  ;;  %v862_v18 = vmul.f32 %v4318_v3, %v861_v57  ;;  %v933_v57 = vstv %s5128_s11  ;;  %v4322_v3 = vld [vmem:[%s4518_s6 + $0x32] sm:$0xff]  ;;  %s5292_s11 = sld [smem:[#allocation2 + $0x51]] }
 0x129   : > { %v792_v42 = vadd.f32 %v790_v9, %v784_v40  ;;  %v803_v10 = vpop.permute.xlu1 %802 }
 0x12a   : > { %v801_v27 = vpop.permute.xlu0 %800  ;;  %v807_v35 = vadd.f32 %v803_v10, %v793_v19  ;;  %v5125_v19 = vld [vmem:[%s4518_s6 + $0x48] sm:$0xff] }
 0x12b   : > { %1329 = vrot.lane.b32.xlu1 %v1324_v33, %s4437_s8  ;;  %v806_v37 = vadd.f32 %v801_v27, %v792_v42  ;;  %v5121_v33 = vld [vmem:[%s4518_s6 + $0x50] sm:$0xff]  ;;  %v897_v42 = vstv %s5103_s5  ;;  %s5269_s5 = sld [smem:[#allocation2 + $0x4e]] }
 0x12c   : > { %1327 = vrot.lane.b32.xlu0 %v1323_v36, %s4437_s8  ;;  %v1416_v36 = vstv %s5093_s4  ;;  %s5265_s4 = sld [smem:[#allocation2 + $0x79]] }
 0x12d   : > { %v817_v44 = vpop.permute.xlu1 %816  ;;  %v1418_v10 = vmul.f32 %v5121_v33, %v1416_v36  ;;  %v1417_v27 = vmul.f32 %v5125_v19, %v1416_v36  ;;  %v5171_v36 = vld [vmem:[%s4518_s6 + $0x52] sm:$0xff] }
 0x12e   : > { %v815_v50 = vpop.permute.xlu0 %814  ;;  %v821_v12 = vadd.f32 %v817_v44, %v807_v35  ;;  %v4320_v35 = vld [vmem:[%s4518_s6 + $0x31] sm:$0xff] }
 0x12f   : > { %v820_v14 = vadd.f32 %v815_v50, %v806_v37  ;;  %1351 = vrot.lane.b32.xlu1 %v1346_v28, %s4438_s9  ;;  %v4319_v28 = vld [vmem:[%s4518_s6 + $0x39] sm:$0xff]  ;;  %v898_v37 = vmul.f32 %v4320_v35, %v897_v42 }
 0x130   : > { %1349 = vrot.lane.b32.xlu0 %v1345_v29, %s4438_s9  ;;  %v829_v51 = vadd.f32 %v827_v26, %v821_v12  ;;  %v899_v29 = vmul.f32 %v4319_v28, %v897_v42  ;;  %v1432_v12 = vmul.f32 %v5121_v33, %v1430_v39  ;;  %v1488_v42 = vstv %s5143_s14  ;;  %s5307_s14 = sld [smem:[#allocation2 + $0x7f]] }
 0x131   : > { %v828_v52 = vadd.f32 %v826_v43, %v820_v14  ;;  %v839_v34 = vpop.permute.xlu1 %838  ;;  %v1431_v14 = vmul.f32 %v5125_v19, %v1430_v39  ;;  %v1490_v28 = vmul.f32 %v5171_v36, %v1488_v42  ;;  %v4324_v39 = vld [vmem:[%s4518_s6 + $0x48] sm:$0xff] }
 0x132   : > { %v837_v59 = vpop.permute.xlu0 %836  ;;  %v843_v16 = vadd.f32 %v839_v34, %v829_v51  ;;  %v5146_v51 = vld [vmem:[%s4518_s6 + $0x51] sm:$0xff] }
 0x133   : > { %1365 = vrot.lane.b32.xlu1 %v1360_v47, %s4437_s8  ;;  %v842_v25 = vadd.f32 %v837_v59, %v828_v52  ;;  %v1452_v52 = vstv %s5118_s10  ;;  %s5288_s10 = sld [smem:[#allocation2 + $0x7c]] }
 0x134   : > { %1363 = vrot.lane.b32.xlu0 %v1359_v49, %s4437_s8 }
 0x135   : > { %v853_v1 = vpop.permute.xlu1 %852 }
 0x136   : > { %v851_v7 = vpop.permute.xlu0 %850  ;;  %v857_v9 = vadd.f32 %v853_v1, %v843_v16 }
 0x137   : > { %v856_v11 = vadd.f32 %v851_v7, %v842_v25  ;;  %1387 = vrot.lane.b32.xlu1 %v1382_v62, %s4438_s9  ;;  %v1454_v62 = vmul.f32 %v5146_v51, %v1452_v52 }
 0x138   : > { %1385 = vrot.lane.b32.xlu0 %v1381_v22, %s4438_s9  ;;  %v865_v17 = vadd.f32 %v863_v58, %v857_v9  ;;  %v1453_v22 = vmul.f32 %v5150_v54, %v1452_v52  ;;  %v935_v58 = vmul.f32 %v4321_v63, %v933_v57 }
 0x139   : > { %v864_v40 = vadd.f32 %v862_v18, %v856_v11  ;;  %v875_v23 = vpop.permute.xlu1 %874  ;;  %v934_v18 = vmul.f32 %v4322_v3, %v933_v57  ;;  %v4325_v3 = vld [vmem:[%s4518_s6 + $0x51] sm:$0xff] }
 0x13a   : > { %v873_v8 = vpop.permute.xlu0 %872  ;;  %v879_v24 = vadd.f32 %v875_v23, %v865_v17  ;;  %v5175_v23 = vld [vmem:[%s4518_s6 + $0x4a] sm:$0xff] }
 0x13b   : > { %1401 = vrot.lane.b32.xlu1 %v1396_v13, %s4437_s8  ;;  %v878_v26 = vadd.f32 %v873_v8, %v864_v40  ;;  %v1468_v13 = vmul.f32 %v5146_v51, %v1466_v6  ;;  %v969_v8 = vstv %s5153_s15  ;;  %s5311_s15 = sld [smem:[#allocation2 + $0x54]] }
 0x13c   : > { %1399 = vrot.lane.b32.xlu0 %v1395_v15, %s4437_s8  ;;  %v1467_v15 = vmul.f32 %v5150_v54, %v1466_v6 }
 0x13d   : > { %v889_v43 = vpop.permute.xlu1 %888 }
 0x13e   : > { %v887_v48 = vpop.permute.xlu0 %886  ;;  %v893_v44 = vadd.f32 %v889_v43, %v879_v24  ;;  %v4323_v24 = vld [vmem:[%s4518_s6 + $0x50] sm:$0xff]  ;;  %v970_v43 = vmul.f32 %v4324_v39, %v969_v8 }
 0x13f   : > { %v892_v50 = vadd.f32 %v887_v48, %v878_v26  ;;  %1423 = vrot.lane.b32.xlu1 %v1418_v10, %s4438_s9  ;;  %v971_v26 = vmul.f32 %v4323_v24, %v969_v8  ;;  %v1502_v48 = vstv %s5162_s16  ;;  %v5223_v24 = vld [vmem:[%s4518_s6 + $0x1] sm:$0xff]  ;;  %s5320_s16 = sld [smem:[#allocation2 + $0x80]] }
 0x140   : > { %1421 = vrot.lane.b32.xlu0 %v1417_v27, %s4438_s9  ;;  %v901_v47 = vadd.f32 %v899_v29, %v893_v44  ;;  %v1489_v29 = vmul.f32 %v5175_v23, %v1488_v42 }
 0x141   : > { %v900_v49 = vadd.f32 %v898_v37, %v892_v50  ;;  %v911_v34 = vpop.permute.xlu1 %910 }
 0x142   : > { %v909_v59 = vpop.permute.xlu0 %908  ;;  %v915_v16 = vadd.f32 %v911_v34, %v901_v47  ;;  %v1504_v47 = vmul.f32 %v5171_v36, %v1502_v48  ;;  %v5196_v34 = vld [vmem:[%s4518_s6 + $0x8] sm:$0xff] }
 0x143   : > { %1437 = vrot.lane.b32.xlu1 %v1432_v12, %s4437_s8  ;;  %v914_v25 = vadd.f32 %v909_v59, %v900_v49  ;;  %v1503_v49 = vmul.f32 %v5175_v23, %v1502_v48  ;;  %v1533_v59 = vstv %s5168_s18  ;;  %v4327_v48 = vld [vmem:[%s4518_s6 + $0x52] sm:$0xff]  ;;  %s5326_s18 = sld [smem:[#allocation2 + $0x82]] }
 0x144   : > { %1435 = vrot.lane.b32.xlu0 %v1431_v14, %s4437_s8 }
 0x145   : > { %v925_v1 = vpop.permute.xlu1 %924 }
 0x146   : > { %v923_v7 = vpop.permute.xlu0 %922  ;;  %v929_v9 = vadd.f32 %v925_v1, %v915_v16  ;;  %v1535_v16 = vmul.f32 %v1533_v59, %v5196_v34 }
 0x147   : > { %v928_v11 = vadd.f32 %v923_v7, %v914_v25  ;;  %1459 = vrot.lane.b32.xlu1 %v1454_v62, %s4438_s9  ;;  %v5200_v62 = vld [vmem:[%s4518_s6] sm:$0xff]  ;;  %v4326_v7 = vld [vmem:[%s4518_s6 + $0x49] sm:$0xff] }
 0x148   : > { %1457 = vrot.lane.b32.xlu0 %v1453_v22, %s4438_s9  ;;  %v937_v17 = vadd.f32 %v935_v58, %v929_v9  ;;  %v1005_v22 = vstv %s5178_s19  ;;  %v1534_v25 = vmul.f32 %v1533_v59, %v5200_v62  ;;  %s5330_s19 = sld [smem:[#allocation2 + $0x57]] }
 0x149   : > { %v936_v40 = vadd.f32 %v934_v18, %v928_v11  ;;  %v947_v10 = vpop.permute.xlu1 %946  ;;  %v1007_v18 = vmul.f32 %v4325_v3, %v1005_v22  ;;  %v1006_v9 = vmul.f32 %v4326_v7, %v1005_v22  ;;  %v1547_v11 = vstv %s5187_s20  ;;  %s5339_s20 = sld [smem:[#allocation2 + $0x83]] }
 0x14a   : > { %v945_v27 = vpop.permute.xlu0 %944  ;;  %v951_v35 = vadd.f32 %v947_v10, %v937_v17  ;;  %v1549_v42 = vmul.f32 %v1547_v11, %v5196_v34  ;;  %v1548_v8 = vmul.f32 %v1547_v11, %v5200_v62  ;;  %v1605_v3 = vstv %s5226_s24  ;;  %s5364_s24 = sld [smem:[#allocation2 + $0x88]] }
 0x14b   : > { %1473 = vrot.lane.b32.xlu1 %v1468_v13, %s4437_s8  ;;  %v950_v37 = vadd.f32 %v945_v27, %v936_v40  ;;  %v1606_v7 = vmul.f32 %v1605_v3, %v4927_v0 }
 0x14c   : > { %1471 = vrot.lane.b32.xlu0 %v1467_v15, %s4437_s8 }
 0x14d   : > { %v961_v44 = vpop.permute.xlu1 %960 }
 0x14e   : > { %v959_v50 = vpop.permute.xlu0 %958  ;;  %v965_v12 = vadd.f32 %v961_v44, %v951_v35 }
 0x14f   : > { %v964_v14 = vadd.f32 %v959_v50, %v950_v37  ;;  %1495 = vrot.lane.b32.xlu1 %v1490_v28, %s4438_s9  ;;  %v5219_v28 = vld [vmem:[%s4518_s6 + $0x9] sm:$0xff] }
 0x150   : > { %1493 = vrot.lane.b32.xlu0 %v1489_v29, %s4438_s9  ;;  %v973_v52 = vadd.f32 %v971_v26, %v965_v12  ;;  %v1569_v29 = vstv %s5193_s21  ;;  %v1041_v26 = vstv %s5203_s22  ;;  %s5345_s21 = sld [smem:[#allocation2 + $0x85]] }
 0x151   : > { %v972_v57 = vadd.f32 %v970_v43, %v964_v14  ;;  %v983_v63 = vpop.permute.xlu1 %982  ;;  %v1571_v39 = vmul.f32 %v1569_v29, %v5219_v28  ;;  %v1570_v43 = vmul.f32 %v1569_v29, %v5223_v24  ;;  %v1043_v44 = vmul.f32 %v4327_v48, %v1041_v26  ;;  %v4328_v14 = vld [vmem:[%s4518_s6 + $0x4a] sm:$0xff]  ;;  %s5349_s22 = sld [smem:[#allocation2 + $0x5a]] }
 0x152   : > { %v981_v58 = vpop.permute.xlu0 %980  ;;  %v987_v6 = vadd.f32 %v983_v63, %v973_v52  ;;  %v1122_v48 = vstv %s5248_s29  ;;  %s5396_s29 = sld [smem:[#allocation2 + $0x8c]] }
 0x153   : > { %1509 = vrot.lane.b32.xlu1 %v1504_v47, %s4437_s8  ;;  %v986_v1 = vadd.f32 %v981_v58, %v972_v57  ;;  %v1042_v47 = vmul.f32 %v4328_v14, %v1041_v26 }
 0x154   : > { %1507 = vrot.lane.b32.xlu0 %v1503_v49, %s4437_s8  ;;  %v1583_v49 = vstv %s5212_s23  ;;  %s5358_s23 = sld [smem:[#allocation2 + $0x86]] }
 0x155   : > { %v997_v13 = vpop.permute.xlu1 %996  ;;  %v1585_v63 = vmul.f32 %v1583_v49, %v5219_v28  ;;  %v1584_v58 = vmul.f32 %v1583_v49, %v5223_v24 }
 0x156   : > { %v995_v15 = vpop.permute.xlu0 %994  ;;  %v1001_v17 = vadd.f32 %v997_v13, %v987_v6 }
 0x157   : > { %v1000_v40 = vadd.f32 %v995_v15, %v986_v1  ;;  %1540 = vrot.lane.b32.xlu1 %v1535_v16, %s4438_s9  ;;  %v1607_v1 = vmul.f32 %v1605_v3, %v4923_v20  ;;  %v1619_v15 = vstv %s5237_s26  ;;  %s5377_s26 = sld [smem:[#allocation2 + $0x89]] }
 0x158   : > { %1538 = vrot.lane.b32.xlu0 %v1534_v25, %s4438_s9  ;;  %v1009_v10 = vadd.f32 %v1007_v18, %v1001_v17  ;;  %v1075_v17 = vstv %s5239_s27  ;;  %v1621_v26 = vmul.f32 %v1619_v15, %v4923_v20  ;;  %s5383_s27 = sld [smem:[#allocation2 + $0x8b]] }
 0x159   : > { %v1008_v27 = vadd.f32 %v1006_v9, %v1000_v40  ;;  %v1019_v35 = vpop.permute.xlu1 %1018  ;;  %v1086_v9 = vstv %s5233_s25  ;;  %s5368_s25 = sld [smem:[#allocation2 + $0x5d]] }
 0x15a   : > { %v1017_v37 = vpop.permute.xlu0 %1016  ;;  %v1023_v50 = vadd.f32 %v1019_v35, %v1009_v10  ;;  %v1087_v29 = vmul.f32 %v4948_v41, %v1086_v9  ;;  %v1620_v35 = vmul.f32 %v1619_v15, %v4927_v0 }
 0x15b   : > { %1554 = vrot.lane.b32.xlu1 %v1549_v42, %s4437_s8  ;;  %v1022_v12 = vadd.f32 %v1017_v37, %v1008_v27  ;;  %v1088_v27 = vmul.f32 %v4942_v38, %v1086_v9 }
 0x15c   : > { %1552 = vrot.lane.b32.xlu0 %v1548_v8, %s4437_s8 }
 0x15d   : > { %v1033_v52 = vpop.permute.xlu1 %1032 }
 0x15e   : > { %v1031_v57 = vpop.permute.xlu0 %1030  ;;  %v1037_v59 = vadd.f32 %v1033_v52, %v1023_v50 }
 0x15f   : > { %v1036_v22 = vadd.f32 %v1031_v57, %v1022_v12  ;;  %1576 = vrot.lane.b32.xlu1 %v1571_v39, %s4438_s9  ;;  %v1123_v57 = vmul.f32 %v4983_v60, %v1122_v48 }
 0x160   : > { %1574 = vrot.lane.b32.xlu0 %v1570_v43, %s4438_s9  ;;  %v1045_v16 = vadd.f32 %v1043_v44, %v1037_v59  ;;  %v1641_v43 = vstv %s5245_s28  ;;  %v1655_v59 = vstv %s5256_s30  ;;  %s5387_s28 = sld [smem:[#allocation2 + $0x60]] }
 0x161   : > { %v1044_v25 = vadd.f32 %v1042_v47, %v1036_v22  ;;  %v1055_v18 = vpop.permute.xlu1 %1054  ;;  %v1643_v41 = vmul.f32 %v4956_v45, %v1641_v43  ;;  %v1642_v14 = vmul.f32 %v4960_v46, %v1641_v43  ;;  %v1124_v47 = vmul.f32 %v4975_v32, %v1122_v48  ;;  %s5402_s30 = sld [smem:[#allocation2 + $0x8e]] }
 0x162   : > { %v1053_v6 = vpop.permute.xlu0 %1052  ;;  %v1059_v11 = vadd.f32 %v1055_v18, %v1045_v16  ;;  %v1657_v32 = vmul.f32 %v4956_v45, %v1655_v59  ;;  %v1677_v18 = vstv %s5265_s4  ;;  %s5406_s4 = sld [smem:[#allocation2 + $0x63]] }
 0x163   : > { %1590 = vrot.lane.b32.xlu1 %v1585_v63, %s4437_s8  ;;  %v1058_v13 = vadd.f32 %v1053_v6, %v1044_v25  ;;  %v1656_v25 = vmul.f32 %v4960_v46, %v1655_v59  ;;  %v1158_v6 = vstv %s5269_s5  ;;  %v1679_v9 = vmul.f32 %v4996_v5, %v1677_v18  ;;  %s5415_s5 = sld [smem:[#allocation2 + $0x8f]] }
 0x164   : > { %1588 = vrot.lane.b32.xlu0 %v1584_v58, %s4437_s8 }
 0x165   : > { %v1069_v40 = vpop.permute.xlu1 %1068 }
 0x166   : > { %v1067_v42 = vpop.permute.xlu0 %1066  ;;  %v1073_v8 = vadd.f32 %v1069_v40, %v1059_v11  ;;  %v1678_v11 = vmul.f32 %v5000_v2, %v1677_v18  ;;  %v1159_v40 = vmul.f32 %v1158_v6, %v4927_v0 }
 0x167   : > { %v1072_v10 = vadd.f32 %v1067_v42, %v1058_v13  ;;  %1612 = vrot.lane.b32.xlu1 %v1607_v1, %s4438_s9  ;;  %v1160_v13 = vmul.f32 %v1158_v6, %v4923_v20  ;;  %v1691_v42 = vstv %s5282_s7  ;;  %s5421_s7 = sld [smem:[#allocation2 + $0x91]] }
 0x168   : > { %1610 = vrot.lane.b32.xlu0 %v1606_v7, %s4438_s9  ;;  %v1077_v37 = vadd.f32 %v1075_v17, %v1073_v8  ;;  %v1692_v20 = vmul.f32 %v5000_v2, %v1691_v42 }
 0x169   : > { %v1076_v39 = vadd.f32 %v1075_v17, %v1072_v10  ;;  %v1100_v38 = vpop.permute.xlu1 %1099 }
 0x16a   : > { %v1098_v44 = vpop.permute.xlu0 %1097  ;;  %v1079_v50 = vmax.f32 %v1077_v37, 0.0  ;;  %v1104_v49 = vadd.f32 %v1100_v38, %v1088_v27  ;;  %v1713_v37 = vstv %s5288_s10  ;;  %s5425_s10 = sld [smem:[#allocation2 + $0x66]] }
 0x16b   : > { %v1078_v12 = vmax.f32 %v1076_v39, 0.0  ;;  %1626 = vrot.lane.b32.xlu1 %v1621_v26, %s4437_s8  ;;  %v1103_v52 = vadd.f32 %v1098_v44, %v1087_v29  ;;  %v1693_v26 = vmul.f32 %v4996_v5, %v1691_v42  ;;  %v1194_v39 = vstv %s5292_s11  ;;  %s5434_s11 = sld [smem:[#allocation2 + $0x92]] }
 0x16c   : > { %1624 = vrot.lane.b32.xlu0 %v1620_v35, %s4437_s8  ;;  %3927 = vst.msk [vmem:[%s4968_s17 + $0x18] sm:$0xff] %vm639_vm0, %v1079_v50  ;;  %v1715_v38 = vmul.f32 %v5021_v30, %v1713_v37  ;;  %v1714_v44 = vmul.f32 %v5025_v31, %v1713_v37  ;;  %v1196_v50 = vmul.f32 %v4956_v45, %v1194_v39 }
 0x16d   : > { %3926 = vst.msk [vmem:[%s4968_s17 + $0x10] sm:$0xff] %vm639_vm0, %v1078_v12  ;;  %v1114_v22 = vpop.permute.xlu1 %1113 }
 0x16e   : > { %v1112_v63 = vpop.permute.xlu0 %1111  ;;  %v1118_v58 = vadd.f32 %v1114_v22, %v1104_v49 }
 0x16f   : > { %v1117_v16 = vadd.f32 %v1112_v63, %v1103_v52  ;;  %1648 = vrot.lane.b32.xlu1 %v1643_v41, %s4438_s9 }
 0x170   : > { %1646 = vrot.lane.b32.xlu0 %v1642_v14, %s4438_s9  ;;  %v1126_v3 = vadd.f32 %v1124_v47, %v1118_v58  ;;  %v1195_v14 = vmul.f32 %v4960_v46, %v1194_v39  ;;  %v1727_v47 = vstv %s5301_s13  ;;  %v1749_v58 = vstv %s5307_s14  ;;  %s5440_s13 = sld [smem:[#allocation2 + $0x94]] }
 0x171   : > { %v1125_v60 = vadd.f32 %v1123_v57, %v1117_v16  ;;  %v1136_v1 = vpop.permute.xlu1 %1135  ;;  %v1729_v22 = vmul.f32 %v5021_v30, %v1727_v47  ;;  %v1728_v45 = vmul.f32 %v5025_v31, %v1727_v47  ;;  %v1230_v16 = vstv %s5311_s15  ;;  %s5444_s14 = sld [smem:[#allocation2 + $0x69]] }
 0x172   : > { %v1134_v7 = vpop.permute.xlu0 %1133  ;;  %v1140_v15 = vadd.f32 %v1136_v1, %v1126_v3  ;;  %v1751_v3 = vmul.f32 %v5046_v61, %v1749_v58  ;;  %v1232_v18 = vmul.f32 %v4996_v5, %v1230_v16  ;;  %v1302_v47 = vstv %s5349_s22  ;;  %s5453_s15 = sld [smem:[#allocation2 + $0x95]] }
 0x173   : > { %1662 = vrot.lane.b32.xlu1 %v1657_v32, %s4437_s8  ;;  %v1139_v17 = vadd.f32 %v1134_v7, %v1125_v60  ;;  %v1750_v60 = vmul.f32 %v5050_v56, %v1749_v58  ;;  %v1231_v7 = vmul.f32 %v5000_v2, %v1230_v16  ;;  %v1835_v58 = vstv %s5358_s23  ;;  %s5489_s22 = sld [smem:[#allocation2 + $0x6f]] }
 0x174   : > { %1660 = vrot.lane.b32.xlu0 %v1656_v25, %s4437_s8  ;;  %s5497_s23 = sld [smem:[#allocation2 + $0x9b]] }
 0x175   : > { %v1150_v8 = vpop.permute.xlu1 %1149 }
 0x176   : > { %v1148_v10 = vpop.permute.xlu0 %1147  ;;  %v1154_v27 = vadd.f32 %v1150_v8, %v1140_v15  ;;  %v1785_v8 = vstv %s5326_s18  ;;  %s5468_s18 = sld [smem:[#allocation2 + $0x6c]] }
 0x177   : > { %v1153_v29 = vadd.f32 %v1148_v10, %v1139_v17  ;;  %1684 = vrot.lane.b32.xlu1 %v1679_v9, %s4438_s9  ;;  %v1763_v9 = vstv %s5320_s16  ;;  %v1266_v10 = vstv %s5330_s19  ;;  %s5461_s16 = sld [smem:[#allocation2 + $0x97]] }
 0x178   : > { %1682 = vrot.lane.b32.xlu0 %v1678_v11, %s4438_s9  ;;  %v1162_v35 = vadd.f32 %v1160_v13, %v1154_v27  ;;  %v1764_v5 = vmul.f32 %v5050_v56, %v1763_v9  ;;  %v1267_v39 = vmul.f32 %v5025_v31, %v1266_v10  ;;  %s5472_s19 = sld [smem:[#allocation2 + $0x98]] }
 0x179   : > { %v1161_v0 = vadd.f32 %v1159_v40, %v1153_v29  ;;  %v1172_v43 = vpop.permute.xlu1 %1171  ;;  %v1765_v40 = vmul.f32 %v5046_v61, %v1763_v9 }
 0x17a   : > { %v1170_v48 = vpop.permute.xlu0 %1169  ;;  %v1176_v12 = vadd.f32 %v1172_v43, %v1162_v35  ;;  %v1268_v35 = vmul.f32 %v5021_v30, %v1266_v10  ;;  %v1799_v43 = vstv %s5339_s20  ;;  %s5474_s20 = sld [smem:[#allocation4 + $0x2]] }
 0x17b   : > { %1698 = vrot.lane.b32.xlu1 %v1693_v26, %s4437_s8  ;;  %v1175_v41 = vadd.f32 %v1170_v48, %v1161_v0  ;;  %v1787_v26 = vmul.f32 %v5071_v21, %v1785_v8  ;;  %v1800_v30 = vmul.f32 %v5075_v4, %v1799_v43 }
 0x17c   : > { %1696 = vrot.lane.b32.xlu0 %v1692_v20, %s4437_s8  ;;  %v1786_v20 = vmul.f32 %v5075_v4, %v1785_v8 }
 0x17d   : > { %v1186_v49 = vpop.permute.xlu1 %1185 }
 0x17e   : > { %v1184_v52 = vpop.permute.xlu0 %1183  ;;  %v1190_v57 = vadd.f32 %v1186_v49, %v1176_v12  ;;  %v1801_v12 = vmul.f32 %v5071_v21, %v1799_v43 }
 0x17f   : > { %v1189_v59 = vadd.f32 %v1184_v52, %v1175_v41  ;;  %1720 = vrot.lane.b32.xlu1 %v1715_v38, %s4438_s9 }
 0x180   : > { %1718 = vrot.lane.b32.xlu0 %v1714_v44, %s4438_s9  ;;  %v1198_v63 = vadd.f32 %v1196_v50, %v1190_v57 }
 0x181   : > { %v1197_v46 = vadd.f32 %v1195_v14, %v1189_v59  ;;  %v1208_v32 = vpop.permute.xlu1 %1207  ;;  %v1821_v14 = vstv %s5345_s21  ;;  %s5480_s21 = sld [smem:[#allocation2 + $0x9a]] }
 0x182   : > { %v1206_v25 = vpop.permute.xlu0 %1205  ;;  %v1212_v6 = vadd.f32 %v1208_v32, %v1198_v63  ;;  %v1823_v57 = vmul.f32 %v5096_v53, %v1821_v14  ;;  %v1822_v59 = vmul.f32 %v5100_v55, %v1821_v14 }
 0x183   : > { %1734 = vrot.lane.b32.xlu1 %v1729_v22, %s4437_s8  ;;  %v1211_v1 = vadd.f32 %v1206_v25, %v1197_v46  ;;  %v1304_v22 = vmul.f32 %v5046_v61, %v1302_v47  ;;  %v1303_v46 = vmul.f32 %v5050_v56, %v1302_v47  ;;  %v1836_v61 = vmul.f32 %v5100_v55, %v1835_v58 }
 0x184   : > { %1732 = vrot.lane.b32.xlu0 %v1728_v45, %s4437_s8 }
 0x185   : > { %v1222_v11 = vpop.permute.xlu1 %1221 }
 0x186   : > { %v1220_v13 = vpop.permute.xlu0 %1219  ;;  %v1226_v15 = vadd.f32 %v1222_v11, %v1212_v6  ;;  %v1857_v6 = vstv %s5364_s24  ;;  %s5506_s24 = sld [smem:[#allocation2 + $0x9d]] }
 0x187   : > { %v1225_v17 = vadd.f32 %v1220_v13, %v1211_v1  ;;  %1756 = vrot.lane.b32.xlu1 %v1751_v3, %s4438_s9  ;;  %v1338_v1 = vstv %s5368_s25  ;;  %v1859_v11 = vmul.f32 %v5121_v33, %v1857_v6  ;;  %v1858_v13 = vmul.f32 %v5125_v19, %v1857_v6  ;;  %s5516_s25 = sld [smem:[#allocation2 + $0x72]] }
 0x188   : > { %1754 = vrot.lane.b32.xlu0 %v1750_v60, %s4438_s9  ;;  %v1234_v42 = vadd.f32 %v1232_v18, %v1226_v15  ;;  %v1837_v60 = vmul.f32 %v5096_v53, %v1835_v58  ;;  %v1340_v15 = vmul.f32 %v5071_v21, %v1338_v1 }
 0x189   : > { %v1233_v2 = vadd.f32 %v1231_v7, %v1225_v17  ;;  %v1244_v27 = vpop.permute.xlu1 %1243 }
 0x18a   : > { %v1242_v29 = vpop.permute.xlu0 %1241  ;;  %v1248_v0 = vadd.f32 %v1244_v27, %v1234_v42  ;;  %v1871_v42 = vstv %s5377_s26  ;;  %s5529_s26 = sld [smem:[#allocation2 + $0x9e]] }
 0x18b   : > { %1770 = vrot.lane.b32.xlu1 %v1765_v40, %s4437_s8  ;;  %v1247_v37 = vadd.f32 %v1242_v29, %v1233_v2  ;;  %v1873_v29 = vmul.f32 %v5121_v33, %v1871_v42  ;;  %v1872_v21 = vmul.f32 %v5125_v19, %v1871_v42 }
 0x18c   : > { %1768 = vrot.lane.b32.xlu0 %v1764_v5, %s4437_s8  ;;  %v1339_v5 = vmul.f32 %v5075_v4, %v1338_v1  ;;  %v1974_v1 = vstv %s5421_s7  ;;  %s5585_s7 = sld [smem:[#allocation2 + $0xa6]] }
 0x18d   : > { %v1258_v48 = vpop.permute.xlu1 %1257 }
 0x18e   : > { %v1256_v38 = vpop.permute.xlu0 %1255  ;;  %v1262_v44 = vadd.f32 %v1258_v48, %v1248_v0 }
 0x18f   : > { %v1261_v50 = vadd.f32 %v1256_v38, %v1247_v37  ;;  %1792 = vrot.lane.b32.xlu1 %v1787_v26, %s4438_s9 }
 0x190   : > { %1790 = vrot.lane.b32.xlu0 %v1786_v20, %s4438_s9  ;;  %v1270_v41 = vadd.f32 %v1268_v35, %v1262_v44  ;;  %v1893_v20 = vstv %s5383_s27  ;;  %v1374_v35 = vstv %s5387_s28  ;;  %s5535_s27 = sld [smem:[#allocation2 + $0xa0]] }
 0x191   : > { %v1269_v31 = vadd.f32 %v1267_v39, %v1261_v50  ;;  %v1280_v49 = vpop.permute.xlu1 %1279  ;;  %v1895_v39 = vmul.f32 %v5146_v51, %v1893_v20  ;;  %v1894_v43 = vmul.f32 %v5150_v54, %v1893_v20  ;;  %v1376_v48 = vmul.f32 %v5096_v53, %v1374_v35  ;;  %s5545_s28 = sld [smem:[#allocation2 + $0x75]] }
 0x192   : > { %v1278_v52 = vpop.permute.xlu0 %1277  ;;  %v1284_v45 = vadd.f32 %v1280_v49, %v1270_v41  ;;  %v1375_v50 = vmul.f32 %v5100_v55, %v1374_v35  ;;  %v2010_v20 = vstv %s5440_s13  ;;  %s5610_s13 = sld [smem:[#allocation2 + $0xa9]] }
 0x193   : > { %1806 = vrot.lane.b32.xlu1 %v1801_v12, %s4437_s8  ;;  %v1283_v63 = vadd.f32 %v1278_v52, %v1269_v31  ;;  %v1907_v12 = vstv %s5396_s29  ;;  %v1929_v52 = vstv %s5402_s30  ;;  %s5554_s29 = sld [smem:[#allocation2 + $0xa1]] }
 0x194   : > { %1804 = vrot.lane.b32.xlu0 %v1800_v30, %s4437_s8  ;;  %v1909_v47 = vmul.f32 %v5146_v51, %v1907_v12  ;;  %v1908_v53 = vmul.f32 %v5150_v54, %v1907_v12  ;;  %s5560_s30 = sld [smem:[#allocation2 + $0xa3]] }
 0x195   : > { %v1294_v16 = vpop.permute.xlu1 %1293 }
 0x196   : > { %v1292_v32 = vpop.permute.xlu0 %1291  ;;  %v1298_v25 = vadd.f32 %v1294_v16, %v1284_v45  ;;  %v1931_v45 = vmul.f32 %v5171_v36, %v1929_v52 }
 0x197   : > { %v1297_v3 = vadd.f32 %v1292_v32, %v1283_v63  ;;  %1828 = vrot.lane.b32.xlu1 %v1823_v57, %s4438_s9  ;;  %v1410_v57 = vstv %s5406_s4  ;;  %v1930_v63 = vmul.f32 %v5175_v23, %v1929_v52  ;;  %s5570_s4 = sld [smem:[#allocation2 + $0x78]] }
 0x198   : > { %1826 = vrot.lane.b32.xlu0 %v1822_v59, %s4438_s9  ;;  %v1306_v18 = vadd.f32 %v1304_v22, %v1298_v25  ;;  %v1411_v32 = vmul.f32 %v5125_v19, %v1410_v57  ;;  %v1943_v25 = vstv %s5415_s5  ;;  %s5579_s5 = sld [smem:[#allocation2 + $0xa4]] }
 0x199   : > { %v1305_v56 = vadd.f32 %v1303_v46, %v1297_v3  ;;  %v1316_v7 = vpop.permute.xlu1 %1315  ;;  %v1412_v46 = vmul.f32 %v5121_v33, %v1410_v57  ;;  %v1944_v33 = vmul.f32 %v5175_v23, %v1943_v25 }
 0x19a   : > { %v1314_v9 = vpop.permute.xlu0 %1313  ;;  %v1320_v17 = vadd.f32 %v1316_v7, %v1306_v18  ;;  %v1446_v7 = vstv %s5425_s10  ;;  %s5595_s10 = sld [smem:[#allocation2 + $0x7b]] }
 0x19b   : > { %1842 = vrot.lane.b32.xlu1 %v1837_v60, %s4437_s8  ;;  %v1319_v40 = vadd.f32 %v1314_v9, %v1305_v56  ;;  %v1945_v56 = vmul.f32 %v5171_v36, %v1943_v25  ;;  %v1447_v42 = vmul.f32 %v5150_v54, %v1446_v7  ;;  %v1482_v54 = vstv %s5444_s14  ;;  %s5620_s14 = sld [smem:[#allocation2 + $0x7e]] }
 0x19c   : > { %1840 = vrot.lane.b32.xlu0 %v1836_v61, %s4437_s8 }
 0x19d   : > { %v1330_v2 = vpop.permute.xlu1 %1329 }
 0x19e   : > { %v1328_v8 = vpop.permute.xlu0 %1327  ;;  %v1334_v10 = vadd.f32 %v1330_v2, %v1320_v17  ;;  %v1448_v17 = vmul.f32 %v5146_v51, %v1446_v7  ;;  %v1988_v2 = vstv %s5434_s11  ;;  %v2082_v7 = vstv %s5480_s21  ;;  %s5604_s11 = sld [smem:[#allocation2 + $0xa7]] }
 0x19f   : > { %v1333_v27 = vadd.f32 %v1328_v8, %v1319_v40  ;;  %1864 = vrot.lane.b32.xlu1 %v1859_v11, %s4438_s9  ;;  %v1989_v51 = vmul.f32 %v1988_v2, %v5200_v62  ;;  %s5670_s21 = sld [smem:[#allocation2 + $0x84]] }
 0x1a0   : > { %1862 = vrot.lane.b32.xlu0 %v1858_v13, %s4438_s9  ;;  %v1342_v26 = vadd.f32 %v1340_v15, %v1334_v10  ;;  %v1976_v13 = vmul.f32 %v1974_v1, %v5196_v34  ;;  %v1975_v15 = vmul.f32 %v1974_v1, %v5200_v62  ;;  %v5509_v1 = vld [vmem:[%s4518_s6 + $0x20] sm:$0xff] }
 0x1a1   : > { %v1341_v4 = vadd.f32 %v1339_v5, %v1333_v27  ;;  %v1352_v0 = vpop.permute.xlu1 %1351 }
 0x1a2   : > { %v1350_v37 = vpop.permute.xlu0 %1349  ;;  %v1356_v38 = vadd.f32 %v1352_v0, %v1342_v26 }
 0x1a3   : > { %1878 = vrot.lane.b32.xlu1 %v1873_v29, %s4437_s8  ;;  %v1355_v44 = vadd.f32 %v1350_v37, %v1341_v4  ;;  %v2012_v37 = vmul.f32 %v2010_v20, %v5219_v28 }
 0x1a4   : > { %1876 = vrot.lane.b32.xlu0 %v1872_v21, %s4437_s8  ;;  %v1990_v21 = vmul.f32 %v1988_v2, %v5196_v34 }
 0x1a5   : > { %v1366_v30 = vpop.permute.xlu1 %1365 }
 0x1a6   : > { %v1364_v41 = vpop.permute.xlu0 %1363  ;;  %v1370_v31 = vadd.f32 %v1366_v30, %v1356_v38 }
 0x1a7   : > { %v1369_v14 = vadd.f32 %v1364_v41, %v1355_v44  ;;  %1900 = vrot.lane.b32.xlu1 %v1895_v39, %s4438_s9  ;;  %v2011_v39 = vmul.f32 %v2010_v20, %v5223_v24  ;;  %v1483_v44 = vmul.f32 %v5175_v23, %v1482_v54  ;;  %v5538_v20 = vld [vmem:[%s4518_s6 + $0x21] sm:$0xff] }
 0x1a8   : > { %1898 = vrot.lane.b32.xlu0 %v1894_v43, %s4438_s9  ;;  %v1378_v49 = vadd.f32 %v1376_v48, %v1370_v31  ;;  %v1484_v43 = vmul.f32 %v5171_v36, %v1482_v54  ;;  %v2118_v54 = vstv %s5506_s24  ;;  %s5695_s24 = sld [smem:[#allocation2 + $0x87]] }
 0x1a9   : > { %v1377_v55 = vadd.f32 %v1375_v50, %v1369_v14  ;;  %v1388_v59 = vpop.permute.xlu1 %1387  ;;  %v2024_v50 = vstv %s5453_s15  ;;  %s5629_s15 = sld [smem:[#allocation2 + $0xaa]] }
 0x1aa   : > { %v1386_v22 = vpop.permute.xlu0 %1385  ;;  %v1392_v58 = vadd.f32 %v1388_v59, %v1378_v49  ;;  %v2026_v36 = vmul.f32 %v2024_v50, %v5219_v28  ;;  %v2025_v23 = vmul.f32 %v2024_v50, %v5223_v24  ;;  %v2046_v49 = vstv %s5461_s16  ;;  %s5635_s16 = sld [smem:[#allocation2 + $0xac]] }
 0x1ab   : > { %1914 = vrot.lane.b32.xlu1 %v1909_v47, %s4437_s8  ;;  %v1391_v16 = vadd.f32 %v1386_v22, %v1377_v55  ;;  %v5487_v55 = vld [vmem:[%s4518_s6 + $0x2] sm:$0xff] }
 0x1ac   : > { %1912 = vrot.lane.b32.xlu0 %v1908_v53, %s4437_s8  ;;  %v5483_v53 = vld [vmem:[%s4518_s6 + $0xa] sm:$0xff]  ;;  %v2047_v22 = vmul.f32 %v2046_v49, %v5487_v55 }
 0x1ad   : > { %v1402_v3 = vpop.permute.xlu1 %1401  ;;  %v2048_v59 = vmul.f32 %v2046_v49, %v5483_v53 }
 0x1ae   : > { %v1400_v60 = vpop.permute.xlu0 %1399  ;;  %v1406_v61 = vadd.f32 %v1402_v3, %v1392_v58  ;;  %v2060_v58 = vstv %s5472_s19  ;;  %s5654_s19 = sld [smem:[#allocation2 + $0xad]] }
 0x1af   : > { %v1405_v18 = vadd.f32 %v1400_v60, %v1391_v16  ;;  %1936 = vrot.lane.b32.xlu1 %v1931_v45, %s4438_s9  ;;  %v1527_v45 = vstv %s5468_s18  ;;  %v1516_v16 = vstv %s5474_s20  ;;  %s5645_s18 = sld [smem:[#allocation2 + $0x81]] }
 0x1b0   : > { %1934 = vrot.lane.b32.xlu0 %v1930_v63, %s4438_s9  ;;  %v1414_v6 = vadd.f32 %v1412_v46, %v1406_v61  ;;  %v1529_v61 = vmul.f32 %v1527_v45, %v5196_v34  ;;  %v5513_v34 = vld [vmem:[%s4518_s6 + $0x18] sm:$0xff]  ;;  %s5660_s20 = sld [smem:[#allocation2 + $0xaf]] }
 0x1b1   : > { %v1413_v19 = vadd.f32 %v1411_v32, %v1405_v18  ;;  %v1424_v9 = vpop.permute.xlu1 %1423  ;;  %v1528_v18 = vmul.f32 %v1527_v45, %v5200_v62  ;;  %v2154_v45 = vstv %s5535_s27  ;;  %s5720_s27 = sld [smem:[#allocation2 + $0x8a]] }
 0x1b2   : > { %v1422_v11 = vpop.permute.xlu0 %1421  ;;  %v1428_v40 = vadd.f32 %v1424_v9, %v1414_v6  ;;  %v1563_v9 = vstv %s5489_s22  ;;  %s5679_s22 = sld [smem:[#allocation2 + $0xb0]] }
 0x1b3   : > { %1950 = vrot.lane.b32.xlu1 %v1945_v56, %s4437_s8  ;;  %v1427_v5 = vadd.f32 %v1422_v11, %v1413_v19  ;;  %v2062_v56 = vmul.f32 %v2060_v58, %v5483_v53 }
 0x1b4   : > { %1948 = vrot.lane.b32.xlu0 %v1944_v33, %s4437_s8  ;;  %v2061_v33 = vmul.f32 %v2060_v58, %v5487_v55 }
 0x1b5   : > { %v1438_v8 = vpop.permute.xlu1 %1437 }
 0x1b6   : > { %v1436_v10 = vpop.permute.xlu0 %1435  ;;  %v1442_v27 = vadd.f32 %v1438_v8, %v1428_v40  ;;  %v2083_v40 = vmul.f32 %v5513_v34, %v2082_v7  ;;  %v1564_v8 = vmul.f32 %v1563_v9, %v5223_v24 }
 0x1b7   : > { %v1441_v29 = vadd.f32 %v1436_v10, %v1427_v5  ;;  %1981 = vrot.lane.b32.xlu1 %v1976_v13, %s4438_s9  ;;  %v1565_v5 = vmul.f32 %v1563_v9, %v5219_v28  ;;  %v2096_v10 = vstv %s5497_s23  ;;  %s5685_s23 = sld [smem:[#allocation2 + $0xb2]] }
 0x1b8   : > { %1979 = vrot.lane.b32.xlu0 %v1975_v15, %s4438_s9  ;;  %v1450_v26 = vadd.f32 %v1448_v17, %v1442_v27  ;;  %v2084_v17 = vmul.f32 %v5509_v1, %v2082_v7  ;;  %v2098_v28 = vmul.f32 %v5509_v1, %v2096_v10 }
 0x1b9   : > { %v1449_v4 = vadd.f32 %v1447_v42, %v1441_v29  ;;  %v1460_v35 = vpop.permute.xlu1 %1459 }
 0x1ba   : > { %v1458_v0 = vpop.permute.xlu0 %1457  ;;  %v1464_v48 = vadd.f32 %v1460_v35, %v1450_v26  ;;  %v2097_v26 = vmul.f32 %v5513_v34, %v2096_v10  ;;  %v5542_v35 = vld [vmem:[%s4518_s6 + $0x19] sm:$0xff] }
 0x1bb   : > { %1995 = vrot.lane.b32.xlu1 %v1990_v21, %s4437_s8  ;;  %v1463_v38 = vadd.f32 %v1458_v0, %v1449_v4  ;;  %v1599_v0 = vstv %s5516_s25  ;;  %s5704_s25 = sld [smem:[#allocation2 + $0xb3]] }
 0x1bc   : > { %1993 = vrot.lane.b32.xlu0 %v1989_v51, %s4437_s8 }
 0x1bd   : > { %v1474_v12 = vpop.permute.xlu1 %1473 }
 0x1be   : > { %v1472_v30 = vpop.permute.xlu0 %1471  ;;  %v1478_v41 = vadd.f32 %v1474_v12, %v1464_v48  ;;  %v2119_v48 = vmul.f32 %v5542_v35, %v2118_v54 }
 0x1bf   : > { %v1477_v31 = vadd.f32 %v1472_v30, %v1463_v38  ;;  %2017 = vrot.lane.b32.xlu1 %v2012_v37, %s4438_s9  ;;  %v4329_v38 = vld [vmem:[%s4518_s6 + $0xa] sm:$0xff]  ;;  %v4330_v30 = vld [vmem:[%s4518_s6 + $0x2] sm:$0xff] }
 0x1c0   : > { %2015 = vrot.lane.b32.xlu0 %v2011_v39, %s4438_s9  ;;  %v1486_v14 = vadd.f32 %v1484_v43, %v1478_v41  ;;  %v2120_v43 = vmul.f32 %v5538_v20, %v2118_v54  ;;  %v1600_v41 = vmul.f32 %v4330_v30, %v1599_v0  ;;  %v2204_v54 = vstv %s5579_s5  ;;  %s5768_s5 = sld [smem:[#allocation2 + $0xbb]] }
 0x1c1   : > { %v1485_v47 = vadd.f32 %v1483_v44, %v1477_v31  ;;  %v1496_v52 = vpop.permute.xlu1 %1495  ;;  %v1601_v44 = vmul.f32 %v4329_v38, %v1599_v0  ;;  %v2132_v31 = vstv %s5529_s26  ;;  %v2226_v30 = vstv %s5585_s7  ;;  %s5710_s26 = sld [smem:[#allocation2 + $0xb5]] }
 0x1c2   : > { %v1494_v57 = vpop.permute.xlu0 %1493  ;;  %v1500_v63 = vadd.f32 %v1496_v52, %v1486_v14  ;;  %v2134_v49 = vmul.f32 %v5538_v20, %v2132_v31  ;;  %v2133_v52 = vmul.f32 %v5542_v35, %v2132_v31  ;;  %v1707_v31 = vstv %s5595_s10  ;;  %s5775_s7 = sld [smem:[#allocation2 + $0x90]] }
 0x1c3   : > { %2031 = vrot.lane.b32.xlu1 %v2026_v36, %s4437_s8  ;;  %v1499_v46 = vadd.f32 %v1494_v57, %v1485_v47  ;;  %s5779_s10 = sld [smem:[#allocation2 + $0xbc]] }
 0x1c4   : > { %2029 = vrot.lane.b32.xlu0 %v2025_v23, %s4437_s8 }
 0x1c5   : > { %v1510_v32 = vpop.permute.xlu1 %1509 }
 0x1c6   : > { %v1508_v25 = vpop.permute.xlu0 %1507  ;;  %v1514_v3 = vadd.f32 %v1510_v32, %v1500_v63  ;;  %v5567_v63 = vld [vmem:[%s4518_s6 + $0x1a] sm:$0xff] }
 0x1c7   : > { %v1513_v60 = vadd.f32 %v1508_v25, %v1499_v46  ;;  %2053 = vrot.lane.b32.xlu1 %v2048_v59, %s4438_s9  ;;  %v1635_v46 = vstv %s5545_s28  ;;  %v2155_v25 = vmul.f32 %v5567_v63, %v2154_v45  ;;  %s5729_s28 = sld [smem:[#allocation2 + $0xb6]] }
 0x1c8   : > { %2051 = vrot.lane.b32.xlu0 %v2047_v22, %s4438_s9  ;;  %v1518_v6 = vadd.f32 %v1516_v16, %v1514_v3  ;;  %v5563_v22 = vld [vmem:[%s4518_s6 + $0x22] sm:$0xff] }
 0x1c9   : > { %v1517_v19 = vadd.f32 %v1516_v16, %v1513_v60  ;;  %v1541_v62 = vpop.permute.xlu1 %1540  ;;  %v2156_v32 = vmul.f32 %v5563_v22, %v2154_v45  ;;  %v4331_v3 = vld [vmem:[%s4518_s6 + $0x20] sm:$0xff] }
 0x1ca   : > { %v1539_v11 = vpop.permute.xlu0 %1538  ;;  %v1520_v13 = vmax.f32 %v1518_v6, 0.0  ;;  %v1545_v42 = vadd.f32 %v1541_v62, %v1529_v61  ;;  %v1637_v60 = vmul.f32 %v4331_v3, %v1635_v46  ;;  %v2168_v6 = vstv %s5554_s29  ;;  %v4336_v45 = vld [vmem:[%s4518_s6 + $0x1a] sm:$0xff]  ;;  %s5735_s29 = sld [smem:[#allocation2 + $0xb8]] }
 0x1cb   : > { %v1519_v15 = vmax.f32 %v1517_v19, 0.0  ;;  %2067 = vrot.lane.b32.xlu1 %v2062_v56, %s4437_s8  ;;  %v1544_v2 = vadd.f32 %v1539_v11, %v1528_v18  ;;  %v4332_v56 = vld [vmem:[%s4518_s6 + $0x18] sm:$0xff]  ;;  %v2170_v11 = vmul.f32 %v5563_v22, %v2168_v6 }
 0x1cc   : > { %2065 = vrot.lane.b32.xlu0 %v2061_v33, %s4437_s8  ;;  %3984 = vst.msk [vmem:[%s4968_s17 + $0x28] sm:$0xff] %vm639_vm0, %v1520_v13  ;;  %v1636_v33 = vmul.f32 %v4332_v56, %v1635_v46  ;;  %v2169_v13 = vmul.f32 %v5567_v63, %v2168_v6  ;;  %v1708_v46 = vmul.f32 %v4336_v45, %v1707_v31  ;;  %v2262_v6 = vstv %s5610_s13  ;;  %s5787_s13 = sld [smem:[#allocation2 + $0xbe]] }
 0x1cd   : > { %3983 = vst.msk [vmem:[%s4968_s17 + $0x20] sm:$0xff] %vm639_vm0, %v1519_v15  ;;  %v1555_v27 = vpop.permute.xlu1 %1554 }
 0x1ce   : > { %v1553_v29 = vpop.permute.xlu0 %1552  ;;  %v1559_v21 = vadd.f32 %v1555_v27, %v1545_v42  ;;  %v5592_v42 = vld [vmem:[%s4518_s6 + $0x30] sm:$0xff] }
 0x1cf   : > { %v1558_v51 = vadd.f32 %v1553_v29, %v1544_v2  ;;  %2089 = vrot.lane.b32.xlu1 %v2084_v17, %s4438_s9  ;;  %v1671_v2 = vstv %s5570_s4  ;;  %v2205_v38 = vmul.f32 %v5592_v42, %v2204_v54  ;;  %s5754_s4 = sld [smem:[#allocation2 + $0xb9]] }
 0x1d0   : > { %2087 = vrot.lane.b32.xlu0 %v2083_v40, %s4438_s9  ;;  %v1567_v24 = vadd.f32 %v1565_v5, %v1559_v21  ;;  %v5588_v40 = vld [vmem:[%s4518_s6 + $0x38] sm:$0xff]  ;;  %v2190_v5 = vstv %s5560_s30  ;;  %v4333_v21 = vld [vmem:[%s4518_s6 + $0x21] sm:$0xff]  ;;  %s5745_s30 = sld [smem:[#allocation2 + $0x8d]] }
 0x1d1   : > { %v1566_v4 = vadd.f32 %v1564_v8, %v1558_v51  ;;  %v1577_v37 = vpop.permute.xlu1 %1576  ;;  %v2192_v27 = vmul.f32 %v5588_v40, %v2190_v5  ;;  %v2191_v29 = vmul.f32 %v5592_v42, %v2190_v5  ;;  %v1673_v51 = vmul.f32 %v4333_v21, %v1671_v2 }
 0x1d2   : > { %v1575_v39 = vpop.permute.xlu0 %1574  ;;  %v1581_v50 = vadd.f32 %v1577_v37, %v1567_v24  ;;  %v4334_v24 = vld [vmem:[%s4518_s6 + $0x19] sm:$0xff] }
 0x1d3   : > { %2103 = vrot.lane.b32.xlu1 %v2098_v28, %s4437_s8  ;;  %v1580_v12 = vadd.f32 %v1575_v39, %v1566_v4  ;;  %v1672_v4 = vmul.f32 %v4334_v24, %v1671_v2 }
 0x1d4   : > { %2101 = vrot.lane.b32.xlu0 %v2097_v26, %s4437_s8 }
 0x1d5   : > { %v1591_v36 = vpop.permute.xlu1 %1590 }
 0x1d6   : > { %v1589_v23 = vpop.permute.xlu0 %1588  ;;  %v1595_v14 = vadd.f32 %v1591_v36, %v1581_v50 }
 0x1d7   : > { %v1594_v47 = vadd.f32 %v1589_v23, %v1580_v12  ;;  %2125 = vrot.lane.b32.xlu1 %v2120_v43, %s4438_s9  ;;  %v5613_v12 = vld [vmem:[%s4518_s6 + $0x39] sm:$0xff] }
 0x1d8   : > { %2123 = vrot.lane.b32.xlu0 %v2119_v48, %s4438_s9  ;;  %v1603_v57 = vadd.f32 %v1601_v44, %v1595_v14  ;;  %v2206_v48 = vmul.f32 %v5588_v40, %v2204_v54  ;;  %v2228_v14 = vmul.f32 %v5613_v12, %v2226_v30 }
 0x1d9   : > { %v1602_v59 = vadd.f32 %v1600_v41, %v1594_v47  ;;  %v1613_v58 = vpop.permute.xlu1 %1612  ;;  %v5617_v41 = vld [vmem:[%s4518_s6 + $0x31] sm:$0xff] }
 0x1da   : > { %v1611_v16 = vpop.permute.xlu0 %1610  ;;  %v1617_v61 = vadd.f32 %v1613_v58, %v1603_v57  ;;  %v2227_v47 = vmul.f32 %v5617_v41, %v2226_v30  ;;  %v2240_v58 = vstv %s5604_s11  ;;  %v4339_v30 = vld [vmem:[%s4518_s6 + $0x39] sm:$0xff]  ;;  %s5781_s11 = sld [smem:[#allocation4 + $0x3]] }
 0x1db   : > { %2139 = vrot.lane.b32.xlu1 %v2134_v49, %s4437_s8  ;;  %v1616_v18 = vadd.f32 %v1611_v16, %v1602_v59  ;;  %v4335_v49 = vld [vmem:[%s4518_s6 + $0x22] sm:$0xff] }
 0x1dc   : > { %2137 = vrot.lane.b32.xlu0 %v2133_v52, %s4437_s8  ;;  %v1709_v52 = vmul.f32 %v4335_v49, %v1707_v31  ;;  %v2312_v49 = vstv %s5654_s19  ;;  %s5824_s19 = sld [smem:[#allocation2 + $0xc2]] }
 0x1dd   : > { %v1627_v19 = vpop.permute.xlu1 %1626 }
 0x1de   : > { %v1625_v7 = vpop.permute.xlu0 %1624  ;;  %v1631_v9 = vadd.f32 %v1627_v19, %v1617_v61  ;;  %v2241_v61 = vmul.f32 %v5617_v41, %v2240_v58  ;;  %v5642_v19 = vld [vmem:[%s4518_s6 + $0x32] sm:$0xff] }
 0x1df   : > { %v1630_v62 = vadd.f32 %v1625_v7, %v1616_v18  ;;  %2161 = vrot.lane.b32.xlu1 %v2156_v32, %s4438_s9  ;;  %v1743_v7 = vstv %s5620_s14  ;;  %s5790_s14 = sld [smem:[#allocation2 + $0x93]] }
 0x1e0   : > { %2159 = vrot.lane.b32.xlu0 %v2155_v25, %s4438_s9  ;;  %v1639_v15 = vadd.f32 %v1637_v60, %v1631_v9  ;;  %v2242_v60 = vmul.f32 %v5613_v12, %v2240_v58 }
 0x1e1   : > { %v1638_v17 = vadd.f32 %v1636_v33, %v1630_v62  ;;  %v1649_v8 = vpop.permute.xlu1 %1648  ;;  %v5638_v33 = vld [vmem:[%s4518_s6 + $0x3a] sm:$0xff] }
 0x1e2   : > { %v1647_v10 = vpop.permute.xlu0 %1646  ;;  %v1653_v28 = vadd.f32 %v1649_v8, %v1639_v15  ;;  %v4337_v15 = vld [vmem:[%s4518_s6 + $0x38] sm:$0xff]  ;;  %v4338_v8 = vld [vmem:[%s4518_s6 + $0x30] sm:$0xff] }
 0x1e3   : > { %2175 = vrot.lane.b32.xlu1 %v2170_v11, %s4437_s8  ;;  %v1652_v26 = vadd.f32 %v1647_v10, %v1638_v17  ;;  %v2264_v11 = vmul.f32 %v5638_v33, %v2262_v6  ;;  %v1745_v17 = vmul.f32 %v4337_v15, %v1743_v7  ;;  %v1744_v10 = vmul.f32 %v4338_v8, %v1743_v7  ;;  %v4342_v15 = vld [vmem:[%s4518_s6 + $0x32] sm:$0xff] }
 0x1e4   : > { %2173 = vrot.lane.b32.xlu0 %v2169_v13, %s4437_s8  ;;  %v2263_v13 = vmul.f32 %v5642_v19, %v2262_v6 }
 0x1e5   : > { %v1663_v0 = vpop.permute.xlu1 %1662 }
 0x1e6   : > { %v1661_v37 = vpop.permute.xlu0 %1660  ;;  %v1667_v39 = vadd.f32 %v1663_v0, %v1653_v28  ;;  %v5663_v0 = vld [vmem:[%s4518_s6 + $0x50] sm:$0xff] }
 0x1e7   : > { %v1666_v43 = vadd.f32 %v1661_v37, %v1652_v26  ;;  %2197 = vrot.lane.b32.xlu1 %v2192_v27, %s4438_s9  ;;  %v2276_v27 = vstv %s5629_s15  ;;  %v2298_v37 = vstv %s5635_s16  ;;  %s5798_s15 = sld [smem:[#allocation2 + $0xbf]] }
 0x1e8   : > { %2195 = vrot.lane.b32.xlu0 %v2191_v29, %s4438_s9  ;;  %v1675_v44 = vadd.f32 %v1673_v51, %v1667_v39  ;;  %v2278_v26 = vmul.f32 %v5638_v33, %v2276_v27  ;;  %v2277_v24 = vmul.f32 %v5642_v19, %v2276_v27  ;;  %v5667_v39 = vld [vmem:[%s4518_s6 + $0x48] sm:$0xff]  ;;  %s5807_s16 = sld [smem:[#allocation2 + $0xc1]] }
 0x1e9   : > { %v1674_v50 = vadd.f32 %v1672_v4, %v1666_v43  ;;  %v1685_v36 = vpop.permute.xlu1 %1684  ;;  %v1779_v43 = vstv %s5645_s18  ;;  %v2313_v58 = vmul.f32 %v5667_v39, %v2312_v49  ;;  %s5811_s18 = sld [smem:[#allocation2 + $0x96]] }
 0x1ea   : > { %v1683_v23 = vpop.permute.xlu0 %1682  ;;  %v1689_v57 = vadd.f32 %v1685_v36, %v1675_v44  ;;  %v2300_v44 = vmul.f32 %v5663_v0, %v2298_v37  ;;  %v1781_v31 = vmul.f32 %v4339_v30, %v1779_v43 }
 0x1eb   : > { %2211 = vrot.lane.b32.xlu1 %v2206_v48, %s4437_s8  ;;  %v1688_v59 = vadd.f32 %v1683_v23, %v1674_v50  ;;  %v2299_v50 = vmul.f32 %v5667_v39, %v2298_v37 }
 0x1ec   : > { %2209 = vrot.lane.b32.xlu0 %v2205_v38, %s4437_s8 }
 0x1ed   : > { %v1699_v16 = vpop.permute.xlu1 %1698 }
 0x1ee   : > { %v1697_v32 = vpop.permute.xlu0 %1696  ;;  %v1703_v25 = vadd.f32 %v1699_v16, %v1689_v57 }
 0x1ef   : > { %v1702_v3 = vadd.f32 %v1697_v32, %v1688_v59  ;;  %2233 = vrot.lane.b32.xlu1 %v2228_v14, %s4438_s9  ;;  %v4340_v14 = vld [vmem:[%s4518_s6 + $0x31] sm:$0xff] }
 0x1f0   : > { %2231 = vrot.lane.b32.xlu0 %v2227_v47, %s4438_s9  ;;  %v1711_v18 = vadd.f32 %v1709_v52, %v1703_v25  ;;  %v1780_v47 = vmul.f32 %v4340_v14, %v1779_v43  ;;  %v5688_v25 = vld [vmem:[%s4518_s6 + $0x51] sm:$0xff]  ;;  %v2384_v14 = vstv %s5704_s25  ;;  %s5862_s25 = sld [smem:[#allocation2 + $0xc8]] }
 0x1f1   : > { %v1710_v56 = vadd.f32 %v1708_v46, %v1702_v3  ;;  %v1721_v9 = vpop.permute.xlu1 %1720  ;;  %v2314_v46 = vmul.f32 %v5663_v0, %v2312_v49  ;;  %v2334_v3 = vstv %s5660_s20  ;;  %s5830_s20 = sld [smem:[#allocation2 + $0xc4]] }
 0x1f2   : > { %v1719_v62 = vpop.permute.xlu0 %1718  ;;  %v1725_v5 = vadd.f32 %v1721_v9, %v1711_v18  ;;  %v2336_v6 = vmul.f32 %v5688_v25, %v2334_v3  ;;  %v4341_v9 = vld [vmem:[%s4518_s6 + $0x3a] sm:$0xff] }
 0x1f3   : > { %2247 = vrot.lane.b32.xlu1 %v2242_v60, %s4437_s8  ;;  %v1724_v2 = vadd.f32 %v1719_v62, %v1710_v56  ;;  %v5692_v60 = vld [vmem:[%s4518_s6 + $0x49] sm:$0xff] }
 0x1f4   : > { %2245 = vrot.lane.b32.xlu0 %v2241_v61, %s4437_s8  ;;  %v1815_v61 = vstv %s5670_s21  ;;  %v2335_v7 = vmul.f32 %v5692_v60, %v2334_v3  ;;  %v5742_v3 = vld [vmem:[%s4518_s6] sm:$0xff]  ;;  %s5834_s21 = sld [smem:[#allocation2 + $0x99]] }
 0x1f5   : > { %v1735_v29 = vpop.permute.xlu1 %1734  ;;  %v1817_v62 = vmul.f32 %v4341_v9, %v1815_v61  ;;  %v4345_v9 = vld [vmem:[%s4518_s6 + $0x51] sm:$0xff] }
 0x1f6   : > { %v1733_v21 = vpop.permute.xlu0 %1732  ;;  %v1739_v51 = vadd.f32 %v1735_v29, %v1725_v5  ;;  %v2348_v5 = vstv %s5679_s22  ;;  %s5843_s22 = sld [smem:[#allocation2 + $0xc5]] }
 0x1f7   : > { %v1738_v28 = vadd.f32 %v1733_v21, %v1724_v2  ;;  %2269 = vrot.lane.b32.xlu1 %v2264_v11, %s4438_s9  ;;  %v2350_v29 = vmul.f32 %v5688_v25, %v2348_v5  ;;  %v2349_v21 = vmul.f32 %v5692_v60, %v2348_v5  ;;  %v2429_v5 = vstv %s5729_s28  ;;  %s5881_s28 = sld [smem:[#allocation2 + $0xcb]] }
 0x1f8   : > { %2267 = vrot.lane.b32.xlu0 %v2263_v13, %s4438_s9  ;;  %v1747_v4 = vadd.f32 %v1745_v17, %v1739_v51  ;;  %v1816_v17 = vmul.f32 %v4342_v15, %v1815_v61  ;;  %v1887_v61 = vstv %s5720_s27  ;;  %v4346_v15 = vld [vmem:[%s4518_s6 + $0x49] sm:$0xff]  ;;  %s5872_s27 = sld [smem:[#allocation2 + $0x9f]] }
 0x1f9   : > { %v1746_v54 = vadd.f32 %v1744_v10, %v1738_v28  ;;  %v1757_v48 = vpop.permute.xlu1 %1756 }
 0x1fa   : > { %v1755_v38 = vpop.permute.xlu0 %1754  ;;  %v1761_v36 = vadd.f32 %v1757_v48, %v1747_v4  ;;  %v5717_v4 = vld [vmem:[%s4518_s6 + $0x4a] sm:$0xff] }
 0x1fb   : > { %2283 = vrot.lane.b32.xlu1 %v2278_v26, %s4437_s8  ;;  %v1760_v23 = vadd.f32 %v1755_v38, %v1746_v54  ;;  %v5713_v26 = vld [vmem:[%s4518_s6 + $0x52] sm:$0xff]  ;;  %v1851_v54 = vstv %s5695_s24  ;;  %s5853_s24 = sld [smem:[#allocation2 + $0x9c]] }
 0x1fc   : > { %2281 = vrot.lane.b32.xlu0 %v2277_v24, %s4437_s8  ;;  %v2370_v24 = vstv %s5685_s23  ;;  %s5849_s23 = sld [smem:[#allocation2 + $0xc7]] }
 0x1fd   : > { %v1771_v52 = vpop.permute.xlu1 %1770  ;;  %v2372_v48 = vmul.f32 %v5713_v26, %v2370_v24  ;;  %v2371_v38 = vmul.f32 %v5717_v4, %v2370_v24  ;;  %v5761_v24 = vld [vmem:[%s4518_s6 + $0x9] sm:$0xff] }
 0x1fe   : > { %v1769_v57 = vpop.permute.xlu0 %1768  ;;  %v1775_v59 = vadd.f32 %v1771_v52, %v1761_v36  ;;  %v4344_v36 = vld [vmem:[%s4518_s6 + $0x48] sm:$0xff] }
 0x1ff   : > { %v1774_v45 = vadd.f32 %v1769_v57, %v1760_v23  ;;  %2305 = vrot.lane.b32.xlu1 %v2300_v44, %s4438_s9  ;;  %v4343_v44 = vld [vmem:[%s4518_s6 + $0x50] sm:$0xff]  ;;  %v1852_v23 = vmul.f32 %v4344_v36, %v1851_v54 }
 0x200   : > { %2303 = vrot.lane.b32.xlu0 %v2299_v50, %s4438_s9  ;;  %v1783_v16 = vadd.f32 %v1781_v31, %v1775_v59  ;;  %v1853_v50 = vmul.f32 %v4343_v44, %v1851_v54  ;;  %v2386_v59 = vmul.f32 %v5713_v26, %v2384_v14  ;;  %v2451_v54 = vstv %s5735_s29  ;;  %s5887_s29 = sld [smem:[#allocation2 + $0xcd]] }
 0x201   : > { %v1782_v32 = vadd.f32 %v1780_v47, %v1774_v45  ;;  %v1793_v18 = vpop.permute.xlu1 %1792  ;;  %v2385_v45 = vmul.f32 %v5717_v4, %v2384_v14  ;;  %v2453_v44 = vmul.f32 %v2451_v54, %v5761_v24  ;;  %v4348_v14 = vld [vmem:[%s4518_s6 + $0x4a] sm:$0xff] }
 0x202   : > { %v1791_v56 = vpop.permute.xlu0 %1790  ;;  %v1797_v11 = vadd.f32 %v1793_v18, %v1783_v16  ;;  %v5738_v16 = vld [vmem:[%s4518_s6 + $0x8] sm:$0xff] }
 0x203   : > { %2319 = vrot.lane.b32.xlu1 %v2314_v46, %s4437_s8  ;;  %v1796_v13 = vadd.f32 %v1791_v56, %v1782_v32  ;;  %v2415_v32 = vstv %s5710_s26  ;;  %s5868_s26 = sld [smem:[#allocation2 + $0xca]] }
 0x204   : > { %2317 = vrot.lane.b32.xlu0 %v2313_v58, %s4437_s8 }
 0x205   : > { %v1807_v2 = vpop.permute.xlu1 %1806 }
 0x206   : > { %v1805_v8 = vpop.permute.xlu0 %1804  ;;  %v1811_v10 = vadd.f32 %v1807_v2, %v1797_v11 }
 0x207   : > { %v1810_v27 = vadd.f32 %v1805_v8, %v1796_v13  ;;  %2341 = vrot.lane.b32.xlu1 %v2336_v6, %s4438_s9  ;;  %v2417_v6 = vmul.f32 %v2415_v32, %v5738_v16 }
 0x208   : > { %2339 = vrot.lane.b32.xlu0 %v2335_v7, %s4438_s9  ;;  %v1819_v51 = vadd.f32 %v1817_v62, %v1811_v10  ;;  %v2416_v7 = vmul.f32 %v2415_v32, %v5742_v3  ;;  %v1889_v62 = vmul.f32 %v4345_v9, %v1887_v61 }
 0x209   : > { %v1818_v28 = vadd.f32 %v1816_v17, %v1810_v27  ;;  %v1829_v37 = vpop.permute.xlu1 %1828  ;;  %v1888_v17 = vmul.f32 %v4346_v15, %v1887_v61  ;;  %v2501_v15 = vstv %s5779_s10  ;;  %s5919_s10 = sld [smem:[#allocation2 + $0xd1]] }
 0x20a   : > { %v1827_v43 = vpop.permute.xlu0 %1826  ;;  %v1833_v30 = vadd.f32 %v1829_v37, %v1819_v51  ;;  %v5765_v37 = vld [vmem:[%s4518_s6 + $0x1] sm:$0xff] }
 0x20b   : > { %2355 = vrot.lane.b32.xlu1 %v2350_v29, %s4437_s8  ;;  %v1832_v31 = vadd.f32 %v1827_v43, %v1818_v28  ;;  %v2431_v29 = vmul.f32 %v2429_v5, %v5738_v16  ;;  %v1923_v43 = vstv %s5745_s30  ;;  %s5891_s30 = sld [smem:[#allocation2 + $0xa2]] }
 0x20c   : > { %2353 = vrot.lane.b32.xlu0 %v2349_v21, %s4437_s8  ;;  %v2430_v21 = vmul.f32 %v2429_v5, %v5742_v3 }
 0x20d   : > { %v1843_v47 = vpop.permute.xlu1 %1842 }
 0x20e   : > { %v1841_v49 = vpop.permute.xlu0 %1840  ;;  %v1847_v52 = vadd.f32 %v1843_v47, %v1833_v30  ;;  %v4347_v30 = vld [vmem:[%s4518_s6 + $0x52] sm:$0xff]  ;;  %v1924_v47 = vmul.f32 %v4348_v14, %v1923_v43 }
 0x20f   : > { %v1846_v57 = vadd.f32 %v1841_v49, %v1832_v31  ;;  %2377 = vrot.lane.b32.xlu1 %v2372_v48, %s4438_s9  ;;  %v1925_v31 = vmul.f32 %v4347_v30, %v1923_v43  ;;  %v2465_v49 = vstv %s5754_s4  ;;  %s5900_s4 = sld [smem:[#allocation2 + $0xce]] }
 0x210   : > { %2375 = vrot.lane.b32.xlu0 %v2371_v38, %s4438_s9  ;;  %v1855_v46 = vadd.f32 %v1853_v50, %v1847_v52  ;;  %v2452_v50 = vmul.f32 %v2451_v54, %v5765_v37  ;;  %v2502_v54 = vmul.f32 %v2501_v15, %v5487_v55 }
 0x211   : > { %v1854_v58 = vadd.f32 %v1852_v23, %v1846_v57  ;;  %v1865_v18 = vpop.permute.xlu1 %1864 }
 0x212   : > { %v1863_v56 = vpop.permute.xlu0 %1862  ;;  %v1869_v11 = vadd.f32 %v1865_v18, %v1855_v46  ;;  %v2467_v46 = vmul.f32 %v2465_v49, %v5761_v24  ;;  %v2487_v18 = vstv %s5768_s5  ;;  %s5906_s5 = sld [smem:[#allocation2 + $0xd0]] }
 0x213   : > { %2391 = vrot.lane.b32.xlu1 %v2386_v59, %s4437_s8  ;;  %v1868_v13 = vadd.f32 %v1863_v56, %v1854_v58  ;;  %v2466_v58 = vmul.f32 %v2465_v49, %v5765_v37  ;;  %v2488_v9 = vmul.f32 %v2487_v18, %v5487_v55 }
 0x214   : > { %2389 = vrot.lane.b32.xlu0 %v2385_v45, %s4437_s8 }
 0x215   : > { %v1879_v2 = vpop.permute.xlu1 %1878 }
 0x216   : > { %v1877_v8 = vpop.permute.xlu0 %1876  ;;  %v1883_v10 = vadd.f32 %v1879_v2, %v1869_v11 }
 0x217   : > { %v1882_v27 = vadd.f32 %v1877_v8, %v1868_v13  ;;  %2422 = vrot.lane.b32.xlu1 %v2417_v6, %s4438_s9 }
 0x218   : > { %2420 = vrot.lane.b32.xlu0 %v2416_v7, %s4438_s9  ;;  %v1891_v51 = vadd.f32 %v1889_v62, %v1883_v10  ;;  %v2489_v7 = vmul.f32 %v2487_v18, %v5483_v53  ;;  %v1968_v62 = vstv %s5775_s7  ;;  %s5910_s7 = sld [smem:[#allocation2 + $0xa5]] }
 0x219   : > { %v1890_v28 = vadd.f32 %v1888_v17, %v1882_v27  ;;  %v1901_v48 = vpop.permute.xlu1 %1900  ;;  %v1957_v17 = vstv %s5781_s11  ;;  %v4349_v27 = vld [vmem:[%s4518_s6 + $0x8] sm:$0xff]  ;;  %s5925_s11 = sld [smem:[#allocation2 + $0xd3]] }
 0x21a   : > { %v1899_v38 = vpop.permute.xlu0 %1898  ;;  %v1905_v36 = vadd.f32 %v1901_v48, %v1891_v51 }
 0x21b   : > { %2436 = vrot.lane.b32.xlu1 %v2431_v29, %s4437_s8  ;;  %v1904_v23 = vadd.f32 %v1899_v38, %v1890_v28  ;;  %v1970_v29 = vmul.f32 %v4349_v27, %v1968_v62  ;;  %v2503_v28 = vmul.f32 %v2501_v15, %v5483_v53  ;;  %v2523_v38 = vstv %s5787_s13  ;;  %s5929_s13 = sld [smem:[#allocation2 + $0xa8]] }
 0x21c   : > { %2434 = vrot.lane.b32.xlu0 %v2430_v21, %s4437_s8  ;;  %v4350_v21 = vld [vmem:[%s4518_s6] sm:$0xff]  ;;  %v2524_v14 = vmul.f32 %v5513_v34, %v2523_v38 }
 0x21d   : > { %v1915_v52 = vpop.permute.xlu1 %1914  ;;  %v1969_v51 = vmul.f32 %v4350_v21, %v1968_v62  ;;  %v2559_v62 = vstv %s5807_s16  ;;  %s5948_s16 = sld [smem:[#allocation2 + $0xab]] }
 0x21e   : > { %v1913_v57 = vpop.permute.xlu0 %1912  ;;  %v1919_v59 = vadd.f32 %v1915_v52, %v1905_v36 }
 0x21f   : > { %v1918_v45 = vadd.f32 %v1913_v57, %v1904_v23  ;;  %2458 = vrot.lane.b32.xlu1 %v2453_v44, %s4438_s9  ;;  %v2004_v44 = vstv %s5790_s14  ;;  %v2525_v23 = vmul.f32 %v5509_v1, %v2523_v38  ;;  %v2595_v38 = vstv %s5830_s20  ;;  %s5938_s14 = sld [smem:[#allocation2 + $0xd4]] }
 0x220   : > { %2456 = vrot.lane.b32.xlu0 %v2452_v50, %s4438_s9  ;;  %v1927_v32 = vadd.f32 %v1925_v31, %v1919_v59  ;;  %v4352_v59 = vld [vmem:[%s4518_s6 + $0x1] sm:$0xff]  ;;  %s5967_s20 = sld [smem:[#allocation2 + $0xae]] }
 0x221   : > { %v1926_v61 = vadd.f32 %v1924_v47, %v1918_v45  ;;  %v1937_v56 = vpop.permute.xlu1 %1936  ;;  %v4351_v47 = vld [vmem:[%s4518_s6 + $0x9] sm:$0xff]  ;;  %v2005_v45 = vmul.f32 %v4352_v59, %v2004_v44 }
 0x222   : > { %v1935_v6 = vpop.permute.xlu0 %1934  ;;  %v1941_v11 = vadd.f32 %v1937_v56, %v1927_v32  ;;  %v2006_v49 = vmul.f32 %v4351_v47, %v2004_v44  ;;  %v2076_v44 = vstv %s5834_s21  ;;  %s5976_s21 = sld [smem:[#allocation2 + $0xda]] }
 0x223   : > { %2472 = vrot.lane.b32.xlu1 %v2467_v46, %s4437_s8  ;;  %v1940_v13 = vadd.f32 %v1935_v6, %v1926_v61  ;;  %v2537_v46 = vstv %s5798_s15  ;;  %s5944_s15 = sld [smem:[#allocation2 + $0xd6]] }
 0x224   : > { %2470 = vrot.lane.b32.xlu0 %v2466_v58, %s4437_s8  ;;  %v2539_v56 = vmul.f32 %v5509_v1, %v2537_v46  ;;  %v2538_v6 = vmul.f32 %v5513_v34, %v2537_v46 }
 0x225   : > { %v1951_v5 = vpop.permute.xlu1 %1950 }
 0x226   : > { %v1949_v2 = vpop.permute.xlu0 %1948  ;;  %v1955_v8 = vadd.f32 %v1951_v5, %v1941_v11  ;;  %v2040_v11 = vstv %s5811_s18  ;;  %v2560_v5 = vmul.f32 %v5542_v35, %v2559_v62  ;;  %s5957_s18 = sld [smem:[#allocation2 + $0xd7]] }
 0x227   : > { %v1954_v10 = vadd.f32 %v1949_v2, %v1940_v13  ;;  %2494 = vrot.lane.b32.xlu1 %v2489_v7, %s4438_s9  ;;  %v2042_v2 = vmul.f32 %v2040_v11, %v5483_v53  ;;  %v2041_v27 = vmul.f32 %v2040_v11, %v5487_v55 }
 0x228   : > { %2492 = vrot.lane.b32.xlu0 %v2488_v9, %s4438_s9  ;;  %v1959_v43 = vadd.f32 %v1957_v17, %v1955_v8 }
 0x229   : > { %v1958_v48 = vadd.f32 %v1957_v17, %v1954_v10  ;;  %v1982_v50 = vpop.permute.xlu1 %1981  ;;  %v2561_v17 = vmul.f32 %v5538_v20, %v2559_v62 }
 0x22a   : > { %v1980_v30 = vpop.permute.xlu0 %1979  ;;  %v1961_v31 = vmax.f32 %v1959_v43, 0.0  ;;  %v1986_v52 = vadd.f32 %v1982_v50, %v1970_v29  ;;  %v2573_v29 = vstv %s5824_s19  ;;  %s5963_s19 = sld [smem:[#allocation2 + $0xd9]] }
 0x22b   : > { %v1960_v36 = vmax.f32 %v1958_v48, 0.0  ;;  %2508 = vrot.lane.b32.xlu1 %v2503_v28, %s4437_s8  ;;  %v1985_v57 = vadd.f32 %v1980_v30, %v1969_v51  ;;  %v2575_v43 = vmul.f32 %v5538_v20, %v2573_v29  ;;  %v2574_v53 = vmul.f32 %v5542_v35, %v2573_v29 }
 0x22c   : > { %2506 = vrot.lane.b32.xlu0 %v2502_v54, %s4437_s8  ;;  %4041 = vst.msk [vmem:[%s4968_s17 + $0x38] sm:$0xff] %vm639_vm0, %v1961_v31  ;;  %v2597_v31 = vmul.f32 %v5563_v22, %v2595_v38 }
 0x22d   : > { %4040 = vst.msk [vmem:[%s4968_s17 + $0x30] sm:$0xff] %vm639_vm0, %v1960_v36  ;;  %v1996_v58 = vpop.permute.xlu1 %1995  ;;  %v2596_v36 = vmul.f32 %v5567_v63, %v2595_v38 }
 0x22e   : > { %v1994_v32 = vpop.permute.xlu0 %1993  ;;  %v2000_v61 = vadd.f32 %v1996_v58, %v1986_v52  ;;  %v2609_v52 = vstv %s5843_s22  ;;  %s5982_s22 = sld [smem:[#allocation2 + $0xdc]] }
 0x22f   : > { %v1999_v18 = vadd.f32 %v1994_v32, %v1985_v57  ;;  %2530 = vrot.lane.b32.xlu1 %v2525_v23, %s4438_s9  ;;  %v2078_v23 = vmul.f32 %v5509_v1, %v2076_v44  ;;  %v2611_v58 = vmul.f32 %v5563_v22, %v2609_v52  ;;  %v2610_v1 = vmul.f32 %v5567_v63, %v2609_v52 }
 0x230   : > { %2528 = vrot.lane.b32.xlu0 %v2524_v14, %s4438_s9  ;;  %v2008_v7 = vadd.f32 %v2006_v49, %v2000_v61  ;;  %v2077_v49 = vmul.f32 %v5513_v34, %v2076_v44  ;;  %v2631_v61 = vstv %s5849_s23  ;;  %v2184_v52 = vstv %s5891_s30  ;;  %s5986_s23 = sld [smem:[#allocation2 + $0xb1]] }
 0x231   : > { %v2007_v9 = vadd.f32 %v2005_v45, %v1999_v18  ;;  %v2018_v13 = vpop.permute.xlu1 %2017  ;;  %v2112_v18 = vstv %s5853_s24  ;;  %s5995_s24 = sld [smem:[#allocation2 + $0xdd]] }
 0x232   : > { %v2016_v15 = vpop.permute.xlu0 %2015  ;;  %v2022_v8 = vadd.f32 %v2018_v13, %v2008_v7  ;;  %v2633_v7 = vmul.f32 %v5588_v40, %v2631_v61  ;;  %v2114_v62 = vmul.f32 %v5538_v20, %v2112_v18  ;;  %s6031_s30 = sld [smem:[#allocation2 + $0xb7]] }
 0x233   : > { %2544 = vrot.lane.b32.xlu1 %v2539_v56, %s4437_s8  ;;  %v2021_v10 = vadd.f32 %v2016_v15, %v2007_v9  ;;  %v2632_v9 = vmul.f32 %v5592_v42, %v2631_v61  ;;  %v2113_v15 = vmul.f32 %v5542_v35, %v2112_v18  ;;  %v2717_v61 = vstv %s5900_s4  ;;  %s6039_s4 = sld [smem:[#allocation2 + $0xe3]] }
 0x234   : > { %2542 = vrot.lane.b32.xlu0 %v2538_v6, %s4437_s8 }
 0x235   : > { %v2032_v21 = vpop.permute.xlu1 %2031 }
 0x236   : > { %v2030_v51 = vpop.permute.xlu0 %2029  ;;  %v2036_v28 = vadd.f32 %v2032_v21, %v2022_v8  ;;  %v2667_v21 = vstv %s5868_s26  ;;  %s6010_s26 = sld [smem:[#allocation2 + $0xb4]] }
 0x237   : > { %v2035_v54 = vadd.f32 %v2030_v51, %v2021_v10  ;;  %2566 = vrot.lane.b32.xlu1 %v2561_v17, %s4438_s9  ;;  %v2645_v17 = vstv %s5862_s25  ;;  %v2148_v51 = vstv %s5872_s27  ;;  %s6003_s25 = sld [smem:[#allocation2 + $0xdf]] }
 0x238   : > { %2564 = vrot.lane.b32.xlu0 %v2560_v5, %s4438_s9  ;;  %v2044_v48 = vadd.f32 %v2042_v2, %v2036_v28  ;;  %v2646_v20 = vmul.f32 %v5592_v42, %v2645_v17  ;;  %v2149_v44 = vmul.f32 %v5567_v63, %v2148_v51  ;;  %s6014_s27 = sld [smem:[#allocation2 + $0xe0]] }
 0x239   : > { %v2043_v55 = vadd.f32 %v2041_v27, %v2035_v54  ;;  %v2054_v50 = vpop.permute.xlu1 %2053  ;;  %v2647_v27 = vmul.f32 %v5588_v40, %v2645_v17 }
 0x23a   : > { %v2052_v30 = vpop.permute.xlu0 %2051  ;;  %v2058_v14 = vadd.f32 %v2054_v50, %v2044_v48  ;;  %v2150_v48 = vmul.f32 %v5563_v22, %v2148_v51  ;;  %v2681_v50 = vstv %s5881_s28  ;;  %s6016_s28 = sld [smem:[#allocation4 + $0x4]] }
 0x23b   : > { %2580 = vrot.lane.b32.xlu1 %v2575_v43, %s4437_s8  ;;  %v2057_v47 = vadd.f32 %v2052_v30, %v2043_v55  ;;  %v2669_v43 = vmul.f32 %v5613_v12, %v2667_v21  ;;  %v2682_v22 = vmul.f32 %v5617_v41, %v2681_v50 }
 0x23c   : > { %2578 = vrot.lane.b32.xlu0 %v2574_v53, %s4437_s8  ;;  %v2668_v53 = vmul.f32 %v5617_v41, %v2667_v21 }
 0x23d   : > { %v2068_v57 = vpop.permute.xlu1 %2067 }
 0x23e   : > { %v2066_v59 = vpop.permute.xlu0 %2065  ;;  %v2072_v45 = vadd.f32 %v2068_v57, %v2058_v14  ;;  %v2683_v14 = vmul.f32 %v5613_v12, %v2681_v50 }
 0x23f   : > { %v2071_v46 = vadd.f32 %v2066_v59, %v2057_v47  ;;  %2602 = vrot.lane.b32.xlu1 %v2597_v31, %s4438_s9 }
 0x240   : > { %2600 = vrot.lane.b32.xlu0 %v2596_v36, %s4438_s9  ;;  %v2080_v32 = vadd.f32 %v2078_v23, %v2072_v45 }
 0x241   : > { %v2079_v34 = vadd.f32 %v2077_v49, %v2071_v46  ;;  %v2090_v56 = vpop.permute.xlu1 %2089  ;;  %v2703_v49 = vstv %s5887_s29  ;;  %s6022_s29 = sld [smem:[#allocation2 + $0xe2]] }
 0x242   : > { %v2088_v6 = vpop.permute.xlu0 %2087  ;;  %v2094_v11 = vadd.f32 %v2090_v56, %v2080_v32  ;;  %v2705_v45 = vmul.f32 %v5638_v33, %v2703_v49  ;;  %v2704_v46 = vmul.f32 %v5642_v19, %v2703_v49 }
 0x243   : > { %2616 = vrot.lane.b32.xlu1 %v2611_v58, %s4437_s8  ;;  %v2093_v13 = vadd.f32 %v2088_v6, %v2079_v34  ;;  %v2186_v58 = vmul.f32 %v5588_v40, %v2184_v52  ;;  %v2185_v34 = vmul.f32 %v5592_v42, %v2184_v52  ;;  %v2718_v40 = vmul.f32 %v5642_v19, %v2717_v61 }
 0x244   : > { %2614 = vrot.lane.b32.xlu0 %v2610_v1, %s4437_s8 }
 0x245   : > { %v2104_v5 = vpop.permute.xlu1 %2103 }
 0x246   : > { %v2102_v2 = vpop.permute.xlu0 %2101  ;;  %v2108_v8 = vadd.f32 %v2104_v5, %v2094_v11  ;;  %v2739_v11 = vstv %s5906_s5  ;;  %s6048_s5 = sld [smem:[#allocation2 + $0xe5]] }
 0x247   : > { %v2107_v10 = vadd.f32 %v2102_v2, %v2093_v13  ;;  %2638 = vrot.lane.b32.xlu1 %v2633_v7, %s4438_s9  ;;  %v2220_v13 = vstv %s5910_s7  ;;  %v2741_v5 = vmul.f32 %v5663_v0, %v2739_v11  ;;  %v2740_v2 = vmul.f32 %v5667_v39, %v2739_v11  ;;  %s6058_s7 = sld [smem:[#allocation2 + $0xba]] }
 0x248   : > { %2636 = vrot.lane.b32.xlu0 %v2632_v9, %s4438_s9  ;;  %v2116_v29 = vadd.f32 %v2114_v62, %v2108_v8  ;;  %v2719_v9 = vmul.f32 %v5638_v33, %v2717_v61  ;;  %v2222_v8 = vmul.f32 %v5613_v12, %v2220_v13 }
 0x249   : > { %v2115_v35 = vadd.f32 %v2113_v15, %v2107_v10  ;;  %v2126_v28 = vpop.permute.xlu1 %2125 }
 0x24a   : > { %v2124_v54 = vpop.permute.xlu0 %2123  ;;  %v2130_v55 = vadd.f32 %v2126_v28, %v2116_v29  ;;  %v2753_v29 = vstv %s5919_s10  ;;  %s6071_s10 = sld [smem:[#allocation2 + $0xe6]] }
 0x24b   : > { %2652 = vrot.lane.b32.xlu1 %v2647_v27, %s4437_s8  ;;  %v2129_v38 = vadd.f32 %v2124_v54, %v2115_v35  ;;  %v2755_v54 = vmul.f32 %v5663_v0, %v2753_v29  ;;  %v2754_v12 = vmul.f32 %v5667_v39, %v2753_v29 }
 0x24c   : > { %2650 = vrot.lane.b32.xlu0 %v2646_v20, %s4437_s8  ;;  %v2221_v20 = vmul.f32 %v5617_v41, %v2220_v13  ;;  %v2856_v13 = vstv %s5963_s19  ;;  %s6127_s19 = sld [smem:[#allocation2 + $0xee]] }
 0x24d   : > { %v2140_v30 = vpop.permute.xlu1 %2139 }
 0x24e   : > { %v2138_v31 = vpop.permute.xlu0 %2137  ;;  %v2144_v36 = vadd.f32 %v2140_v30, %v2130_v55 }
 0x24f   : > { %v2143_v23 = vadd.f32 %v2138_v31, %v2129_v38  ;;  %2674 = vrot.lane.b32.xlu1 %v2669_v43, %s4438_s9 }
 0x250   : > { %2672 = vrot.lane.b32.xlu0 %v2668_v53, %s4438_s9  ;;  %v2152_v47 = vadd.f32 %v2150_v48, %v2144_v36  ;;  %v2775_v53 = vstv %s5925_s11  ;;  %v2256_v48 = vstv %s5929_s13  ;;  %s6077_s11 = sld [smem:[#allocation2 + $0xe8]] }
 0x251   : > { %v2151_v63 = vadd.f32 %v2149_v44, %v2143_v23  ;;  %v2162_v57 = vpop.permute.xlu1 %2161  ;;  %v2777_v44 = vmul.f32 %v5688_v25, %v2775_v53  ;;  %v2776_v50 = vmul.f32 %v5692_v60, %v2775_v53  ;;  %v2258_v30 = vmul.f32 %v5638_v33, %v2256_v48  ;;  %s6087_s13 = sld [smem:[#allocation2 + $0xbd]] }
 0x252   : > { %v2160_v59 = vpop.permute.xlu0 %2159  ;;  %v2166_v1 = vadd.f32 %v2162_v57, %v2152_v47  ;;  %v2257_v23 = vmul.f32 %v5642_v19, %v2256_v48  ;;  %v2892_v53 = vstv %s5982_s22  ;;  %s6152_s22 = sld [smem:[#allocation2 + $0xfe]] }
 0x253   : > { %2688 = vrot.lane.b32.xlu1 %v2683_v14, %s4437_s8  ;;  %v2165_v32 = vadd.f32 %v2160_v59, %v2151_v63  ;;  %v2789_v14 = vstv %s5938_s14  ;;  %v2811_v59 = vstv %s5944_s15  ;;  %s6096_s14 = sld [smem:[#allocation2 + $0xe9]] }
 0x254   : > { %2686 = vrot.lane.b32.xlu0 %v2682_v22, %s4437_s8  ;;  %v2791_v52 = vmul.f32 %v5688_v25, %v2789_v14  ;;  %v2790_v33 = vmul.f32 %v5692_v60, %v2789_v14  ;;  %s6102_s15 = sld [smem:[#allocation2 + $0xeb]] }
 0x255   : > { %v2176_v18 = vpop.permute.xlu1 %2175 }
 0x256   : > { %v2174_v56 = vpop.permute.xlu0 %2173  ;;  %v2180_v6 = vadd.f32 %v2176_v18, %v2166_v1  ;;  %v2813_v1 = vmul.f32 %v5713_v26, %v2811_v59 }
 0x257   : > { %v2179_v7 = vadd.f32 %v2174_v56, %v2165_v32  ;;  %2710 = vrot.lane.b32.xlu1 %v2705_v45, %s4438_s9  ;;  %v2292_v45 = vstv %s5948_s16  ;;  %v2812_v32 = vmul.f32 %v5717_v4, %v2811_v59  ;;  %s6112_s16 = sld [smem:[#allocation2 + $0xc0]] }
 0x258   : > { %2708 = vrot.lane.b32.xlu0 %v2704_v46, %s4438_s9  ;;  %v2188_v62 = vadd.f32 %v2186_v58, %v2180_v6  ;;  %v2293_v56 = vmul.f32 %v5667_v39, %v2292_v45  ;;  %v2825_v6 = vstv %s5957_s18  ;;  %s6121_s18 = sld [smem:[#allocation2 + $0xec]] }
 0x259   : > { %v2187_v42 = vadd.f32 %v2185_v34, %v2179_v7  ;;  %v2198_v15 = vpop.permute.xlu1 %2197  ;;  %v2294_v34 = vmul.f32 %v5663_v0, %v2292_v45  ;;  %v2826_v0 = vmul.f32 %v5717_v4, %v2825_v6 }
 0x25a   : > { %v2196_v17 = vpop.permute.xlu0 %2195  ;;  %v2202_v10 = vadd.f32 %v2198_v15, %v2188_v62  ;;  %v2328_v15 = vstv %s5967_s20  ;;  %s6137_s20 = sld [smem:[#allocation2 + $0xc3]] }
 0x25b   : > { %2724 = vrot.lane.b32.xlu1 %v2719_v9, %s4437_s8  ;;  %v2201_v27 = vadd.f32 %v2196_v17, %v2187_v42  ;;  %v2827_v42 = vmul.f32 %v5713_v26, %v2825_v6  ;;  %v2329_v29 = vmul.f32 %v5692_v60, %v2328_v15  ;;  %v2364_v60 = vstv %s5986_s23  ;;  %s6162_s23 = sld [smem:[#allocation2 + $0xc6]] }
 0x25c   : > { %2722 = vrot.lane.b32.xlu0 %v2718_v40, %s4437_s8 }
 0x25d   : > { %v2212_v35 = vpop.permute.xlu1 %2211 }
 0x25e   : > { %v2210_v21 = vpop.permute.xlu0 %2209  ;;  %v2216_v51 = vadd.f32 %v2212_v35, %v2202_v10  ;;  %v2330_v10 = vmul.f32 %v5688_v25, %v2328_v15  ;;  %v2870_v35 = vstv %s5976_s21  ;;  %v2964_v15 = vstv %s6022_s29  ;;  %s6146_s21 = sld [smem:[#allocation2 + $0xfd]] }
 0x25f   : > { %v2215_v28 = vadd.f32 %v2210_v21, %v2201_v27  ;;  %2746 = vrot.lane.b32.xlu1 %v2741_v5, %s4438_s9  ;;  %v2871_v25 = vmul.f32 %v2870_v35, %v5742_v3  ;;  %s6212_s29 = sld [smem:[#allocation2 + $0xcc]] }
 0x260   : > { %2744 = vrot.lane.b32.xlu0 %v2740_v2, %s4438_s9  ;;  %v2224_v43 = vadd.f32 %v2222_v8, %v2216_v51  ;;  %v2858_v2 = vmul.f32 %v2856_v13, %v5738_v16  ;;  %v2857_v8 = vmul.f32 %v2856_v13, %v5742_v3  ;;  %v6051_v13 = vld [vmem:[%s4518_s6 + $0x20] sm:$0xff] }
 0x261   : > { %v2223_v41 = vadd.f32 %v2221_v20, %v2215_v28  ;;  %v2234_v55 = vpop.permute.xlu1 %2233 }
 0x262   : > { %v2232_v38 = vpop.permute.xlu0 %2231  ;;  %v2238_v31 = vadd.f32 %v2234_v55, %v2224_v43 }
 0x263   : > { %2760 = vrot.lane.b32.xlu1 %v2755_v54, %s4437_s8  ;;  %v2237_v36 = vadd.f32 %v2232_v38, %v2223_v41  ;;  %v2894_v38 = vmul.f32 %v2892_v53, %v5761_v24 }
 0x264   : > { %2758 = vrot.lane.b32.xlu0 %v2754_v12, %s4437_s8  ;;  %v2872_v12 = vmul.f32 %v2870_v35, %v5738_v16 }
 0x265   : > { %v2248_v22 = vpop.permute.xlu1 %2247 }
 0x266   : > { %v2246_v47 = vpop.permute.xlu0 %2245  ;;  %v2252_v63 = vadd.f32 %v2248_v22, %v2238_v31 }
 0x267   : > { %v2251_v49 = vadd.f32 %v2246_v47, %v2237_v36  ;;  %2782 = vrot.lane.b32.xlu1 %v2777_v44, %s4438_s9  ;;  %v2893_v44 = vmul.f32 %v2892_v53, %v5765_v37  ;;  %v2365_v36 = vmul.f32 %v5717_v4, %v2364_v60  ;;  %v6080_v53 = vld [vmem:[%s4518_s6 + $0x21] sm:$0xff] }
 0x268   : > { %2780 = vrot.lane.b32.xlu0 %v2776_v50, %s4438_s9  ;;  %v2260_v57 = vadd.f32 %v2258_v30, %v2252_v63  ;;  %v2366_v50 = vmul.f32 %v5713_v26, %v2364_v60  ;;  %v3000_v60 = vstv %s6048_s5  ;;  %s6231_s5 = sld [smem:[#allocation2 + $0xcf]] }
 0x269   : > { %v2259_v19 = vadd.f32 %v2257_v23, %v2251_v49  ;;  %v2270_v46 = vpop.permute.xlu1 %2269  ;;  %v2906_v23 = vstv %s5995_s24  ;;  %s6177_s24 = sld [smem:[#allocation2 + $0x100]] }
 0x26a   : > { %v2268_v58 = vpop.permute.xlu0 %2267  ;;  %v2274_v61 = vadd.f32 %v2270_v46, %v2260_v57  ;;  %v2908_v26 = vmul.f32 %v2906_v23, %v5761_v24  ;;  %v2907_v4 = vmul.f32 %v2906_v23, %v5765_v37  ;;  %v2928_v57 = vstv %s6003_s25  ;;  %s6183_s25 = sld [smem:[#allocation2 + $0x101]] }
 0x26b   : > { %2796 = vrot.lane.b32.xlu1 %v2791_v52, %s4437_s8  ;;  %v2273_v18 = vadd.f32 %v2268_v58, %v2259_v19  ;;  %v6029_v19 = vld [vmem:[%s4518_s6 + $0x2] sm:$0xff] }
 0x26c   : > { %2794 = vrot.lane.b32.xlu0 %v2790_v33, %s4437_s8  ;;  %v6025_v33 = vld [vmem:[%s4518_s6 + $0xa] sm:$0xff]  ;;  %v2929_v58 = vmul.f32 %v2928_v57, %v6029_v19 }
 0x26d   : > { %v2284_v7 = vpop.permute.xlu1 %2283  ;;  %v2930_v46 = vmul.f32 %v2928_v57, %v6025_v33 }
 0x26e   : > { %v2282_v9 = vpop.permute.xlu0 %2281  ;;  %v2288_v40 = vadd.f32 %v2284_v7, %v2274_v61  ;;  %v2942_v61 = vstv %s6014_s27  ;;  %s6202_s27 = sld [smem:[#allocation2 + $0x103]] }
 0x26f   : > { %v2287_v62 = vadd.f32 %v2282_v9, %v2273_v18  ;;  %2818 = vrot.lane.b32.xlu1 %v2813_v1, %s4438_s9  ;;  %v2409_v1 = vstv %s6010_s26  ;;  %v2398_v18 = vstv %s6016_s28  ;;  %s6187_s26 = sld [smem:[#allocation2 + $0xc9]] }
 0x270   : > { %2816 = vrot.lane.b32.xlu0 %v2812_v32, %s4438_s9  ;;  %v2296_v11 = vadd.f32 %v2294_v34, %v2288_v40  ;;  %v2411_v40 = vmul.f32 %v2409_v1, %v5738_v16  ;;  %v6055_v16 = vld [vmem:[%s4518_s6 + $0x18] sm:$0xff]  ;;  %s6208_s28 = sld [smem:[#allocation2 + $0x104]] }
 0x271   : > { %v2295_v39 = vadd.f32 %v2293_v56, %v2287_v62  ;;  %v2306_v17 = vpop.permute.xlu1 %2305  ;;  %v2410_v62 = vmul.f32 %v2409_v1, %v5742_v3  ;;  %v3036_v1 = vstv %s6077_s11  ;;  %s6250_s11 = sld [smem:[#allocation2 + $0xd2]] }
 0x272   : > { %v2304_v5 = vpop.permute.xlu0 %2303  ;;  %v2310_v27 = vadd.f32 %v2306_v17, %v2296_v11  ;;  %v2445_v17 = vstv %s6031_s30  ;;  %s6221_s30 = sld [smem:[#allocation2 + $0x106]] }
 0x273   : > { %2832 = vrot.lane.b32.xlu1 %v2827_v42, %s4437_s8  ;;  %v2309_v20 = vadd.f32 %v2304_v5, %v2295_v39  ;;  %v2944_v42 = vmul.f32 %v2942_v61, %v6025_v33 }
 0x274   : > { %2830 = vrot.lane.b32.xlu0 %v2826_v0, %s4437_s8  ;;  %v2943_v0 = vmul.f32 %v2942_v61, %v6029_v19 }
 0x275   : > { %v2320_v21 = vpop.permute.xlu1 %2319 }
 0x276   : > { %v2318_v51 = vpop.permute.xlu0 %2317  ;;  %v2324_v28 = vadd.f32 %v2320_v21, %v2310_v27  ;;  %v2965_v27 = vmul.f32 %v6055_v16, %v2964_v15  ;;  %v2446_v21 = vmul.f32 %v2445_v17, %v5765_v37 }
 0x277   : > { %v2323_v54 = vadd.f32 %v2318_v51, %v2309_v20  ;;  %2863 = vrot.lane.b32.xlu1 %v2858_v2, %s4438_s9  ;;  %v2447_v20 = vmul.f32 %v2445_v17, %v5761_v24  ;;  %v2978_v51 = vstv %s6039_s4  ;;  %s6227_s4 = sld [smem:[#allocation2 + $0x107]] }
 0x278   : > { %2861 = vrot.lane.b32.xlu0 %v2857_v8, %s4438_s9  ;;  %v2332_v43 = vadd.f32 %v2330_v10, %v2324_v28  ;;  %v2966_v10 = vmul.f32 %v6051_v13, %v2964_v15  ;;  %v2980_v24 = vmul.f32 %v6051_v13, %v2978_v51 }
 0x279   : > { %v2331_v41 = vadd.f32 %v2329_v29, %v2323_v54  ;;  %v2342_v48 = vpop.permute.xlu1 %2341 }
 0x27a   : > { %v2340_v55 = vpop.permute.xlu0 %2339  ;;  %v2346_v30 = vadd.f32 %v2342_v48, %v2332_v43  ;;  %v2979_v43 = vmul.f32 %v6055_v16, %v2978_v51  ;;  %v6084_v48 = vld [vmem:[%s4518_s6 + $0x19] sm:$0xff] }
 0x27b   : > { %2877 = vrot.lane.b32.xlu1 %v2872_v12, %s4437_s8  ;;  %v2345_v31 = vadd.f32 %v2340_v55, %v2331_v41  ;;  %v2481_v55 = vstv %s6058_s7  ;;  %s6240_s7 = sld [smem:[#allocation2 + $0x109]] }
 0x27c   : > { %2875 = vrot.lane.b32.xlu0 %v2871_v25, %s4437_s8 }
 0x27d   : > { %v2356_v14 = vpop.permute.xlu1 %2355 }
 0x27e   : > { %v2354_v22 = vpop.permute.xlu0 %2353  ;;  %v2360_v47 = vadd.f32 %v2356_v14, %v2346_v30  ;;  %v3001_v30 = vmul.f32 %v6084_v48, %v3000_v60 }
 0x27f   : > { %v2359_v63 = vadd.f32 %v2354_v22, %v2345_v31  ;;  %2899 = vrot.lane.b32.xlu1 %v2894_v38, %s4438_s9  ;;  %v4353_v31 = vld [vmem:[%s4518_s6 + $0xa] sm:$0xff]  ;;  %v4354_v22 = vld [vmem:[%s4518_s6 + $0x2] sm:$0xff] }
 0x280   : > { %2897 = vrot.lane.b32.xlu0 %v2893_v44, %s4438_s9  ;;  %v2368_v49 = vadd.f32 %v2366_v50, %v2360_v47  ;;  %v3002_v50 = vmul.f32 %v6080_v53, %v3000_v60  ;;  %v2482_v47 = vmul.f32 %v4354_v22, %v2481_v55  ;;  %v3086_v60 = vstv %s6121_s18  ;;  %s6286_s18 = sld [smem:[#allocation2 + $0x110]] }
 0x281   : > { %v2367_v52 = vadd.f32 %v2365_v36, %v2359_v63  ;;  %v2378_v59 = vpop.permute.xlu1 %2377  ;;  %v2483_v36 = vmul.f32 %v4353_v31, %v2481_v55  ;;  %v3014_v63 = vstv %s6071_s10  ;;  %v3108_v22 = vstv %s6127_s19  ;;  %s6246_s10 = sld [smem:[#allocation2 + $0x10a]] }
 0x282   : > { %v2376_v45 = vpop.permute.xlu0 %2375  ;;  %v2382_v32 = vadd.f32 %v2378_v59, %v2368_v49  ;;  %v3016_v57 = vmul.f32 %v6080_v53, %v3014_v63  ;;  %v3015_v59 = vmul.f32 %v6084_v48, %v3014_v63  ;;  %v2589_v63 = vstv %s6137_s20  ;;  %s6293_s19 = sld [smem:[#allocation2 + $0xd8]] }
 0x283   : > { %2913 = vrot.lane.b32.xlu1 %v2908_v26, %s4437_s8  ;;  %v2381_v34 = vadd.f32 %v2376_v45, %v2367_v52  ;;  %s6297_s20 = sld [smem:[#allocation2 + $0x112]] }
 0x284   : > { %2911 = vrot.lane.b32.xlu0 %v2907_v4, %s4437_s8 }
 0x285   : > { %v2392_v56 = vpop.permute.xlu1 %2391 }
 0x286   : > { %v2390_v6 = vpop.permute.xlu0 %2389  ;;  %v2396_v7 = vadd.f32 %v2392_v56, %v2382_v32  ;;  %v6109_v32 = vld [vmem:[%s4518_s6 + $0x1a] sm:$0xff] }
 0x287   : > { %v2395_v9 = vadd.f32 %v2390_v6, %v2381_v34  ;;  %2935 = vrot.lane.b32.xlu1 %v2930_v46, %s4438_s9  ;;  %v2517_v34 = vstv %s6087_s13  ;;  %v3037_v6 = vmul.f32 %v6109_v32, %v3036_v1  ;;  %s6259_s13 = sld [smem:[#allocation2 + $0x10c]] }
 0x288   : > { %2933 = vrot.lane.b32.xlu0 %v2929_v58, %s4438_s9  ;;  %v2400_v11 = vadd.f32 %v2398_v18, %v2396_v7  ;;  %v6105_v58 = vld [vmem:[%s4518_s6 + $0x22] sm:$0xff] }
 0x289   : > { %v2399_v39 = vadd.f32 %v2398_v18, %v2395_v9  ;;  %v2423_v3 = vpop.permute.xlu1 %2422  ;;  %v3038_v56 = vmul.f32 %v6105_v58, %v3036_v1  ;;  %v4355_v7 = vld [vmem:[%s4518_s6 + $0x20] sm:$0xff] }
 0x28a   : > { %v2421_v5 = vpop.permute.xlu0 %2420  ;;  %v2402_v2 = vmax.f32 %v2400_v11, 0.0  ;;  %v2427_v29 = vadd.f32 %v2423_v3, %v2411_v40  ;;  %v2519_v9 = vmul.f32 %v4355_v7, %v2517_v34  ;;  %v3050_v11 = vstv %s6096_s14  ;;  %v4360_v1 = vld [vmem:[%s4518_s6 + $0x1a] sm:$0xff]  ;;  %s6265_s14 = sld [smem:[#allocation2 + $0x10d]] }
 0x28b   : > { %v2401_v8 = vmax.f32 %v2399_v39, 0.0  ;;  %2949 = vrot.lane.b32.xlu1 %v2944_v42, %s4437_s8  ;;  %v2426_v35 = vadd.f32 %v2421_v5, %v2410_v62  ;;  %v4356_v42 = vld [vmem:[%s4518_s6 + $0x18] sm:$0xff]  ;;  %v3052_v5 = vmul.f32 %v6105_v58, %v3050_v11 }
 0x28c   : > { %2947 = vrot.lane.b32.xlu0 %v2943_v0, %s4437_s8  ;;  %4098 = vst.msk [vmem:[%s4968_s17 + $0x48] sm:$0xff] %vm639_vm0, %v2402_v2  ;;  %v2518_v0 = vmul.f32 %v4356_v42, %v2517_v34  ;;  %v3051_v2 = vmul.f32 %v6109_v32, %v3050_v11  ;;  %v2590_v34 = vmul.f32 %v4360_v1, %v2589_v63 }
 0x28d   : > { %4097 = vst.msk [vmem:[%s4968_s17 + $0x40] sm:$0xff] %vm639_vm0, %v2401_v8  ;;  %v2437_v28 = vpop.permute.xlu1 %2436 }
 0x28e   : > { %v2435_v54 = vpop.permute.xlu0 %2434  ;;  %v2441_v12 = vadd.f32 %v2437_v28, %v2427_v29  ;;  %v6134_v29 = vld [vmem:[%s4518_s6 + $0x30] sm:$0xff] }
 0x28f   : > { %v2440_v25 = vadd.f32 %v2435_v54, %v2426_v35  ;;  %2971 = vrot.lane.b32.xlu1 %v2966_v10, %s4438_s9  ;;  %v2553_v35 = vstv %s6112_s16  ;;  %v3087_v31 = vmul.f32 %v6134_v29, %v3086_v60  ;;  %s6278_s16 = sld [smem:[#allocation2 + $0x10f]] }
 0x290   : > { %2969 = vrot.lane.b32.xlu0 %v2965_v27, %s4438_s9  ;;  %v2449_v37 = vadd.f32 %v2447_v20, %v2441_v12  ;;  %v6130_v27 = vld [vmem:[%s4518_s6 + $0x38] sm:$0xff]  ;;  %v3072_v20 = vstv %s6102_s15  ;;  %v4357_v12 = vld [vmem:[%s4518_s6 + $0x21] sm:$0xff]  ;;  %s6269_s15 = sld [smem:[#allocation2 + $0xd5]] }
 0x291   : > { %v2448_v41 = vadd.f32 %v2446_v21, %v2440_v25  ;;  %v2459_v38 = vpop.permute.xlu1 %2458  ;;  %v3074_v28 = vmul.f32 %v6130_v27, %v3072_v20  ;;  %v3073_v54 = vmul.f32 %v6134_v29, %v3072_v20  ;;  %v2555_v25 = vmul.f32 %v4357_v12, %v2553_v35  ;;  %v6200_v12 = vld [vmem:[%s4518_s6 + $0x1] sm:$0xff] }
 0x292   : > { %v2457_v44 = vpop.permute.xlu0 %2456  ;;  %v2463_v23 = vadd.f32 %v2459_v38, %v2449_v37  ;;  %v4358_v37 = vld [vmem:[%s4518_s6 + $0x19] sm:$0xff] }
 0x293   : > { %2985 = vrot.lane.b32.xlu1 %v2980_v24, %s4437_s8  ;;  %v2462_v14 = vadd.f32 %v2457_v44, %v2448_v41  ;;  %v2554_v41 = vmul.f32 %v4358_v37, %v2553_v35 }
 0x294   : > { %2983 = vrot.lane.b32.xlu0 %v2979_v43, %s4437_s8 }
 0x295   : > { %v2473_v26 = vpop.permute.xlu1 %2472 }
 0x296   : > { %v2471_v4 = vpop.permute.xlu0 %2470  ;;  %v2477_v49 = vadd.f32 %v2473_v26, %v2463_v23 }
 0x297   : > { %v2476_v52 = vadd.f32 %v2471_v4, %v2462_v14  ;;  %3007 = vrot.lane.b32.xlu1 %v3002_v50, %s4438_s9  ;;  %v6155_v14 = vld [vmem:[%s4518_s6 + $0x39] sm:$0xff] }
 0x298   : > { %3005 = vrot.lane.b32.xlu0 %v3001_v30, %s4438_s9  ;;  %v2485_v45 = vadd.f32 %v2483_v36, %v2477_v49  ;;  %v3088_v30 = vmul.f32 %v6130_v27, %v3086_v60  ;;  %v3110_v49 = vmul.f32 %v6155_v14, %v3108_v22 }
 0x299   : > { %v2484_v46 = vadd.f32 %v2482_v47, %v2476_v52  ;;  %v2495_v61 = vpop.permute.xlu1 %2494  ;;  %v6159_v47 = vld [vmem:[%s4518_s6 + $0x31] sm:$0xff] }
 0x29a   : > { %v2493_v18 = vpop.permute.xlu0 %2492  ;;  %v2499_v40 = vadd.f32 %v2495_v61, %v2485_v45  ;;  %v3109_v52 = vmul.f32 %v6159_v47, %v3108_v22  ;;  %v6171_v61 = vld [vmem:[%s4518_s6 + $0x8] sm:$0xff]  ;;  %v4363_v22 = vld [vmem:[%s4518_s6 + $0x39] sm:$0xff] }
 0x29b   : > { %3021 = vrot.lane.b32.xlu1 %v3016_v57, %s4437_s8  ;;  %v2498_v62 = vadd.f32 %v2493_v18, %v2484_v46  ;;  %v4359_v57 = vld [vmem:[%s4518_s6 + $0x22] sm:$0xff]  ;;  %v3297_v18 = vstv %s6146_s21  ;;  %s6299_s21 = sld [smem:[#allocation4 + $0x5]] }
 0x29c   : > { %3019 = vrot.lane.b32.xlu0 %v3015_v59, %s4437_s8  ;;  %v2591_v59 = vmul.f32 %v4359_v57, %v2589_v63  ;;  %v3369_v57 = vstv %s6202_s27  ;;  %s6342_s27 = sld [smem:[#allocation2 + $0x115]] }
 0x29d   : > { %v2509_v39 = vpop.permute.xlu1 %2508 }
 0x29e   : > { %v2507_v15 = vpop.permute.xlu0 %2506  ;;  %v2513_v17 = vadd.f32 %v2509_v39, %v2499_v40  ;;  %v3311_v39 = vstv %s6152_s22  ;;  %s6305_s22 = sld [smem:[#allocation2 + $0xef]] }
 0x29f   : > { %v2512_v3 = vadd.f32 %v2507_v15, %v2498_v62  ;;  %3043 = vrot.lane.b32.xlu1 %v3038_v56, %s4438_s9  ;;  %v6175_v56 = vld [vmem:[%s4518_s6] sm:$0xff]  ;;  %v3299_v62 = vmul.f32 %v3297_v18, %v6171_v61  ;;  %v2625_v15 = vstv %s6162_s23  ;;  %s6308_s23 = sld [smem:[#allocation2 + $0xdb]] }
 0x2a0   : > { %3041 = vrot.lane.b32.xlu0 %v3037_v6, %s4438_s9  ;;  %v2521_v8 = vadd.f32 %v2519_v9, %v2513_v17  ;;  %v3298_v42 = vmul.f32 %v3297_v18, %v6175_v56  ;;  %v3370_v18 = vmul.f32 %v3369_v57, %v6029_v19 }
 0x2a1   : > { %v2520_v10 = vadd.f32 %v2518_v0, %v2512_v3  ;;  %v2531_v21 = vpop.permute.xlu1 %2530 }
 0x2a2   : > { %v2529_v51 = vpop.permute.xlu0 %2528  ;;  %v2535_v24 = vadd.f32 %v2531_v21, %v2521_v8  ;;  %v4361_v8 = vld [vmem:[%s4518_s6 + $0x38] sm:$0xff]  ;;  %v4362_v21 = vld [vmem:[%s4518_s6 + $0x30] sm:$0xff] }
 0x2a3   : > { %3057 = vrot.lane.b32.xlu1 %v3052_v5, %s4437_s8  ;;  %v2534_v43 = vadd.f32 %v2529_v51, %v2520_v10  ;;  %v3313_v5 = vmul.f32 %v3311_v39, %v6171_v61  ;;  %v2627_v10 = vmul.f32 %v4361_v8, %v2625_v15  ;;  %v2626_v51 = vmul.f32 %v4362_v21, %v2625_v15 }
 0x2a4   : > { %3055 = vrot.lane.b32.xlu0 %v3051_v2, %s4437_s8  ;;  %v3312_v2 = vmul.f32 %v3311_v39, %v6175_v56  ;;  %v4365_v39 = vld [vmem:[%s4518_s6 + $0x3a] sm:$0xff]  ;;  %v3405_v8 = vstv %s6221_s30  ;;  %s6367_s30 = sld [smem:[#allocation2 + $0x116]] }
 0x2a5   : > { %v2545_v55 = vpop.permute.xlu1 %2544 }
 0x2a6   : > { %v2543_v38 = vpop.permute.xlu0 %2542  ;;  %v2549_v44 = vadd.f32 %v2545_v55, %v2535_v24 }
 0x2a7   : > { %v2548_v50 = vadd.f32 %v2543_v38, %v2534_v43  ;;  %3079 = vrot.lane.b32.xlu1 %v3074_v28, %s4438_s9  ;;  %v6196_v28 = vld [vmem:[%s4518_s6 + $0x9] sm:$0xff] }
 0x2a8   : > { %3077 = vrot.lane.b32.xlu0 %v3073_v54, %s4438_s9  ;;  %v2557_v36 = vadd.f32 %v2555_v25, %v2549_v44  ;;  %v3333_v54 = vstv %s6177_s24  ;;  %v3347_v44 = vstv %s6183_s25  ;;  %s6316_s24 = sld [smem:[#allocation2 + $0x113]] }
 0x2a9   : > { %v2556_v23 = vadd.f32 %v2554_v41, %v2548_v50  ;;  %v2567_v26 = vpop.permute.xlu1 %2566  ;;  %v3335_v41 = vmul.f32 %v3333_v54, %v6196_v28  ;;  %v3334_v60 = vmul.f32 %v3333_v54, %v6200_v12  ;;  %v2661_v50 = vstv %s6187_s26  ;;  %s6327_s25 = sld [smem:[#allocation2 + $0xf1]] }
 0x2aa   : > { %v2565_v4 = vpop.permute.xlu0 %2564  ;;  %v2571_v45 = vadd.f32 %v2567_v26, %v2557_v36  ;;  %v3349_v36 = vmul.f32 %v3347_v44, %v6196_v28  ;;  %v2663_v63 = vmul.f32 %v4363_v22, %v2661_v50  ;;  %v3406_v54 = vmul.f32 %v6055_v16, %v3405_v8  ;;  %s6329_s26 = sld [smem:[#allocation2 + $0xde]] }
 0x2ab   : > { %3093 = vrot.lane.b32.xlu1 %v3088_v30, %s4437_s8  ;;  %v2570_v46 = vadd.f32 %v2565_v4, %v2556_v23  ;;  %v3348_v23 = vmul.f32 %v3347_v44, %v6200_v12  ;;  %v4367_v44 = vld [vmem:[%s4518_s6 + $0x50] sm:$0xff]  ;;  %v3441_v22 = vstv %s6240_s7  ;;  %s6386_s7 = sld [smem:[#allocation2 + $0x118]] }
 0x2ac   : > { %3091 = vrot.lane.b32.xlu0 %v3087_v31, %s4437_s8 }
 0x2ad   : > { %v2581_v6 = vpop.permute.xlu1 %2580 }
 0x2ae   : > { %v2579_v7 = vpop.permute.xlu0 %2578  ;;  %v2585_v9 = vadd.f32 %v2581_v6, %v2571_v45 }
 0x2af   : > { %v2584_v40 = vadd.f32 %v2579_v7, %v2570_v46  ;;  %3115 = vrot.lane.b32.xlu1 %v3110_v49, %s4438_s9  ;;  %v4364_v49 = vld [vmem:[%s4518_s6 + $0x31] sm:$0xff] }
 0x2b0   : > { %3113 = vrot.lane.b32.xlu0 %v3109_v52, %s4438_s9  ;;  %v2593_v0 = vadd.f32 %v2591_v59, %v2585_v9  ;;  %v2662_v52 = vmul.f32 %v4364_v49, %v2661_v50  ;;  %v3383_v9 = vstv %s6208_s28  ;;  %s6355_s28 = sld [smem:[#allocation2 + $0xf2]] }
 0x2b1   : > { %v2592_v11 = vadd.f32 %v2590_v34, %v2584_v40  ;;  %v2603_v17 = vpop.permute.xlu1 %2602  ;;  %v3371_v34 = vmul.f32 %v3369_v57, %v6025_v33  ;;  %v2697_v40 = vstv %s6212_s29  ;;  %v3442_v57 = vmul.f32 %v6084_v48, %v3441_v22  ;;  %s6358_s29 = sld [smem:[#allocation2 + $0xe1]] }
 0x2b2   : > { %v2601_v3 = vpop.permute.xlu0 %2600  ;;  %v2607_v20 = vadd.f32 %v2603_v17, %v2593_v0  ;;  %v3385_v0 = vmul.f32 %v3383_v9, %v6025_v33  ;;  %v2699_v15 = vmul.f32 %v4365_v39, %v2697_v40  ;;  %v3477_v39 = vstv %s6259_s13  ;;  %s6411_s13 = sld [smem:[#allocation2 + $0x119]] }
 0x2b3   : > { %3304 = vrot.lane.b32.xlu1 %v3299_v62, %s4438_s9  ;;  %v2606_v35 = vadd.f32 %v2601_v3, %v2592_v11  ;;  %v3384_v11 = vmul.f32 %v3383_v9, %v6029_v19  ;;  %v4369_v9 = vld [vmem:[%s4518_s6 + $0x51] sm:$0xff] }
 0x2b4   : > { %3302 = vrot.lane.b32.xlu0 %v3298_v42, %s4438_s9 }
 0x2b5   : > { %v2617_v25 = vpop.permute.xlu1 %2616 }
 0x2b6   : > { %v2615_v24 = vpop.permute.xlu0 %2614  ;;  %v2621_v43 = vadd.f32 %v2617_v25, %v2607_v20 }
 0x2b7   : > { %v2620_v37 = vadd.f32 %v2615_v24, %v2606_v35  ;;  %3318 = vrot.lane.b32.xlu1 %v3313_v5, %s4437_s8  ;;  %v4366_v5 = vld [vmem:[%s4518_s6 + $0x32] sm:$0xff] }
 0x2b8   : > { %3316 = vrot.lane.b32.xlu0 %v3312_v2, %s4437_s8  ;;  %v2629_v55 = vadd.f32 %v2627_v10, %v2621_v43  ;;  %v2698_v2 = vmul.f32 %v4366_v5, %v2697_v40  ;;  %v3419_v43 = vstv %s6227_s4  ;;  %s6374_s4 = sld [smem:[#allocation2 + $0xf4]] }
 0x2b9   : > { %v2628_v38 = vadd.f32 %v2626_v51, %v2620_v37  ;;  %v2639_v30 = vpop.permute.xlu1 %2638  ;;  %v3407_v51 = vmul.f32 %v6051_v13, %v3405_v8  ;;  %v2733_v37 = vstv %s6231_s5  ;;  %v3478_v8 = vmul.f32 %v6109_v32, %v3477_v39  ;;  %s6377_s5 = sld [smem:[#allocation2 + $0xe4]] }
 0x2ba   : > { %v2637_v31 = vpop.permute.xlu0 %2636  ;;  %v2643_v26 = vadd.f32 %v2639_v30, %v2629_v55  ;;  %v3421_v55 = vmul.f32 %v6051_v13, %v3419_v43  ;;  %v2735_v50 = vmul.f32 %v4367_v44, %v2733_v37  ;;  %v3513_v44 = vstv %s6278_s16  ;;  %s6430_s16 = sld [smem:[#allocation2 + $0x11b]] }
 0x2bb   : > { %3340 = vrot.lane.b32.xlu1 %v3335_v41, %s4438_s9  ;;  %v2642_v4 = vadd.f32 %v2637_v31, %v2628_v38  ;;  %v3420_v38 = vmul.f32 %v6055_v16, %v3419_v43  ;;  %v4371_v43 = vld [vmem:[%s4518_s6 + $0x52] sm:$0xff] }
 0x2bc   : > { %3338 = vrot.lane.b32.xlu0 %v3334_v60, %s4438_s9 }
 0x2bd   : > { %v2653_v59 = vpop.permute.xlu1 %2652 }
 0x2be   : > { %v2651_v45 = vpop.permute.xlu0 %2650  ;;  %v2657_v46 = vadd.f32 %v2653_v59, %v2643_v26 }
 0x2bf   : > { %v2656_v1 = vadd.f32 %v2651_v45, %v2642_v4  ;;  %3354 = vrot.lane.b32.xlu1 %v3349_v36, %s4437_s8  ;;  %v4368_v36 = vld [vmem:[%s4518_s6 + $0x48] sm:$0xff] }
 0x2c0   : > { %3352 = vrot.lane.b32.xlu0 %v3348_v23, %s4437_s8  ;;  %v2665_v6 = vadd.f32 %v2663_v63, %v2657_v46  ;;  %v2734_v23 = vmul.f32 %v4368_v36, %v2733_v37  ;;  %v3455_v46 = vstv %s6246_s10  ;;  %s6399_s10 = sld [smem:[#allocation2 + $0xf5]] }
 0x2c1   : > { %v2664_v7 = vadd.f32 %v2662_v52, %v2656_v1  ;;  %v2675_v62 = vpop.permute.xlu1 %2674  ;;  %v3443_v52 = vmul.f32 %v6080_v53, %v3441_v22  ;;  %v2769_v1 = vstv %s6250_s11  ;;  %v3514_v22 = vmul.f32 %v6134_v29, %v3513_v44  ;;  %s6402_s11 = sld [smem:[#allocation2 + $0xe7]] }
 0x2c2   : > { %v2673_v42 = vpop.permute.xlu0 %2672  ;;  %v2679_v17 = vadd.f32 %v2675_v62, %v2665_v6  ;;  %v3457_v6 = vmul.f32 %v6080_v53, %v3455_v46  ;;  %v2771_v40 = vmul.f32 %v4369_v9, %v2769_v1 }
 0x2c3   : > { %3376 = vrot.lane.b32.xlu1 %v3371_v34, %s4438_s9  ;;  %v2678_v3 = vadd.f32 %v2673_v42, %v2664_v7  ;;  %v3456_v7 = vmul.f32 %v6084_v48, %v3455_v46 }
 0x2c4   : > { %3374 = vrot.lane.b32.xlu0 %v3370_v18, %s4438_s9 }
 0x2c5   : > { %v2689_v10 = vpop.permute.xlu1 %2688 }
 0x2c6   : > { %v2687_v20 = vpop.permute.xlu0 %2686  ;;  %v2693_v35 = vadd.f32 %v2689_v10, %v2679_v17 }
 0x2c7   : > { %v2692_v21 = vadd.f32 %v2687_v20, %v2678_v3  ;;  %3390 = vrot.lane.b32.xlu1 %v3385_v0, %s4437_s8  ;;  %v4370_v0 = vld [vmem:[%s4518_s6 + $0x49] sm:$0xff] }
 0x2c8   : > { %3388 = vrot.lane.b32.xlu0 %v3384_v11, %s4437_s8  ;;  %v2701_v25 = vadd.f32 %v2699_v15, %v2693_v35  ;;  %v2770_v11 = vmul.f32 %v4370_v0, %v2769_v1  ;;  %v3491_v35 = vstv %s6265_s14  ;;  %v4374_v0 = vld [vmem:[%s4518_s6] sm:$0xff]  ;;  %s6418_s14 = sld [smem:[#allocation2 + $0xf7]] }
 0x2c9   : > { %v2700_v24 = vadd.f32 %v2698_v2, %v2692_v21  ;;  %v2711_v41 = vpop.permute.xlu1 %2710  ;;  %v3479_v2 = vmul.f32 %v6105_v58, %v3477_v39  ;;  %v2805_v21 = vstv %s6269_s15  ;;  %s6421_s15 = sld [smem:[#allocation2 + $0xea]] }
 0x2ca   : > { %v2709_v60 = vpop.permute.xlu0 %2708  ;;  %v2715_v30 = vadd.f32 %v2711_v41, %v2701_v25  ;;  %v3493_v25 = vmul.f32 %v6105_v58, %v3491_v35  ;;  %v2807_v37 = vmul.f32 %v4371_v43, %v2805_v21 }
 0x2cb   : > { %3412 = vrot.lane.b32.xlu1 %v3407_v51, %s4438_s9  ;;  %v2714_v31 = vadd.f32 %v2709_v60, %v2700_v24  ;;  %v3492_v24 = vmul.f32 %v6109_v32, %v3491_v35 }
 0x2cc   : > { %3410 = vrot.lane.b32.xlu0 %v3406_v54, %s4438_s9 }
 0x2cd   : > { %v2725_v63 = vpop.permute.xlu1 %2724 }
 0x2ce   : > { %v2723_v26 = vpop.permute.xlu0 %2722  ;;  %v2729_v4 = vadd.f32 %v2725_v63, %v2715_v30 }
 0x2cf   : > { %v2728_v49 = vadd.f32 %v2723_v26, %v2714_v31  ;;  %3426 = vrot.lane.b32.xlu1 %v3421_v55, %s4437_s8  ;;  %v4372_v55 = vld [vmem:[%s4518_s6 + $0x4a] sm:$0xff] }
 0x2d0   : > { %3424 = vrot.lane.b32.xlu0 %v3420_v38, %s4437_s8  ;;  %v2737_v59 = vadd.f32 %v2735_v50, %v2729_v4  ;;  %v2806_v38 = vmul.f32 %v4372_v55, %v2805_v21  ;;  %v3527_v4 = vstv %s6286_s18  ;;  %s6443_s18 = sld [smem:[#allocation2 + $0xf8]] }
 0x2d1   : > { %v2736_v45 = vadd.f32 %v2734_v23, %v2728_v49  ;;  %v2747_v34 = vpop.permute.xlu1 %2746  ;;  %v3515_v23 = vmul.f32 %v6130_v27, %v3513_v44 }
 0x2d2   : > { %v2745_v18 = vpop.permute.xlu0 %2744  ;;  %v2751_v62 = vadd.f32 %v2747_v34, %v2737_v59  ;;  %v3528_v59 = vmul.f32 %v6134_v29, %v3527_v4  ;;  %v3549_v34 = vstv %s6297_s20  ;;  %s6455_s20 = sld [smem:[#allocation2 + $0x11c]] }
 0x2d3   : > { %3448 = vrot.lane.b32.xlu1 %v3443_v52, %s4438_s9  ;;  %v2750_v42 = vadd.f32 %v2745_v18, %v2736_v45  ;;  %v2850_v45 = vstv %s6293_s19  ;;  %v2839_v18 = vstv %s6299_s21  ;;  %v3551_v39 = vmul.f32 %v6155_v14, %v3549_v34  ;;  %s6446_s19 = sld [smem:[#allocation2 + $0xed]] }
 0x2d4   : > { %3446 = vrot.lane.b32.xlu0 %v3442_v57, %s4438_s9  ;;  %v3529_v57 = vmul.f32 %v6130_v27, %v3527_v4  ;;  %s6462_s21 = sld [smem:[#allocation2 + $0xfa]] }
 0x2d5   : > { %v2761_v15 = vpop.permute.xlu1 %2760 }
 0x2d6   : > { %v2759_v17 = vpop.permute.xlu0 %2758  ;;  %v2765_v3 = vadd.f32 %v2761_v15, %v2751_v62  ;;  %v4373_v62 = vld [vmem:[%s4518_s6 + $0x8] sm:$0xff]  ;;  %v3550_v15 = vmul.f32 %v6159_v47, %v3549_v34 }
 0x2d7   : > { %v2764_v5 = vadd.f32 %v2759_v17, %v2750_v42  ;;  %3462 = vrot.lane.b32.xlu1 %v3457_v6, %s4437_s8  ;;  %v2852_v42 = vmul.f32 %v4373_v62, %v2850_v45 }
 0x2d8   : > { %3460 = vrot.lane.b32.xlu0 %v3456_v7, %s4437_s8  ;;  %v2773_v10 = vadd.f32 %v2771_v40, %v2765_v3 }
 0x2d9   : > { %v2772_v20 = vadd.f32 %v2770_v11, %v2764_v5  ;;  %v2783_v51 = vpop.permute.xlu1 %2782  ;;  %v2851_v11 = vmul.f32 %v4374_v0, %v2850_v45  ;;  %v3122_v5 = vstv %s6305_s22  ;;  %s4265_s22 = sld [smem:[#allocation2 + $0x11e]] }
 0x2da   : > { %v2781_v54 = vpop.permute.xlu0 %2780  ;;  %v2787_v41 = vadd.f32 %v2783_v51, %v2773_v10  ;;  %v3124_v21 = vmul.f32 %v6155_v14, %v3122_v5  ;;  %v3123_v51 = vmul.f32 %v6159_v47, %v3122_v5 }
 0x2db   : > { %3484 = vrot.lane.b32.xlu1 %v3479_v2, %s4438_s9  ;;  %v2786_v60 = vadd.f32 %v2781_v54, %v2772_v20  ;;  %v2886_v2 = vstv %s6308_s23  ;;  %v4375_v54 = vld [vmem:[%s4518_s6 + $0x9] sm:$0xff]  ;;  %s4209_s23 = sld [smem:[#allocation2 + $0xfb]] }
 0x2dc   : > { %3482 = vrot.lane.b32.xlu0 %v3478_v8, %s4438_s9 }
 0x2dd   : > { %v2797_v50 = vpop.permute.xlu1 %2796 }
 0x2de   : > { %v2795_v30 = vpop.permute.xlu0 %2794  ;;  %v2801_v31 = vadd.f32 %v2797_v50, %v2787_v41 }
 0x2df   : > { %v2800_v36 = vadd.f32 %v2795_v30, %v2786_v60  ;;  %3498 = vrot.lane.b32.xlu1 %v3493_v25, %s4437_s8  ;;  %v2888_v25 = vmul.f32 %v4375_v54, %v2886_v2  ;;  %v3563_v60 = vstv %s6316_s24  ;;  %s4266_s24 = sld [smem:[#allocation2 + $0x11f]] }
 0x2e0   : > { %3496 = vrot.lane.b32.xlu0 %v3492_v24, %s4437_s8  ;;  %v2809_v63 = vadd.f32 %v2807_v37, %v2801_v31  ;;  %v4376_v37 = vld [vmem:[%s4518_s6 + $0x1] sm:$0xff]  ;;  %v3565_v30 = vmul.f32 %v6155_v14, %v3563_v60  ;;  %v3564_v31 = vmul.f32 %v6159_v47, %v3563_v60 }
 0x2e1   : > { %v2808_v26 = vadd.f32 %v2806_v38, %v2800_v36  ;;  %v2819_v49 = vpop.permute.xlu1 %2818  ;;  %v2887_v41 = vmul.f32 %v4376_v37, %v2886_v2  ;;  %v6393_v37 = vld [vmem:[%s4518_s6 + $0x50] sm:$0xff] }
 0x2e2   : > { %v2817_v52 = vpop.permute.xlu0 %2816  ;;  %v2823_v46 = vadd.f32 %v2819_v49, %v2809_v63  ;;  %v3144_v63 = vstv %s6327_s25  ;;  %s4213_s25 = sld [smem:[#allocation2 + $0xfc]] }
 0x2e3   : > { %3520 = vrot.lane.b32.xlu1 %v3515_v23, %s4438_s9  ;;  %v2822_v1 = vadd.f32 %v2817_v52, %v2808_v26  ;;  %v6353_v26 = vld [vmem:[%s4518_s6 + $0x32] sm:$0xff]  ;;  %v2922_v52 = vstv %s6329_s26  ;;  %s4219_s26 = sld [smem:[#allocation2 + $0x102]] }
 0x2e4   : > { %3518 = vrot.lane.b32.xlu0 %v3514_v22, %s4438_s9  ;;  %v6349_v22 = vld [vmem:[%s4518_s6 + $0x3a] sm:$0xff]  ;;  %v2923_v34 = vmul.f32 %v2922_v52, %v6029_v19  ;;  %v3158_v19 = vstv %s6355_s28  ;;  %s4232_s28 = sld [smem:[#allocation2 + $0x10b]] }
 0x2e5   : > { %v2833_v6 = vpop.permute.xlu1 %2832  ;;  %v3146_v45 = vmul.f32 %v6349_v22, %v3144_v63  ;;  %v3160_v5 = vmul.f32 %v6349_v22, %v3158_v19  ;;  %v3159_v2 = vmul.f32 %v6353_v26, %v3158_v19 }
 0x2e6   : > { %v2831_v7 = vpop.permute.xlu0 %2830  ;;  %v2837_v9 = vadd.f32 %v2833_v6, %v2823_v46  ;;  %v3145_v46 = vmul.f32 %v6353_v26, %v3144_v63  ;;  %v3621_v63 = vstv %s6386_s7  ;;  %s4195_s7 = sld [smem:[#allocation2 + $0xf3]] }
 0x2e7   : > { %v2836_v40 = vadd.f32 %v2831_v7, %v2822_v1  ;;  %3534 = vrot.lane.b32.xlu1 %v3529_v57, %s4437_s8  ;;  %v2924_v1 = vmul.f32 %v2922_v52, %v6025_v33 }
 0x2e8   : > { %3532 = vrot.lane.b32.xlu0 %v3528_v59, %s4437_s8  ;;  %v2841_v17 = vadd.f32 %v2839_v18, %v2837_v9 }
 0x2e9   : > { %v2840_v3 = vadd.f32 %v2839_v18, %v2836_v40  ;;  %v2864_v8 = vpop.permute.xlu1 %2863  ;;  %v3585_v18 = vstv %s6342_s27  ;;  %s4227_s27 = sld [smem:[#allocation2 + $0x108]] }
 0x2ea   : > { %v2862_v10 = vpop.permute.xlu0 %2861  ;;  %v2843_v20 = vmax.f32 %v2841_v17, 0.0  ;;  %v2868_v24 = vadd.f32 %v2864_v8, %v2852_v42  ;;  %v3587_v62 = vmul.f32 %v6349_v22, %v3585_v18  ;;  %v3586_v42 = vmul.f32 %v6353_v26, %v3585_v18 }
 0x2eb   : > { %v2842_v35 = vmax.f32 %v2840_v3, 0.0  ;;  %3556 = vrot.lane.b32.xlu1 %v3551_v39, %s4438_s9  ;;  %v2867_v43 = vadd.f32 %v2862_v10, %v2851_v11  ;;  %v3030_v18 = vstv %s6402_s11  ;;  %s6554_s11 = sld [smem:[#allocation2 + $0x11a]] }
 0x2ec   : > { %3554 = vrot.lane.b32.xlu0 %v3550_v15, %s4438_s9  ;;  %4155 = vst.msk [vmem:[%s4968_s17 + $0x58] sm:$0xff] %vm639_vm0, %v2843_v20  ;;  %v2958_v15 = vstv %s6358_s29  ;;  %v3599_v20 = vstv %s6367_s30  ;;  %s4237_s29 = sld [smem:[#allocation2 + $0x10e]] }
 0x2ed   : > { %4154 = vst.msk [vmem:[%s4968_s17 + $0x50] sm:$0xff] %vm639_vm0, %v2842_v35  ;;  %v2878_v55 = vpop.permute.xlu1 %2877  ;;  %v2960_v8 = vmul.f32 %v6051_v13, %v2958_v15  ;;  %v2959_v10 = vmul.f32 %v6055_v16, %v2958_v15  ;;  %v3180_v16 = vstv %s6374_s4  ;;  %s4242_s30 = sld [smem:[#allocation2 + $0x111]] }
 0x2ee   : > { %v2876_v38 = vpop.permute.xlu0 %2875  ;;  %v2882_v44 = vadd.f32 %v2878_v55, %v2868_v24  ;;  %v3600_v24 = vmul.f32 %v6353_v26, %v3599_v20  ;;  %s4190_s4 = sld [smem:[#allocation2 + $0xf0]] }
 0x2ef   : > { %v2881_v50 = vadd.f32 %v2876_v38, %v2867_v43  ;;  %3129 = vrot.lane.b32.xlu1 %v3124_v21, %s4437_s8  ;;  %v2994_v38 = vstv %s6377_s5  ;;  %s4247_s5 = sld [smem:[#allocation2 + $0x114]] }
 0x2f0   : > { %3127 = vrot.lane.b32.xlu0 %v3123_v51, %s4437_s8  ;;  %v2890_v36 = vadd.f32 %v2888_v25, %v2882_v44  ;;  %v3601_v25 = vmul.f32 %v6349_v22, %v3599_v20  ;;  %v3066_v20 = vstv %s6421_s15  ;;  %s4210_s15 = sld [smem:[#allocation4 + $0x6]] }
 0x2f1   : > { %v2889_v23 = vadd.f32 %v2887_v41, %v2881_v50  ;;  %v2900_v4 = vpop.permute.xlu1 %2899  ;;  %v6397_v41 = vld [vmem:[%s4518_s6 + $0x48] sm:$0xff] }
 0x2f2   : > { %v2898_v49 = vpop.permute.xlu0 %2897  ;;  %v2904_v57 = vadd.f32 %v2900_v4, %v2890_v36  ;;  %v2996_v36 = vmul.f32 %v6080_v53, %v2994_v38 }
 0x2f3   : > { %v2903_v59 = vadd.f32 %v2898_v49, %v2889_v23  ;;  %3570 = vrot.lane.b32.xlu1 %v3565_v30, %s4437_s8  ;;  %v3182_v30 = vmul.f32 %v6393_v37, %v3180_v16  ;;  %v2995_v23 = vmul.f32 %v6084_v48, %v2994_v38  ;;  %v3194_v48 = vstv %s6399_s10  ;;  %s6538_s10 = sld [smem:[#allocation2 + $0x117]] }
 0x2f4   : > { %3568 = vrot.lane.b32.xlu0 %v3564_v31, %s4437_s8  ;;  %v3181_v31 = vmul.f32 %v6397_v41, %v3180_v16 }
 0x2f5   : > { %v2914_v6 = vpop.permute.xlu1 %2913 }
 0x2f6   : > { %v2912_v7 = vpop.permute.xlu0 %2911  ;;  %v2918_v9 = vadd.f32 %v2914_v6, %v2904_v57 }
 0x2f7   : > { %v2917_v40 = vadd.f32 %v2912_v7, %v2903_v59  ;;  %3151 = vrot.lane.b32.xlu1 %v3146_v45, %s4438_s9  ;;  %v3623_v59 = vmul.f32 %v6393_v37, %v3621_v63  ;;  %v3622_v45 = vmul.f32 %v6397_v41, %v3621_v63 }
 0x2f8   : > { %3149 = vrot.lane.b32.xlu0 %v3145_v46, %s4438_s9  ;;  %v2926_v0 = vadd.f32 %v2924_v1, %v2918_v9  ;;  %v3196_v9 = vmul.f32 %v6393_v37, %v3194_v48 }
 0x2f9   : > { %v2925_v33 = vadd.f32 %v2923_v34, %v2917_v40  ;;  %v2936_v11 = vpop.permute.xlu1 %2935  ;;  %v3195_v40 = vmul.f32 %v6397_v41, %v3194_v48 }
 0x2fa   : > { %v2934_v39 = vpop.permute.xlu0 %2933  ;;  %v2940_v17 = vadd.f32 %v2936_v11, %v2926_v0  ;;  %v3635_v0 = vstv %s6411_s13  ;;  %s6561_s13 = sld [smem:[#allocation2 + $0xf9]] }
 0x2fb   : > { %v2939_v3 = vadd.f32 %v2934_v39, %v2925_v33  ;;  %3592 = vrot.lane.b32.xlu1 %v3587_v62, %s4438_s9  ;;  %v3032_v62 = vmul.f32 %v6105_v58, %v3030_v18  ;;  %v3637_v15 = vmul.f32 %v6393_v37, %v3635_v0 }
 0x2fc   : > { %3590 = vrot.lane.b32.xlu0 %v3586_v42, %s4438_s9  ;;  %v3031_v42 = vmul.f32 %v6109_v32, %v3030_v18  ;;  %v3216_v32 = vstv %s6418_s14  ;;  %s6568_s14 = sld [smem:[#allocation2 + $0x11d]] }
 0x2fd   : > { %v2950_v35 = vpop.permute.xlu1 %2949 }
 0x2fe   : > { %v2948_v21 = vpop.permute.xlu0 %2947  ;;  %v2954_v51 = vadd.f32 %v2950_v35, %v2940_v17  ;;  %v3636_v17 = vmul.f32 %v6397_v41, %v3635_v0 }
 0x2ff   : > { %v2953_v54 = vadd.f32 %v2948_v21, %v2939_v3  ;;  %3165 = vrot.lane.b32.xlu1 %v3160_v5, %s4437_s8  ;;  %v6437_v5 = vld [vmem:[%s4518_s6 + $0x51] sm:$0xff] }
 0x300   : > { %3163 = vrot.lane.b32.xlu0 %v3159_v2, %s4437_s8  ;;  %v2962_v13 = vadd.f32 %v2960_v8, %v2954_v51  ;;  %v6441_v2 = vld [vmem:[%s4518_s6 + $0x49] sm:$0xff]  ;;  %v3218_v51 = vmul.f32 %v6437_v5, %v3216_v32 }
 0x301   : > { %v2961_v43 = vadd.f32 %v2959_v10, %v2953_v54  ;;  %v2972_v60 = vpop.permute.xlu1 %2971  ;;  %v3217_v54 = vmul.f32 %v6441_v2, %v3216_v32 }
 0x302   : > { %v2970_v55 = vpop.permute.xlu0 %2969  ;;  %v2976_v44 = vadd.f32 %v2972_v60, %v2962_v13  ;;  %v3657_v13 = vstv %s6430_s16  ;;  %s4267_s16 = sld [smem:[#allocation4 + $0x7]] }
 0x303   : > { %v2975_v50 = vadd.f32 %v2970_v55, %v2961_v43  ;;  %3606 = vrot.lane.b32.xlu1 %v3601_v25, %s4437_s8  ;;  %v3068_v25 = vmul.f32 %v6130_v27, %v3066_v20  ;;  %v3659_v38 = vmul.f32 %v6437_v5, %v3657_v13 }
 0x304   : > { %3604 = vrot.lane.b32.xlu0 %v3600_v24, %s4437_s8  ;;  %v3067_v24 = vmul.f32 %v6134_v29, %v3066_v20  ;;  %v3230_v29 = vstv %s6443_s18  ;;  %v3707_v20 = vstv %s4266_s24 }
 0x305   : > { %v2986_v4 = vpop.permute.xlu1 %2985 }
 0x306   : > { %v2984_v49 = vpop.permute.xlu0 %2983  ;;  %v2990_v52 = vadd.f32 %v2986_v4, %v2976_v44  ;;  %v3658_v44 = vmul.f32 %v6441_v2, %v3657_v13  ;;  %v3232_v4 = vmul.f32 %v6437_v5, %v3230_v29 }
 0x307   : > { %v2989_v57 = vadd.f32 %v2984_v49, %v2975_v50  ;;  %3187 = vrot.lane.b32.xlu1 %v3182_v30, %s4438_s9  ;;  %v3231_v49 = vmul.f32 %v6441_v2, %v3230_v29 }
 0x308   : > { %3185 = vrot.lane.b32.xlu0 %v3181_v31, %s4438_s9  ;;  %v2998_v46 = vadd.f32 %v2996_v36, %v2990_v52  ;;  %v3102_v36 = vstv %s6446_s19 }
 0x309   : > { %v2997_v53 = vadd.f32 %v2995_v23, %v2989_v57  ;;  %v3008_v1 = vpop.permute.xlu1 %3007  ;;  %v3104_v52 = vmul.f32 %v6155_v14, %v3102_v36  ;;  %v3103_v57 = vmul.f32 %v6159_v47, %v3102_v36  ;;  %v6477_v14 = vld [vmem:[%s4518_s6 + $0x52] sm:$0xff]  ;;  %v6481_v47 = vld [vmem:[%s4518_s6 + $0x4a] sm:$0xff] }
 0x30a   : > { %v3006_v34 = vpop.permute.xlu0 %3005  ;;  %v3012_v6 = vadd.f32 %v3008_v1, %v2998_v46 }
 0x30b   : > { %v3011_v7 = vadd.f32 %v3006_v34, %v2997_v53  ;;  %3628 = vrot.lane.b32.xlu1 %v3623_v59, %s4438_s9  ;;  %v3671_v59 = vstv %s6455_s20 }
 0x30c   : > { %3626 = vrot.lane.b32.xlu0 %v3622_v45, %s4438_s9  ;;  %v3673_v1 = vmul.f32 %v6437_v5, %v3671_v59  ;;  %v3672_v34 = vmul.f32 %v6441_v2, %v3671_v59 }
 0x30d   : > { %v3022_v33 = vpop.permute.xlu1 %3021 }
 0x30e   : > { %v3020_v19 = vpop.permute.xlu0 %3019  ;;  %v3026_v11 = vadd.f32 %v3022_v33, %v3012_v6 }
 0x30f   : > { %v3025_v39 = vadd.f32 %v3020_v19, %v3011_v7  ;;  %3201 = vrot.lane.b32.xlu1 %v3196_v9, %s4437_s8  ;;  %v3252_v7 = vstv %s6462_s21  ;;  %v3693_v19 = vstv %s4265_s22 }
 0x310   : > { %3199 = vrot.lane.b32.xlu0 %v3195_v40, %s4437_s8  ;;  %v3034_v58 = vadd.f32 %v3032_v62, %v3026_v11  ;;  %v3254_v0 = vmul.f32 %v6477_v14, %v3252_v7  ;;  %v3253_v33 = vmul.f32 %v6481_v47, %v3252_v7  ;;  %v4378_v7 = vld [vmem:[%s4518_s6 + $0x2] sm:$0xff] }
 0x311   : > { %v3033_v3 = vadd.f32 %v3031_v42, %v3025_v39  ;;  %v3044_v8 = vpop.permute.xlu1 %3043 }
 0x312   : > { %v3042_v10 = vpop.permute.xlu0 %3041  ;;  %v3048_v35 = vadd.f32 %v3044_v8, %v3034_v58  ;;  %v3266_v58 = vstv %s4209_s23 }
 0x313   : > { %v3047_v21 = vadd.f32 %v3042_v10, %v3033_v3  ;;  %3642 = vrot.lane.b32.xlu1 %v3637_v15, %s4437_s8  ;;  %v3695_v15 = vmul.f32 %v6477_v14, %v3693_v19  ;;  %v3268_v8 = vmul.f32 %v6477_v14, %v3266_v58  ;;  %v3267_v10 = vmul.f32 %v6481_v47, %v3266_v58 }
 0x314   : > { %3640 = vrot.lane.b32.xlu0 %v3636_v17, %s4437_s8  ;;  %v3694_v17 = vmul.f32 %v6481_v47, %v3693_v19 }
 0x315   : > { %v3058_v43 = vpop.permute.xlu1 %3057 }
 0x316   : > { %v3056_v16 = vpop.permute.xlu0 %3055  ;;  %v3062_v60 = vadd.f32 %v3058_v43, %v3048_v35 }
 0x317   : > { %v3061_v55 = vadd.f32 %v3056_v16, %v3047_v21  ;;  %3223 = vrot.lane.b32.xlu1 %v3218_v51, %s4438_s9  ;;  %v3709_v51 = vmul.f32 %v6477_v14, %v3707_v20  ;;  %v3291_v16 = vstv %s4213_s25 }
 0x318   : > { %3221 = vrot.lane.b32.xlu0 %v3217_v54, %s4438_s9  ;;  %v3070_v27 = vadd.f32 %v3068_v25, %v3062_v60  ;;  %v3708_v54 = vmul.f32 %v6481_v47, %v3707_v20 }
 0x319   : > { %v3069_v50 = vadd.f32 %v3067_v24, %v3061_v55  ;;  %v3080_v30 = vpop.permute.xlu1 %3079 }
 0x31a   : > { %v3078_v31 = vpop.permute.xlu0 %3077  ;;  %v3084_v23 = vadd.f32 %v3080_v30, %v3070_v27 }
 0x31b   : > { %v3083_v63 = vadd.f32 %v3078_v31, %v3069_v50  ;;  %3664 = vrot.lane.b32.xlu1 %v3659_v38, %s4438_s9  ;;  %v3293_v38 = vmul.f32 %v3291_v16, %v6171_v61 }
 0x31c   : > { %3662 = vrot.lane.b32.xlu0 %v3658_v44, %s4438_s9  ;;  %v3292_v44 = vmul.f32 %v3291_v16, %v6175_v56  ;;  %v3435_v16 = vstv %s4227_s27 }
 0x31d   : > { %v3094_v45 = vpop.permute.xlu1 %3093 }
 0x31e   : > { %v3092_v46 = vpop.permute.xlu0 %3091  ;;  %v3098_v53 = vadd.f32 %v3094_v45, %v3084_v23  ;;  %v3363_v45 = vstv %s4219_s26 }
 0x31f   : > { %v3097_v48 = vadd.f32 %v3092_v46, %v3083_v63  ;;  %3237 = vrot.lane.b32.xlu1 %v3232_v4, %s4437_s8 }
 0x320   : > { %3235 = vrot.lane.b32.xlu0 %v3231_v49, %s4437_s8  ;;  %v3106_v18 = vadd.f32 %v3104_v52, %v3098_v53 }
 0x321   : > { %v3105_v6 = vadd.f32 %v3103_v57, %v3097_v48  ;;  %v3116_v9 = vpop.permute.xlu1 %3115 }
 0x322   : > { %v3114_v40 = vpop.permute.xlu0 %3113  ;;  %v6483_v62 = vadd.f32 %v3116_v9, %v3106_v18 }
 0x323   : > { %v6485_v42 = vadd.f32 %v3114_v40, %v3105_v6  ;;  %3678 = vrot.lane.b32.xlu1 %v3673_v1, %s4437_s8  ;;  %v4377_v6 = vld [vmem:[%s4518_s6 + $0xa] sm:$0xff] }
 0x324   : > { %3676 = vrot.lane.b32.xlu0 %v3672_v34, %s4437_s8 }
 0x325   : > { %v3305_v11 = vpop.permute.xlu1 %3304 }
 0x326   : > { %v3303_v39 = vpop.permute.xlu0 %3302  ;;  %v3309_v30 = vadd.f32 %v3305_v11, %v3293_v38 }
 0x327   : > { %3259 = vrot.lane.b32.xlu1 %v3254_v0, %s4438_s9  ;;  %v3308_v31 = vadd.f32 %v3303_v39, %v3292_v44 }
 0x328   : > { %3257 = vrot.lane.b32.xlu0 %v3253_v33, %s4438_s9 }
 0x329   : > { %v3319_v3 = vpop.permute.xlu1 %3318 }
 0x32a   : > { %v3317_v32 = vpop.permute.xlu0 %3316  ;;  %v3323_v36 = vadd.f32 %v3319_v3, %v3309_v30 }
 0x32b   : > { %3700 = vrot.lane.b32.xlu1 %v3695_v15, %s4438_s9  ;;  %v3322_v23 = vadd.f32 %v3317_v32, %v3308_v31  ;;  %v4379_v32 = vld [vmem:[%s4518_s6 + $0x20] sm:$0xff] }
 0x32c   : > { %3698 = vrot.lane.b32.xlu0 %v3694_v17, %s4438_s9  ;;  %s4216_s9 = sld [smem:[#allocation2 + $0xff]]  ;;  %v4382_v31 = vld [vmem:[%s4518_s6 + $0x19] sm:$0xff] }
 0x32d   : > { %v3341_v35 = vpop.permute.xlu1 %3340 }
 0x32e   : > { %v3339_v21 = vpop.permute.xlu0 %3338 }
 0x32f   : > { %3273 = vrot.lane.b32.xlu1 %v3268_v8, %s4437_s8 }
 0x330   : > { %3271 = vrot.lane.b32.xlu0 %v3267_v10, %s4437_s8  ;;  %v4380_v10 = vld [vmem:[%s4518_s6 + $0x18] sm:$0xff] }
 0x331   : > { %v3355_v25 = vpop.permute.xlu1 %3354 }
 0x332   : > { %v3353_v24 = vpop.permute.xlu0 %3352  ;;  %v3327_v27 = vstv %s4216_s9 }
 0x333   : > { %3714 = vrot.lane.b32.xlu1 %v3709_v51, %s4437_s8  ;;  %v3329_v63 = vmul.f32 %v3327_v27, %v6196_v28  ;;  %v3328_v4 = vmul.f32 %v3327_v27, %v6200_v12  ;;  %v3365_v28 = vmul.f32 %v4377_v6, %v3363_v45  ;;  %v3364_v12 = vmul.f32 %v4378_v7, %v3363_v45  ;;  %v4381_v27 = vld [vmem:[%s4518_s6 + $0x21] sm:$0xff] }
 0x334   : > { %3712 = vrot.lane.b32.xlu0 %v3708_v54, %s4437_s8  ;;  %s4222_s8 = sld [smem:[#allocation2 + $0x105]]  ;;  %v3437_v30 = vmul.f32 %v4381_v27, %v3435_v16 }
 0x335   : > { %v3377_v13 = vpop.permute.xlu1 %3376  ;;  %v3331_v57 = vadd.f32 %v3329_v63, %v3323_v36  ;;  %v3330_v61 = vadd.f32 %v3328_v4, %v3322_v23  ;;  %v3436_v36 = vmul.f32 %v4382_v31, %v3435_v16 }
 0x336   : > { %v3375_v43 = vpop.permute.xlu0 %3374 }
 0x337   : > { %v3345_v46 = vadd.f32 %v3341_v35, %v3331_v57  ;;  %v3344_v53 = vadd.f32 %v3339_v21, %v3330_v61  ;;  %v3471_v61 = vstv %s4232_s28 }
 0x339   : > { %v3391_v60 = vpop.permute.xlu1 %3390  ;;  %v3359_v34 = vadd.f32 %v3355_v25, %v3345_v46  ;;  %v3358_v18 = vadd.f32 %v3353_v24, %v3344_v53  ;;  %v4383_v53 = vld [vmem:[%s4518_s6 + $0x22] sm:$0xff] }
 0x33a   : > { %v3389_v55 = vpop.permute.xlu0 %3388  ;;  %v3399_v19 = vstv %s4222_s8 }
 0x33b   : > { %v3367_v0 = vadd.f32 %v3365_v28, %v3359_v34  ;;  %v3366_v33 = vadd.f32 %v3364_v12, %v3358_v18  ;;  %v3401_v8 = vmul.f32 %v4379_v32, %v3399_v19  ;;  %v3400_v20 = vmul.f32 %v4380_v10, %v3399_v19  ;;  %v4384_v18 = vld [vmem:[%s4518_s6 + $0x1a] sm:$0xff] }
 0x33c   : > { %v3473_v34 = vmul.f32 %v4383_v53, %v3471_v61  ;;  %v3472_v6 = vmul.f32 %v4384_v18, %v3471_v61 }
 0x33d   : > { %v3413_v50 = vpop.permute.xlu1 %3412  ;;  %v3381_v15 = vadd.f32 %v3377_v13, %v3367_v0  ;;  %v3380_v17 = vadd.f32 %v3375_v43, %v3366_v33 }
 0x33e   : > { %v3411_v29 = vpop.permute.xlu0 %3410 }
 0x33f   : > { %v3395_v58 = vadd.f32 %v3391_v60, %v3381_v15  ;;  %v3394_v3 = vadd.f32 %v3389_v55, %v3380_v17  ;;  %v3507_v15 = vstv %s4237_s29 }
 0x341   : > { %v3427_v49 = vpop.permute.xlu1 %3426  ;;  %v3403_v51 = vadd.f32 %v3401_v8, %v3395_v58  ;;  %v3402_v54 = vadd.f32 %v3400_v20, %v3394_v3  ;;  %v4385_v3 = vld [vmem:[%s4518_s6 + $0x38] sm:$0xff]  ;;  %v4386_v8 = vld [vmem:[%s4518_s6 + $0x30] sm:$0xff] }
 0x342   : > { %v3425_v52 = vpop.permute.xlu0 %3424  ;;  %v3509_v32 = vmul.f32 %v4385_v3, %v3507_v15  ;;  %v3508_v10 = vmul.f32 %v4386_v8, %v3507_v15 }
 0x343   : > { %v3417_v38 = vadd.f32 %v3413_v50, %v3403_v51  ;;  %v3416_v44 = vadd.f32 %v3411_v29, %v3402_v54 }
 0x345   : > { %v3449_v59 = vpop.permute.xlu1 %3448  ;;  %v3431_v60 = vadd.f32 %v3427_v49, %v3417_v38  ;;  %v3430_v55 = vadd.f32 %v3425_v52, %v3416_v44 }
 0x346   : > { %v3447_v56 = vpop.permute.xlu0 %3446 }
 0x347   : > { %v3439_v4 = vadd.f32 %v3437_v30, %v3431_v60  ;;  %v3438_v57 = vadd.f32 %v3436_v36, %v3430_v55  ;;  %v4387_v55 = vld [vmem:[%s4518_s6 + $0x39] sm:$0xff]  ;;  %v4388_v30 = vld [vmem:[%s4518_s6 + $0x31] sm:$0xff]  ;;  %s6547_s6 = sld [smem:[#allocation2 + $0xf6]] }
 0x349   : > { %v3463_v48 = vpop.permute.xlu1 %3462  ;;  %v3453_v45 = vadd.f32 %v3449_v59, %v3439_v4  ;;  %v3452_v46 = vadd.f32 %v3447_v56, %v3438_v57  ;;  %v3138_v57 = vstv %s4190_s4 }
 0x34a   : > { %v3461_v1 = vpop.permute.xlu0 %3460 }
 0x34b   : > { %v3467_v49 = vadd.f32 %v3463_v48, %v3453_v45  ;;  %v3466_v52 = vadd.f32 %v3461_v1, %v3452_v46  ;;  %v3140_v46 = vmul.f32 %v6349_v22, %v3138_v57 }
 0x34d   : > { %v3485_v9 = vpop.permute.xlu1 %3484  ;;  %v3475_v12 = vadd.f32 %v3473_v34, %v3467_v49  ;;  %v3474_v0 = vadd.f32 %v3472_v6, %v3466_v52  ;;  %v3579_v52 = vstv %s4247_s5 }
 0x34e   : > { %v3483_v40 = vpop.permute.xlu0 %3482  ;;  %v3581_v18 = vmul.f32 %v6349_v22, %v3579_v52  ;;  %v3580_v6 = vmul.f32 %v6353_v26, %v3579_v52 }
 0x34f   : > { %v3489_v59 = vadd.f32 %v3485_v9, %v3475_v12  ;;  %v3488_v56 = vadd.f32 %v3483_v40, %v3474_v0  ;;  %v3543_v9 = vstv %s4242_s30  ;;  %v3174_v12 = vstv %s4195_s7 }
 0x350   : > { %v3545_v27 = vmul.f32 %v4387_v55, %v3543_v9  ;;  %v3544_v31 = vmul.f32 %v4388_v30, %v3543_v9  ;;  %v3175_v22 = vmul.f32 %v6397_v41, %v3174_v12 }
 0x351   : > { %v3499_v11 = vpop.permute.xlu1 %3498 }
 0x352   : > { %v3497_v39 = vpop.permute.xlu0 %3496  ;;  %v3503_v17 = vadd.f32 %v3499_v11, %v3489_v59 }
 0x353   : > { %v3502_v58 = vadd.f32 %v3497_v39, %v3488_v56  ;;  %v3615_v56 = vstv %s6538_s10 }
 0x354   : > { %v3511_v54 = vadd.f32 %v3509_v32, %v3503_v17  ;;  %v3616_v8 = vmul.f32 %v6397_v41, %v3615_v56 }
 0x355   : > { %v3521_v35 = vpop.permute.xlu1 %3520  ;;  %v3510_v16 = vadd.f32 %v3508_v10, %v3502_v58  ;;  %v3210_v10 = vstv %s6547_s6 }
 0x356   : > { %v3519_v21 = vpop.permute.xlu0 %3518  ;;  %v3525_v44 = vadd.f32 %v3521_v35, %v3511_v54 }
 0x357   : > { %v3524_v60 = vadd.f32 %v3519_v21, %v3510_v16 }
 0x359   : > { %v3535_v25 = vpop.permute.xlu1 %3534 }
 0x35a   : > { %v3533_v24 = vpop.permute.xlu0 %3532  ;;  %v3539_v11 = vadd.f32 %v3535_v25, %v3525_v44 }
 0x35b   : > { %v3538_v39 = vadd.f32 %v3533_v24, %v3524_v60  ;;  %v3139_v24 = vmul.f32 %v6353_v26, %v3138_v57 }
 0x35c   : > { %v3547_v61 = vadd.f32 %v3545_v27, %v3539_v11  ;;  %v3212_v11 = vmul.f32 %v6437_v5, %v3210_v10 }
 0x35d   : > { %v6513_v13 = vpop.permute.xlu1 %3556  ;;  %v3546_v45 = vadd.f32 %v3544_v31, %v3538_v39 }
 0x35e   : > { %v6515_v43 = vpop.permute.xlu0 %3554  ;;  %v3561_v53 = vadd.f32 %v6513_v13, %v3547_v61 }
 0x35f   : > { %v3560_v34 = vadd.f32 %v6515_v43, %v3546_v45  ;;  %v3176_v43 = vmul.f32 %v6393_v37, %v3174_v12  ;;  %v3246_v45 = vstv %s6561_s13 }
 0x361   : > { %v3130_v23 = vpop.permute.xlu1 %3129 }
 0x362   : > { %v3128_v63 = vpop.permute.xlu0 %3127  ;;  %v3134_v21 = vadd.f32 %v3130_v23, %v6483_v62 }
 0x363   : > { %v3133_v25 = vadd.f32 %v3128_v63, %v6485_v42 }
 0x364   : > { %v3142_v23 = vadd.f32 %v3140_v46, %v3134_v21 }
 0x365   : > { %v6519_v50 = vpop.permute.xlu1 %3570  ;;  %v3141_v63 = vadd.f32 %v3139_v24, %v3133_v25 }
 0x366   : > { %v6521_v29 = vpop.permute.xlu0 %3568  ;;  %v3575_v62 = vadd.f32 %v6519_v50, %v3561_v53 }
 0x367   : > { %v3574_v42 = vadd.f32 %v6521_v29, %v3560_v34  ;;  %v3248_v34 = vmul.f32 %v6477_v14, %v3246_v45 }
 0x368   : > { %v3583_v58 = vadd.f32 %v3581_v18, %v3575_v62 }
 0x369   : > { %v3152_v28 = vpop.permute.xlu1 %3151  ;;  %v3582_v3 = vadd.f32 %v3580_v6, %v3574_v42 }
 0x36a   : > { %v3150_v7 = vpop.permute.xlu0 %3149  ;;  %v3156_v59 = vadd.f32 %v3152_v28, %v3142_v23 }
 0x36b   : > { %v3155_v13 = vadd.f32 %v3150_v7, %v3141_v63  ;;  %v3617_v7 = vmul.f32 %v6393_v37, %v3615_v56  ;;  %v3211_v37 = vmul.f32 %v6441_v2, %v3210_v10 }
 0x36d   : > { %v6525_v33 = vpop.permute.xlu1 %3592 }
 0x36e   : > { %v6527_v19 = vpop.permute.xlu0 %3590  ;;  %v3597_v29 = vadd.f32 %v6525_v33, %v3583_v58 }
 0x36f   : > { %v3596_v28 = vadd.f32 %v6527_v19, %v3582_v3  ;;  %v3651_v19 = vstv %s6554_s11 }
 0x371   : > { %v3166_v48 = vpop.permute.xlu1 %3165 }
 0x372   : > { %v3164_v1 = vpop.permute.xlu0 %3163  ;;  %v3170_v32 = vadd.f32 %v3166_v48, %v3156_v59 }
 0x373   : > { %v3169_v50 = vadd.f32 %v3164_v1, %v3155_v13 }
 0x374   : > { %v3178_v48 = vadd.f32 %v3176_v43, %v3170_v32 }
 0x375   : > { %v6531_v20 = vpop.permute.xlu1 %3606  ;;  %v3177_v1 = vadd.f32 %v3175_v22, %v3169_v50 }
 0x376   : > { %v6533_v51 = vpop.permute.xlu0 %3604  ;;  %v3611_v9 = vadd.f32 %v6531_v20, %v3597_v29 }
 0x377   : > { %v3610_v44 = vadd.f32 %v6533_v51, %v3596_v28 }
 0x378   : > { %v3619_v55 = vadd.f32 %v3617_v7, %v3611_v9 }
 0x379   : > { %v3188_v40 = vpop.permute.xlu1 %3187  ;;  %v3618_v27 = vadd.f32 %v3616_v8, %v3610_v44  ;;  %v3721_v8 = vstv %s4267_s16 }
 0x37a   : > { %v3186_v38 = vpop.permute.xlu0 %3185  ;;  %v3192_v60 = vadd.f32 %v3188_v40, %v3178_v48  ;;  %v3653_v40 = vmul.f32 %v6437_v5, %v3651_v19 }
 0x37b   : > { %v3191_v33 = vadd.f32 %v3186_v38, %v3177_v1  ;;  %v3652_v38 = vmul.f32 %v6441_v2, %v3651_v19 }
 0x37d   : > { %v3629_v36 = vpop.permute.xlu1 %3628 }
 0x37e   : > { %v3627_v4 = vpop.permute.xlu0 %3626  ;;  %v3633_v31 = vadd.f32 %v3629_v36, %v3619_v55  ;;  %v3247_v36 = vmul.f32 %v6481_v47, %v3246_v45 }
 0x37f   : > { %v3632_v51 = vadd.f32 %v3627_v4, %v3618_v27 }
 0x381   : > { %v3202_v49 = vpop.permute.xlu1 %3201 }
 0x382   : > { %v3200_v35 = vpop.permute.xlu0 %3199  ;;  %v3206_v30 = vadd.f32 %v3202_v49, %v3192_v60 }
 0x383   : > { %v3205_v20 = vadd.f32 %v3200_v35, %v3191_v33  ;;  %v3687_v35 = vstv %s6568_s14 }
 0x384   : > { %v3214_v25 = vadd.f32 %v3212_v11, %v3206_v30  ;;  %v3688_v42 = vmul.f32 %v6481_v47, %v3687_v35 }
 0x385   : > { %v3643_v0 = vpop.permute.xlu1 %3642  ;;  %v3213_v24 = vadd.f32 %v3211_v37, %v3205_v20 }
 0x386   : > { %v3641_v15 = vpop.permute.xlu0 %3640  ;;  %v3647_v46 = vadd.f32 %v3643_v0, %v3633_v31  ;;  %v3689_v0 = vmul.f32 %v6477_v14, %v3687_v35 }
 0x387   : > { %v3646_v21 = vadd.f32 %v3641_v15, %v3632_v51 }
 0x388   : > { %v3655_v5 = vadd.f32 %v3653_v40, %v3647_v46 }
 0x389   : > { %v3224_v26 = vpop.permute.xlu1 %3223  ;;  %v3654_v18 = vadd.f32 %v3652_v38, %v3646_v21 }
 0x38a   : > { %v3222_v17 = vpop.permute.xlu0 %3221  ;;  %v3228_v52 = vadd.f32 %v3224_v26, %v3214_v25  ;;  %v3280_v26 = vstv %s4210_s15 }
 0x38b   : > { %v3227_v53 = vadd.f32 %v3222_v17, %v3213_v24 }
 0x38d   : > { %v3665_v54 = vpop.permute.xlu1 %3664 }
 0x38e   : > { %v3663_v16 = vpop.permute.xlu0 %3662  ;;  %v3669_v12 = vadd.f32 %v3665_v54, %v3655_v5 }
 0x38f   : > { %v3668_v62 = vadd.f32 %v3663_v16, %v3654_v18 }
 0x391   : > { %v3238_v41 = vpop.permute.xlu1 %3237 }
 0x392   : > { %v3236_v39 = vpop.permute.xlu0 %3235  ;;  %v3242_v2 = vadd.f32 %v3238_v41, %v3228_v52 }
 0x393   : > { %v3241_v6 = vadd.f32 %v3236_v39, %v3227_v53 }
 0x394   : > { %v3250_v13 = vadd.f32 %v3248_v34, %v3242_v2 }
 0x395   : > { %v3679_v57 = vpop.permute.xlu1 %3678  ;;  %v3249_v43 = vadd.f32 %v3247_v36, %v3241_v6 }
 0x396   : > { %v3677_v61 = vpop.permute.xlu0 %3676  ;;  %v3683_v63 = vadd.f32 %v3679_v57, %v3669_v12 }
 0x397   : > { %v3682_v59 = vadd.f32 %v3677_v61, %v3668_v62 }
 0x398   : > { %v3691_v3 = vadd.f32 %v3689_v0, %v3683_v63 }
 0x399   : > { %v3260_v49 = vpop.permute.xlu1 %3259  ;;  %v3690_v32 = vadd.f32 %v3688_v42, %v3682_v59 }
 0x39a   : > { %v3258_v4 = vpop.permute.xlu0 %3257  ;;  %v3264_v22 = vadd.f32 %v3260_v49, %v3250_v13 }
 0x39b   : > { %v3263_v56 = vadd.f32 %v3258_v4, %v3249_v43 }
 0x39d   : > { %v3701_v15 = vpop.permute.xlu1 %3700 }
 0x39e   : > { %v3699_v23 = vpop.permute.xlu0 %3698  ;;  %v3705_v29 = vadd.f32 %v3701_v15, %v3691_v3 }
 0x39f   : > { %v3704_v28 = vadd.f32 %v3699_v23, %v3690_v32 }
 0x3a1   : > { %v3274_v17 = vpop.permute.xlu1 %3273 }
 0x3a2   : > { %v3272_v58 = vpop.permute.xlu0 %3271  ;;  %v3278_v50 = vadd.f32 %v3274_v17, %v3264_v22 }
 0x3a3   : > { %v3277_v14 = vadd.f32 %v3272_v58, %v3263_v56 }
 0x3a4   : > { %v3282_v47 = vadd.f32 %v3280_v26, %v3278_v50 }
 0x3a5   : > { %v3281_v7 = vadd.f32 %v3280_v26, %v3277_v14  ;;  %v3715_v10 = vpop.permute.xlu1 %3714 }
 0x3a6   : > { %v3713_v54 = vpop.permute.xlu0 %3712  ;;  %v3284_v16 = vmax.f32 %v3282_v47, 0.0  ;;  %v3719_v44 = vadd.f32 %v3715_v10, %v3705_v29 }
 0x3a7   : > { %v3283_v9 = vmax.f32 %v3281_v7, 0.0  ;;  %v3718_v48 = vadd.f32 %v3713_v54, %v3704_v28 }
 0x3a8   : > { %4212 = vst.msk [vmem:[%s4968_s17 + $0x68] sm:$0xff] %vm639_vm0, %v3284_v16  ;;  %v3723_v1 = vadd.f32 %v3721_v8, %v3719_v44 }
 0x3a9   : > { %4211 = vst.msk [vmem:[%s4968_s17 + $0x60] sm:$0xff] %vm639_vm0, %v3283_v9  ;;  %v3722_v60 = vadd.f32 %v3721_v8, %v3718_v48 }
 0x3aa   : > { %v3725_v33 = vmax.f32 %v3723_v1, 0.0 }
 0x3ab   : > { %v3724_v11 = vmax.f32 %v3722_v60, 0.0 }
 0x3ac   : > { %4269 = vst.msk [vmem:[%s4968_s17 + $0x78] sm:$0xff] %vm639_vm0, %v3725_v33 }
 0x3ad   : > { %4268 = vst.msk [vmem:[%s4968_s17 + $0x70] sm:$0xff] %vm639_vm0, %v3724_v11 }
 0x3ae PF: > { %s15_s12 = sadd.s32 1, %s4433_s12  }
 0x3af   : > { %p12_p5 = scmp.ge.s32.totalorder %s15_s12, 4  }
 0x3b1   :  { %14 = sbr.rel (!%p12_p5) target bundleno = 2 (0x2), region = 81 }
 0x3b6   :  { %3750 = vsyncpa [#allocation3], 1 }
 0x3b7   :  { %3752 = vsyncpa [#allocation3 + $0x1], 1 }
 0x3b8   :  { %3753 = vsyncpa [#allocation5], 1 }

</bundles_post_ra>
